<compile_context>
chip_gen: v6e
topology: v6e:2x2x1
jax: 0.10.0
libtpu: 0.0.40
codegen_flags: <defaults>
</compile_context>

<pallas_src>
import math

import jax
import jax.numpy as jnp
from jax.experimental import pallas as pl
from jax.experimental.pallas import tpu as pltpu


# ----------------------------------------------------------------------------- helpers

def _round_up(x, m):
    return ((x + m - 1) // m) * m


def _pick_tile(dim, target, quantum):
    """Largest multiple of `quantum` that divides `dim` (a multiple of quantum) and
    does not exceed `target`."""
    best = quantum
    t = quantum
    while t <= min(target, dim):
        if dim % t == 0:
            best = t
        t += quantum
    return best


# ----------------------------------------------------------------------------- kernels

def _mm_bias_kernel(a_ref, w_ref, b_ref, o_ref, acc_ref):
    # a: (tm, tk) bf16, w: (tk, tn) bf16, b: (1, tn) f32 -> o: (tm, tn) f32
    @pl.when(pl.program_id(2) == 0)
    def _():
        acc_ref[...] = jnp.zeros_like(acc_ref)

    acc_ref[...] += jnp.dot(a_ref[...], w_ref[...], preferred_element_type=jnp.float32)

    @pl.when(pl.program_id(2) == pl.num_programs(2) - 1)
    def _():
        o_ref[...] = (acc_ref[...] + b_ref[...]).astype(o_ref.dtype)


def _mm_bias_skip_kernel(a_ref, w_ref, b_ref, s_ref, o_ref, acc_ref):
    # Same as above, with the residual skip fused into the epilogue.
    @pl.when(pl.program_id(2) == 0)
    def _():
        acc_ref[...] = jnp.zeros_like(acc_ref)

    acc_ref[...] += jnp.dot(a_ref[...], w_ref[...], preferred_element_type=jnp.float32)

    @pl.when(pl.program_id(2) == pl.num_programs(2) - 1)
    def _():
        o_ref[...] = (acc_ref[...] + b_ref[...] + s_ref[...]).astype(o_ref.dtype)


def _instnorm_relu_kernel(x_ref, o_ref):
    # x: (1, H*W, C) f32; InstanceNorm2d (affine=False, eps=1e-5, biased var) + ReLU.
    # Single pass: accumulate sum and sum-of-squares, var = E[x^2] - E[x]^2 (clamped >= 0).
    x = x_ref[...]
    inv_hw = 1.0 / x.shape[1]
    s = jnp.sum(x, axis=1, keepdims=True)
    ss = jnp.sum(x * x, axis=1, keepdims=True)
    mean = s * inv_hw
    var = jnp.maximum(ss * inv_hw - mean * mean, 0.0)
    y = (x - mean) * jax.lax.rsqrt(var + 1e-5)
    o_ref[...] = jnp.maximum(y, 0.0)


# ----------------------------------------------------------------------------- wrappers

def _matmul_bias(a, w, b, skip=None, *, tm_target=512, tn_target=256, tk_target=768):
    """Tiled MXU matmul with fused bias (+ optional residual skip) epilogue.

    a: (M, K) bf16, w: (K, N) bf16, b: (N,) f32, skip: optional (M, N) f32.
    Returns (M, N) f32 = a @ w + b (+ skip), accumulated in f32.
    """
    M, K = a.shape
    Kw, N = w.shape
    assert K == Kw

    # Pad to tile-friendly / lane-dense sizes (zeros are exact for matmul).
    Mp = _round_up(M, 8)
    Kp = _round_up(K, 128)
    Np = _round_up(N, 128)

    tm = _pick_tile(Mp, tm_target, 8)
    tk = _pick_tile(Kp, tk_target, 128)
    tn = _pick_tile(Np, tn_target, 128)

    a_p = a if (Mp == M and Kp == K) else jnp.pad(a, ((0, Mp - M), (0, Kp - K)))
    w_p = w if (Kp == K and Np == N) else jnp.pad(w, ((0, Kp - K), (0, Np - N)))
    b_p = b.reshape(1, N).astype(jnp.float32)
    if Np != N:
        b_p = jnp.pad(b_p, ((0, 0), (0, Np - N)))

    in_specs = [
        pl.BlockSpec((tm, tk), lambda i, j, k: (i, k)),
        pl.BlockSpec((tk, tn), lambda i, j, k: (k, j)),
        pl.BlockSpec((1, tn), lambda i, j, k: (0, j)),
    ]
    operands = [a_p, w_p, b_p]
    kernel = _mm_bias_kernel
    skip_block_bytes = 0
    if skip is not None:
        s_p = skip.astype(jnp.float32)
        if Mp != M or Np != N:
            s_p = jnp.pad(s_p, ((0, Mp - M), (0, Np - N)))
        in_specs.append(pl.BlockSpec((tm, tn), lambda i, j, k: (i, j)))
        operands.append(s_p)
        kernel = _mm_bias_skip_kernel
        skip_block_bytes = tm * tn * 4

    grid = (Mp // tm, Np // tn, Kp // tk)

    # Per-step VMEM footprint (bf16 inputs, f32 out + acc), x2 for double buffering,
    # x2 headroom + 2 MiB slack; well under the scoped limit on v5e/v6e/v7x.
    block_bytes = (tm * tk * 2 + tk * tn * 2 + tn * 4 + tm * tn * 4
                   + tm * tn * 4 + skip_block_bytes)
    vmem_limit = int(min(2 * 2 * block_bytes + (2 << 20), 100 << 20))

    cost = pl.CostEstimate(
        flops=2 * Mp * Kp * Np,
        transcendentals=0,
        bytes_accessed=(Mp * Kp * 2 + Kp * Np * 2 * (Mp // tm)
                        + Mp * Np * 4 + (Mp * Np * 4 if skip is not None else 0)),
    )

    out = pl.pallas_call(
        kernel,
        out_shape=jax.ShapeDtypeStruct((Mp, Np), jnp.float32),
        grid_spec=pltpu.PrefetchScalarGridSpec(
            num_scalar_prefetch=0,
            grid=grid,
            in_specs=in_specs,
            out_specs=pl.BlockSpec((tm, tn), lambda i, j, k: (i, j)),
            scratch_shapes=[pltpu.VMEM((tm, tn), jnp.float32)],
        ),
        compiler_params=pltpu.CompilerParams(
            dimension_semantics=("parallel", "parallel", "arbitrary"),
            vmem_limit_bytes=vmem_limit,
        ),
        cost_estimate=cost,
    )(*operands)

    if Mp != M or Np != N:
        out = out[:M, :N]
    return out


def conv2d(x, w, b, stride=1, skip=None):
    """'same'-padded conv. x: (N,H,W,Cin) f32, w: (KH,KW,Cin,Cout) f32, b: (Cout,) f32.
    skip: optional (N,Ho,Wo,Cout) residual added in the matmul epilogue."""
    N, H, W, Cin = x.shape
    KH, KW, _, Cout = w.shape
    ph, pw = KH // 2, KW // 2
    Ho = (H + 2 * ph - KH) // stride + 1
    Wo = (W + 2 * pw - KW) // stride + 1
    xp = jnp.pad(x, ((0, 0), (ph, ph), (pw, pw), (0, 0)))
    # im2col (XLA indexing glue). Ordering (kh, kw, cin) matches w.reshape(KH*KW*Cin, Cout).
    # TODO(synk): fold the (kh, kw) taps into the matmul's K grid axis (shifted-window
    #             index_map / manual DMA) to avoid materializing the KH*KW-amplified
    #             patches tensor in HBM at large spatial sizes.
    cols = []
    for kh in range(KH):
        for kw in range(KW):
            cols.append(xp[:, kh:kh + stride * Ho:stride, kw:kw + stride * Wo:stride, :])
    patches = jnp.concatenate(cols, axis=-1).reshape(N * Ho * Wo, KH * KW * Cin)
    patches = patches.astype(jnp.bfloat16)              # bf16 MXU operands,
    wmat = w.reshape(KH * KW * Cin, Cout).astype(jnp.bfloat16)  # f32 accumulation.
    skip2d = None if skip is None else skip.reshape(N * Ho * Wo, Cout)
    out = _matmul_bias(patches, wmat, b, skip2d)
    return out.reshape(N, Ho, Wo, Cout)


def instnorm_relu(x):
    """Fused InstanceNorm2d(affine=False, eps=1e-5) + ReLU, grid over batch."""
    N, H, W, C = x.shape
    hw = H * W
    xr = x.reshape(N, hw, C)
    block_bytes = hw * C * 4
    vmem_limit = int(min(2 * 2 * block_bytes + (2 << 20), 100 << 20))
    # TODO(synk): for very large H*W*C (v7x 64 MiB VMEM) switch to a two-pass
    #             tiled-spatial stats + normalize implementation.
    out = pl.pallas_call(
        _instnorm_relu_kernel,
        grid=(N,),
        in_specs=[pl.BlockSpec((1, hw, C), lambda n: (n, 0, 0))],
        out_specs=pl.BlockSpec((1, hw, C), lambda n: (n, 0, 0)),
        out_shape=jax.ShapeDtypeStruct((N, hw, C), jnp.float32),
        compiler_params=pltpu.CompilerParams(
            dimension_semantics=("parallel",),
            vmem_limit_bytes=vmem_limit,
        ),
    )(xr)
    return out.reshape(N, H, W, C)


# ----------------------------------------------------------------------------- model

def _conv_init(key, kh, kw, cin, cout):
    k1, k2 = jax.random.split(key)
    scale = 1.0 / math.sqrt(kh * kw * cin)
    w = jax.random.normal(k1, (kh, kw, cin, cout), jnp.float32) * scale
    b = jax.random.normal(k2, (cout,), jnp.float32) * scale
    return w, b


def init_encoder_params(key, out_features=256):
    keys = jax.random.split(key, 6 + 6 * 3)
    p = {}
    # convolution stem
    p["c0"] = _conv_init(keys[0], 3, 3, 3, 64)
    p["c1"] = _conv_init(keys[1], 5, 5, 64, 64)
    p["c2"] = _conv_init(keys[2], 3, 3, 64, 128)     # stride 2
    p["c3"] = _conv_init(keys[3], 3, 3, 128, 128)
    p["c4"] = _conv_init(keys[4], 3, 3, 128, 256)    # stride 2
    p["c5"] = _conv_init(keys[5], 3, 3, 256, 256)
    # residual blocks (in == out == 256 for all six, so fit_features is identity)
    res = []
    for r in range(6):
        cout = out_features if r == 5 else 256
        res.append({
            "w0b0": _conv_init(keys[6 + 3 * r + 0], 3, 3, 256, 256),
            "w1b1": _conv_init(keys[6 + 3 * r + 1], 3, 3, 256, 256),
            "w2b2": _conv_init(keys[6 + 3 * r + 2], 3, 3, 256, cout),
        })
    p["res"] = res
    return p


def residual_block(x, rp):
    # block = IN -> ReLU -> conv3 -> IN -> ReLU -> conv3 -> IN -> ReLU -> conv3
    h = instnorm_relu(x)
    h = conv2d(h, *rp["w0b0"])
    h = instnorm_relu(h)
    h = conv2d(h, *rp["w1b1"])
    h = instnorm_relu(h)
    # fit_features is nn.Sequential() (identity) since in_features == out_features;
    # the skip-add is fused into the final conv's matmul epilogue.
    return conv2d(h, *rp["w2b2"], skip=x)


def encoder_forward(x_nchw, params):
    """x_nchw: (N, 3, H, W) float32 (PyTorch layout). Returns NCHW output."""
    x = jnp.transpose(x_nchw, (0, 2, 3, 1))  # -> NHWC
    # convolution stem
    y = conv2d(x, *params["c0"])
    y = conv2d(y, *params["c1"])
    y = instnorm_relu(y)
    y = conv2d(y, *params["c2"], stride=2)
    y = conv2d(y, *params["c3"])
    y = instnorm_relu(y)
    y = conv2d(y, *params["c4"], stride=2)
    y = conv2d(y, *params["c5"])
    # dropout2d(0.1): eval-mode identity
    # residual stack
    for r in range(6):
        y = residual_block(y, params["res"][r])
    y = instnorm_relu(y)
    return jnp.transpose(y, (0, 3, 1, 2))  # back to NCHW


# ----------------------------------------------------------------------------- main

if __name__ == "__main__":
    key = jax.random.PRNGKey(0)
    kp, kx = jax.random.split(key)
    params = init_encoder_params(kp, out_features=256)
    # small deterministic input, NCHW like PyTorch: (batch=2, channels=3, 16x16)
    x = jax.random.normal(kx, (2, 3, 16, 16), jnp.float32)

    fwd = jax.jit(lambda xx: encoder_forward(xx, params))
    out = fwd(x)
    jax.block_until_ready(out)

    assert out.shape == (2, 256, 4, 4), out.shape
    assert out.dtype == jnp.float32
    print("KERNEL_OK")
</pallas_src>

<mosaic_0001>
module attributes {stable_mosaic.version = 11 : i64} {
  func.func @_mm_bias_kernel(%arg0: i32, %arg1: i32, %arg2: i32, %arg3: memref<512x128xbf16, #tpu.memory_space<vmem>>, %arg4: memref<128x128xbf16, #tpu.memory_space<vmem>>, %arg5: memref<1x128xf32, #tpu.memory_space<vmem>>, %arg6: memref<512x128xf32, #tpu.memory_space<vmem>>, %arg7: memref<512x128xf32, #tpu.memory_space<vmem>>) attributes {dimension_semantics = [#tpu.dimension_semantics<parallel>, #tpu.dimension_semantics<parallel>, #tpu.dimension_semantics<arbitrary>], iteration_bounds = array<i64: 1, 1, 1>, scalar_prefetch = 0 : i64, scratch_operands = 1 : i64, tpu.core_type = #tpu.core_type<tc>, window_params = [{transform_indices = @transform_0, window_bounds = array<i64: 512, 128>}, {transform_indices = @transform_1, window_bounds = array<i64: 128, 128>}, {transform_indices = @transform_2, window_bounds = array<i64: 1, 128>}, {transform_indices = @transform_3, window_bounds = array<i64: 512, 128>}]} {
    %c0_i32 = arith.constant 0 : i32
    %0 = arith.cmpi eq, %arg2, %c0_i32 : i32
    %1 = arith.extui %0 : i1 to i32
    %c0_i32_0 = arith.constant 0 : i32
    %2 = arith.cmpi ne, %1, %c0_i32_0 : i32
    scf.if %2 {
      %cst_10 = arith.constant 0.000000e+00 : f32
      %12 = vector.broadcast %cst_10 : f32 to vector<512x128xf32>
      %c0_11 = arith.constant 0 : index
      %c0_12 = arith.constant 0 : index
      %13 = vector.load %arg7[%c0_11, %c0_12] : memref<512x128xf32, #tpu.memory_space<vmem>>, vector<512x128xf32>
      tpu.vector_store %arg7[%c0_11, %c0_12], %12 {strides = array<i32>} : memref<512x128xf32, #tpu.memory_space<vmem>>, vector<512x128xf32>,
    } else {
    }
    %c0 = arith.constant 0 : index
    %c0_1 = arith.constant 0 : index
    %3 = vector.load %arg7[%c0, %c0_1] : memref<512x128xf32, #tpu.memory_space<vmem>>, vector<512x128xf32>
    %c0_2 = arith.constant 0 : index
    %c0_3 = arith.constant 0 : index
    %4 = vector.load %arg3[%c0_2, %c0_3] : memref<512x128xbf16, #tpu.memory_space<vmem>>, vector<512x128xbf16>
    %c0_4 = arith.constant 0 : index
    %c0_5 = arith.constant 0 : index
    %5 = vector.load %arg4[%c0_4, %c0_5] : memref<128x128xbf16, #tpu.memory_space<vmem>>, vector<128x128xbf16>
    %cst = arith.constant dense<0.000000e+00> : vector<512x128xf32>
    %6 = tpu.matmul %4, %5, %cst {dimension_numbers = #tpu.dot_dimension_numbers<[1], [0], [0], [1], [0, 0, 1, 1], [], []>} : vector<512x128xbf16>, vector<128x128xbf16>, vector<512x128xf32> -> vector<512x128xf32>
    %7 = arith.addf %3, %6 : vector<512x128xf32>
    %c0_6 = arith.constant 0 : index
    %c0_7 = arith.constant 0 : index
    %8 = vector.load %arg7[%c0_6, %c0_7] : memref<512x128xf32, #tpu.memory_space<vmem>>, vector<512x128xf32>
    tpu.vector_store %arg7[%c0_6, %c0_7], %7 {strides = array<i32>} : memref<512x128xf32, #tpu.memory_space<vmem>>, vector<512x128xf32>,
    %c0_i32_8 = arith.constant 0 : i32
    %9 = arith.cmpi eq, %arg2, %c0_i32_8 : i32
    %10 = arith.extui %9 : i1 to i32
    %c0_i32_9 = arith.constant 0 : i32
    %11 = arith.cmpi ne, %10, %c0_i32_9 : i32
    scf.if %11 {
      %c0_10 = arith.constant 0 : index
      %c0_11 = arith.constant 0 : index
      %12 = vector.load %arg7[%c0_10, %c0_11] : memref<512x128xf32, #tpu.memory_space<vmem>>, vector<512x128xf32>
      %c0_12 = arith.constant 0 : index
      %c0_13 = arith.constant 0 : index
      %13 = vector.load %arg5[%c0_12, %c0_13] : memref<1x128xf32, #tpu.memory_space<vmem>>, vector<1x128xf32>
      %14 = vector.broadcast %13 : vector<1x128xf32> to vector<512x128xf32>
      %15 = arith.addf %12, %14 : vector<512x128xf32>
      %c0_14 = arith.constant 0 : index
      %c0_15 = arith.constant 0 : index
      %16 = vector.load %arg6[%c0_14, %c0_15] : memref<512x128xf32, #tpu.memory_space<vmem>>, vector<512x128xf32>
      tpu.vector_store %arg6[%c0_14, %c0_15], %15 {strides = array<i32>} : memref<512x128xf32, #tpu.memory_space<vmem>>, vector<512x128xf32>,
    } else {
    }
    return
  }
  func.func @transform_0(%arg0: i32, %arg1: i32, %arg2: i32) -> (i32, i32) {
    %c0_i32 = arith.constant 0 : i32
    return %arg0, %arg2 : i32, i32
  }
  func.func @transform_1(%arg0: i32, %arg1: i32, %arg2: i32) -> (i32, i32) {
    %c0_i32 = arith.constant 0 : i32
    return %arg2, %arg1 : i32, i32
  }
  func.func @transform_2(%arg0: i32, %arg1: i32, %arg2: i32) -> (i32, i32) {
    %c0_i32 = arith.constant 0 : i32
    %c0_i32_0 = arith.constant 0 : i32
    return %c0_i32, %arg1 : i32, i32
  }
  func.func @transform_3(%arg0: i32, %arg1: i32, %arg2: i32) -> (i32, i32) {
    %c0_i32 = arith.constant 0 : i32
    return %arg0, %arg1 : i32, i32
  }
}

module attributes {stable_mosaic.version = 11 : i64} {
  func.func @_mm_bias_kernel(%arg0: i32, %arg1: i32, %arg2: i32, %arg3: memref<512x128xbf16, #tpu.memory_space<vmem>>, %arg4: memref<128x128xbf16, #tpu.memory_space<vmem>>, %arg5: memref<1x128xf32, #tpu.memory_space<vmem>>, %arg6: memref<512x128xf32, #tpu.memory_space<vmem>>, %arg7: memref<512x128xf32, #tpu.memory_space<vmem>>) attributes {dimension_semantics = [#tpu.dimension_semantics<parallel>, #tpu.dimension_semantics<parallel>, #tpu.dimension_semantics<arbitrary>], iteration_bounds = array<i64: 1, 1, 13>, scalar_prefetch = 0 : i64, scratch_operands = 1 : i64, tpu.core_type = #tpu.core_type<tc>, window_params = [{transform_indices = @transform_0, window_bounds = array<i64: 512, 128>}, {transform_indices = @transform_1, window_bounds = array<i64: 128, 128>}, {transform_indices = @transform_2, window_bounds = array<i64: 1, 128>}, {transform_indices = @transform_3, window_bounds = array<i64: 512, 128>}]} {
    %c0_i32 = arith.constant 0 : i32
    %0 = arith.cmpi eq, %arg2, %c0_i32 : i32
    %1 = arith.extui %0 : i1 to i32
    %c0_i32_0 = arith.constant 0 : i32
    %2 = arith.cmpi ne, %1, %c0_i32_0 : i32
    scf.if %2 {
      %cst_9 = arith.constant 0.000000e+00 : f32
      %12 = vector.broadcast %cst_9 : f32 to vector<512x128xf32>
      %c0_10 = arith.constant 0 : index
      %c0_11 = arith.constant 0 : index
      %13 = vector.load %arg7[%c0_10, %c0_11] : memref<512x128xf32, #tpu.memory_space<vmem>>, vector<512x128xf32>
      tpu.vector_store %arg7[%c0_10, %c0_11], %12 {strides = array<i32>} : memref<512x128xf32, #tpu.memory_space<vmem>>, vector<512x128xf32>,
    } else {
    }
    %c0 = arith.constant 0 : index
    %c0_1 = arith.constant 0 : index
    %3 = vector.load %arg7[%c0, %c0_1] : memref<512x128xf32, #tpu.memory_space<vmem>>, vector<512x128xf32>
    %c0_2 = arith.constant 0 : index
    %c0_3 = arith.constant 0 : index
    %4 = vector.load %arg3[%c0_2, %c0_3] : memref<512x128xbf16, #tpu.memory_space<vmem>>, vector<512x128xbf16>
    %c0_4 = arith.constant 0 : index
    %c0_5 = arith.constant 0 : index
    %5 = vector.load %arg4[%c0_4, %c0_5] : memref<128x128xbf16, #tpu.memory_space<vmem>>, vector<128x128xbf16>
    %cst = arith.constant dense<0.000000e+00> : vector<512x128xf32>
    %6 = tpu.matmul %4, %5, %cst {dimension_numbers = #tpu.dot_dimension_numbers<[1], [0], [0], [1], [0, 0, 1, 1], [], []>} : vector<512x128xbf16>, vector<128x128xbf16>, vector<512x128xf32> -> vector<512x128xf32>
    %7 = arith.addf %3, %6 : vector<512x128xf32>
    %c0_6 = arith.constant 0 : index
    %c0_7 = arith.constant 0 : index
    %8 = vector.load %arg7[%c0_6, %c0_7] : memref<512x128xf32, #tpu.memory_space<vmem>>, vector<512x128xf32>
    tpu.vector_store %arg7[%c0_6, %c0_7], %7 {strides = array<i32>} : memref<512x128xf32, #tpu.memory_space<vmem>>, vector<512x128xf32>,
    %c12_i32 = arith.constant 12 : i32
    %9 = arith.cmpi eq, %arg2, %c12_i32 : i32
    %10 = arith.extui %9 : i1 to i32
    %c0_i32_8 = arith.constant 0 : i32
    %11 = arith.cmpi ne, %10, %c0_i32_8 : i32
    scf.if %11 {
      %c0_9 = arith.constant 0 : index
      %c0_10 = arith.constant 0 : index
      %12 = vector.load %arg7[%c0_9, %c0_10] : memref<512x128xf32, #tpu.memory_space<vmem>>, vector<512x128xf32>
      %c0_11 = arith.constant 0 : index
      %c0_12 = arith.constant 0 : index
      %13 = vector.load %arg5[%c0_11, %c0_12] : memref<1x128xf32, #tpu.memory_space<vmem>>, vector<1x128xf32>
      %14 = vector.broadcast %13 : vector<1x128xf32> to vector<512x128xf32>
      %15 = arith.addf %12, %14 : vector<512x128xf32>
      %c0_13 = arith.constant 0 : index
      %c0_14 = arith.constant 0 : index
      %16 = vector.load %arg6[%c0_13, %c0_14] : memref<512x128xf32, #tpu.memory_space<vmem>>, vector<512x128xf32>
      tpu.vector_store %arg6[%c0_13, %c0_14], %15 {strides = array<i32>} : memref<512x128xf32, #tpu.memory_space<vmem>>, vector<512x128xf32>,
    } else {
    }
    return
  }
  func.func @transform_0(%arg0: i32, %arg1: i32, %arg2: i32) -> (i32, i32) {
    %c0_i32 = arith.constant 0 : i32
    return %arg0, %arg2 : i32, i32
  }
  func.func @transform_1(%arg0: i32, %arg1: i32, %arg2: i32) -> (i32, i32) {
    %c0_i32 = arith.constant 0 : i32
    return %arg2, %arg1 : i32, i32
  }
  func.func @transform_2(%arg0: i32, %arg1: i32, %arg2: i32) -> (i32, i32) {
    %c0_i32 = arith.constant 0 : i32
    %c0_i32_0 = arith.constant 0 : i32
    return %c0_i32, %arg1 : i32, i32
  }
  func.func @transform_3(%arg0: i32, %arg1: i32, %arg2: i32) -> (i32, i32) {
    %c0_i32 = arith.constant 0 : i32
    return %arg0, %arg1 : i32, i32
  }
}

module attributes {stable_mosaic.version = 11 : i64} {
  func.func @_instnorm_relu_kernel(%arg0: i32, %arg1: memref<1x256x64xf32, #tpu.memory_space<vmem>>, %arg2: memref<1x256x64xf32, #tpu.memory_space<vmem>>) attributes {dimension_semantics = [#tpu.dimension_semantics<parallel>], iteration_bounds = array<i64: 2>, scalar_prefetch = 0 : i64, scratch_operands = 0 : i64, tpu.core_type = #tpu.core_type<tc>, window_params = [{transform_indices = @transform_0, window_bounds = array<i64: 1, 256, 64>}, {transform_indices = @transform_1, window_bounds = array<i64: 1, 256, 64>}]} {
    %c0 = arith.constant 0 : index
    %c0_0 = arith.constant 0 : index
    %c0_1 = arith.constant 0 : index
    %0 = vector.load %arg1[%c0, %c0_0, %c0_1] : memref<1x256x64xf32, #tpu.memory_space<vmem>>, vector<1x256x64xf32>
    %cst = arith.constant dense<0.000000e+00> : vector<1x64xf32>
    %1 = vector.multi_reduction <add>, %0, %cst [1] : vector<1x256x64xf32> to vector<1x64xf32>
    %2 = vector.shape_cast %1 : vector<1x64xf32> to vector<1x1x64xf32>
    %3 = arith.mulf %0, %0 : vector<1x256x64xf32>
    %cst_2 = arith.constant dense<0.000000e+00> : vector<1x64xf32>
    %4 = vector.multi_reduction <add>, %3, %cst_2 [1] : vector<1x256x64xf32> to vector<1x64xf32>
    %5 = vector.shape_cast %4 : vector<1x64xf32> to vector<1x1x64xf32>
    %cst_3 = arith.constant 3.906250e-03 : f32
    %6 = vector.broadcast %cst_3 : f32 to vector<1x1x64xf32>
    %7 = arith.mulf %2, %6 : vector<1x1x64xf32>
    %cst_4 = arith.constant 3.906250e-03 : f32
    %8 = vector.broadcast %cst_4 : f32 to vector<1x1x64xf32>
    %9 = arith.mulf %5, %8 : vector<1x1x64xf32>
    %10 = arith.mulf %7, %7 : vector<1x1x64xf32>
    %11 = arith.subf %9, %10 : vector<1x1x64xf32>
    %cst_5 = arith.constant 0.000000e+00 : f32
    %12 = vector.broadcast %cst_5 : f32 to vector<1x1x64xf32>
    %13 = arith.maximumf %11, %12 : vector<1x1x64xf32>
    %14 = vector.broadcast %7 : vector<1x1x64xf32> to vector<1x256x64xf32>
    %15 = arith.subf %0, %14 : vector<1x256x64xf32>
    %cst_6 = arith.constant 9.99999974E-6 : f32
    %16 = vector.broadcast %cst_6 : f32 to vector<1x1x64xf32>
    %17 = arith.addf %13, %16 : vector<1x1x64xf32>
    %18 = math.rsqrt %17 : vector<1x1x64xf32>
    %19 = vector.broadcast %18 : vector<1x1x64xf32> to vector<1x256x64xf32>
    %20 = arith.mulf %15, %19 : vector<1x256x64xf32>
    %cst_7 = arith.constant 0.000000e+00 : f32
    %21 = vector.broadcast %cst_7 : f32 to vector<1x256x64xf32>
    %22 = arith.maximumf %20, %21 : vector<1x256x64xf32>
    %c0_8 = arith.constant 0 : index
    %c0_9 = arith.constant 0 : index
    %c0_10 = arith.constant 0 : index
    %23 = vector.load %arg2[%c0_8, %c0_9, %c0_10] : memref<1x256x64xf32, #tpu.memory_space<vmem>>, vector<1x256x64xf32>
    tpu.vector_store %arg2[%c0_8, %c0_9, %c0_10], %22 {strides = array<i32>} : memref<1x256x64xf32, #tpu.memory_space<vmem>>, vector<1x256x64xf32>,
    return
  }
  func.func @transform_0(%arg0: i32) -> (i32, i32, i32) {
    %c0_i32 = arith.constant 0 : i32
    %c0_i32_0 = arith.constant 0 : i32
    %c0_i32_1 = arith.constant 0 : i32
    return %arg0, %c0_i32, %c0_i32_0 : i32, i32, i32
  }
  func.func @transform_1(%arg0: i32) -> (i32, i32, i32) {
    %c0_i32 = arith.constant 0 : i32
    %c0_i32_0 = arith.constant 0 : i32
    %c0_i32_1 = arith.constant 0 : i32
    return %arg0, %c0_i32, %c0_i32_0 : i32, i32, i32
  }
}

module attributes {stable_mosaic.version = 11 : i64} {
  func.func @_mm_bias_kernel(%arg0: i32, %arg1: i32, %arg2: i32, %arg3: memref<128x640xbf16, #tpu.memory_space<vmem>>, %arg4: memref<640x128xbf16, #tpu.memory_space<vmem>>, %arg5: memref<1x128xf32, #tpu.memory_space<vmem>>, %arg6: memref<128x128xf32, #tpu.memory_space<vmem>>, %arg7: memref<128x128xf32, #tpu.memory_space<vmem>>) attributes {dimension_semantics = [#tpu.dimension_semantics<parallel>, #tpu.dimension_semantics<parallel>, #tpu.dimension_semantics<arbitrary>], iteration_bounds = array<i64: 1, 1, 1>, scalar_prefetch = 0 : i64, scratch_operands = 1 : i64, tpu.core_type = #tpu.core_type<tc>, window_params = [{transform_indices = @transform_0, window_bounds = array<i64: 128, 640>}, {transform_indices = @transform_1, window_bounds = array<i64: 640, 128>}, {transform_indices = @transform_2, window_bounds = array<i64: 1, 128>}, {transform_indices = @transform_3, window_bounds = array<i64: 128, 128>}]} {
    %c0_i32 = arith.constant 0 : i32
    %0 = arith.cmpi eq, %arg2, %c0_i32 : i32
    %1 = arith.extui %0 : i1 to i32
    %c0_i32_0 = arith.constant 0 : i32
    %2 = arith.cmpi ne, %1, %c0_i32_0 : i32
    scf.if %2 {
      %cst_10 = arith.constant 0.000000e+00 : f32
      %12 = vector.broadcast %cst_10 : f32 to vector<128x128xf32>
      %c0_11 = arith.constant 0 : index
      %c0_12 = arith.constant 0 : index
      %13 = vector.load %arg7[%c0_11, %c0_12] : memref<128x128xf32, #tpu.memory_space<vmem>>, vector<128x128xf32>
      tpu.vector_store %arg7[%c0_11, %c0_12], %12 {strides = array<i32>} : memref<128x128xf32, #tpu.memory_space<vmem>>, vector<128x128xf32>,
    } else {
    }
    %c0 = arith.constant 0 : index
    %c0_1 = arith.constant 0 : index
    %3 = vector.load %arg7[%c0, %c0_1] : memref<128x128xf32, #tpu.memory_space<vmem>>, vector<128x128xf32>
    %c0_2 = arith.constant 0 : index
    %c0_3 = arith.constant 0 : index
    %4 = vector.load %arg3[%c0_2, %c0_3] : memref<128x640xbf16, #tpu.memory_space<vmem>>, vector<128x640xbf16>
    %c0_4 = arith.constant 0 : index
    %c0_5 = arith.constant 0 : index
    %5 = vector.load %arg4[%c0_4, %c0_5] : memref<640x128xbf16, #tpu.memory_space<vmem>>, vector<640x128xbf16>
    %cst = arith.constant dense<0.000000e+00> : vector<128x128xf32>
    %6 = tpu.matmul %4, %5, %cst {dimension_numbers = #tpu.dot_dimension_numbers<[1], [0], [0], [1], [0, 0, 1, 1], [], []>} : vector<128x640xbf16>, vector<640x128xbf16>, vector<128x128xf32> -> vector<128x128xf32>
    %7 = arith.addf %3, %6 : vector<128x128xf32>
    %c0_6 = arith.constant 0 : index
    %c0_7 = arith.constant 0 : index
    %8 = vector.load %arg7[%c0_6, %c0_7] : memref<128x128xf32, #tpu.memory_space<vmem>>, vector<128x128xf32>
    tpu.vector_store %arg7[%c0_6, %c0_7], %7 {strides = array<i32>} : memref<128x128xf32, #tpu.memory_space<vmem>>, vector<128x128xf32>,
    %c0_i32_8 = arith.constant 0 : i32
    %9 = arith.cmpi eq, %arg2, %c0_i32_8 : i32
    %10 = arith.extui %9 : i1 to i32
    %c0_i32_9 = arith.constant 0 : i32
    %11 = arith.cmpi ne, %10, %c0_i32_9 : i32
    scf.if %11 {
      %c0_10 = arith.constant 0 : index
      %c0_11 = arith.constant 0 : index
      %12 = vector.load %arg7[%c0_10, %c0_11] : memref<128x128xf32, #tpu.memory_space<vmem>>, vector<128x128xf32>
      %c0_12 = arith.constant 0 : index
      %c0_13 = arith.constant 0 : index
      %13 = vector.load %arg5[%c0_12, %c0_13] : memref<1x128xf32, #tpu.memory_space<vmem>>, vector<1x128xf32>
      %14 = vector.broadcast %13 : vector<1x128xf32> to vector<128x128xf32>
      %15 = arith.addf %12, %14 : vector<128x128xf32>
      %c0_14 = arith.constant 0 : index
      %c0_15 = arith.constant 0 : index
      %16 = vector.load %arg6[%c0_14, %c0_15] : memref<128x128xf32, #tpu.memory_space<vmem>>, vector<128x128xf32>
      tpu.vector_store %arg6[%c0_14, %c0_15], %15 {strides = array<i32>} : memref<128x128xf32, #tpu.memory_space<vmem>>, vector<128x128xf32>,
    } else {
    }
    return
  }
  func.func @transform_0(%arg0: i32, %arg1: i32, %arg2: i32) -> (i32, i32) {
    %c0_i32 = arith.constant 0 : i32
    return %arg0, %arg2 : i32, i32
  }
  func.func @transform_1(%arg0: i32, %arg1: i32, %arg2: i32) -> (i32, i32) {
    %c0_i32 = arith.constant 0 : i32
    return %arg2, %arg1 : i32, i32
  }
  func.func @transform_2(%arg0: i32, %arg1: i32, %arg2: i32) -> (i32, i32) {
    %c0_i32 = arith.constant 0 : i32
    %c0_i32_0 = arith.constant 0 : i32
    return %c0_i32, %arg1 : i32, i32
  }
  func.func @transform_3(%arg0: i32, %arg1: i32, %arg2: i32) -> (i32, i32) {
    %c0_i32 = arith.constant 0 : i32
    return %arg0, %arg1 : i32, i32
  }
}

module attributes {stable_mosaic.version = 11 : i64} {
  func.func @_mm_bias_kernel(%arg0: i32, %arg1: i32, %arg2: i32, %arg3: memref<128x384xbf16, #tpu.memory_space<vmem>>, %arg4: memref<384x128xbf16, #tpu.memory_space<vmem>>, %arg5: memref<1x128xf32, #tpu.memory_space<vmem>>, %arg6: memref<128x128xf32, #tpu.memory_space<vmem>>, %arg7: memref<128x128xf32, #tpu.memory_space<vmem>>) attributes {dimension_semantics = [#tpu.dimension_semantics<parallel>, #tpu.dimension_semantics<parallel>, #tpu.dimension_semantics<arbitrary>], iteration_bounds = array<i64: 1, 1, 3>, scalar_prefetch = 0 : i64, scratch_operands = 1 : i64, tpu.core_type = #tpu.core_type<tc>, window_params = [{transform_indices = @transform_0, window_bounds = array<i64: 128, 384>}, {transform_indices = @transform_1, window_bounds = array<i64: 384, 128>}, {transform_indices = @transform_2, window_bounds = array<i64: 1, 128>}, {transform_indices = @transform_3, window_bounds = array<i64: 128, 128>}]} {
    %c0_i32 = arith.constant 0 : i32
    %0 = arith.cmpi eq, %arg2, %c0_i32 : i32
    %1 = arith.extui %0 : i1 to i32
    %c0_i32_0 = arith.constant 0 : i32
    %2 = arith.cmpi ne, %1, %c0_i32_0 : i32
    scf.if %2 {
      %cst_9 = arith.constant 0.000000e+00 : f32
      %12 = vector.broadcast %cst_9 : f32 to vector<128x128xf32>
      %c0_10 = arith.constant 0 : index
      %c0_11 = arith.constant 0 : index
      %13 = vector.load %arg7[%c0_10, %c0_11] : memref<128x128xf32, #tpu.memory_space<vmem>>, vector<128x128xf32>
      tpu.vector_store %arg7[%c0_10, %c0_11], %12 {strides = array<i32>} : memref<128x128xf32, #tpu.memory_space<vmem>>, vector<128x128xf32>,
    } else {
    }
    %c0 = arith.constant 0 : index
    %c0_1 = arith.constant 0 : index
    %3 = vector.load %arg7[%c0, %c0_1] : memref<128x128xf32, #tpu.memory_space<vmem>>, vector<128x128xf32>
    %c0_2 = arith.constant 0 : index
    %c0_3 = arith.constant 0 : index
    %4 = vector.load %arg3[%c0_2, %c0_3] : memref<128x384xbf16, #tpu.memory_space<vmem>>, vector<128x384xbf16>
    %c0_4 = arith.constant 0 : index
    %c0_5 = arith.constant 0 : index
    %5 = vector.load %arg4[%c0_4, %c0_5] : memref<384x128xbf16, #tpu.memory_space<vmem>>, vector<384x128xbf16>
    %cst = arith.constant dense<0.000000e+00> : vector<128x128xf32>
    %6 = tpu.matmul %4, %5, %cst {dimension_numbers = #tpu.dot_dimension_numbers<[1], [0], [0], [1], [0, 0, 1, 1], [], []>} : vector<128x384xbf16>, vector<384x128xbf16>, vector<128x128xf32> -> vector<128x128xf32>
    %7 = arith.addf %3, %6 : vector<128x128xf32>
    %c0_6 = arith.constant 0 : index
    %c0_7 = arith.constant 0 : index
    %8 = vector.load %arg7[%c0_6, %c0_7] : memref<128x128xf32, #tpu.memory_space<vmem>>, vector<128x128xf32>
    tpu.vector_store %arg7[%c0_6, %c0_7], %7 {strides = array<i32>} : memref<128x128xf32, #tpu.memory_space<vmem>>, vector<128x128xf32>,
    %c2_i32 = arith.constant 2 : i32
    %9 = arith.cmpi eq, %arg2, %c2_i32 : i32
    %10 = arith.extui %9 : i1 to i32
    %c0_i32_8 = arith.constant 0 : i32
    %11 = arith.cmpi ne, %10, %c0_i32_8 : i32
    scf.if %11 {
      %c0_9 = arith.constant 0 : index
      %c0_10 = arith.constant 0 : index
      %12 = vector.load %arg7[%c0_9, %c0_10] : memref<128x128xf32, #tpu.memory_space<vmem>>, vector<128x128xf32>
      %c0_11 = arith.constant 0 : index
      %c0_12 = arith.constant 0 : index
      %13 = vector.load %arg5[%c0_11, %c0_12] : memref<1x128xf32, #tpu.memory_space<vmem>>, vector<1x128xf32>
      %14 = vector.broadcast %13 : vector<1x128xf32> to vector<128x128xf32>
      %15 = arith.addf %12, %14 : vector<128x128xf32>
      %c0_13 = arith.constant 0 : index
      %c0_14 = arith.constant 0 : index
      %16 = vector.load %arg6[%c0_13, %c0_14] : memref<128x128xf32, #tpu.memory_space<vmem>>, vector<128x128xf32>
      tpu.vector_store %arg6[%c0_13, %c0_14], %15 {strides = array<i32>} : memref<128x128xf32, #tpu.memory_space<vmem>>, vector<128x128xf32>,
    } else {
    }
    return
  }
  func.func @transform_0(%arg0: i32, %arg1: i32, %arg2: i32) -> (i32, i32) {
    %c0_i32 = arith.constant 0 : i32
    return %arg0, %arg2 : i32, i32
  }
  func.func @transform_1(%arg0: i32, %arg1: i32, %arg2: i32) -> (i32, i32) {
    %c0_i32 = arith.constant 0 : i32
    return %arg2, %arg1 : i32, i32
  }
  func.func @transform_2(%arg0: i32, %arg1: i32, %arg2: i32) -> (i32, i32) {
    %c0_i32 = arith.constant 0 : i32
    %c0_i32_0 = arith.constant 0 : i32
    return %c0_i32, %arg1 : i32, i32
  }
  func.func @transform_3(%arg0: i32, %arg1: i32, %arg2: i32) -> (i32, i32) {
    %c0_i32 = arith.constant 0 : i32
    return %arg0, %arg1 : i32, i32
  }
}

module attributes {stable_mosaic.version = 11 : i64} {
  func.func @_instnorm_relu_kernel(%arg0: i32, %arg1: memref<1x64x128xf32, #tpu.memory_space<vmem>>, %arg2: memref<1x64x128xf32, #tpu.memory_space<vmem>>) attributes {dimension_semantics = [#tpu.dimension_semantics<parallel>], iteration_bounds = array<i64: 2>, scalar_prefetch = 0 : i64, scratch_operands = 0 : i64, tpu.core_type = #tpu.core_type<tc>, window_params = [{transform_indices = @transform_0, window_bounds = array<i64: 1, 64, 128>}, {transform_indices = @transform_1, window_bounds = array<i64: 1, 64, 128>}]} {
    %c0 = arith.constant 0 : index
    %c0_0 = arith.constant 0 : index
    %c0_1 = arith.constant 0 : index
    %0 = vector.load %arg1[%c0, %c0_0, %c0_1] : memref<1x64x128xf32, #tpu.memory_space<vmem>>, vector<1x64x128xf32>
    %cst = arith.constant dense<0.000000e+00> : vector<1x128xf32>
    %1 = vector.multi_reduction <add>, %0, %cst [1] : vector<1x64x128xf32> to vector<1x128xf32>
    %2 = vector.shape_cast %1 : vector<1x128xf32> to vector<1x1x128xf32>
    %3 = arith.mulf %0, %0 : vector<1x64x128xf32>
    %cst_2 = arith.constant dense<0.000000e+00> : vector<1x128xf32>
    %4 = vector.multi_reduction <add>, %3, %cst_2 [1] : vector<1x64x128xf32> to vector<1x128xf32>
    %5 = vector.shape_cast %4 : vector<1x128xf32> to vector<1x1x128xf32>
    %cst_3 = arith.constant 1.562500e-02 : f32
    %6 = vector.broadcast %cst_3 : f32 to vector<1x1x128xf32>
    %7 = arith.mulf %2, %6 : vector<1x1x128xf32>
    %cst_4 = arith.constant 1.562500e-02 : f32
    %8 = vector.broadcast %cst_4 : f32 to vector<1x1x128xf32>
    %9 = arith.mulf %5, %8 : vector<1x1x128xf32>
    %10 = arith.mulf %7, %7 : vector<1x1x128xf32>
    %11 = arith.subf %9, %10 : vector<1x1x128xf32>
    %cst_5 = arith.constant 0.000000e+00 : f32
    %12 = vector.broadcast %cst_5 : f32 to vector<1x1x128xf32>
    %13 = arith.maximumf %11, %12 : vector<1x1x128xf32>
    %14 = vector.broadcast %7 : vector<1x1x128xf32> to vector<1x64x128xf32>
    %15 = arith.subf %0, %14 : vector<1x64x128xf32>
    %cst_6 = arith.constant 9.99999974E-6 : f32
    %16 = vector.broadcast %cst_6 : f32 to vector<1x1x128xf32>
    %17 = arith.addf %13, %16 : vector<1x1x128xf32>
    %18 = math.rsqrt %17 : vector<1x1x128xf32>
    %19 = vector.broadcast %18 : vector<1x1x128xf32> to vector<1x64x128xf32>
    %20 = arith.mulf %15, %19 : vector<1x64x128xf32>
    %cst_7 = arith.constant 0.000000e+00 : f32
    %21 = vector.broadcast %cst_7 : f32 to vector<1x64x128xf32>
    %22 = arith.maximumf %20, %21 : vector<1x64x128xf32>
    %c0_8 = arith.constant 0 : index
    %c0_9 = arith.constant 0 : index
    %c0_10 = arith.constant 0 : index
    %23 = vector.load %arg2[%c0_8, %c0_9, %c0_10] : memref<1x64x128xf32, #tpu.memory_space<vmem>>, vector<1x64x128xf32>
    tpu.vector_store %arg2[%c0_8, %c0_9, %c0_10], %22 {strides = array<i32>} : memref<1x64x128xf32, #tpu.memory_space<vmem>>, vector<1x64x128xf32>,
    return
  }
  func.func @transform_0(%arg0: i32) -> (i32, i32, i32) {
    %c0_i32 = arith.constant 0 : i32
    %c0_i32_0 = arith.constant 0 : i32
    %c0_i32_1 = arith.constant 0 : i32
    return %arg0, %c0_i32, %c0_i32_0 : i32, i32, i32
  }
  func.func @transform_1(%arg0: i32) -> (i32, i32, i32) {
    %c0_i32 = arith.constant 0 : i32
    %c0_i32_0 = arith.constant 0 : i32
    %c0_i32_1 = arith.constant 0 : i32
    return %arg0, %c0_i32, %c0_i32_0 : i32, i32, i32
  }
}

module attributes {stable_mosaic.version = 11 : i64} {
  func.func @_mm_bias_kernel(%arg0: i32, %arg1: i32, %arg2: i32, %arg3: memref<32x384xbf16, #tpu.memory_space<vmem>>, %arg4: memref<384x256xbf16, #tpu.memory_space<vmem>>, %arg5: memref<1x256xf32, #tpu.memory_space<vmem>>, %arg6: memref<32x256xf32, #tpu.memory_space<vmem>>, %arg7: memref<32x256xf32, #tpu.memory_space<vmem>>) attributes {dimension_semantics = [#tpu.dimension_semantics<parallel>, #tpu.dimension_semantics<parallel>, #tpu.dimension_semantics<arbitrary>], iteration_bounds = array<i64: 1, 1, 3>, scalar_prefetch = 0 : i64, scratch_operands = 1 : i64, tpu.core_type = #tpu.core_type<tc>, window_params = [{transform_indices = @transform_0, window_bounds = array<i64: 32, 384>}, {transform_indices = @transform_1, window_bounds = array<i64: 384, 256>}, {transform_indices = @transform_2, window_bounds = array<i64: 1, 256>}, {transform_indices = @transform_3, window_bounds = array<i64: 32, 256>}]} {
    %c0_i32 = arith.constant 0 : i32
    %0 = arith.cmpi eq, %arg2, %c0_i32 : i32
    %1 = arith.extui %0 : i1 to i32
    %c0_i32_0 = arith.constant 0 : i32
    %2 = arith.cmpi ne, %1, %c0_i32_0 : i32
    scf.if %2 {
      %cst_9 = arith.constant 0.000000e+00 : f32
      %12 = vector.broadcast %cst_9 : f32 to vector<32x256xf32>
      %c0_10 = arith.constant 0 : index
      %c0_11 = arith.constant 0 : index
      %13 = vector.load %arg7[%c0_10, %c0_11] : memref<32x256xf32, #tpu.memory_space<vmem>>, vector<32x256xf32>
      tpu.vector_store %arg7[%c0_10, %c0_11], %12 {strides = array<i32>} : memref<32x256xf32, #tpu.memory_space<vmem>>, vector<32x256xf32>,
    } else {
    }
    %c0 = arith.constant 0 : index
    %c0_1 = arith.constant 0 : index
    %3 = vector.load %arg7[%c0, %c0_1] : memref<32x256xf32, #tpu.memory_space<vmem>>, vector<32x256xf32>
    %c0_2 = arith.constant 0 : index
    %c0_3 = arith.constant 0 : index
    %4 = vector.load %arg3[%c0_2, %c0_3] : memref<32x384xbf16, #tpu.memory_space<vmem>>, vector<32x384xbf16>
    %c0_4 = arith.constant 0 : index
    %c0_5 = arith.constant 0 : index
    %5 = vector.load %arg4[%c0_4, %c0_5] : memref<384x256xbf16, #tpu.memory_space<vmem>>, vector<384x256xbf16>
    %cst = arith.constant dense<0.000000e+00> : vector<32x256xf32>
    %6 = tpu.matmul %4, %5, %cst {dimension_numbers = #tpu.dot_dimension_numbers<[1], [0], [0], [1], [0, 0, 1, 1], [], []>} : vector<32x384xbf16>, vector<384x256xbf16>, vector<32x256xf32> -> vector<32x256xf32>
    %7 = arith.addf %3, %6 : vector<32x256xf32>
    %c0_6 = arith.constant 0 : index
    %c0_7 = arith.constant 0 : index
    %8 = vector.load %arg7[%c0_6, %c0_7] : memref<32x256xf32, #tpu.memory_space<vmem>>, vector<32x256xf32>
    tpu.vector_store %arg7[%c0_6, %c0_7], %7 {strides = array<i32>} : memref<32x256xf32, #tpu.memory_space<vmem>>, vector<32x256xf32>,
    %c2_i32 = arith.constant 2 : i32
    %9 = arith.cmpi eq, %arg2, %c2_i32 : i32
    %10 = arith.extui %9 : i1 to i32
    %c0_i32_8 = arith.constant 0 : i32
    %11 = arith.cmpi ne, %10, %c0_i32_8 : i32
    scf.if %11 {
      %c0_9 = arith.constant 0 : index
      %c0_10 = arith.constant 0 : index
      %12 = vector.load %arg7[%c0_9, %c0_10] : memref<32x256xf32, #tpu.memory_space<vmem>>, vector<32x256xf32>
      %c0_11 = arith.constant 0 : index
      %c0_12 = arith.constant 0 : index
      %13 = vector.load %arg5[%c0_11, %c0_12] : memref<1x256xf32, #tpu.memory_space<vmem>>, vector<1x256xf32>
      %14 = vector.broadcast %13 : vector<1x256xf32> to vector<32x256xf32>
      %15 = arith.addf %12, %14 : vector<32x256xf32>
      %c0_13 = arith.constant 0 : index
      %c0_14 = arith.constant 0 : index
      %16 = vector.load %arg6[%c0_13, %c0_14] : memref<32x256xf32, #tpu.memory_space<vmem>>, vector<32x256xf32>
      tpu.vector_store %arg6[%c0_13, %c0_14], %15 {strides = array<i32>} : memref<32x256xf32, #tpu.memory_space<vmem>>, vector<32x256xf32>,
    } else {
    }
    return
  }
  func.func @transform_0(%arg0: i32, %arg1: i32, %arg2: i32) -> (i32, i32) {
    %c0_i32 = arith.constant 0 : i32
    return %arg0, %arg2 : i32, i32
  }
  func.func @transform_1(%arg0: i32, %arg1: i32, %arg2: i32) -> (i32, i32) {
    %c0_i32 = arith.constant 0 : i32
    return %arg2, %arg1 : i32, i32
  }
  func.func @transform_2(%arg0: i32, %arg1: i32, %arg2: i32) -> (i32, i32) {
    %c0_i32 = arith.constant 0 : i32
    %c0_i32_0 = arith.constant 0 : i32
    return %c0_i32, %arg1 : i32, i32
  }
  func.func @transform_3(%arg0: i32, %arg1: i32, %arg2: i32) -> (i32, i32) {
    %c0_i32 = arith.constant 0 : i32
    return %arg0, %arg1 : i32, i32
  }
}

module attributes {stable_mosaic.version = 11 : i64} {
  func.func @_mm_bias_kernel(%arg0: i32, %arg1: i32, %arg2: i32, %arg3: memref<32x768xbf16, #tpu.memory_space<vmem>>, %arg4: memref<768x256xbf16, #tpu.memory_space<vmem>>, %arg5: memref<1x256xf32, #tpu.memory_space<vmem>>, %arg6: memref<32x256xf32, #tpu.memory_space<vmem>>, %arg7: memref<32x256xf32, #tpu.memory_space<vmem>>) attributes {dimension_semantics = [#tpu.dimension_semantics<parallel>, #tpu.dimension_semantics<parallel>, #tpu.dimension_semantics<arbitrary>], iteration_bounds = array<i64: 1, 1, 3>, scalar_prefetch = 0 : i64, scratch_operands = 1 : i64, tpu.core_type = #tpu.core_type<tc>, window_params = [{transform_indices = @transform_0, window_bounds = array<i64: 32, 768>}, {transform_indices = @transform_1, window_bounds = array<i64: 768, 256>}, {transform_indices = @transform_2, window_bounds = array<i64: 1, 256>}, {transform_indices = @transform_3, window_bounds = array<i64: 32, 256>}]} {
    %c0_i32 = arith.constant 0 : i32
    %0 = arith.cmpi eq, %arg2, %c0_i32 : i32
    %1 = arith.extui %0 : i1 to i32
    %c0_i32_0 = arith.constant 0 : i32
    %2 = arith.cmpi ne, %1, %c0_i32_0 : i32
    scf.if %2 {
      %cst_9 = arith.constant 0.000000e+00 : f32
      %12 = vector.broadcast %cst_9 : f32 to vector<32x256xf32>
      %c0_10 = arith.constant 0 : index
      %c0_11 = arith.constant 0 : index
      %13 = vector.load %arg7[%c0_10, %c0_11] : memref<32x256xf32, #tpu.memory_space<vmem>>, vector<32x256xf32>
      tpu.vector_store %arg7[%c0_10, %c0_11], %12 {strides = array<i32>} : memref<32x256xf32, #tpu.memory_space<vmem>>, vector<32x256xf32>,
    } else {
    }
    %c0 = arith.constant 0 : index
    %c0_1 = arith.constant 0 : index
    %3 = vector.load %arg7[%c0, %c0_1] : memref<32x256xf32, #tpu.memory_space<vmem>>, vector<32x256xf32>
    %c0_2 = arith.constant 0 : index
    %c0_3 = arith.constant 0 : index
    %4 = vector.load %arg3[%c0_2, %c0_3] : memref<32x768xbf16, #tpu.memory_space<vmem>>, vector<32x768xbf16>
    %c0_4 = arith.constant 0 : index
    %c0_5 = arith.constant 0 : index
    %5 = vector.load %arg4[%c0_4, %c0_5] : memref<768x256xbf16, #tpu.memory_space<vmem>>, vector<768x256xbf16>
    %cst = arith.constant dense<0.000000e+00> : vector<32x256xf32>
    %6 = tpu.matmul %4, %5, %cst {dimension_numbers = #tpu.dot_dimension_numbers<[1], [0], [0], [1], [0, 0, 1, 1], [], []>} : vector<32x768xbf16>, vector<768x256xbf16>, vector<32x256xf32> -> vector<32x256xf32>
    %7 = arith.addf %3, %6 : vector<32x256xf32>
    %c0_6 = arith.constant 0 : index
    %c0_7 = arith.constant 0 : index
    %8 = vector.load %arg7[%c0_6, %c0_7] : memref<32x256xf32, #tpu.memory_space<vmem>>, vector<32x256xf32>
    tpu.vector_store %arg7[%c0_6, %c0_7], %7 {strides = array<i32>} : memref<32x256xf32, #tpu.memory_space<vmem>>, vector<32x256xf32>,
    %c2_i32 = arith.constant 2 : i32
    %9 = arith.cmpi eq, %arg2, %c2_i32 : i32
    %10 = arith.extui %9 : i1 to i32
    %c0_i32_8 = arith.constant 0 : i32
    %11 = arith.cmpi ne, %10, %c0_i32_8 : i32
    scf.if %11 {
      %c0_9 = arith.constant 0 : index
      %c0_10 = arith.constant 0 : index
      %12 = vector.load %arg7[%c0_9, %c0_10] : memref<32x256xf32, #tpu.memory_space<vmem>>, vector<32x256xf32>
      %c0_11 = arith.constant 0 : index
      %c0_12 = arith.constant 0 : index
      %13 = vector.load %arg5[%c0_11, %c0_12] : memref<1x256xf32, #tpu.memory_space<vmem>>, vector<1x256xf32>
      %14 = vector.broadcast %13 : vector<1x256xf32> to vector<32x256xf32>
      %15 = arith.addf %12, %14 : vector<32x256xf32>
      %c0_13 = arith.constant 0 : index
      %c0_14 = arith.constant 0 : index
      %16 = vector.load %arg6[%c0_13, %c0_14] : memref<32x256xf32, #tpu.memory_space<vmem>>, vector<32x256xf32>
      tpu.vector_store %arg6[%c0_13, %c0_14], %15 {strides = array<i32>} : memref<32x256xf32, #tpu.memory_space<vmem>>, vector<32x256xf32>,
    } else {
    }
    return
  }
  func.func @transform_0(%arg0: i32, %arg1: i32, %arg2: i32) -> (i32, i32) {
    %c0_i32 = arith.constant 0 : i32
    return %arg0, %arg2 : i32, i32
  }
  func.func @transform_1(%arg0: i32, %arg1: i32, %arg2: i32) -> (i32, i32) {
    %c0_i32 = arith.constant 0 : i32
    return %arg2, %arg1 : i32, i32
  }
  func.func @transform_2(%arg0: i32, %arg1: i32, %arg2: i32) -> (i32, i32) {
    %c0_i32 = arith.constant 0 : i32
    %c0_i32_0 = arith.constant 0 : i32
    return %c0_i32, %arg1 : i32, i32
  }
  func.func @transform_3(%arg0: i32, %arg1: i32, %arg2: i32) -> (i32, i32) {
    %c0_i32 = arith.constant 0 : i32
    return %arg0, %arg1 : i32, i32
  }
}

module attributes {stable_mosaic.version = 11 : i64} {
  func.func @_instnorm_relu_kernel(%arg0: i32, %arg1: memref<1x16x256xf32, #tpu.memory_space<vmem>>, %arg2: memref<1x16x256xf32, #tpu.memory_space<vmem>>) attributes {dimension_semantics = [#tpu.dimension_semantics<parallel>], iteration_bounds = array<i64: 2>, scalar_prefetch = 0 : i64, scratch_operands = 0 : i64, tpu.core_type = #tpu.core_type<tc>, window_params = [{transform_indices = @transform_0, window_bounds = array<i64: 1, 16, 256>}, {transform_indices = @transform_1, window_bounds = array<i64: 1, 16, 256>}]} {
    %c0 = arith.constant 0 : index
    %c0_0 = arith.constant 0 : index
    %c0_1 = arith.constant 0 : index
    %0 = vector.load %arg1[%c0, %c0_0, %c0_1] : memref<1x16x256xf32, #tpu.memory_space<vmem>>, vector<1x16x256xf32>
    %cst = arith.constant dense<0.000000e+00> : vector<1x256xf32>
    %1 = vector.multi_reduction <add>, %0, %cst [1] : vector<1x16x256xf32> to vector<1x256xf32>
    %2 = vector.shape_cast %1 : vector<1x256xf32> to vector<1x1x256xf32>
    %3 = arith.mulf %0, %0 : vector<1x16x256xf32>
    %cst_2 = arith.constant dense<0.000000e+00> : vector<1x256xf32>
    %4 = vector.multi_reduction <add>, %3, %cst_2 [1] : vector<1x16x256xf32> to vector<1x256xf32>
    %5 = vector.shape_cast %4 : vector<1x256xf32> to vector<1x1x256xf32>
    %cst_3 = arith.constant 6.250000e-02 : f32
    %6 = vector.broadcast %cst_3 : f32 to vector<1x1x256xf32>
    %7 = arith.mulf %2, %6 : vector<1x1x256xf32>
    %cst_4 = arith.constant 6.250000e-02 : f32
    %8 = vector.broadcast %cst_4 : f32 to vector<1x1x256xf32>
    %9 = arith.mulf %5, %8 : vector<1x1x256xf32>
    %10 = arith.mulf %7, %7 : vector<1x1x256xf32>
    %11 = arith.subf %9, %10 : vector<1x1x256xf32>
    %cst_5 = arith.constant 0.000000e+00 : f32
    %12 = vector.broadcast %cst_5 : f32 to vector<1x1x256xf32>
    %13 = arith.maximumf %11, %12 : vector<1x1x256xf32>
    %14 = vector.broadcast %7 : vector<1x1x256xf32> to vector<1x16x256xf32>
    %15 = arith.subf %0, %14 : vector<1x16x256xf32>
    %cst_6 = arith.constant 9.99999974E-6 : f32
    %16 = vector.broadcast %cst_6 : f32 to vector<1x1x256xf32>
    %17 = arith.addf %13, %16 : vector<1x1x256xf32>
    %18 = math.rsqrt %17 : vector<1x1x256xf32>
    %19 = vector.broadcast %18 : vector<1x1x256xf32> to vector<1x16x256xf32>
    %20 = arith.mulf %15, %19 : vector<1x16x256xf32>
    %cst_7 = arith.constant 0.000000e+00 : f32
    %21 = vector.broadcast %cst_7 : f32 to vector<1x16x256xf32>
    %22 = arith.maximumf %20, %21 : vector<1x16x256xf32>
    %c0_8 = arith.constant 0 : index
    %c0_9 = arith.constant 0 : index
    %c0_10 = arith.constant 0 : index
    %23 = vector.load %arg2[%c0_8, %c0_9, %c0_10] : memref<1x16x256xf32, #tpu.memory_space<vmem>>, vector<1x16x256xf32>
    tpu.vector_store %arg2[%c0_8, %c0_9, %c0_10], %22 {strides = array<i32>} : memref<1x16x256xf32, #tpu.memory_space<vmem>>, vector<1x16x256xf32>,
    return
  }
  func.func @transform_0(%arg0: i32) -> (i32, i32, i32) {
    %c0_i32 = arith.constant 0 : i32
    %c0_i32_0 = arith.constant 0 : i32
    %c0_i32_1 = arith.constant 0 : i32
    return %arg0, %c0_i32, %c0_i32_0 : i32, i32, i32
  }
  func.func @transform_1(%arg0: i32) -> (i32, i32, i32) {
    %c0_i32 = arith.constant 0 : i32
    %c0_i32_0 = arith.constant 0 : i32
    %c0_i32_1 = arith.constant 0 : i32
    return %arg0, %c0_i32, %c0_i32_0 : i32, i32, i32
  }
}

module attributes {stable_mosaic.version = 11 : i64} {
  func.func @_mm_bias_skip_kernel(%arg0: i32, %arg1: i32, %arg2: i32, %arg3: memref<32x768xbf16, #tpu.memory_space<vmem>>, %arg4: memref<768x256xbf16, #tpu.memory_space<vmem>>, %arg5: memref<1x256xf32, #tpu.memory_space<vmem>>, %arg6: memref<32x256xf32, #tpu.memory_space<vmem>>, %arg7: memref<32x256xf32, #tpu.memory_space<vmem>>, %arg8: memref<32x256xf32, #tpu.memory_space<vmem>>) attributes {dimension_semantics = [#tpu.dimension_semantics<parallel>, #tpu.dimension_semantics<parallel>, #tpu.dimension_semantics<arbitrary>], iteration_bounds = array<i64: 1, 1, 3>, scalar_prefetch = 0 : i64, scratch_operands = 1 : i64, tpu.core_type = #tpu.core_type<tc>, window_params = [{transform_indices = @transform_0, window_bounds = array<i64: 32, 768>}, {transform_indices = @transform_1, window_bounds = array<i64: 768, 256>}, {transform_indices = @transform_2, window_bounds = array<i64: 1, 256>}, {transform_indices = @transform_3, window_bounds = array<i64: 32, 256>}, {transform_indices = @transform_4, window_bounds = array<i64: 32, 256>}]} {
    %c0_i32 = arith.constant 0 : i32
    %0 = arith.cmpi eq, %arg2, %c0_i32 : i32
    %1 = arith.extui %0 : i1 to i32
    %c0_i32_0 = arith.constant 0 : i32
    %2 = arith.cmpi ne, %1, %c0_i32_0 : i32
    scf.if %2 {
      %cst_9 = arith.constant 0.000000e+00 : f32
      %12 = vector.broadcast %cst_9 : f32 to vector<32x256xf32>
      %c0_10 = arith.constant 0 : index
      %c0_11 = arith.constant 0 : index
      %13 = vector.load %arg8[%c0_10, %c0_11] : memref<32x256xf32, #tpu.memory_space<vmem>>, vector<32x256xf32>
      tpu.vector_store %arg8[%c0_10, %c0_11], %12 {strides = array<i32>} : memref<32x256xf32, #tpu.memory_space<vmem>>, vector<32x256xf32>,
    } else {
    }
    %c0 = arith.constant 0 : index
    %c0_1 = arith.constant 0 : index
    %3 = vector.load %arg8[%c0, %c0_1] : memref<32x256xf32, #tpu.memory_space<vmem>>, vector<32x256xf32>
    %c0_2 = arith.constant 0 : index
    %c0_3 = arith.constant 0 : index
    %4 = vector.load %arg3[%c0_2, %c0_3] : memref<32x768xbf16, #tpu.memory_space<vmem>>, vector<32x768xbf16>
    %c0_4 = arith.constant 0 : index
    %c0_5 = arith.constant 0 : index
    %5 = vector.load %arg4[%c0_4, %c0_5] : memref<768x256xbf16, #tpu.memory_space<vmem>>, vector<768x256xbf16>
    %cst = arith.constant dense<0.000000e+00> : vector<32x256xf32>
    %6 = tpu.matmul %4, %5, %cst {dimension_numbers = #tpu.dot_dimension_numbers<[1], [0], [0], [1], [0, 0, 1, 1], [], []>} : vector<32x768xbf16>, vector<768x256xbf16>, vector<32x256xf32> -> vector<32x256xf32>
    %7 = arith.addf %3, %6 : vector<32x256xf32>
    %c0_6 = arith.constant 0 : index
    %c0_7 = arith.constant 0 : index
    %8 = vector.load %arg8[%c0_6, %c0_7] : memref<32x256xf32, #tpu.memory_space<vmem>>, vector<32x256xf32>
    tpu.vector_store %arg8[%c0_6, %c0_7], %7 {strides = array<i32>} : memref<32x256xf32, #tpu.memory_space<vmem>>, vector<32x256xf32>,
    %c2_i32 = arith.constant 2 : i32
    %9 = arith.cmpi eq, %arg2, %c2_i32 : i32
    %10 = arith.extui %9 : i1 to i32
    %c0_i32_8 = arith.constant 0 : i32
    %11 = arith.cmpi ne, %10, %c0_i32_8 : i32
    scf.if %11 {
      %c0_9 = arith.constant 0 : index
      %c0_10 = arith.constant 0 : index
      %12 = vector.load %arg8[%c0_9, %c0_10] : memref<32x256xf32, #tpu.memory_space<vmem>>, vector<32x256xf32>
      %c0_11 = arith.constant 0 : index
      %c0_12 = arith.constant 0 : index
      %13 = vector.load %arg5[%c0_11, %c0_12] : memref<1x256xf32, #tpu.memory_space<vmem>>, vector<1x256xf32>
      %14 = vector.broadcast %13 : vector<1x256xf32> to vector<32x256xf32>
      %15 = arith.addf %12, %14 : vector<32x256xf32>
      %c0_13 = arith.constant 0 : index
      %c0_14 = arith.constant 0 : index
      %16 = vector.load %arg6[%c0_13, %c0_14] : memref<32x256xf32, #tpu.memory_space<vmem>>, vector<32x256xf32>
      %17 = arith.addf %15, %16 : vector<32x256xf32>
      %c0_15 = arith.constant 0 : index
      %c0_16 = arith.constant 0 : index
      %18 = vector.load %arg7[%c0_15, %c0_16] : memref<32x256xf32, #tpu.memory_space<vmem>>, vector<32x256xf32>
      tpu.vector_store %arg7[%c0_15, %c0_16], %17 {strides = array<i32>} : memref<32x256xf32, #tpu.memory_space<vmem>>, vector<32x256xf32>,
    } else {
    }
    return
  }
  func.func @transform_0(%arg0: i32, %arg1: i32, %arg2: i32) -> (i32, i32) {
    %c0_i32 = arith.constant 0 : i32
    return %arg0, %arg2 : i32, i32
  }
  func.func @transform_1(%arg0: i32, %arg1: i32, %arg2: i32) -> (i32, i32) {
    %c0_i32 = arith.constant 0 : i32
    return %arg2, %arg1 : i32, i32
  }
  func.func @transform_2(%arg0: i32, %arg1: i32, %arg2: i32) -> (i32, i32) {
    %c0_i32 = arith.constant 0 : i32
    %c0_i32_0 = arith.constant 0 : i32
    return %c0_i32, %arg1 : i32, i32
  }
  func.func @transform_3(%arg0: i32, %arg1: i32, %arg2: i32) -> (i32, i32) {
    %c0_i32 = arith.constant 0 : i32
    return %arg0, %arg1 : i32, i32
  }
  func.func @transform_4(%arg0: i32, %arg1: i32, %arg2: i32) -> (i32, i32) {
    %c0_i32 = arith.constant 0 : i32
    return %arg0, %arg1 : i32, i32
  }
}

</mosaic_0001>

<bundles_post_ra>
// kernel: _lambda_.45
= control target key start
LH: loop header
LB: loop body
LE: loop exit
PB: predicated region body
PF: predicated region fallthrough
CT: control target
= control target key end

     0   :  { %s1708_s1 = inlined_call_operand.vmem [shape: bf16[128,128], index: 1, kind: input, shape index: {}]   ;;  %s1709_s0 = inlined_call_operand.vmem [shape: bf16[512,128], index: 0, kind: input, shape index: {}]   ;;  %s1710_s2 = inlined_call_operand.vmem [shape: f32[1,128], index: 2, kind: input, shape index: {}]   ;;  %s1711_s3 = inlined_call_operand.vmem [shape: f32[512,128], index: 3, kind: output, shape index: {}]  }
   0x1   :  { %v1267_v0 = vld [vmem:[%s1708_s1 + $0x38] sm:$0xff]   ;;  %v1268_v1 = vld [vmem:[%s1708_s1 + $0x30] sm:$0xff]   ;;  %v1269_v2 = vld [vmem:[%s1708_s1 + $0x28] sm:$0xff]  }
   0x2   :  { %1171 = vmatprep.subr.bf16.mxu0 %v1267_v0  ;;  %1251 = vmatprep.subr.bf16.mxu1 %v1267_v0  ;;  %v1270_v3 = vld [vmem:[%s1708_s1 + $0x20] sm:$0xff]   ;;  %v1271_v6 = vld [vmem:[%s1708_s1 + $0x18] sm:$0xff]   ;;  %v1272_v7 = vld [vmem:[%s1708_s1 + $0x10] sm:$0xff]  }
   0x3   :  { %1172 = vmatpush3.bf16.msra.mxu0 %v1267_v0  ;;  %1259 = vmatpush3.bf16.msra.mxu1 %v1267_v0  ;;  %v1275_v4 = vld [vmem:[%s1709_s0] sm:$0xff]   ;;  %v1273_v8 = vld [vmem:[%s1708_s1 + $0x8] sm:$0xff]   ;;  %v1279_v12 = vld [vmem:[%s1709_s0 + $0x10] sm:$0xff]  }
   0x4   :  { %1173 = vmatprep.subr.bf16.mxu0 %v1268_v1  ;;  %1252 = vmatprep.subr.bf16.mxu1 %v1268_v1  ;;  %v1276_v5 = vld [vmem:[%s1709_s0 + $0x80] sm:$0xff]   ;;  %v1277_v10 = vld [vmem:[%s1709_s0 + $0x8] sm:$0xff]   ;;  %v1280_v13 = vld [vmem:[%s1709_s0 + $0x90] sm:$0xff]  }
   0x5   :  { %1187 = vmatprep.mubr.bf16.mxu0 %v1275_v4  ;;  %1219 = vmatprep.mubr.bf16.mxu1 %v1276_v5  ;;  %v1274_v9 = vld [vmem:[%s1708_s1] sm:$0xff]   ;;  %v1278_v11 = vld [vmem:[%s1709_s0 + $0x88] sm:$0xff]   ;;  %v1281_v14 = vld [vmem:[%s1709_s0 + $0x18] sm:$0xff]  }
   0x6   :  { %v1282_v15 = vld [vmem:[%s1709_s0 + $0x98] sm:$0xff]   ;;  %v1283_v16 = vld [vmem:[%s1709_s0 + $0x20] sm:$0xff]   ;;  %v1285_v18 = vld [vmem:[%s1709_s0 + $0x28] sm:$0xff]  }
   0x7   :  { %1174 = vmatpush3.bf16.msra.mxu0 %v1268_v1  ;;  %1260 = vmatpush3.bf16.msra.mxu1 %v1268_v1  ;;  %v1284_v17 = vld [vmem:[%s1709_s0 + $0xa0] sm:$0xff]   ;;  %v1286_v19 = vld [vmem:[%s1709_s0 + $0xa8] sm:$0xff]   ;;  %v1287_v20 = vld [vmem:[%s1709_s0 + $0x30] sm:$0xff]  }
   0x8   :  { %1175 = vmatprep.subr.bf16.mxu0 %v1269_v2  ;;  %1253 = vmatprep.subr.bf16.mxu1 %v1269_v2  ;;  %v1288_v21 = vld [vmem:[%s1709_s0 + $0xb0] sm:$0xff]   ;;  %v1289_v22 = vld [vmem:[%s1709_s0 + $0x38] sm:$0xff]   ;;  %v1291_v24 = vld [vmem:[%s1709_s0 + $0x40] sm:$0xff]  }
   0x9   :  { %v1290_v23 = vld [vmem:[%s1709_s0 + $0xb8] sm:$0xff]   ;;  %v1292_v25 = vld [vmem:[%s1709_s0 + $0xc0] sm:$0xff]   ;;  %v1293_v26 = vld [vmem:[%s1709_s0 + $0x48] sm:$0xff]  }
   0xa   :  { %v1294_v27 = vld [vmem:[%s1709_s0 + $0xc8] sm:$0xff]   ;;  %v1295_v28 = vld [vmem:[%s1709_s0 + $0x50] sm:$0xff]   ;;  %v1297_v30 = vld [vmem:[%s1709_s0 + $0x58] sm:$0xff]  }
   0xb   :  { %1176 = vmatpush3.bf16.msra.mxu0 %v1269_v2  ;;  %1261 = vmatpush3.bf16.msra.mxu1 %v1269_v2  ;;  %v1296_v29 = vld [vmem:[%s1709_s0 + $0xd0] sm:$0xff]   ;;  %v1298_v31 = vld [vmem:[%s1709_s0 + $0xd8] sm:$0xff]   ;;  %v1299_v32 = vld [vmem:[%s1709_s0 + $0x60] sm:$0xff]  }
   0xc   :  { %1177 = vmatprep.subr.bf16.mxu0 %v1270_v3  ;;  %1254 = vmatprep.subr.bf16.mxu1 %v1270_v3  ;;  %v1300_v33 = vld [vmem:[%s1709_s0 + $0xe0] sm:$0xff]   ;;  %v1301_v34 = vld [vmem:[%s1709_s0 + $0x68] sm:$0xff]   ;;  %v1303_v36 = vld [vmem:[%s1709_s0 + $0x70] sm:$0xff]  }
   0xd   :  { %v1302_v35 = vld [vmem:[%s1709_s0 + $0xe8] sm:$0xff]   ;;  %v1304_v37 = vld [vmem:[%s1709_s0 + $0xf0] sm:$0xff]   ;;  %v1305_v38 = vld [vmem:[%s1709_s0 + $0x78] sm:$0xff]  }
   0xe   :  { %v1306_v39 = vld [vmem:[%s1709_s0 + $0xf8] sm:$0xff]   ;;  %v1450_v40 = vld [vmem:[%s1710_s2] ss:$0 sm:$0xff] }
   0xf   :  { %1178 = vmatpush3.bf16.msra.mxu0 %v1270_v3  ;;  %1262 = vmatpush3.bf16.msra.mxu1 %v1270_v3 }
  0x10   :  { %1179 = vmatprep.subr.bf16.mxu0 %v1271_v6  ;;  %1255 = vmatprep.subr.bf16.mxu1 %v1271_v6 }
  0x13   :  { %1180 = vmatpush3.bf16.msra.mxu0 %v1271_v6  ;;  %1263 = vmatpush3.bf16.msra.mxu1 %v1271_v6 }
  0x14   :  { %1181 = vmatprep.subr.bf16.mxu0 %v1272_v7  ;;  %1256 = vmatprep.subr.bf16.mxu1 %v1272_v7 }
  0x17   :  { %1182 = vmatpush3.bf16.msra.mxu0 %v1272_v7  ;;  %1264 = vmatpush3.bf16.msra.mxu1 %v1272_v7 }
  0x18   :  { %1183 = vmatprep.subr.bf16.mxu0 %v1273_v8  ;;  %1257 = vmatprep.subr.bf16.mxu1 %v1273_v8 }
  0x1b   :  { %1184 = vmatpush3.bf16.msra.mxu0 %v1273_v8  ;;  %1265 = vmatpush3.bf16.msra.mxu1 %v1273_v8 }
  0x1c   :  { %1185 = vmatprep.subr.bf16.mxu0 %v1274_v9  ;;  %1258 = vmatprep.subr.bf16.mxu1 %v1274_v9 }
  0x1f   :  { %1186 = vmatpush3.bf16.msra.mxu0 %v1274_v9  ;;  %1266 = vmatpush3.bf16.msra.mxu1 %v1274_v9 }
  0x22   :  { %1188 = vmatmul.mubr.bf16.vlgmr.msra.gmra.mxu0 %v1277_v10  ;;  %1220 = vmatmul.mubr.bf16.vlgmr.msra.gmra.mxu1 %v1278_v11 }
  0x23   :  { %1191 = vmatprep.mubr.bf16.mxu0 %v1279_v12  ;;  %1223 = vmatprep.mubr.bf16.mxu1 %v1280_v13 }
  0x2a   :  { %1192 = vmatmul.mubr.bf16.gmra.mxu0 %v1281_v14  ;;  %1224 = vmatmul.mubr.bf16.gmra.mxu1 %v1282_v15 }
  0x2b   :  { %1195 = vmatprep.mubr.bf16.mxu0 %v1283_v16  ;;  %1227 = vmatprep.mubr.bf16.mxu1 %v1284_v17 }
  0x32   :  { %1196 = vmatmul.mubr.bf16.gmra.mxu0 %v1285_v18  ;;  %1228 = vmatmul.mubr.bf16.gmra.mxu1 %v1286_v19 }
  0x33   :  { %1199 = vmatprep.mubr.bf16.mxu0 %v1287_v20  ;;  %1231 = vmatprep.mubr.bf16.mxu1 %v1288_v21 }
  0x3a   :  { %1200 = vmatmul.mubr.bf16.gmra.mxu0 %v1289_v22  ;;  %1232 = vmatmul.mubr.bf16.gmra.mxu1 %v1290_v23 }
  0x3b   :  { %1203 = vmatprep.mubr.bf16.mxu0 %v1291_v24  ;;  %1235 = vmatprep.mubr.bf16.mxu1 %v1292_v25 }
  0x42   :  { %1204 = vmatmul.mubr.bf16.gmra.mxu0 %v1293_v26  ;;  %1236 = vmatmul.mubr.bf16.gmra.mxu1 %v1294_v27 }
  0x43   :  { %1207 = vmatprep.mubr.bf16.mxu0 %v1295_v28  ;;  %1239 = vmatprep.mubr.bf16.mxu1 %v1296_v29 }
  0x4a   :  { %1208 = vmatmul.mubr.bf16.gmra.mxu0 %v1297_v30  ;;  %1240 = vmatmul.mubr.bf16.gmra.mxu1 %v1298_v31 }
  0x4b   :  { %1211 = vmatprep.mubr.bf16.mxu0 %v1299_v32  ;;  %1243 = vmatprep.mubr.bf16.mxu1 %v1300_v33 }
  0x52   :  { %1212 = vmatmul.mubr.bf16.gmra.mxu0 %v1301_v34  ;;  %1244 = vmatmul.mubr.bf16.gmra.mxu1 %v1302_v35 }
  0x53   :  { %1215 = vmatprep.mubr.bf16.mxu0 %v1303_v36  ;;  %1247 = vmatprep.mubr.bf16.mxu1 %v1304_v37 }
  0x5a   :  { %1216 = vmatmul.mubr.bf16.gmra.mxu0 %v1305_v38  ;;  %1248 = vmatmul.mubr.bf16.gmra.mxu1 %v1306_v39 }
  0xe2   :  { %v1189_v41 = vpop.f32.mrf.mxu0  ;;  %v1221_v42 = vpop.f32.mrf.mxu1 }
  0xe3   :  { %v960_v43 = vadd.f32 %v1189_v41, %v1450_v40  ;;  %v992_v44 = vadd.f32 %v1221_v42, %v1450_v40 }
  0xe4   :  { %v501_v45 = vpop.f32.mrf.mxu0  ;;  %v629_v46 = vpop.f32.mrf.mxu1 }
  0xe5   :  { %1024 = vst [vmem:[%s1711_s3 + $0x10] sm:$0xff] %v960_v43  ;;  %1056 = vst [vmem:[%s1711_s3 + $0x110] sm:$0xff] %v992_v44  ;;  %v958_v47 = vadd.f32 %v1450_v40, %v501_v45  ;;  %v990_v48 = vadd.f32 %v1450_v40, %v629_v46 }
  0xe6   :  { %v1190_v49 = vpop.f32.mrf.mxu0  ;;  %v1222_v50 = vpop.f32.mrf.mxu1 }
  0xe7   :  { %1022 = vst [vmem:[%s1711_s3] sm:$0xff] %v958_v47  ;;  %1054 = vst [vmem:[%s1711_s3 + $0x100] sm:$0xff] %v990_v48  ;;  %v961_v51 = vadd.f32 %v1190_v49, %v1450_v40  ;;  %v993_v52 = vadd.f32 %v1222_v50, %v1450_v40 }
  0xe8   :  { %v504_v53 = vpop.f32.mrf.mxu0  ;;  %v632_v54 = vpop.f32.mrf.mxu1 }
  0xe9   :  { %1025 = vst [vmem:[%s1711_s3 + $0x18] sm:$0xff] %v961_v51  ;;  %1057 = vst [vmem:[%s1711_s3 + $0x118] sm:$0xff] %v993_v52  ;;  %v959_v55 = vadd.f32 %v1450_v40, %v504_v53  ;;  %v991_v56 = vadd.f32 %v1450_v40, %v632_v54 }
  0xea   :  { %v1193_v57 = vpop.f32.mrf.mxu0  ;;  %v1225_v58 = vpop.f32.mrf.mxu1 }
  0xeb   :  { %1023 = vst [vmem:[%s1711_s3 + $0x8] sm:$0xff] %v959_v55  ;;  %1055 = vst [vmem:[%s1711_s3 + $0x108] sm:$0xff] %v991_v56  ;;  %v964_v59 = vadd.f32 %v1193_v57, %v1450_v40  ;;  %v996_v60 = vadd.f32 %v1225_v58, %v1450_v40 }
  0xec   :  { %v517_v61 = vpop.f32.mrf.mxu0  ;;  %v645_v62 = vpop.f32.mrf.mxu1 }
  0xed   :  { %1028 = vst [vmem:[%s1711_s3 + $0x30] sm:$0xff] %v964_v59  ;;  %1060 = vst [vmem:[%s1711_s3 + $0x130] sm:$0xff] %v996_v60  ;;  %v962_v63 = vadd.f32 %v1450_v40, %v517_v61  ;;  %v994_v0 = vadd.f32 %v1450_v40, %v645_v62 }
  0xee   :  { %v1194_v1 = vpop.f32.mrf.mxu0  ;;  %v1226_v2 = vpop.f32.mrf.mxu1 }
  0xef   :  { %1026 = vst [vmem:[%s1711_s3 + $0x20] sm:$0xff] %v962_v63  ;;  %1058 = vst [vmem:[%s1711_s3 + $0x120] sm:$0xff] %v994_v0  ;;  %v965_v3 = vadd.f32 %v1194_v1, %v1450_v40  ;;  %v997_v4 = vadd.f32 %v1226_v2, %v1450_v40 }
  0xf0   :  { %v520_v5 = vpop.f32.mrf.mxu0  ;;  %v648_v6 = vpop.f32.mrf.mxu1 }
  0xf1   :  { %1029 = vst [vmem:[%s1711_s3 + $0x38] sm:$0xff] %v965_v3  ;;  %1061 = vst [vmem:[%s1711_s3 + $0x138] sm:$0xff] %v997_v4  ;;  %v963_v7 = vadd.f32 %v1450_v40, %v520_v5  ;;  %v995_v8 = vadd.f32 %v1450_v40, %v648_v6 }
  0xf2   :  { %v1197_v9 = vpop.f32.mrf.mxu0  ;;  %v1229_v10 = vpop.f32.mrf.mxu1 }
  0xf3   :  { %1027 = vst [vmem:[%s1711_s3 + $0x28] sm:$0xff] %v963_v7  ;;  %1059 = vst [vmem:[%s1711_s3 + $0x128] sm:$0xff] %v995_v8  ;;  %v968_v11 = vadd.f32 %v1197_v9, %v1450_v40  ;;  %v1000_v12 = vadd.f32 %v1229_v10, %v1450_v40 }
  0xf4   :  { %v533_v13 = vpop.f32.mrf.mxu0  ;;  %v661_v14 = vpop.f32.mrf.mxu1 }
  0xf5   :  { %1032 = vst [vmem:[%s1711_s3 + $0x50] sm:$0xff] %v968_v11  ;;  %1064 = vst [vmem:[%s1711_s3 + $0x150] sm:$0xff] %v1000_v12  ;;  %v966_v15 = vadd.f32 %v1450_v40, %v533_v13  ;;  %v998_v16 = vadd.f32 %v1450_v40, %v661_v14 }
  0xf6   :  { %v1198_v17 = vpop.f32.mrf.mxu0  ;;  %v1230_v18 = vpop.f32.mrf.mxu1 }
  0xf7   :  { %1030 = vst [vmem:[%s1711_s3 + $0x40] sm:$0xff] %v966_v15  ;;  %1062 = vst [vmem:[%s1711_s3 + $0x140] sm:$0xff] %v998_v16  ;;  %v969_v19 = vadd.f32 %v1198_v17, %v1450_v40  ;;  %v1001_v20 = vadd.f32 %v1230_v18, %v1450_v40 }
  0xf8   :  { %v536_v21 = vpop.f32.mrf.mxu0  ;;  %v664_v22 = vpop.f32.mrf.mxu1 }
  0xf9   :  { %1033 = vst [vmem:[%s1711_s3 + $0x58] sm:$0xff] %v969_v19  ;;  %1065 = vst [vmem:[%s1711_s3 + $0x158] sm:$0xff] %v1001_v20  ;;  %v967_v23 = vadd.f32 %v1450_v40, %v536_v21  ;;  %v999_v24 = vadd.f32 %v1450_v40, %v664_v22 }
  0xfa   :  { %v1201_v25 = vpop.f32.mrf.mxu0  ;;  %v1233_v26 = vpop.f32.mrf.mxu1 }
  0xfb   :  { %1031 = vst [vmem:[%s1711_s3 + $0x48] sm:$0xff] %v967_v23  ;;  %1063 = vst [vmem:[%s1711_s3 + $0x148] sm:$0xff] %v999_v24  ;;  %v972_v27 = vadd.f32 %v1201_v25, %v1450_v40  ;;  %v1004_v28 = vadd.f32 %v1233_v26, %v1450_v40 }
  0xfc   :  { %v549_v29 = vpop.f32.mrf.mxu0  ;;  %v677_v30 = vpop.f32.mrf.mxu1 }
  0xfd   :  { %1036 = vst [vmem:[%s1711_s3 + $0x70] sm:$0xff] %v972_v27  ;;  %1068 = vst [vmem:[%s1711_s3 + $0x170] sm:$0xff] %v1004_v28  ;;  %v970_v31 = vadd.f32 %v1450_v40, %v549_v29  ;;  %v1002_v32 = vadd.f32 %v1450_v40, %v677_v30 }
  0xfe   :  { %v1202_v33 = vpop.f32.mrf.mxu0  ;;  %v1234_v34 = vpop.f32.mrf.mxu1 }
  0xff   :  { %1034 = vst [vmem:[%s1711_s3 + $0x60] sm:$0xff] %v970_v31  ;;  %1066 = vst [vmem:[%s1711_s3 + $0x160] sm:$0xff] %v1002_v32  ;;  %v973_v35 = vadd.f32 %v1202_v33, %v1450_v40  ;;  %v1005_v36 = vadd.f32 %v1234_v34, %v1450_v40 }
 0x100   :  { %v552_v37 = vpop.f32.mrf.mxu0  ;;  %v680_v38 = vpop.f32.mrf.mxu1 }
 0x101   :  { %1037 = vst [vmem:[%s1711_s3 + $0x78] sm:$0xff] %v973_v35  ;;  %1069 = vst [vmem:[%s1711_s3 + $0x178] sm:$0xff] %v1005_v36  ;;  %v971_v39 = vadd.f32 %v1450_v40, %v552_v37  ;;  %v1003_v41 = vadd.f32 %v1450_v40, %v680_v38 }
 0x102   :  { %v1205_v42 = vpop.f32.mrf.mxu0  ;;  %v1237_v43 = vpop.f32.mrf.mxu1 }
 0x103   :  { %1035 = vst [vmem:[%s1711_s3 + $0x68] sm:$0xff] %v971_v39  ;;  %1067 = vst [vmem:[%s1711_s3 + $0x168] sm:$0xff] %v1003_v41  ;;  %v976_v44 = vadd.f32 %v1205_v42, %v1450_v40  ;;  %v1008_v45 = vadd.f32 %v1237_v43, %v1450_v40 }
 0x104   :  { %v565_v46 = vpop.f32.mrf.mxu0  ;;  %v693_v47 = vpop.f32.mrf.mxu1 }
 0x105   :  { %1040 = vst [vmem:[%s1711_s3 + $0x90] sm:$0xff] %v976_v44  ;;  %1072 = vst [vmem:[%s1711_s3 + $0x190] sm:$0xff] %v1008_v45  ;;  %v974_v48 = vadd.f32 %v1450_v40, %v565_v46  ;;  %v1006_v49 = vadd.f32 %v1450_v40, %v693_v47 }
 0x106   :  { %v1206_v50 = vpop.f32.mrf.mxu0  ;;  %v1238_v51 = vpop.f32.mrf.mxu1 }
 0x107   :  { %1038 = vst [vmem:[%s1711_s3 + $0x80] sm:$0xff] %v974_v48  ;;  %1070 = vst [vmem:[%s1711_s3 + $0x180] sm:$0xff] %v1006_v49  ;;  %v977_v52 = vadd.f32 %v1206_v50, %v1450_v40  ;;  %v1009_v53 = vadd.f32 %v1238_v51, %v1450_v40 }
 0x108   :  { %v568_v54 = vpop.f32.mrf.mxu0  ;;  %v696_v55 = vpop.f32.mrf.mxu1 }
 0x109   :  { %1041 = vst [vmem:[%s1711_s3 + $0x98] sm:$0xff] %v977_v52  ;;  %1073 = vst [vmem:[%s1711_s3 + $0x198] sm:$0xff] %v1009_v53  ;;  %v975_v56 = vadd.f32 %v1450_v40, %v568_v54  ;;  %v1007_v57 = vadd.f32 %v1450_v40, %v696_v55 }
 0x10a   :  { %v1209_v58 = vpop.f32.mrf.mxu0  ;;  %v1241_v59 = vpop.f32.mrf.mxu1 }
 0x10b   :  { %1039 = vst [vmem:[%s1711_s3 + $0x88] sm:$0xff] %v975_v56  ;;  %1071 = vst [vmem:[%s1711_s3 + $0x188] sm:$0xff] %v1007_v57  ;;  %v980_v60 = vadd.f32 %v1209_v58, %v1450_v40  ;;  %v1012_v61 = vadd.f32 %v1241_v59, %v1450_v40 }
 0x10c   :  { %v581_v62 = vpop.f32.mrf.mxu0  ;;  %v709_v63 = vpop.f32.mrf.mxu1 }
 0x10d   :  { %1044 = vst [vmem:[%s1711_s3 + $0xb0] sm:$0xff] %v980_v60  ;;  %1076 = vst [vmem:[%s1711_s3 + $0x1b0] sm:$0xff] %v1012_v61  ;;  %v978_v0 = vadd.f32 %v1450_v40, %v581_v62  ;;  %v1010_v1 = vadd.f32 %v1450_v40, %v709_v63 }
 0x10e   :  { %v1210_v2 = vpop.f32.mrf.mxu0  ;;  %v1242_v3 = vpop.f32.mrf.mxu1 }
 0x10f   :  { %1042 = vst [vmem:[%s1711_s3 + $0xa0] sm:$0xff] %v978_v0  ;;  %1074 = vst [vmem:[%s1711_s3 + $0x1a0] sm:$0xff] %v1010_v1  ;;  %v981_v4 = vadd.f32 %v1210_v2, %v1450_v40  ;;  %v1013_v5 = vadd.f32 %v1242_v3, %v1450_v40 }
 0x110   :  { %v584_v6 = vpop.f32.mrf.mxu0  ;;  %v712_v7 = vpop.f32.mrf.mxu1 }
 0x111   :  { %1045 = vst [vmem:[%s1711_s3 + $0xb8] sm:$0xff] %v981_v4  ;;  %1077 = vst [vmem:[%s1711_s3 + $0x1b8] sm:$0xff] %v1013_v5  ;;  %v979_v8 = vadd.f32 %v1450_v40, %v584_v6  ;;  %v1011_v9 = vadd.f32 %v1450_v40, %v712_v7 }
 0x112   :  { %v1213_v10 = vpop.f32.mrf.mxu0  ;;  %v1245_v11 = vpop.f32.mrf.mxu1 }
 0x113   :  { %1043 = vst [vmem:[%s1711_s3 + $0xa8] sm:$0xff] %v979_v8  ;;  %1075 = vst [vmem:[%s1711_s3 + $0x1a8] sm:$0xff] %v1011_v9  ;;  %v984_v12 = vadd.f32 %v1213_v10, %v1450_v40  ;;  %v1016_v13 = vadd.f32 %v1245_v11, %v1450_v40 }
 0x114   :  { %v597_v14 = vpop.f32.mrf.mxu0  ;;  %v725_v15 = vpop.f32.mrf.mxu1 }
 0x115   :  { %1048 = vst [vmem:[%s1711_s3 + $0xd0] sm:$0xff] %v984_v12  ;;  %1080 = vst [vmem:[%s1711_s3 + $0x1d0] sm:$0xff] %v1016_v13  ;;  %v982_v16 = vadd.f32 %v1450_v40, %v597_v14  ;;  %v1014_v17 = vadd.f32 %v1450_v40, %v725_v15 }
 0x116   :  { %v1214_v18 = vpop.f32.mrf.mxu0  ;;  %v1246_v19 = vpop.f32.mrf.mxu1 }
 0x117   :  { %1046 = vst [vmem:[%s1711_s3 + $0xc0] sm:$0xff] %v982_v16  ;;  %1078 = vst [vmem:[%s1711_s3 + $0x1c0] sm:$0xff] %v1014_v17  ;;  %v985_v20 = vadd.f32 %v1214_v18, %v1450_v40  ;;  %v1017_v21 = vadd.f32 %v1246_v19, %v1450_v40 }
 0x118   :  { %v600_v22 = vpop.f32.mrf.mxu0  ;;  %v728_v23 = vpop.f32.mrf.mxu1 }
 0x119   :  { %1049 = vst [vmem:[%s1711_s3 + $0xd8] sm:$0xff] %v985_v20  ;;  %1081 = vst [vmem:[%s1711_s3 + $0x1d8] sm:$0xff] %v1017_v21  ;;  %v983_v24 = vadd.f32 %v1450_v40, %v600_v22  ;;  %v1015_v25 = vadd.f32 %v1450_v40, %v728_v23 }
 0x11a   :  { %v1217_v26 = vpop.f32.mrf.mxu0  ;;  %v1249_v27 = vpop.f32.mrf.mxu1 }
 0x11b   :  { %1047 = vst [vmem:[%s1711_s3 + $0xc8] sm:$0xff] %v983_v24  ;;  %1079 = vst [vmem:[%s1711_s3 + $0x1c8] sm:$0xff] %v1015_v25  ;;  %v988_v28 = vadd.f32 %v1217_v26, %v1450_v40  ;;  %v1020_v29 = vadd.f32 %v1249_v27, %v1450_v40 }
 0x11c   :  { %v613_v30 = vpop.f32.mrf.mxu0  ;;  %v741_v31 = vpop.f32.mrf.mxu1 }
 0x11d   :  { %1052 = vst [vmem:[%s1711_s3 + $0xf0] sm:$0xff] %v988_v28  ;;  %1084 = vst [vmem:[%s1711_s3 + $0x1f0] sm:$0xff] %v1020_v29  ;;  %v986_v32 = vadd.f32 %v1450_v40, %v613_v30  ;;  %v1018_v33 = vadd.f32 %v1450_v40, %v741_v31 }
 0x11e   :  { %v1218_v34 = vpop.f32.mrf.mxu0  ;;  %v1250_v35 = vpop.f32.mrf.mxu1 }
 0x11f   :  { %1050 = vst [vmem:[%s1711_s3 + $0xe0] sm:$0xff] %v986_v32  ;;  %1082 = vst [vmem:[%s1711_s3 + $0x1e0] sm:$0xff] %v1018_v33  ;;  %v989_v36 = vadd.f32 %v1218_v34, %v1450_v40  ;;  %v1021_v37 = vadd.f32 %v1250_v35, %v1450_v40 }
 0x120   :  { %v616_v38 = vpop.f32.mrf.mxu0  ;;  %v744_v39 = vpop.f32.mrf.mxu1 }
 0x121   :  { %1053 = vst [vmem:[%s1711_s3 + $0xf8] sm:$0xff] %v989_v36  ;;  %1085 = vst [vmem:[%s1711_s3 + $0x1f8] sm:$0xff] %v1021_v37  ;;  %v987_v41 = vadd.f32 %v1450_v40, %v616_v38  ;;  %v1019_v42 = vadd.f32 %v1450_v40, %v744_v39 }
 0x123   :  { %1051 = vst [vmem:[%s1711_s3 + $0xe8] sm:$0xff] %v987_v41  ;;  %1083 = vst [vmem:[%s1711_s3 + $0x1e8] sm:$0xff] %v1019_v42 }

// kernel: _lambda_.47
= control target key start
LH: loop header
LB: loop body
LE: loop exit
PB: predicated region body
PF: predicated region fallthrough
CT: control target
= control target key end

     0   :  { %s551_s6 = smov 0   ;;  %s1037_s0 = inlined_call_operand.vmem [shape: f32[2,256,64], index: 0, kind: input, shape index: {}]   ;;  %s1038_s1 = inlined_call_operand.vmem [shape: f32[2,256,64], index: 1, kind: output, shape index: {}]  }
   0x1 LB: > { %s510_s7 = sadd.s32 4294967295, %s539_s6   ;;  %p514_p0 = scmp.ge.s32.totalorder %s539_s6, 1  ;;  %s539_s6 = sphi %s551_s6, %s11_s6  }
   0x2   : > { %p87_p1 = scmp.lt.s32.totalorder %s539_s6, 3 }
   0x4   : > { %p88_p2 = pnand %p514_p0, %p87_p1 }
   0x5   : > { %p107_p3 = scmp.lt.s32.totalorder (!%p88_p2), %s510_s7, 1 }
   0x6   : > { %91 = sbr.rel (%p88_p2) target bundleno = 141 (0x8d), region = 24 }
   0xb   : > { %s1040_s7 = smov (!%p107_p3, %s510_s7), 1  ;;  %vm149_vm0 = vcmask 523264  }
   0xc   : > { %s521_s8 = sshll.u32 %s1040_s7, 8 }
   0xd   : > { %s567_s11 = scalar_lea.vmem %s1037_s0, %s521_s8  ;;  %s904_s14 = scalar_lea.vmem %s1038_s1, %s521_s8 }
   0xe   : > { %v570_v0 = vld [vmem:[%s567_s11] sm:$0xff]  ;;  %v573_v1 = vld [vmem:[%s567_s11 + $0x8] sm:$0xff]  ;;  %v576_v2 = vld [vmem:[%s567_s11 + $0x10] sm:$0xff] }
   0xf   : > { %v579_v3 = vld [vmem:[%s567_s11 + $0x18] sm:$0xff]  ;;  %v150_v4 = vsel %vm149_vm0, %v570_v0, 0.0  ;;  %v151_v5 = vsel %vm149_vm0, %v573_v1, 0.0  ;;  %v153_v6 = vsel %vm149_vm0, %v576_v2, 0.0  ;;  %v588_v7 = vld [vmem:[%s567_s11 + $0x20] sm:$0xff]  ;;  %v593_v10 = vld [vmem:[%s567_s11 + $0x28] sm:$0xff]  ;;  %v219_v29 = vmul.f32 %v570_v0, %v570_v0 }
  0x10   : > { %v152_v8 = vadd.f32 %v151_v5, %v150_v4  ;;  %v155_v9 = vsel %vm149_vm0, %v579_v3, 0.0  ;;  %v157_v12 = vsel %vm149_vm0, %v588_v7, 0.0  ;;  %v598_v13 = vld [vmem:[%s567_s11 + $0x30] sm:$0xff]  ;;  %v159_v15 = vsel %vm149_vm0, %v593_v10, 0.0  ;;  %v603_v16 = vld [vmem:[%s567_s11 + $0x38] sm:$0xff]  ;;  %v608_v19 = vld [vmem:[%s567_s11 + $0x40] sm:$0xff] }
  0x11   : > { %v161_v18 = vsel %vm149_vm0, %v598_v13, 0.0  ;;  %v163_v21 = vsel %vm149_vm0, %v603_v16, 0.0  ;;  %v613_v22 = vld [vmem:[%s567_s11 + $0x48] sm:$0xff]  ;;  %v165_v24 = vsel %vm149_vm0, %v608_v19, 0.0  ;;  %v618_v25 = vld [vmem:[%s567_s11 + $0x50] sm:$0xff]  ;;  %v621_v27 = vld [vmem:[%s567_s11 + $0x58] sm:$0xff]  ;;  %v220_v30 = vmul.f32 %v573_v1, %v573_v1 }
  0x12   : > { %v154_v11 = vadd.f32 %v153_v6, %v152_v8  ;;  %v167_v28 = vsel %vm149_vm0, %v613_v22, 0.0  ;;  %v221_v31 = vmul.f32 %v576_v2, %v576_v2  ;;  %v169_v33 = vsel %vm149_vm0, %v618_v25, 0.0  ;;  %v636_v35 = vld [vmem:[%s567_s11 + $0x60] sm:$0xff]  ;;  %v646_v42 = vld [vmem:[%s567_s11 + $0x68] sm:$0xff]  ;;  %v654_v48 = vld [vmem:[%s567_s11 + $0x70] sm:$0xff] }
  0x13   : > { %v222_v34 = vmul.f32 %v579_v3, %v579_v3  ;;  %v171_v37 = vsel %vm149_vm0, %v621_v27, 0.0  ;;  %v223_v38 = vmul.f32 %v588_v7, %v588_v7  ;;  %v251_v39 = vsel %vm149_vm0, %v219_v29, 0.0  ;;  %v662_v54 = vld [vmem:[%s567_s11 + $0x78] sm:$0xff]  ;;  %v670_v60 = vld [vmem:[%s567_s11 + $0x80] sm:$0xff]  ;;  %v678_v6 = vld [vmem:[%s567_s11 + $0x88] sm:$0xff] }
  0x14   : > { %v156_v14 = vadd.f32 %v155_v9, %v154_v11  ;;  %v252_v40 = vsel %vm149_vm0, %v220_v30, 0.0  ;;  %v254_v41 = vsel %vm149_vm0, %v221_v31, 0.0  ;;  %v173_v45 = vsel %vm149_vm0, %v636_v35, 0.0 }
  0x15   : > { %v253_v44 = vadd.f32 %v252_v40, %v251_v39  ;;  %v224_v46 = vmul.f32 %v593_v10, %v593_v10  ;;  %v256_v47 = vsel %vm149_vm0, %v222_v34, 0.0  ;;  %v175_v51 = vsel %vm149_vm0, %v646_v42, 0.0  ;;  %v710_v39 = vld [vmem:[%s567_s11 + $0xa8] sm:$0xff] }
  0x16   : > { %v158_v17 = vadd.f32 %v157_v12, %v156_v14  ;;  %v225_v52 = vmul.f32 %v598_v13, %v598_v13  ;;  %v258_v53 = vsel %vm149_vm0, %v223_v38, 0.0  ;;  %v177_v57 = vsel %vm149_vm0, %v654_v48, 0.0 }
  0x17   : > { %v255_v50 = vadd.f32 %v254_v41, %v253_v44  ;;  %v226_v58 = vmul.f32 %v603_v16, %v603_v16  ;;  %v260_v59 = vsel %vm149_vm0, %v224_v46, 0.0  ;;  %v179_v63 = vsel %vm149_vm0, %v662_v54, 0.0  ;;  %v718_v46 = vld [vmem:[%s567_s11 + $0xb0] sm:$0xff] }
  0x18   : > { %v160_v20 = vadd.f32 %v159_v15, %v158_v17  ;;  %v227_v4 = vmul.f32 %v608_v19, %v608_v19  ;;  %v262_v5 = vsel %vm149_vm0, %v225_v52, 0.0  ;;  %v181_v11 = vsel %vm149_vm0, %v670_v60, 0.0  ;;  %v686_v15 = vld [vmem:[%s567_s11 + $0x90] sm:$0xff] }
  0x19   : > { %v257_v56 = vadd.f32 %v256_v47, %v255_v50  ;;  %v228_v12 = vmul.f32 %v613_v22, %v613_v22  ;;  %v264_v14 = vsel %vm149_vm0, %v226_v58, 0.0  ;;  %v185_v29 = vsel %vm149_vm0, %v686_v15, 0.0 }
  0x1a   : > { %v162_v23 = vadd.f32 %v161_v18, %v160_v20  ;;  %v183_v20 = vsel %vm149_vm0, %v678_v6, 0.0  ;;  %v230_v30 = vmul.f32 %v621_v27, %v621_v27  ;;  %v232_v44 = vmul.f32 %v646_v42, %v646_v42 }
  0x1b   : > { %v259_v62 = vadd.f32 %v258_v53, %v257_v56  ;;  %v268_v31 = vsel %vm149_vm0, %v228_v12, 0.0  ;;  %v191_v50 = vsel %vm149_vm0, %v710_v39, 0.0  ;;  %v726_v53 = vld [vmem:[%s567_s11 + $0xb8] sm:$0xff]  ;;  %v234_v58 = vmul.f32 %v662_v54, %v662_v54 }
  0x1c   : > { %v164_v26 = vadd.f32 %v163_v21, %v162_v23  ;;  %v229_v21 = vmul.f32 %v618_v25, %v618_v25  ;;  %v266_v23 = vsel %vm149_vm0, %v227_v4, 0.0  ;;  %v195_v4 = vsel %vm149_vm0, %v726_v53, 0.0 }
  0x1d   : > { %v261_v9 = vadd.f32 %v260_v59, %v259_v62  ;;  %v276_v59 = vsel %vm149_vm0, %v232_v44, 0.0 }
  0x1e   : > { %v166_v32 = vadd.f32 %v165_v24, %v164_v26  ;;  %v694_v24 = vld [vmem:[%s567_s11 + $0x98] sm:$0xff]  ;;  %v270_v38 = vsel %vm149_vm0, %v229_v21, 0.0 }
  0x1f   : > { %v263_v18 = vadd.f32 %v262_v5, %v261_v9  ;;  %v235_v5 = vmul.f32 %v670_v60, %v670_v60  ;;  %v742_v9 = vld [vmem:[%s567_s11 + $0xc8] sm:$0xff] }
  0x20   : > { %v168_v36 = vadd.f32 %v167_v28, %v166_v32  ;;  %v702_v32 = vld [vmem:[%s567_s11 + $0xa0] sm:$0xff] }
  0x21   : > { %v265_v28 = vadd.f32 %v264_v14, %v263_v18  ;;  %v280_v18 = vsel %vm149_vm0, %v234_v58, 0.0  ;;  %v239_v44 = vmul.f32 %v702_v32, %v702_v32 }
  0x22   : > { %v170_v43 = vadd.f32 %v169_v33, %v168_v36  ;;  %v187_v36 = vsel %vm149_vm0, %v694_v24, 0.0 }
  0x23   : > { %v267_v34 = vadd.f32 %v266_v23, %v265_v28  ;;  %v237_v28 = vmul.f32 %v686_v15, %v686_v15 }
  0x24   : > { %v172_v49 = vadd.f32 %v171_v37, %v170_v43  ;;  %v231_v37 = vmul.f32 %v636_v35, %v636_v35  ;;  %v189_v43 = vsel %vm149_vm0, %v702_v32, 0.0 }
  0x25   : > { %v269_v41 = vadd.f32 %v268_v31, %v267_v34 }
  0x26   : > { %v174_v55 = vadd.f32 %v173_v45, %v172_v49  ;;  %v272_v45 = vsel %vm149_vm0, %v230_v30, 0.0  ;;  %v274_v52 = vsel %vm149_vm0, %v231_v37, 0.0  ;;  %v758_v30 = vld [vmem:[%s567_s11 + $0xd8] sm:$0xff] }
  0x27   : > { %v271_v49 = vadd.f32 %v270_v38, %v269_v41  ;;  %v766_v38 = vld [vmem:[%s567_s11 + $0xe0] sm:$0xff] }
  0x28   : > { %v176_v61 = vadd.f32 %v175_v51, %v174_v55  ;;  %v233_v51 = vmul.f32 %v654_v48, %v654_v48 }
  0x29   : > { %v273_v56 = vadd.f32 %v272_v45, %v271_v49  ;;  %v286_v45 = vsel %vm149_vm0, %v237_v28, 0.0 }
  0x2a   : > { %v178_v8 = vadd.f32 %v177_v57, %v176_v61  ;;  %v193_v57 = vsel %vm149_vm0, %v718_v46, 0.0  ;;  %v734_v61 = vld [vmem:[%s567_s11 + $0xc0] sm:$0xff] }
  0x2b   : > { %v197_v14 = vsel %vm149_vm0, %v734_v61, 0.0 }
  0x2c   : > { %v180_v17 = vadd.f32 %v179_v63, %v178_v8  ;;  %v275_v63 = vadd.f32 %v274_v52, %v273_v56  ;;  %v278_v8 = vsel %vm149_vm0, %v233_v51, 0.0  ;;  %v205_v51 = vsel %vm149_vm0, %v766_v38, 0.0  ;;  %v782_v56 = vld [vmem:[%s567_s11 + $0xf0] sm:$0xff] }
  0x2d   : > { %v240_v52 = vmul.f32 %v710_v39, %v710_v39 }
  0x2e   : > { %v182_v26 = vadd.f32 %v181_v11, %v180_v17  ;;  %v277_v12 = vadd.f32 %v276_v59, %v275_v63  ;;  %v236_v17 = vmul.f32 %v678_v6, %v678_v6  ;;  %v290_v63 = vsel %vm149_vm0, %v239_v44, 0.0 }
  0x2f   : > { %v246_v44 = vmul.f32 %v758_v30, %v758_v30 }
  0x30   : > { %v184_v33 = vadd.f32 %v183_v20, %v182_v26  ;;  %v750_v20 = vld [vmem:[%s567_s11 + $0xd0] sm:$0xff]  ;;  %v279_v23 = vadd.f32 %v278_v8, %v277_v12  ;;  %v199_v26 = vsel %vm149_vm0, %v742_v9, 0.0  ;;  %v284_v37 = vsel %vm149_vm0, %v236_v17, 0.0 }
  0x31   : > { %v201_v34 = vsel %vm149_vm0, %v750_v20, 0.0  ;;  %v242_v12 = vmul.f32 %v726_v53, %v726_v53 }
  0x32   : > { %v186_v40 = vadd.f32 %v185_v29, %v184_v33  ;;  %v282_v29 = vsel %vm149_vm0, %v235_v5, 0.0  ;;  %v281_v33 = vadd.f32 %v280_v18, %v279_v23  ;;  %v243_v23 = vmul.f32 %v734_v61, %v734_v61 }
  0x34   : > { %v188_v47 = vadd.f32 %v187_v36, %v186_v40  ;;  %v238_v36 = vmul.f32 %v694_v24, %v694_v24  ;;  %v283_v41 = vadd.f32 %v282_v29, %v281_v33  ;;  %v296_v33 = vsel %vm149_vm0, %v242_v12, 0.0 }
  0x36   : > { %v190_v55 = vadd.f32 %v189_v43, %v188_v47  ;;  %v203_v43 = vsel %vm149_vm0, %v758_v30, 0.0  ;;  %v774_v47 = vld [vmem:[%s567_s11 + $0xe8] sm:$0xff] }
  0x37   : > { %v207_v59 = vsel %vm149_vm0, %v774_v47, 0.0 }
  0x38   : > { %v192_v62 = vadd.f32 %v191_v50, %v190_v55  ;;  %v285_v50 = vadd.f32 %v284_v37, %v283_v41  ;;  %v288_v55 = vsel %vm149_vm0, %v238_v36, 0.0  ;;  %v245_v37 = vmul.f32 %v750_v20, %v750_v20 }
  0x3a   : > { %v194_v11 = vadd.f32 %v193_v57, %v192_v62  ;;  %v287_v58 = vadd.f32 %v286_v45, %v285_v50  ;;  %v241_v62 = vmul.f32 %v718_v46, %v718_v46  ;;  %v247_v50 = vmul.f32 %v766_v38, %v766_v38 }
  0x3c   : > { %v196_v21 = vadd.f32 %v195_v4, %v194_v11  ;;  %v790_v4 = vld [vmem:[%s567_s11 + $0xf8] sm:$0xff]  ;;  %v289_v8 = vadd.f32 %v288_v55, %v287_v58  ;;  %v209_v11 = vsel %vm149_vm0, %v782_v56, 0.0  ;;  %v304_v58 = vsel %vm149_vm0, %v246_v44, 0.0 }
  0x3e   : > { %v198_v31 = vadd.f32 %v197_v14, %v196_v21  ;;  %v292_v14 = vsel %vm149_vm0, %v240_v52, 0.0  ;;  %v291_v18 = vadd.f32 %v290_v63, %v289_v8  ;;  %v211_v21 = vsel %vm149_vm0, %v790_v4, 0.0 }
  0x3f   : > { %v306_v63 = vsel %vm149_vm0, %v247_v50, 0.0 }
  0x40   : > { %v200_v40 = vadd.f32 %v199_v26, %v198_v31  ;;  %v294_v26 = vsel %vm149_vm0, %v241_v62, 0.0  ;;  %v293_v29 = vadd.f32 %v292_v14, %v291_v18  ;;  %v244_v31 = vmul.f32 %v742_v9, %v742_v9 }
  0x41   : > { %v249_v62 = vmul.f32 %v782_v56, %v782_v56 }
  0x42   : > { %v202_v49 = vadd.f32 %v201_v34, %v200_v40  ;;  %v295_v36 = vadd.f32 %v294_v26, %v293_v29  ;;  %v298_v40 = vsel %vm149_vm0, %v243_v23, 0.0  ;;  %v300_v45 = vsel %vm149_vm0, %v244_v31, 0.0 }
  0x44   : > { %v204_v57 = vadd.f32 %v203_v43, %v202_v49  ;;  %v297_v43 = vadd.f32 %v296_v33, %v295_v36 }
  0x46   : > { %v206_v5 = vadd.f32 %v205_v51, %v204_v57  ;;  %v299_v49 = vadd.f32 %v298_v40, %v297_v43  ;;  %v302_v51 = vsel %vm149_vm0, %v245_v37, 0.0  ;;  %v248_v57 = vmul.f32 %v774_v47, %v774_v47 }
  0x48   : > { %v208_v17 = vadd.f32 %v207_v59, %v206_v5  ;;  %v301_v55 = vadd.f32 %v300_v45, %v299_v49  ;;  %v308_v12 = vsel %vm149_vm0, %v248_v57, 0.0 }
  0x4a   : > { %v210_v28 = vadd.f32 %v209_v11, %v208_v17  ;;  %v303_v59 = vadd.f32 %v302_v51, %v301_v55  ;;  %v250_v11 = vmul.f32 %v790_v4, %v790_v4  ;;  %v310_v17 = vsel %vm149_vm0, %v249_v62, 0.0 }
  0x4c   : > { %v212_v34 = vadd.f32 %v211_v21, %v210_v28  ;;  %v305_v8 = vadd.f32 %v304_v58, %v303_v59  ;;  %v312_v23 = vsel %vm149_vm0, %v250_v11, 0.0 }
  0x4e   : > { %v213_v41 = vrot.slane %v212_v34, 4  ;;  %v307_v14 = vadd.f32 %v306_v63, %v305_v8 }
  0x50   : > { %v214_v52 = vadd.f32 %v213_v41, %v212_v34  ;;  %v309_v21 = vadd.f32 %v308_v12, %v307_v14 }
  0x52   : > { %v215_v5 = vrot.slane %v214_v52, 2  ;;  %v311_v26 = vadd.f32 %v310_v17, %v309_v21 }
  0x54   : > { %v216_v18 = vadd.f32 %v215_v5, %v214_v52  ;;  %v313_v29 = vadd.f32 %v312_v23, %v311_v26 }
  0x56   : > { %v217_v28 = vrot.slane %v216_v18, 1  ;;  %v314_v31 = vrot.slane %v313_v29, 4 }
  0x58   : > { %v218_v33 = vadd.f32 %v217_v28, %v216_v18  ;;  %v315_v34 = vadd.f32 %v314_v31, %v313_v29 }
  0x5a   : > { %v316_v36 = vrot.slane %v315_v34, 2  ;;  %v825_v40 = vmul.f32 0.00390625, %v218_v33 }
  0x5c   : > { %v317_v37 = vadd.f32 %v316_v36, %v315_v34  ;;  %v322_v44 = vmul.f32 %v825_v40, %v825_v40  ;;  %v325_v52 = vsub.f32 %v570_v0, %v825_v40  ;;  %v326_v55 = vsub.f32 %v573_v1, %v825_v40 }
  0x5d   : > { %v327_v57 = vsub.f32 %v576_v2, %v825_v40  ;;  %v328_v58 = vsub.f32 %v579_v3, %v825_v40  ;;  %v329_v59 = vsub.f32 %v588_v7, %v825_v40  ;;  %v330_v62 = vsub.f32 %v593_v10, %v825_v40 }
  0x5e   : > { %v318_v41 = vrot.slane %v317_v37, 1  ;;  %v331_v63 = vsub.f32 %v598_v13, %v825_v40  ;;  %v332_v0 = vsub.f32 %v603_v16, %v825_v40  ;;  %v333_v1 = vsub.f32 %v608_v19, %v825_v40 }
  0x5f   : > { %v334_v2 = vsub.f32 %v613_v22, %v825_v40  ;;  %v335_v3 = vsub.f32 %v618_v25, %v825_v40  ;;  %v336_v7 = vsub.f32 %v621_v27, %v825_v40  ;;  %v337_v10 = vsub.f32 %v636_v35, %v825_v40 }
  0x60   : > { %v319_v43 = vadd.f32 %v318_v41, %v317_v37  ;;  %v338_v13 = vsub.f32 %v646_v42, %v825_v40  ;;  %v339_v16 = vsub.f32 %v654_v48, %v825_v40  ;;  %v340_v19 = vsub.f32 %v662_v54, %v825_v40 }
  0x61   : > { %v341_v22 = vsub.f32 %v670_v60, %v825_v40  ;;  %v342_v25 = vsub.f32 %v678_v6, %v825_v40  ;;  %v343_v27 = vsub.f32 %v686_v15, %v825_v40  ;;  %v344_v35 = vsub.f32 %v694_v24, %v825_v40 }
  0x62   : > { %v321_v45 = vmul.f32 0.00390625, %v319_v43  ;;  %v345_v42 = vsub.f32 %v702_v32, %v825_v40  ;;  %v346_v48 = vsub.f32 %v710_v39, %v825_v40  ;;  %v347_v54 = vsub.f32 %v718_v46, %v825_v40 }
  0x63   : > { %v348_v60 = vsub.f32 %v726_v53, %v825_v40  ;;  %v349_v6 = vsub.f32 %v734_v61, %v825_v40  ;;  %v350_v15 = vsub.f32 %v742_v9, %v825_v40  ;;  %v351_v24 = vsub.f32 %v750_v20, %v825_v40 }
  0x64   : > { %v323_v49 = vsub.f32 %v321_v45, %v322_v44  ;;  %v352_v5 = vsub.f32 %v758_v30, %v825_v40  ;;  %v353_v11 = vsub.f32 %v766_v38, %v825_v40  ;;  %v354_v12 = vsub.f32 %v774_v47, %v825_v40 }
  0x65   : > { %v355_v14 = vsub.f32 %v782_v56, %v825_v40  ;;  %v356_v17 = vsub.f32 %v790_v4, %v825_v40 }
  0x66   : > { %v324_v50 = vmax.f32 %v323_v49, 0.0 }
  0x68   : > { %v357_v51 = vadd.f32 1e-05, %v324_v50 }
  0x6a   : > { %531 = vrsqrt.f32 %v357_v51 }
  0x77   : > { %v885_v8 = vpop.eup %531 }
  0x78   : > { %v359_v18 = vmul.f32 %v885_v8, %v325_v52  ;;  %v360_v21 = vmul.f32 %v885_v8, %v326_v55  ;;  %v361_v23 = vmul.f32 %v885_v8, %v327_v57  ;;  %v362_v26 = vmul.f32 %v885_v8, %v328_v58 }
  0x79   : > { %v363_v28 = vmul.f32 %v885_v8, %v329_v59  ;;  %v364_v29 = vmul.f32 %v885_v8, %v330_v62  ;;  %v365_v31 = vmul.f32 %v885_v8, %v331_v63  ;;  %v366_v33 = vmul.f32 %v885_v8, %v332_v0 }
  0x7a   : > { %v391_v34 = vmax.f32 %v359_v18, 0.0  ;;  %v392_v36 = vmax.f32 %v360_v21, 0.0  ;;  %v393_v37 = vmax.f32 %v361_v23, 0.0  ;;  %v394_v41 = vmax.f32 %v362_v26, 0.0 }
  0x7b   : > { %v395_v43 = vmax.f32 %v363_v28, 0.0  ;;  %v396_v44 = vmax.f32 %v364_v29, 0.0  ;;  %v397_v45 = vmax.f32 %v365_v31, 0.0  ;;  %v398_v49 = vmax.f32 %v366_v33, 0.0 }
  0x7c   : > { %423 = vst.msk [vmem:[%s904_s14] sm:$0xff] %vm149_vm0, %v391_v34  ;;  %424 = vst.msk [vmem:[%s904_s14 + $0x8] sm:$0xff] %vm149_vm0, %v392_v36  ;;  %v367_v50 = vmul.f32 %v885_v8, %v333_v1  ;;  %v368_v51 = vmul.f32 %v885_v8, %v334_v2  ;;  %v369_v52 = vmul.f32 %v885_v8, %v335_v3 }
  0x7d   : > { %425 = vst.msk [vmem:[%s904_s14 + $0x10] sm:$0xff] %vm149_vm0, %v393_v37  ;;  %426 = vst.msk [vmem:[%s904_s14 + $0x18] sm:$0xff] %vm149_vm0, %v394_v41  ;;  %v370_v55 = vmul.f32 %v885_v8, %v336_v7  ;;  %v371_v57 = vmul.f32 %v885_v8, %v337_v10  ;;  %v372_v58 = vmul.f32 %v885_v8, %v338_v13 }
  0x7e   : > { %427 = vst.msk [vmem:[%s904_s14 + $0x20] sm:$0xff] %vm149_vm0, %v395_v43  ;;  %428 = vst.msk [vmem:[%s904_s14 + $0x28] sm:$0xff] %vm149_vm0, %v396_v44  ;;  %v373_v59 = vmul.f32 %v885_v8, %v339_v16  ;;  %v374_v62 = vmul.f32 %v885_v8, %v340_v19  ;;  %v399_v63 = vmax.f32 %v367_v50, 0.0  ;;  %v400_v0 = vmax.f32 %v368_v51, 0.0 }
  0x7f   : > { %429 = vst.msk [vmem:[%s904_s14 + $0x30] sm:$0xff] %vm149_vm0, %v397_v45  ;;  %430 = vst.msk [vmem:[%s904_s14 + $0x38] sm:$0xff] %vm149_vm0, %v398_v49  ;;  %v401_v1 = vmax.f32 %v369_v52, 0.0  ;;  %v402_v2 = vmax.f32 %v370_v55, 0.0  ;;  %v403_v3 = vmax.f32 %v371_v57, 0.0  ;;  %v404_v7 = vmax.f32 %v372_v58, 0.0 }
  0x80   : > { %v405_v18 = vmax.f32 %v373_v59, 0.0  ;;  %v406_v21 = vmax.f32 %v374_v62, 0.0  ;;  %431 = vst.msk [vmem:[%s904_s14 + $0x40] sm:$0xff] %vm149_vm0, %v399_v63  ;;  %432 = vst.msk [vmem:[%s904_s14 + $0x48] sm:$0xff] %vm149_vm0, %v400_v0  ;;  %v375_v10 = vmul.f32 %v885_v8, %v341_v22  ;;  %v376_v13 = vmul.f32 %v885_v8, %v342_v25 }
  0x81   : > { %433 = vst.msk [vmem:[%s904_s14 + $0x50] sm:$0xff] %vm149_vm0, %v401_v1  ;;  %434 = vst.msk [vmem:[%s904_s14 + $0x58] sm:$0xff] %vm149_vm0, %v402_v2  ;;  %v377_v16 = vmul.f32 %v885_v8, %v343_v27  ;;  %v378_v19 = vmul.f32 %v885_v8, %v344_v35  ;;  %v379_v22 = vmul.f32 %v885_v8, %v345_v42 }
  0x82   : > { %435 = vst.msk [vmem:[%s904_s14 + $0x60] sm:$0xff] %vm149_vm0, %v403_v3  ;;  %436 = vst.msk [vmem:[%s904_s14 + $0x68] sm:$0xff] %vm149_vm0, %v404_v7  ;;  %v380_v25 = vmul.f32 %v885_v8, %v346_v48  ;;  %v381_v27 = vmul.f32 %v885_v8, %v347_v54  ;;  %v382_v35 = vmul.f32 %v885_v8, %v348_v60  ;;  %v407_v23 = vmax.f32 %v375_v10, 0.0 }
  0x83   : > { %437 = vst.msk [vmem:[%s904_s14 + $0x70] sm:$0xff] %vm149_vm0, %v405_v18  ;;  %438 = vst.msk [vmem:[%s904_s14 + $0x78] sm:$0xff] %vm149_vm0, %v406_v21  ;;  %v408_v32 = vmax.f32 %v376_v13, 0.0  ;;  %v409_v42 = vmax.f32 %v377_v16, 0.0  ;;  %v410_v26 = vmax.f32 %v378_v19, 0.0  ;;  %v411_v39 = vmax.f32 %v379_v22, 0.0 }
  0x84   : > { %v412_v48 = vmax.f32 %v380_v25, 0.0  ;;  %v413_v28 = vmax.f32 %v381_v27, 0.0  ;;  %v414_v29 = vmax.f32 %v382_v35, 0.0  ;;  %439 = vst.msk [vmem:[%s904_s14 + $0x80] sm:$0xff] %vm149_vm0, %v407_v23  ;;  %v383_v46 = vmul.f32 %v885_v8, %v349_v6 }
  0x85   : > { %440 = vst.msk [vmem:[%s904_s14 + $0x88] sm:$0xff] %vm149_vm0, %v408_v32  ;;  %441 = vst.msk [vmem:[%s904_s14 + $0x90] sm:$0xff] %vm149_vm0, %v409_v42  ;;  %v384_v53 = vmul.f32 %v885_v8, %v350_v15  ;;  %v385_v54 = vmul.f32 %v885_v8, %v351_v24  ;;  %v386_v60 = vmul.f32 %v885_v8, %v352_v5 }
  0x86   : > { %442 = vst.msk [vmem:[%s904_s14 + $0x98] sm:$0xff] %vm149_vm0, %v410_v26  ;;  %443 = vst.msk [vmem:[%s904_s14 + $0xa0] sm:$0xff] %vm149_vm0, %v411_v39  ;;  %v387_v61 = vmul.f32 %v885_v8, %v353_v11  ;;  %v388_v9 = vmul.f32 %v885_v8, %v354_v12  ;;  %v389_v20 = vmul.f32 %v885_v8, %v355_v14  ;;  %v415_v38 = vmax.f32 %v383_v46, 0.0 }
  0x87   : > { %444 = vst.msk [vmem:[%s904_s14 + $0xa8] sm:$0xff] %vm149_vm0, %v412_v48  ;;  %445 = vst.msk [vmem:[%s904_s14 + $0xb0] sm:$0xff] %vm149_vm0, %v413_v28  ;;  %v390_v30 = vmul.f32 %v885_v8, %v356_v17  ;;  %v416_v6 = vmax.f32 %v384_v53, 0.0  ;;  %v417_v15 = vmax.f32 %v385_v54, 0.0  ;;  %v418_v47 = vmax.f32 %v386_v60, 0.0 }
  0x88   : > { %446 = vst.msk [vmem:[%s904_s14 + $0xb8] sm:$0xff] %vm149_vm0, %v414_v29  ;;  %v419_v24 = vmax.f32 %v387_v61, 0.0  ;;  %v420_v5 = vmax.f32 %v388_v9, 0.0  ;;  %v421_v11 = vmax.f32 %v389_v20, 0.0  ;;  %447 = vst.msk [vmem:[%s904_s14 + $0xc0] sm:$0xff] %vm149_vm0, %v415_v38 }
  0x89   : > { %v422_v12 = vmax.f32 %v390_v30, 0.0  ;;  %448 = vst.msk [vmem:[%s904_s14 + $0xc8] sm:$0xff] %vm149_vm0, %v416_v6  ;;  %449 = vst.msk [vmem:[%s904_s14 + $0xd0] sm:$0xff] %vm149_vm0, %v417_v15 }
  0x8a   : > { %450 = vst.msk [vmem:[%s904_s14 + $0xd8] sm:$0xff] %vm149_vm0, %v418_v47  ;;  %451 = vst.msk [vmem:[%s904_s14 + $0xe0] sm:$0xff] %vm149_vm0, %v419_v24 }
  0x8b   : > { %452 = vst.msk [vmem:[%s904_s14 + $0xe8] sm:$0xff] %vm149_vm0, %v420_v5  ;;  %453 = vst.msk [vmem:[%s904_s14 + $0xf0] sm:$0xff] %vm149_vm0, %v421_v11 }
  0x8c   : > { %454 = vst.msk [vmem:[%s904_s14 + $0xf8] sm:$0xff] %vm149_vm0, %v422_v12 }
  0x8d PF: > { %s11_s6 = sadd.s32 1, %s539_s6  }
  0x8e   : > { %p8_p4 = scmp.ge.s32.totalorder %s11_s6, 4  }
  0x90   :  { %10 = sbr.rel (!%p8_p4) target bundleno = 1 (0x1), region = 54 }

// kernel: _lambda_.46
= control target key start
LH: loop header
LB: loop body
LE: loop exit
PB: predicated region body
PF: predicated region fallthrough
CT: control target
= control target key end

     0   :  { %s2065_s12 = smov 0   ;;  %s2067_s13 = smov 0   ;;  %s2633_s0 = inlined_call_operand.vmem [shape: bf16[512,1664], index: 0, kind: input, shape index: {}]   ;;  %s2634_s1 = inlined_call_operand.vmem [shape: bf16[1664,128], index: 1, kind: input, shape index: {}]   ;;  %s2635_s2 = inlined_call_operand.vmem [shape: f32[1,128], index: 2, kind: input, shape index: {}]   ;;  %s2636_s3 = inlined_call_operand.vmem [shape: f32[512,128], index: 3, kind: output, shape index: {}]  }
   0x1   :  { %s2069_s14 = smov 0   ;;  %s2071_s15 = smov 0  }
   0x2   :  { %s2073_s16 = smov 0  }
   0x3 LB: > { %s25_s17 = sadd.s32 1, %s2038_s15  ;;  %p48_p1 = scmp.ne.s32.totalorder %s2030_s13, %s2026_s12  ;;  %s2042_s16 = sphi %s2073_s16, %s13_s16   ;;  %s2038_s15 = sphi %s2071_s15, %s2640_s15   ;;  %s2034_s14 = sphi %s2069_s14, %s2639_s14   ;;  %s2030_s13 = sphi %s2067_s13, %s2638_s13   ;;  %s2026_s12 = sphi %s2065_s12, %s2637_s12  }
   0x4   : > { %p26_p0 = scmp.ge.s32.totalorder %s25_s17, 13  ;;  %p49_p2 = scmp.eq.s32.totalorder %s2042_s16, 0 }
   0x5   : > { %s41_s19 = sadd.s32 1, %s2030_s13  ;;  %p1733_p5 = scmp.ge.s32.totalorder %s2042_s16, 13 }
   0x6   : > { %s2642_s17 = smov (%p26_p0, %s25_s17), 0  ;;  %p50_p3 = por %p49_p2, %p48_p1 }
   0x7   : > { %s37_s18 = ssub.s32 %s2038_s15, %s2642_s17  ;;  %162 = sbr.rel (%p1733_p5) target bundleno = 58 (0x3a), region = 20 }
   0x8   : > { %p39_p4 = scmp.eq.s32.totalorder %s37_s18, 0 }
   0xa   : > { %s2100_s20 = scalar_select %p39_p4, %s2030_s13, %s41_s19  }
   0xc   : > { %165 = sbr.rel (!%p50_p3) target bundleno = 58 (0x3a), region = 24  ;;  %s167_s21 = sand.u32 (%p50_p3), 1, %s2030_s13  }
   0xd   : > { %s1735_s22 = sshll.u32 (%p50_p3), %s2038_s15, 2  ;;  %s1734_s23 = sshll.u32 (%p50_p3), %s167_s21, 8 }
   0xe   : > { %s2108_s26 = scalar_lea.vmem (%p50_p3), %s2633_s0, %s1735_s22  ;;  %s2112_s27 = scalar_lea.vmem (%p50_p3), [#allocation3], %s1734_s23 }
   0xf   : > { %v191_v0 = vld [vmem:[%s2108_s26] sm:$0xf] (%p50_p3)  ;;  %v193_v1 = vld [vmem:[%s2108_s26 + $0x34] sm:$0xf] (%p50_p3)  ;;  %v195_v2 = vld [vmem:[%s2108_s26 + $0x68] sm:$0xf] (%p50_p3) }
  0x10   : > { %192 = vst [vmem:[%s2112_s27] sm:$0xf] (%p50_p3), %v191_v0  ;;  %194 = vst [vmem:[%s2112_s27 + $0x4] sm:$0xf] (%p50_p3), %v193_v1  ;;  %v197_v3 = vld [vmem:[%s2108_s26 + $0x9c] sm:$0xf] (%p50_p3) }
  0x11   : > { %v199_v4 = vld [vmem:[%s2108_s26 + $0xd0] sm:$0xf]  ;;  %196 = vst [vmem:[%s2112_s27 + $0x8] sm:$0xf] %v195_v2  ;;  %198 = vst [vmem:[%s2112_s27 + $0xc] sm:$0xf] %v197_v3 }
  0x12   : > { %200 = vst [vmem:[%s2112_s27 + $0x10] sm:$0xf] %v199_v4  ;;  %v201_v5 = vld [vmem:[%s2108_s26 + $0x104] sm:$0xf]  ;;  %v203_v6 = vld [vmem:[%s2108_s26 + $0x138] sm:$0xf] }
  0x13   : > { %v205_v7 = vld [vmem:[%s2108_s26 + $0x16c] sm:$0xf]  ;;  %202 = vst [vmem:[%s2112_s27 + $0x14] sm:$0xf] %v201_v5  ;;  %204 = vst [vmem:[%s2112_s27 + $0x18] sm:$0xf] %v203_v6 }
  0x14   : > { %206 = vst [vmem:[%s2112_s27 + $0x1c] sm:$0xf] %v205_v7  ;;  %v207_v8 = vld [vmem:[%s2108_s26 + $0x1a0] sm:$0xf]  ;;  %v209_v9 = vld [vmem:[%s2108_s26 + $0x1d4] sm:$0xf] }
  0x15   : > { %v211_v10 = vld [vmem:[%s2108_s26 + $0x208] sm:$0xf]  ;;  %208 = vst [vmem:[%s2112_s27 + $0x20] sm:$0xf] %v207_v8  ;;  %210 = vst [vmem:[%s2112_s27 + $0x24] sm:$0xf] %v209_v9 }
  0x16   : > { %212 = vst [vmem:[%s2112_s27 + $0x28] sm:$0xf] %v211_v10  ;;  %v213_v11 = vld [vmem:[%s2108_s26 + $0x23c] sm:$0xf]  ;;  %v215_v12 = vld [vmem:[%s2108_s26 + $0x270] sm:$0xf] }
  0x17   : > { %v217_v13 = vld [vmem:[%s2108_s26 + $0x2a4] sm:$0xf]  ;;  %214 = vst [vmem:[%s2112_s27 + $0x2c] sm:$0xf] %v213_v11  ;;  %216 = vst [vmem:[%s2112_s27 + $0x30] sm:$0xf] %v215_v12 }
  0x18   : > { %218 = vst [vmem:[%s2112_s27 + $0x34] sm:$0xf] %v217_v13  ;;  %v219_v14 = vld [vmem:[%s2108_s26 + $0x2d8] sm:$0xf]  ;;  %v221_v15 = vld [vmem:[%s2108_s26 + $0x30c] sm:$0xf] }
  0x19   : > { %v223_v16 = vld [vmem:[%s2108_s26 + $0x340] sm:$0xf]  ;;  %220 = vst [vmem:[%s2112_s27 + $0x38] sm:$0xf] %v219_v14  ;;  %222 = vst [vmem:[%s2112_s27 + $0x3c] sm:$0xf] %v221_v15 }
  0x1a   : > { %224 = vst [vmem:[%s2112_s27 + $0x40] sm:$0xf] %v223_v16  ;;  %v225_v17 = vld [vmem:[%s2108_s26 + $0x374] sm:$0xf]  ;;  %v227_v18 = vld [vmem:[%s2108_s26 + $0x3a8] sm:$0xf] }
  0x1b   : > { %v229_v19 = vld [vmem:[%s2108_s26 + $0x3dc] sm:$0xf]  ;;  %226 = vst [vmem:[%s2112_s27 + $0x44] sm:$0xf] %v225_v17  ;;  %228 = vst [vmem:[%s2112_s27 + $0x48] sm:$0xf] %v227_v18 }
  0x1c   : > { %230 = vst [vmem:[%s2112_s27 + $0x4c] sm:$0xf] %v229_v19  ;;  %v231_v20 = vld [vmem:[%s2108_s26 + $0x410] sm:$0xf]  ;;  %v233_v21 = vld [vmem:[%s2108_s26 + $0x444] sm:$0xf] }
  0x1d   : > { %v235_v22 = vld [vmem:[%s2108_s26 + $0x478] sm:$0xf]  ;;  %232 = vst [vmem:[%s2112_s27 + $0x50] sm:$0xf] %v231_v20  ;;  %234 = vst [vmem:[%s2112_s27 + $0x54] sm:$0xf] %v233_v21 }
  0x1e   : > { %236 = vst [vmem:[%s2112_s27 + $0x58] sm:$0xf] %v235_v22  ;;  %v237_v23 = vld [vmem:[%s2108_s26 + $0x4ac] sm:$0xf]  ;;  %v239_v24 = vld [vmem:[%s2108_s26 + $0x4e0] sm:$0xf] }
  0x1f   : > { %v241_v25 = vld [vmem:[%s2108_s26 + $0x514] sm:$0xf]  ;;  %238 = vst [vmem:[%s2112_s27 + $0x5c] sm:$0xf] %v237_v23  ;;  %240 = vst [vmem:[%s2112_s27 + $0x60] sm:$0xf] %v239_v24 }
  0x20   : > { %242 = vst [vmem:[%s2112_s27 + $0x64] sm:$0xf] %v241_v25  ;;  %v243_v26 = vld [vmem:[%s2108_s26 + $0x548] sm:$0xf]  ;;  %v245_v27 = vld [vmem:[%s2108_s26 + $0x57c] sm:$0xf] }
  0x21   : > { %v247_v28 = vld [vmem:[%s2108_s26 + $0x5b0] sm:$0xf]  ;;  %244 = vst [vmem:[%s2112_s27 + $0x68] sm:$0xf] %v243_v26  ;;  %246 = vst [vmem:[%s2112_s27 + $0x6c] sm:$0xf] %v245_v27 }
  0x22   : > { %248 = vst [vmem:[%s2112_s27 + $0x70] sm:$0xf] %v247_v28  ;;  %v249_v29 = vld [vmem:[%s2108_s26 + $0x5e4] sm:$0xf]  ;;  %v251_v30 = vld [vmem:[%s2108_s26 + $0x618] sm:$0xf] }
  0x23   : > { %v253_v31 = vld [vmem:[%s2108_s26 + $0x64c] sm:$0xf]  ;;  %250 = vst [vmem:[%s2112_s27 + $0x74] sm:$0xf] %v249_v29  ;;  %252 = vst [vmem:[%s2112_s27 + $0x78] sm:$0xf] %v251_v30 }
  0x24   : > { %254 = vst [vmem:[%s2112_s27 + $0x7c] sm:$0xf] %v253_v31  ;;  %v255_v32 = vld [vmem:[%s2108_s26 + $0x680] sm:$0xf]  ;;  %v257_v33 = vld [vmem:[%s2108_s26 + $0x6b4] sm:$0xf] }
  0x25   : > { %v259_v34 = vld [vmem:[%s2108_s26 + $0x6e8] sm:$0xf]  ;;  %256 = vst [vmem:[%s2112_s27 + $0x80] sm:$0xf] %v255_v32  ;;  %258 = vst [vmem:[%s2112_s27 + $0x84] sm:$0xf] %v257_v33 }
  0x26   : > { %260 = vst [vmem:[%s2112_s27 + $0x88] sm:$0xf] %v259_v34  ;;  %v261_v35 = vld [vmem:[%s2108_s26 + $0x71c] sm:$0xf]  ;;  %v263_v36 = vld [vmem:[%s2108_s26 + $0x750] sm:$0xf] }
  0x27   : > { %v265_v37 = vld [vmem:[%s2108_s26 + $0x784] sm:$0xf]  ;;  %262 = vst [vmem:[%s2112_s27 + $0x8c] sm:$0xf] %v261_v35  ;;  %264 = vst [vmem:[%s2112_s27 + $0x90] sm:$0xf] %v263_v36 }
  0x28   : > { %266 = vst [vmem:[%s2112_s27 + $0x94] sm:$0xf] %v265_v37  ;;  %v267_v38 = vld [vmem:[%s2108_s26 + $0x7b8] sm:$0xf]  ;;  %v269_v39 = vld [vmem:[%s2108_s26 + $0x7ec] sm:$0xf] }
  0x29   : > { %v271_v40 = vld [vmem:[%s2108_s26 + $0x820] sm:$0xf]  ;;  %268 = vst [vmem:[%s2112_s27 + $0x98] sm:$0xf] %v267_v38  ;;  %270 = vst [vmem:[%s2112_s27 + $0x9c] sm:$0xf] %v269_v39 }
  0x2a   : > { %272 = vst [vmem:[%s2112_s27 + $0xa0] sm:$0xf] %v271_v40  ;;  %v273_v41 = vld [vmem:[%s2108_s26 + $0x854] sm:$0xf]  ;;  %v275_v42 = vld [vmem:[%s2108_s26 + $0x888] sm:$0xf] }
  0x2b   : > { %v277_v43 = vld [vmem:[%s2108_s26 + $0x8bc] sm:$0xf]  ;;  %274 = vst [vmem:[%s2112_s27 + $0xa4] sm:$0xf] %v273_v41  ;;  %276 = vst [vmem:[%s2112_s27 + $0xa8] sm:$0xf] %v275_v42 }
  0x2c   : > { %278 = vst [vmem:[%s2112_s27 + $0xac] sm:$0xf] %v277_v43  ;;  %v279_v44 = vld [vmem:[%s2108_s26 + $0x8f0] sm:$0xf]  ;;  %v281_v45 = vld [vmem:[%s2108_s26 + $0x924] sm:$0xf] }
  0x2d   : > { %v283_v46 = vld [vmem:[%s2108_s26 + $0x958] sm:$0xf]  ;;  %280 = vst [vmem:[%s2112_s27 + $0xb0] sm:$0xf] %v279_v44  ;;  %282 = vst [vmem:[%s2112_s27 + $0xb4] sm:$0xf] %v281_v45 }
  0x2e   : > { %284 = vst [vmem:[%s2112_s27 + $0xb8] sm:$0xf] %v283_v46  ;;  %v285_v47 = vld [vmem:[%s2108_s26 + $0x98c] sm:$0xf]  ;;  %v287_v48 = vld [vmem:[%s2108_s26 + $0x9c0] sm:$0xf] }
  0x2f   : > { %v289_v49 = vld [vmem:[%s2108_s26 + $0x9f4] sm:$0xf]  ;;  %286 = vst [vmem:[%s2112_s27 + $0xbc] sm:$0xf] %v285_v47  ;;  %288 = vst [vmem:[%s2112_s27 + $0xc0] sm:$0xf] %v287_v48 }
  0x30   : > { %290 = vst [vmem:[%s2112_s27 + $0xc4] sm:$0xf] %v289_v49  ;;  %v291_v50 = vld [vmem:[%s2108_s26 + $0xa28] sm:$0xf]  ;;  %v293_v51 = vld [vmem:[%s2108_s26 + $0xa5c] sm:$0xf] }
  0x31   : > { %v295_v52 = vld [vmem:[%s2108_s26 + $0xa90] sm:$0xf]  ;;  %292 = vst [vmem:[%s2112_s27 + $0xc8] sm:$0xf] %v291_v50  ;;  %294 = vst [vmem:[%s2112_s27 + $0xcc] sm:$0xf] %v293_v51 }
  0x32   : > { %296 = vst [vmem:[%s2112_s27 + $0xd0] sm:$0xf] %v295_v52  ;;  %v297_v53 = vld [vmem:[%s2108_s26 + $0xac4] sm:$0xf]  ;;  %v299_v54 = vld [vmem:[%s2108_s26 + $0xaf8] sm:$0xf] }
  0x33   : > { %v301_v55 = vld [vmem:[%s2108_s26 + $0xb2c] sm:$0xf]  ;;  %298 = vst [vmem:[%s2112_s27 + $0xd4] sm:$0xf] %v297_v53  ;;  %300 = vst [vmem:[%s2112_s27 + $0xd8] sm:$0xf] %v299_v54 }
  0x34   : > { %302 = vst [vmem:[%s2112_s27 + $0xdc] sm:$0xf] %v301_v55  ;;  %v303_v56 = vld [vmem:[%s2108_s26 + $0xb60] sm:$0xf]  ;;  %v305_v57 = vld [vmem:[%s2108_s26 + $0xb94] sm:$0xf] }
  0x35   : > { %v307_v58 = vld [vmem:[%s2108_s26 + $0xbc8] sm:$0xf]  ;;  %304 = vst [vmem:[%s2112_s27 + $0xe0] sm:$0xf] %v303_v56  ;;  %306 = vst [vmem:[%s2112_s27 + $0xe4] sm:$0xf] %v305_v57 }
  0x36   : > { %308 = vst [vmem:[%s2112_s27 + $0xe8] sm:$0xf] %v307_v58  ;;  %v309_v59 = vld [vmem:[%s2108_s26 + $0xbfc] sm:$0xf]  ;;  %v311_v60 = vld [vmem:[%s2108_s26 + $0xc30] sm:$0xf] }
  0x37   : > { %v313_v61 = vld [vmem:[%s2108_s26 + $0xc64] sm:$0xf]  ;;  %310 = vst [vmem:[%s2112_s27 + $0xec] sm:$0xf] %v309_v59  ;;  %312 = vst [vmem:[%s2112_s27 + $0xf0] sm:$0xf] %v311_v60 }
  0x38   : > { %314 = vst [vmem:[%s2112_s27 + $0xf4] sm:$0xf] %v313_v61  ;;  %v315_v62 = vld [vmem:[%s2108_s26 + $0xc98] sm:$0xf]  ;;  %v317_v63 = vld [vmem:[%s2108_s26 + $0xccc] sm:$0xf] }
  0x39   : > { %316 = vst [vmem:[%s2112_s27 + $0xf8] sm:$0xf] %v315_v62  ;;  %318 = vst [vmem:[%s2112_s27 + $0xfc] sm:$0xf] %v317_v63 }
  0x3a PF: > { %p1736_p6 = scmp.ge.s32.totalorder %s2042_s16, 1  ;;  %p481_p7 = scmp.lt.s32.totalorder %s2042_s16, 14 }
  0x3c   : > { %p482_p8 = pnand %p1736_p6, %p481_p7 }
  0x3d   : > { %s488_s28 = sand.u32 (!%p482_p8), 1, %s2026_s12   ;;  %s1738_s29 = sshll.u32 (!%p482_p8), %s2034_s14, 4 }
  0x3e   : > { %485 = sbr.rel (%p482_p8) target bundleno = 431 (0x1af), region = 69  ;;  %s1737_s30 = sshll.u32 (!%p482_p8), %s488_s28, 8 }
  0x3f   : > { %p527_p9 = scmp.lt.s32.totalorder (!%p482_p8), %s1738_s29, 207  ;;  %s2249_s8 = scalar_lea.vmem (!%p482_p8), [#allocation3], %s1737_s30 }
  0x40   : > { %p1740_p10 = scmp.ne.s32.totalorder (!%p482_p8), %s2034_s14, 0 }
  0x43   : > { %s2644_s29 = smov (!%p527_p9, %s1738_s29), 207  ;;  %551 = sbr.rel (%p1740_p10) target bundleno = 105 (0x69), region = 77 }
  0x44   : > { %s1739_s4 = sshll.u32 %s2644_s29, 2 }
  0x45   : > { %s2247_s7 = scalar_lea.vmem %s2634_s1, %s1739_s4 }
  0x48   : > { %v2044_v0 = vmov 0.0  }
  0x49   : > { %552 = vst [vmem:[#allocation2 + $0xb0] sm:$0xff] %v2044_v0  ;;  %553 = vst [vmem:[#allocation2 + $0x1b0] sm:$0xff] %v2044_v0 }
  0x4a   : > { %554 = vst [vmem:[#allocation2 + $0xd8] sm:$0xff] %v2044_v0  ;;  %555 = vst [vmem:[#allocation2 + $0x18] sm:$0xff] %v2044_v0 }
  0x4b   : > { %556 = vst [vmem:[#allocation2 + $0x50] sm:$0xff] %v2044_v0  ;;  %557 = vst [vmem:[#allocation2 + $0x168] sm:$0xff] %v2044_v0 }
  0x4c   : > { %558 = vst [vmem:[#allocation2 + $0x130] sm:$0xff] %v2044_v0  ;;  %559 = vst [vmem:[#allocation2 + $0x48] sm:$0xff] %v2044_v0 }
  0x4d   : > { %560 = vst [vmem:[#allocation2 + $0x180] sm:$0xff] %v2044_v0  ;;  %561 = vst [vmem:[#allocation2 + $0x110] sm:$0xff] %v2044_v0 }
  0x4e   : > { %562 = vst [vmem:[#allocation2 + $0x118] sm:$0xff] %v2044_v0  ;;  %563 = vst [vmem:[#allocation2 + $0x98] sm:$0xff] %v2044_v0 }
  0x4f   : > { %564 = vst [vmem:[#allocation2 + $0x120] sm:$0xff] %v2044_v0  ;;  %565 = vst [vmem:[#allocation2 + $0x150] sm:$0xff] %v2044_v0 }
  0x50   : > { %566 = vst [vmem:[#allocation2 + $0x108] sm:$0xff] %v2044_v0  ;;  %567 = vst [vmem:[#allocation2 + $0x60] sm:$0xff] %v2044_v0 }
  0x51   : > { %568 = vst [vmem:[#allocation2 + $0xe0] sm:$0xff] %v2044_v0  ;;  %569 = vst [vmem:[#allocation2 + $0x188] sm:$0xff] %v2044_v0 }
  0x52   : > { %570 = vst [vmem:[#allocation2 + $0x138] sm:$0xff] %v2044_v0  ;;  %571 = vst [vmem:[#allocation2 + $0x140] sm:$0xff] %v2044_v0 }
  0x53   : > { %572 = vst [vmem:[#allocation2 + $0x80] sm:$0xff] %v2044_v0  ;;  %573 = vst [vmem:[#allocation2 + $0x1a8] sm:$0xff] %v2044_v0 }
  0x54   : > { %574 = vst [vmem:[#allocation2 + $0x1b8] sm:$0xff] %v2044_v0  ;;  %575 = vst [vmem:[#allocation2 + $0x28] sm:$0xff] %v2044_v0 }
  0x55   : > { %576 = vst [vmem:[#allocation2 + $0x1e8] sm:$0xff] %v2044_v0  ;;  %577 = vst [vmem:[#allocation2 + $0xf8] sm:$0xff] %v2044_v0 }
  0x56   : > { %578 = vst [vmem:[#allocation2 + $0x160] sm:$0xff] %v2044_v0  ;;  %579 = vst [vmem:[#allocation2 + $0x30] sm:$0xff] %v2044_v0 }
  0x57   : > { %580 = vst [vmem:[#allocation2 + $0x1e0] sm:$0xff] %v2044_v0  ;;  %581 = vst [vmem:[#allocation2] sm:$0xff] %v2044_v0 }
  0x58   : > { %582 = vst [vmem:[#allocation2 + $0xf0] sm:$0xff] %v2044_v0  ;;  %583 = vst [vmem:[#allocation2 + $0x8] sm:$0xff] %v2044_v0 }
  0x59   : > { %584 = vst [vmem:[#allocation2 + $0x148] sm:$0xff] %v2044_v0  ;;  %585 = vst [vmem:[#allocation2 + $0x1d0] sm:$0xff] %v2044_v0 }
  0x5a   : > { %586 = vst [vmem:[#allocation2 + $0x100] sm:$0xff] %v2044_v0  ;;  %587 = vst [vmem:[#allocation2 + $0xc8] sm:$0xff] %v2044_v0 }
  0x5b   : > { %588 = vst [vmem:[#allocation2 + $0x40] sm:$0xff] %v2044_v0  ;;  %589 = vst [vmem:[#allocation2 + $0x1f8] sm:$0xff] %v2044_v0 }
  0x5c   : > { %590 = vst [vmem:[#allocation2 + $0x20] sm:$0xff] %v2044_v0  ;;  %591 = vst [vmem:[#allocation2 + $0x128] sm:$0xff] %v2044_v0 }
  0x5d   : > { %592 = vst [vmem:[#allocation2 + $0x1a0] sm:$0xff] %v2044_v0  ;;  %593 = vst [vmem:[#allocation2 + $0x1f0] sm:$0xff] %v2044_v0 }
  0x5e   : > { %594 = vst [vmem:[#allocation2 + $0xe8] sm:$0xff] %v2044_v0  ;;  %595 = vst [vmem:[#allocation2 + $0x78] sm:$0xff] %v2044_v0 }
  0x5f   : > { %596 = vst [vmem:[#allocation2 + $0x70] sm:$0xff] %v2044_v0  ;;  %597 = vst [vmem:[#allocation2 + $0x90] sm:$0xff] %v2044_v0 }
  0x60   : > { %598 = vst [vmem:[#allocation2 + $0x1d8] sm:$0xff] %v2044_v0  ;;  %599 = vst [vmem:[#allocation2 + $0xd0] sm:$0xff] %v2044_v0 }
  0x61   : > { %600 = vst [vmem:[#allocation2 + $0xb8] sm:$0xff] %v2044_v0  ;;  %601 = vst [vmem:[#allocation2 + $0x88] sm:$0xff] %v2044_v0 }
  0x62   : > { %602 = vst [vmem:[#allocation2 + $0xa8] sm:$0xff] %v2044_v0  ;;  %603 = vst [vmem:[#allocation2 + $0x1c8] sm:$0xff] %v2044_v0 }
  0x63   : > { %604 = vst [vmem:[#allocation2 + $0x170] sm:$0xff] %v2044_v0  ;;  %605 = vst [vmem:[#allocation2 + $0x178] sm:$0xff] %v2044_v0 }
  0x64   : > { %606 = vst [vmem:[#allocation2 + $0x68] sm:$0xff] %v2044_v0  ;;  %607 = vst [vmem:[#allocation2 + $0x190] sm:$0xff] %v2044_v0 }
  0x65   : > { %608 = vst [vmem:[#allocation2 + $0x198] sm:$0xff] %v2044_v0  ;;  %609 = vst [vmem:[#allocation2 + $0x38] sm:$0xff] %v2044_v0 }
  0x66   : > { %610 = vst [vmem:[#allocation2 + $0xc0] sm:$0xff] %v2044_v0  ;;  %611 = vst [vmem:[#allocation2 + $0x1c0] sm:$0xff] %v2044_v0 }
  0x67   : > { %612 = vst [vmem:[#allocation2 + $0x158] sm:$0xff] %v2044_v0  ;;  %613 = vst [vmem:[#allocation2 + $0x10] sm:$0xff] %v2044_v0 }
  0x68   : > { %614 = vst [vmem:[#allocation2 + $0x58] sm:$0xff] %v2044_v0  ;;  %615 = vst [vmem:[#allocation2 + $0xa0] sm:$0xff] %v2044_v0 }
  0x69 PF: > { %v1964_v1 = vld [vmem:[%s2247_s7 + $0x38] sm:$0xff]   ;;  %v1965_v2 = vld [vmem:[%s2247_s7 + $0x30] sm:$0xff]   ;;  %v1966_v3 = vld [vmem:[%s2247_s7 + $0x28] sm:$0xff]   ;;  %p1781_p11 = scmp.ne.s32.totalorder %s2034_s14, 12 }
  0x6a   : > { %1827 = vmatprep.subr.bf16.mxu0 %v1964_v1  ;;  %1907 = vmatprep.subr.bf16.mxu1 %v1964_v1  ;;  %v1967_v4 = vld [vmem:[%s2247_s7 + $0x20] sm:$0xff]   ;;  %v1968_v7 = vld [vmem:[%s2247_s7 + $0x18] sm:$0xff]   ;;  %v1969_v8 = vld [vmem:[%s2247_s7 + $0x10] sm:$0xff]  }
  0x6b   : > { %1828 = vmatpush3.bf16.msra.mxu0 %v1964_v1  ;;  %1915 = vmatpush3.bf16.msra.mxu1 %v1964_v1  ;;  %v1972_v5 = vld [vmem:[%s2249_s8] sm:$0xff]   ;;  %v1970_v9 = vld [vmem:[%s2247_s7 + $0x8] sm:$0xff]   ;;  %v1976_v13 = vld [vmem:[%s2249_s8 + $0x10] sm:$0xff]  }
  0x6c   : > { %1829 = vmatprep.subr.bf16.mxu0 %v1965_v2  ;;  %1908 = vmatprep.subr.bf16.mxu1 %v1965_v2  ;;  %v1973_v6 = vld [vmem:[%s2249_s8 + $0x80] sm:$0xff]   ;;  %v1974_v11 = vld [vmem:[%s2249_s8 + $0x8] sm:$0xff]   ;;  %v1977_v14 = vld [vmem:[%s2249_s8 + $0x90] sm:$0xff]  }
  0x6d   : > { %1843 = vmatprep.mubr.bf16.mxu0 %v1972_v5  ;;  %1875 = vmatprep.mubr.bf16.mxu1 %v1973_v6  ;;  %v1971_v10 = vld [vmem:[%s2247_s7] sm:$0xff]   ;;  %v1975_v12 = vld [vmem:[%s2249_s8 + $0x88] sm:$0xff]   ;;  %v1978_v15 = vld [vmem:[%s2249_s8 + $0x18] sm:$0xff]  }
  0x6e   : > { %v1979_v16 = vld [vmem:[%s2249_s8 + $0x98] sm:$0xff]   ;;  %v1980_v17 = vld [vmem:[%s2249_s8 + $0x20] sm:$0xff]   ;;  %v1982_v19 = vld [vmem:[%s2249_s8 + $0x28] sm:$0xff]  }
  0x6f   : > { %1830 = vmatpush3.bf16.msra.mxu0 %v1965_v2  ;;  %1916 = vmatpush3.bf16.msra.mxu1 %v1965_v2  ;;  %v1981_v18 = vld [vmem:[%s2249_s8 + $0xa0] sm:$0xff]   ;;  %v1983_v20 = vld [vmem:[%s2249_s8 + $0xa8] sm:$0xff]   ;;  %v1984_v21 = vld [vmem:[%s2249_s8 + $0x30] sm:$0xff]  }
  0x70   : > { %1831 = vmatprep.subr.bf16.mxu0 %v1966_v3  ;;  %1909 = vmatprep.subr.bf16.mxu1 %v1966_v3  ;;  %v1985_v22 = vld [vmem:[%s2249_s8 + $0xb0] sm:$0xff]   ;;  %v1986_v23 = vld [vmem:[%s2249_s8 + $0x38] sm:$0xff]   ;;  %v1988_v25 = vld [vmem:[%s2249_s8 + $0x40] sm:$0xff]  }
  0x71   : > { %v1987_v24 = vld [vmem:[%s2249_s8 + $0xb8] sm:$0xff]   ;;  %v1989_v26 = vld [vmem:[%s2249_s8 + $0xc0] sm:$0xff]   ;;  %v1990_v27 = vld [vmem:[%s2249_s8 + $0x48] sm:$0xff]  }
  0x72   : > { %v1991_v28 = vld [vmem:[%s2249_s8 + $0xc8] sm:$0xff]   ;;  %v1992_v29 = vld [vmem:[%s2249_s8 + $0x50] sm:$0xff]   ;;  %v1994_v31 = vld [vmem:[%s2249_s8 + $0x58] sm:$0xff]  }
  0x73   : > { %1832 = vmatpush3.bf16.msra.mxu0 %v1966_v3  ;;  %1917 = vmatpush3.bf16.msra.mxu1 %v1966_v3  ;;  %v1993_v30 = vld [vmem:[%s2249_s8 + $0xd0] sm:$0xff]   ;;  %v1995_v32 = vld [vmem:[%s2249_s8 + $0xd8] sm:$0xff]   ;;  %v1996_v33 = vld [vmem:[%s2249_s8 + $0x60] sm:$0xff]  }
  0x74   : > { %1833 = vmatprep.subr.bf16.mxu0 %v1967_v4  ;;  %1910 = vmatprep.subr.bf16.mxu1 %v1967_v4  ;;  %v1997_v34 = vld [vmem:[%s2249_s8 + $0xe0] sm:$0xff]   ;;  %v1998_v35 = vld [vmem:[%s2249_s8 + $0x68] sm:$0xff]   ;;  %v2000_v37 = vld [vmem:[%s2249_s8 + $0x70] sm:$0xff]  }
  0x75   : > { %v1999_v36 = vld [vmem:[%s2249_s8 + $0xe8] sm:$0xff]   ;;  %v2001_v38 = vld [vmem:[%s2249_s8 + $0xf0] sm:$0xff]   ;;  %v2002_v39 = vld [vmem:[%s2249_s8 + $0x78] sm:$0xff]  }
  0x76   : > { %v2003_v40 = vld [vmem:[%s2249_s8 + $0xf8] sm:$0xff]   ;;  %v650_v42 = vld [vmem:[#allocation2 + $0x100] sm:$0xff]  ;;  %v616_v45 = vld [vmem:[#allocation2 + $0xb0] sm:$0xff] }
  0x77   : > { %1834 = vmatpush3.bf16.msra.mxu0 %v1967_v4  ;;  %1918 = vmatpush3.bf16.msra.mxu1 %v1967_v4  ;;  %v618_v41 = vld [vmem:[#allocation2 + $0xd8] sm:$0xff]  ;;  %v648_v46 = vld [vmem:[#allocation2 + $0x148] sm:$0xff]  ;;  %v617_v57 = vld [vmem:[#allocation2 + $0x1b0] sm:$0xff] }
  0x78   : > { %1835 = vmatprep.subr.bf16.mxu0 %v1968_v7  ;;  %1911 = vmatprep.subr.bf16.mxu1 %v1968_v7  ;;  %v619_v51 = vld [vmem:[#allocation2 + $0x18] sm:$0xff]  ;;  %v651_v52 = vld [vmem:[#allocation2 + $0xc8] sm:$0xff]  ;;  %v649_v58 = vld [vmem:[#allocation2 + $0x1d0] sm:$0xff] }
  0x79   : > { %v622_v63 = vld [vmem:[#allocation2 + $0x130] sm:$0xff]  ;;  %v654_v0 = vld [vmem:[#allocation2 + $0x20] sm:$0xff] }
  0x7a   : > { %v620_v5 = vld [vmem:[#allocation2 + $0x50] sm:$0xff]  ;;  %v652_v6 = vld [vmem:[#allocation2 + $0x40] sm:$0xff] }
  0x7b   : > { %1836 = vmatpush3.bf16.msra.mxu0 %v1968_v7  ;;  %1919 = vmatpush3.bf16.msra.mxu1 %v1968_v7 }
  0x7c   : > { %1837 = vmatprep.subr.bf16.mxu0 %v1969_v8  ;;  %1912 = vmatprep.subr.bf16.mxu1 %v1969_v8 }
  0x7f   : > { %1838 = vmatpush3.bf16.msra.mxu0 %v1969_v8  ;;  %1920 = vmatpush3.bf16.msra.mxu1 %v1969_v8 }
  0x80   : > { %1839 = vmatprep.subr.bf16.mxu0 %v1970_v9  ;;  %1913 = vmatprep.subr.bf16.mxu1 %v1970_v9 }
  0x83   : > { %1840 = vmatpush3.bf16.msra.mxu0 %v1970_v9  ;;  %1921 = vmatpush3.bf16.msra.mxu1 %v1970_v9 }
  0x84   : > { %1841 = vmatprep.subr.bf16.mxu0 %v1971_v10  ;;  %1914 = vmatprep.subr.bf16.mxu1 %v1971_v10 }
  0x87   : > { %1842 = vmatpush3.bf16.msra.mxu0 %v1971_v10  ;;  %1922 = vmatpush3.bf16.msra.mxu1 %v1971_v10 }
  0x8a   : > { %1844 = vmatmul.mubr.bf16.vlgmr.msra.gmra.mxu0 %v1974_v11  ;;  %1876 = vmatmul.mubr.bf16.vlgmr.msra.gmra.mxu1 %v1975_v12  ;;  %v623_v11 = vld [vmem:[#allocation2 + $0x48] sm:$0xff] }
  0x8b   : > { %1847 = vmatprep.mubr.bf16.mxu0 %v1976_v13  ;;  %1879 = vmatprep.mubr.bf16.mxu1 %v1977_v14  ;;  %v655_v12 = vld [vmem:[#allocation2 + $0x128] sm:$0xff] }
  0x92   : > { %1848 = vmatmul.mubr.bf16.gmra.mxu0 %v1978_v15  ;;  %1880 = vmatmul.mubr.bf16.gmra.mxu1 %v1979_v16 }
  0x93   : > { %1851 = vmatprep.mubr.bf16.mxu0 %v1980_v17  ;;  %1883 = vmatprep.mubr.bf16.mxu1 %v1981_v18  ;;  %v621_v17 = vld [vmem:[#allocation2 + $0x168] sm:$0xff]  ;;  %v653_v18 = vld [vmem:[#allocation2 + $0x1f8] sm:$0xff] }
  0x9a   : > { %1852 = vmatmul.mubr.bf16.gmra.mxu0 %v1982_v19  ;;  %1884 = vmatmul.mubr.bf16.gmra.mxu1 %v1983_v20 }
  0x9b   : > { %1855 = vmatprep.mubr.bf16.mxu0 %v1984_v21  ;;  %1887 = vmatprep.mubr.bf16.mxu1 %v1985_v22 }
  0xa2   : > { %1856 = vmatmul.mubr.bf16.gmra.mxu0 %v1986_v23  ;;  %1888 = vmatmul.mubr.bf16.gmra.mxu1 %v1987_v24  ;;  %v626_v23 = vld [vmem:[#allocation2 + $0x118] sm:$0xff]  ;;  %v658_v24 = vld [vmem:[#allocation2 + $0xe8] sm:$0xff] }
  0xa3   : > { %1859 = vmatprep.mubr.bf16.mxu0 %v1988_v25  ;;  %1891 = vmatprep.mubr.bf16.mxu1 %v1989_v26 }
  0xaa   : > { %1860 = vmatmul.mubr.bf16.gmra.mxu0 %v1990_v27  ;;  %1892 = vmatmul.mubr.bf16.gmra.mxu1 %v1991_v28 }
  0xab   : > { %1863 = vmatprep.mubr.bf16.mxu0 %v1992_v29  ;;  %1895 = vmatprep.mubr.bf16.mxu1 %v1993_v30  ;;  %v624_v29 = vld [vmem:[#allocation2 + $0x180] sm:$0xff] }
  0xac   : > { %v656_v30 = vld [vmem:[#allocation2 + $0x1a0] sm:$0xff] }
  0xb2   : > { %1864 = vmatmul.mubr.bf16.gmra.mxu0 %v1994_v31  ;;  %1896 = vmatmul.mubr.bf16.gmra.mxu1 %v1995_v32 }
  0xb3   : > { %1867 = vmatprep.mubr.bf16.mxu0 %v1996_v33  ;;  %1899 = vmatprep.mubr.bf16.mxu1 %v1997_v34 }
  0xba   : > { %1868 = vmatmul.mubr.bf16.gmra.mxu0 %v1998_v35  ;;  %1900 = vmatmul.mubr.bf16.gmra.mxu1 %v1999_v36  ;;  %v627_v35 = vld [vmem:[#allocation2 + $0x98] sm:$0xff] }
  0xbb   : > { %1871 = vmatprep.mubr.bf16.mxu0 %v2000_v37  ;;  %1903 = vmatprep.mubr.bf16.mxu1 %v2001_v38  ;;  %v659_v36 = vld [vmem:[#allocation2 + $0x78] sm:$0xff] }
  0xc2   : > { %1872 = vmatmul.mubr.bf16.gmra.mxu0 %v2002_v39  ;;  %1904 = vmatmul.mubr.bf16.gmra.mxu1 %v2003_v40 }
 0x14a   : > { %v1845_v43 = vpop.f32.mrf.mxu0  ;;  %v1877_v44 = vpop.f32.mrf.mxu1 }
 0x14b   : > { %v1291_v47 = vadd.f32 %v1845_v43, %v618_v41  ;;  %v1323_v48 = vadd.f32 %v1877_v44, %v650_v42  ;;  %v625_v41 = vld [vmem:[#allocation2 + $0x110] sm:$0xff] }
 0x14c   : > { %v1034_v49 = vpop.f32.mrf.mxu0  ;;  %v1162_v50 = vpop.f32.mrf.mxu1  ;;  %v657_v42 = vld [vmem:[#allocation2 + $0x1f0] sm:$0xff] }
 0x14d   : > { %1355 = vst [vmem:[#allocation2 + $0xd8] sm:$0xff] %v1291_v47  ;;  %1387 = vst [vmem:[#allocation2 + $0x100] sm:$0xff] %v1323_v48  ;;  %v1289_v53 = vadd.f32 %v1034_v49, %v616_v45  ;;  %v1321_v54 = vadd.f32 %v1162_v50, %v648_v46  ;;  %v630_v47 = vld [vmem:[#allocation2 + $0x108] sm:$0xff]  ;;  %v662_v48 = vld [vmem:[#allocation2 + $0x1d8] sm:$0xff] }
 0x14e   : > { %v1846_v55 = vpop.f32.mrf.mxu0  ;;  %v1878_v56 = vpop.f32.mrf.mxu1 }
 0x14f   : > { %1353 = vst [vmem:[#allocation2 + $0xb0] sm:$0xff] %v1289_v53  ;;  %1385 = vst [vmem:[#allocation2 + $0x148] sm:$0xff] %v1321_v54  ;;  %v1292_v59 = vadd.f32 %v1846_v55, %v619_v51  ;;  %v1324_v60 = vadd.f32 %v1878_v56, %v651_v52  ;;  %v628_v53 = vld [vmem:[#allocation2 + $0x120] sm:$0xff]  ;;  %v660_v54 = vld [vmem:[#allocation2 + $0x70] sm:$0xff] }
 0x150   : > { %v1037_v61 = vpop.f32.mrf.mxu0  ;;  %v1165_v62 = vpop.f32.mrf.mxu1 }
 0x151   : > { %1356 = vst [vmem:[#allocation2 + $0x18] sm:$0xff] %v1292_v59  ;;  %1388 = vst [vmem:[#allocation2 + $0xc8] sm:$0xff] %v1324_v60  ;;  %v1290_v1 = vadd.f32 %v1037_v61, %v617_v57  ;;  %v1322_v2 = vadd.f32 %v1165_v62, %v649_v58  ;;  %v631_v59 = vld [vmem:[#allocation2 + $0x60] sm:$0xff]  ;;  %v663_v60 = vld [vmem:[#allocation2 + $0xd0] sm:$0xff] }
 0x152   : > { %v1849_v3 = vpop.f32.mrf.mxu0  ;;  %v1881_v4 = vpop.f32.mrf.mxu1 }
 0x153   : > { %1354 = vst [vmem:[#allocation2 + $0x1b0] sm:$0xff] %v1290_v1  ;;  %1386 = vst [vmem:[#allocation2 + $0x1d0] sm:$0xff] %v1322_v2  ;;  %v1295_v7 = vadd.f32 %v1849_v3, %v622_v63  ;;  %v1327_v8 = vadd.f32 %v1881_v4, %v654_v0  ;;  %v629_v1 = vld [vmem:[#allocation2 + $0x150] sm:$0xff] }
 0x154   : > { %v1050_v9 = vpop.f32.mrf.mxu0  ;;  %v1178_v10 = vpop.f32.mrf.mxu1  ;;  %v661_v2 = vld [vmem:[#allocation2 + $0x90] sm:$0xff] }
 0x155   : > { %1359 = vst [vmem:[#allocation2 + $0x130] sm:$0xff] %v1295_v7  ;;  %1391 = vst [vmem:[#allocation2 + $0x20] sm:$0xff] %v1327_v8  ;;  %v1293_v13 = vadd.f32 %v1050_v9, %v620_v5  ;;  %v1325_v14 = vadd.f32 %v1178_v10, %v652_v6  ;;  %v634_v7 = vld [vmem:[#allocation2 + $0x138] sm:$0xff]  ;;  %v666_v8 = vld [vmem:[#allocation2 + $0xa8] sm:$0xff] }
 0x156   : > { %v1850_v15 = vpop.f32.mrf.mxu0  ;;  %v1882_v16 = vpop.f32.mrf.mxu1 }
 0x157   : > { %1357 = vst [vmem:[#allocation2 + $0x50] sm:$0xff] %v1293_v13  ;;  %1389 = vst [vmem:[#allocation2 + $0x40] sm:$0xff] %v1325_v14  ;;  %v1296_v19 = vadd.f32 %v1850_v15, %v623_v11  ;;  %v1328_v20 = vadd.f32 %v1882_v16, %v655_v12  ;;  %v632_v13 = vld [vmem:[#allocation2 + $0xe0] sm:$0xff]  ;;  %v664_v14 = vld [vmem:[#allocation2 + $0xb8] sm:$0xff] }
 0x158   : > { %v1053_v21 = vpop.f32.mrf.mxu0  ;;  %v1181_v22 = vpop.f32.mrf.mxu1 }
 0x159   : > { %1360 = vst [vmem:[#allocation2 + $0x48] sm:$0xff] %v1296_v19  ;;  %1392 = vst [vmem:[#allocation2 + $0x128] sm:$0xff] %v1328_v20  ;;  %v1294_v25 = vadd.f32 %v1053_v21, %v621_v17  ;;  %v1326_v26 = vadd.f32 %v1181_v22, %v653_v18  ;;  %v635_v19 = vld [vmem:[#allocation2 + $0x140] sm:$0xff]  ;;  %v667_v20 = vld [vmem:[#allocation2 + $0x1c8] sm:$0xff] }
 0x15a   : > { %v1853_v27 = vpop.f32.mrf.mxu0  ;;  %v1885_v28 = vpop.f32.mrf.mxu1 }
 0x15b   : > { %1358 = vst [vmem:[#allocation2 + $0x168] sm:$0xff] %v1294_v25  ;;  %1390 = vst [vmem:[#allocation2 + $0x1f8] sm:$0xff] %v1326_v26  ;;  %v1299_v31 = vadd.f32 %v1853_v27, %v626_v23  ;;  %v1331_v32 = vadd.f32 %v1885_v28, %v658_v24  ;;  %v633_v25 = vld [vmem:[#allocation2 + $0x188] sm:$0xff] }
 0x15c   : > { %v1066_v33 = vpop.f32.mrf.mxu0  ;;  %v1194_v34 = vpop.f32.mrf.mxu1  ;;  %v665_v26 = vld [vmem:[#allocation2 + $0x88] sm:$0xff] }
 0x15d   : > { %1363 = vst [vmem:[#allocation2 + $0x118] sm:$0xff] %v1299_v31  ;;  %1395 = vst [vmem:[#allocation2 + $0xe8] sm:$0xff] %v1331_v32  ;;  %v1297_v37 = vadd.f32 %v1066_v33, %v624_v29  ;;  %v1329_v38 = vadd.f32 %v1194_v34, %v656_v30  ;;  %v638_v31 = vld [vmem:[#allocation2 + $0x1b8] sm:$0xff]  ;;  %v670_v32 = vld [vmem:[#allocation2 + $0x68] sm:$0xff] }
 0x15e   : > { %v1854_v39 = vpop.f32.mrf.mxu0  ;;  %v1886_v40 = vpop.f32.mrf.mxu1 }
 0x15f   : > { %1361 = vst [vmem:[#allocation2 + $0x180] sm:$0xff] %v1297_v37  ;;  %1393 = vst [vmem:[#allocation2 + $0x1a0] sm:$0xff] %v1329_v38  ;;  %v1300_v43 = vadd.f32 %v1854_v39, %v627_v35  ;;  %v1332_v44 = vadd.f32 %v1886_v40, %v659_v36  ;;  %v636_v37 = vld [vmem:[#allocation2 + $0x80] sm:$0xff]  ;;  %v668_v38 = vld [vmem:[#allocation2 + $0x170] sm:$0xff] }
 0x160   : > { %v1069_v45 = vpop.f32.mrf.mxu0  ;;  %v1197_v46 = vpop.f32.mrf.mxu1 }
 0x161   : > { %1364 = vst [vmem:[#allocation2 + $0x98] sm:$0xff] %v1300_v43  ;;  %1396 = vst [vmem:[#allocation2 + $0x78] sm:$0xff] %v1332_v44  ;;  %v1298_v49 = vadd.f32 %v1069_v45, %v625_v41  ;;  %v1330_v50 = vadd.f32 %v1197_v46, %v657_v42  ;;  %v639_v43 = vld [vmem:[#allocation2 + $0x28] sm:$0xff]  ;;  %v671_v44 = vld [vmem:[#allocation2 + $0x190] sm:$0xff] }
 0x162   : > { %v1857_v51 = vpop.f32.mrf.mxu0  ;;  %v1889_v52 = vpop.f32.mrf.mxu1 }
 0x163   : > { %1362 = vst [vmem:[#allocation2 + $0x110] sm:$0xff] %v1298_v49  ;;  %1394 = vst [vmem:[#allocation2 + $0x1f0] sm:$0xff] %v1330_v50  ;;  %v1303_v55 = vadd.f32 %v1857_v51, %v630_v47  ;;  %v1335_v56 = vadd.f32 %v1889_v52, %v662_v48  ;;  %v637_v49 = vld [vmem:[#allocation2 + $0x1a8] sm:$0xff]  ;;  %v669_v50 = vld [vmem:[#allocation2 + $0x178] sm:$0xff] }
 0x164   : > { %v1082_v57 = vpop.f32.mrf.mxu0  ;;  %v1210_v58 = vpop.f32.mrf.mxu1 }
 0x165   : > { %1367 = vst [vmem:[#allocation2 + $0x108] sm:$0xff] %v1303_v55  ;;  %1399 = vst [vmem:[#allocation2 + $0x1d8] sm:$0xff] %v1335_v56  ;;  %v1301_v61 = vadd.f32 %v1082_v57, %v628_v53  ;;  %v1333_v62 = vadd.f32 %v1210_v58, %v660_v54  ;;  %v642_v55 = vld [vmem:[#allocation2 + $0x160] sm:$0xff] }
 0x166   : > { %v1858_v63 = vpop.f32.mrf.mxu0  ;;  %v1890_v0 = vpop.f32.mrf.mxu1  ;;  %v674_v56 = vld [vmem:[#allocation2 + $0xc0] sm:$0xff] }
 0x167   : > { %1365 = vst [vmem:[#allocation2 + $0x120] sm:$0xff] %v1301_v61  ;;  %1397 = vst [vmem:[#allocation2 + $0x70] sm:$0xff] %v1333_v62  ;;  %v1304_v3 = vadd.f32 %v1858_v63, %v631_v59  ;;  %v1336_v4 = vadd.f32 %v1890_v0, %v663_v60  ;;  %v640_v61 = vld [vmem:[#allocation2 + $0x1e8] sm:$0xff]  ;;  %v672_v62 = vld [vmem:[#allocation2 + $0x198] sm:$0xff] }
 0x168   : > { %v1085_v5 = vpop.f32.mrf.mxu0  ;;  %v1213_v6 = vpop.f32.mrf.mxu1 }
 0x169   : > { %1368 = vst [vmem:[#allocation2 + $0x60] sm:$0xff] %v1304_v3  ;;  %1400 = vst [vmem:[#allocation2 + $0xd0] sm:$0xff] %v1336_v4  ;;  %v1302_v9 = vadd.f32 %v1085_v5, %v629_v1  ;;  %v1334_v10 = vadd.f32 %v1213_v6, %v661_v2  ;;  %v643_v3 = vld [vmem:[#allocation2 + $0x30] sm:$0xff]  ;;  %v675_v4 = vld [vmem:[#allocation2 + $0x1c0] sm:$0xff] }
 0x16a   : > { %v1861_v11 = vpop.f32.mrf.mxu0  ;;  %v1893_v12 = vpop.f32.mrf.mxu1 }
 0x16b   : > { %1366 = vst [vmem:[#allocation2 + $0x150] sm:$0xff] %v1302_v9  ;;  %1398 = vst [vmem:[#allocation2 + $0x90] sm:$0xff] %v1334_v10  ;;  %v1307_v15 = vadd.f32 %v1861_v11, %v634_v7  ;;  %v1339_v16 = vadd.f32 %v1893_v12, %v666_v8  ;;  %v641_v9 = vld [vmem:[#allocation2 + $0xf8] sm:$0xff] }
 0x16c   : > { %v1098_v17 = vpop.f32.mrf.mxu0  ;;  %v1226_v18 = vpop.f32.mrf.mxu1  ;;  %v673_v10 = vld [vmem:[#allocation2 + $0x38] sm:$0xff] }
 0x16d   : > { %1371 = vst [vmem:[#allocation2 + $0x138] sm:$0xff] %v1307_v15  ;;  %1403 = vst [vmem:[#allocation2 + $0xa8] sm:$0xff] %v1339_v16  ;;  %v1305_v21 = vadd.f32 %v1098_v17, %v632_v13  ;;  %v1337_v22 = vadd.f32 %v1226_v18, %v664_v14  ;;  %v646_v15 = vld [vmem:[#allocation2 + $0xf0] sm:$0xff]  ;;  %v678_v16 = vld [vmem:[#allocation2 + $0x58] sm:$0xff] }
 0x16e   : > { %v1862_v23 = vpop.f32.mrf.mxu0  ;;  %v1894_v24 = vpop.f32.mrf.mxu1 }
 0x16f   : > { %1369 = vst [vmem:[#allocation2 + $0xe0] sm:$0xff] %v1305_v21  ;;  %1401 = vst [vmem:[#allocation2 + $0xb8] sm:$0xff] %v1337_v22  ;;  %v1308_v27 = vadd.f32 %v1862_v23, %v635_v19  ;;  %v1340_v28 = vadd.f32 %v1894_v24, %v667_v20  ;;  %v644_v21 = vld [vmem:[#allocation2 + $0x1e0] sm:$0xff]  ;;  %v676_v22 = vld [vmem:[#allocation2 + $0x158] sm:$0xff] }
 0x170   : > { %v1101_v29 = vpop.f32.mrf.mxu0  ;;  %v1229_v30 = vpop.f32.mrf.mxu1 }
 0x171   : > { %1372 = vst [vmem:[#allocation2 + $0x140] sm:$0xff] %v1308_v27  ;;  %1404 = vst [vmem:[#allocation2 + $0x1c8] sm:$0xff] %v1340_v28  ;;  %v1306_v33 = vadd.f32 %v1101_v29, %v633_v25  ;;  %v1338_v34 = vadd.f32 %v1229_v30, %v665_v26  ;;  %v647_v27 = vld [vmem:[#allocation2 + $0x8] sm:$0xff]  ;;  %v679_v28 = vld [vmem:[#allocation2 + $0xa0] sm:$0xff] }
 0x172   : > { %v1865_v35 = vpop.f32.mrf.mxu0  ;;  %v1897_v36 = vpop.f32.mrf.mxu1 }
 0x173   : > { %1370 = vst [vmem:[#allocation2 + $0x188] sm:$0xff] %v1306_v33  ;;  %1402 = vst [vmem:[#allocation2 + $0x88] sm:$0xff] %v1338_v34  ;;  %v1311_v39 = vadd.f32 %v1865_v35, %v638_v31  ;;  %v1343_v40 = vadd.f32 %v1897_v36, %v670_v32  ;;  %v645_v33 = vld [vmem:[#allocation2] sm:$0xff]  ;;  %v677_v34 = vld [vmem:[#allocation2 + $0x10] sm:$0xff] }
 0x174   : > { %v1114_v41 = vpop.f32.mrf.mxu0  ;;  %v1242_v42 = vpop.f32.mrf.mxu1 }
 0x175   : > { %1375 = vst [vmem:[#allocation2 + $0x1b8] sm:$0xff] %v1311_v39  ;;  %1407 = vst [vmem:[#allocation2 + $0x68] sm:$0xff] %v1343_v40  ;;  %v1309_v45 = vadd.f32 %v1114_v41, %v636_v37  ;;  %v1341_v46 = vadd.f32 %v1242_v42, %v668_v38 }
 0x176   : > { %v1866_v47 = vpop.f32.mrf.mxu0  ;;  %v1898_v48 = vpop.f32.mrf.mxu1 }
 0x177   : > { %1373 = vst [vmem:[#allocation2 + $0x80] sm:$0xff] %v1309_v45  ;;  %1405 = vst [vmem:[#allocation2 + $0x170] sm:$0xff] %v1341_v46  ;;  %v1312_v51 = vadd.f32 %v1866_v47, %v639_v43  ;;  %v1344_v52 = vadd.f32 %v1898_v48, %v671_v44 }
 0x178   : > { %v1117_v53 = vpop.f32.mrf.mxu0  ;;  %v1245_v54 = vpop.f32.mrf.mxu1 }
 0x179   : > { %1376 = vst [vmem:[#allocation2 + $0x28] sm:$0xff] %v1312_v51  ;;  %1408 = vst [vmem:[#allocation2 + $0x190] sm:$0xff] %v1344_v52  ;;  %v1310_v57 = vadd.f32 %v1117_v53, %v637_v49  ;;  %v1342_v58 = vadd.f32 %v1245_v54, %v669_v50 }
 0x17a   : > { %v1869_v59 = vpop.f32.mrf.mxu0  ;;  %v1901_v60 = vpop.f32.mrf.mxu1 }
 0x17b   : > { %1374 = vst [vmem:[#allocation2 + $0x1a8] sm:$0xff] %v1310_v57  ;;  %1406 = vst [vmem:[#allocation2 + $0x178] sm:$0xff] %v1342_v58  ;;  %v1315_v63 = vadd.f32 %v1869_v59, %v642_v55  ;;  %v1347_v0 = vadd.f32 %v1901_v60, %v674_v56 }
 0x17c   : > { %v1130_v1 = vpop.f32.mrf.mxu0  ;;  %v1258_v2 = vpop.f32.mrf.mxu1 }
 0x17d   : > { %1379 = vst [vmem:[#allocation2 + $0x160] sm:$0xff] %v1315_v63  ;;  %1411 = vst [vmem:[#allocation2 + $0xc0] sm:$0xff] %v1347_v0  ;;  %v1313_v5 = vadd.f32 %v1130_v1, %v640_v61  ;;  %v1345_v6 = vadd.f32 %v1258_v2, %v672_v62 }
 0x17e   : > { %v1870_v7 = vpop.f32.mrf.mxu0  ;;  %v1902_v8 = vpop.f32.mrf.mxu1 }
 0x17f   : > { %1377 = vst [vmem:[#allocation2 + $0x1e8] sm:$0xff] %v1313_v5  ;;  %1409 = vst [vmem:[#allocation2 + $0x198] sm:$0xff] %v1345_v6  ;;  %v1316_v11 = vadd.f32 %v1870_v7, %v643_v3  ;;  %v1348_v12 = vadd.f32 %v1902_v8, %v675_v4 }
 0x180   : > { %v1133_v13 = vpop.f32.mrf.mxu0  ;;  %v1261_v14 = vpop.f32.mrf.mxu1 }
 0x181   : > { %1380 = vst [vmem:[#allocation2 + $0x30] sm:$0xff] %v1316_v11  ;;  %1412 = vst [vmem:[#allocation2 + $0x1c0] sm:$0xff] %v1348_v12  ;;  %v1314_v17 = vadd.f32 %v1133_v13, %v641_v9  ;;  %v1346_v18 = vadd.f32 %v1261_v14, %v673_v10 }
 0x182   : > { %v1873_v19 = vpop.f32.mrf.mxu0  ;;  %v1905_v20 = vpop.f32.mrf.mxu1 }
 0x183   : > { %1378 = vst [vmem:[#allocation2 + $0xf8] sm:$0xff] %v1314_v17  ;;  %1410 = vst [vmem:[#allocation2 + $0x38] sm:$0xff] %v1346_v18  ;;  %v1319_v23 = vadd.f32 %v1873_v19, %v646_v15  ;;  %v1351_v24 = vadd.f32 %v1905_v20, %v678_v16 }
 0x184   : > { %v1146_v25 = vpop.f32.mrf.mxu0  ;;  %v1274_v26 = vpop.f32.mrf.mxu1 }
 0x185   : > { %1383 = vst [vmem:[#allocation2 + $0xf0] sm:$0xff] %v1319_v23  ;;  %1415 = vst [vmem:[#allocation2 + $0x58] sm:$0xff] %v1351_v24  ;;  %v1317_v29 = vadd.f32 %v1146_v25, %v644_v21  ;;  %v1349_v30 = vadd.f32 %v1274_v26, %v676_v22 }
 0x186   : > { %v1874_v31 = vpop.f32.mrf.mxu0  ;;  %v1906_v32 = vpop.f32.mrf.mxu1 }
 0x187   : > { %1381 = vst [vmem:[#allocation2 + $0x1e0] sm:$0xff] %v1317_v29  ;;  %1413 = vst [vmem:[#allocation2 + $0x158] sm:$0xff] %v1349_v30  ;;  %v1320_v35 = vadd.f32 %v1874_v31, %v647_v27  ;;  %v1352_v36 = vadd.f32 %v1906_v32, %v679_v28  ;;  %1420 = sbr.rel (%p1781_p11) target bundleno = 431 (0x1af), region = 81 }
 0x188   : > { %v1149_v37 = vpop.f32.mrf.mxu0  ;;  %v1277_v38 = vpop.f32.mrf.mxu1 }
 0x189   : > { %1384 = vst [vmem:[#allocation2 + $0x8] sm:$0xff] %v1320_v35  ;;  %1416 = vst [vmem:[#allocation2 + $0xa0] sm:$0xff] %v1352_v36  ;;  %v1318_v39 = vadd.f32 %v1149_v37, %v645_v33  ;;  %v1350_v40 = vadd.f32 %v1277_v38, %v677_v34 }
 0x18b   : > { %1382 = vst [vmem:[#allocation2] sm:$0xff] %v1318_v39  ;;  %1414 = vst [vmem:[#allocation2 + $0x10] sm:$0xff] %v1350_v40 }
 0x18c   : > { %v1421_v41 = vld [vmem:[#allocation2 + $0xb0] sm:$0xff]  ;;  %v2360_v42 = vld [vmem:[%s2635_s2] ss:$0 sm:$0xff]  ;;  %v1423_v46 = vld [vmem:[#allocation2 + $0xd8] sm:$0xff] }
 0x18d   : > { %v1422_v43 = vld [vmem:[#allocation2 + $0x1b0] sm:$0xff]  ;;  %v1492_v44 = vadd.f32 %v2360_v42, %v1421_v41  ;;  %v1424_v47 = vld [vmem:[#allocation2 + $0x18] sm:$0xff]  ;;  %v1494_v49 = vadd.f32 %v2360_v42, %v1423_v46  ;;  %v1426_v52 = vld [vmem:[#allocation2 + $0x168] sm:$0xff] }
 0x18e   : > { %v1493_v45 = vadd.f32 %v2360_v42, %v1422_v43  ;;  %v1425_v48 = vld [vmem:[#allocation2 + $0x50] sm:$0xff]  ;;  %v1495_v50 = vadd.f32 %v2360_v42, %v1424_v47  ;;  %v1428_v54 = vld [vmem:[#allocation2 + $0x48] sm:$0xff]  ;;  %v1497_v55 = vadd.f32 %v2360_v42, %v1426_v52  ;;  %v1429_v58 = vld [vmem:[#allocation2 + $0x180] sm:$0xff] }
 0x18f   : > { %v1496_v51 = vadd.f32 %v2360_v42, %v1425_v48  ;;  %v1427_v53 = vld [vmem:[#allocation2 + $0x130] sm:$0xff]  ;;  %1556 = vst [vmem:[%s2636_s3] sm:$0xff] %v1492_v44  ;;  %v1499_v57 = vadd.f32 %v2360_v42, %v1428_v54  ;;  %v1431_v60 = vld [vmem:[#allocation2 + $0x118] sm:$0xff]  ;;  %1558 = vst [vmem:[%s2636_s3 + $0x10] sm:$0xff] %v1494_v49  ;;  %v1500_v61 = vadd.f32 %v2360_v42, %v1429_v58 }
 0x190   : > { %1557 = vst [vmem:[%s2636_s3 + $0x8] sm:$0xff] %v1493_v45  ;;  %v1498_v56 = vadd.f32 %v2360_v42, %v1427_v53  ;;  %v1430_v59 = vld [vmem:[#allocation2 + $0x110] sm:$0xff]  ;;  %1559 = vst [vmem:[%s2636_s3 + $0x18] sm:$0xff] %v1495_v50  ;;  %v1502_v63 = vadd.f32 %v2360_v42, %v1431_v60  ;;  %v1432_v0 = vld [vmem:[#allocation2 + $0x98] sm:$0xff] }
 0x191   : > { %1560 = vst [vmem:[%s2636_s3 + $0x20] sm:$0xff] %v1496_v51  ;;  %v1501_v62 = vadd.f32 %v2360_v42, %v1430_v59  ;;  %v1433_v1 = vld [vmem:[#allocation2 + $0x120] sm:$0xff]  ;;  %v1434_v2 = vld [vmem:[#allocation2 + $0x150] sm:$0xff]  ;;  %1561 = vst [vmem:[%s2636_s3 + $0x28] sm:$0xff] %v1497_v55  ;;  %v1503_v3 = vadd.f32 %v2360_v42, %v1432_v0 }
 0x192   : > { %1562 = vst [vmem:[%s2636_s3 + $0x30] sm:$0xff] %v1498_v56  ;;  %1563 = vst [vmem:[%s2636_s3 + $0x38] sm:$0xff] %v1499_v57  ;;  %v1504_v4 = vadd.f32 %v2360_v42, %v1433_v1  ;;  %v1505_v5 = vadd.f32 %v2360_v42, %v1434_v2  ;;  %v1435_v6 = vld [vmem:[#allocation2 + $0x108] sm:$0xff]  ;;  %v1436_v7 = vld [vmem:[#allocation2 + $0x60] sm:$0xff] }
 0x193   : > { %v1437_v8 = vld [vmem:[#allocation2 + $0xe0] sm:$0xff]  ;;  %1564 = vst [vmem:[%s2636_s3 + $0x40] sm:$0xff] %v1500_v61  ;;  %1565 = vst [vmem:[%s2636_s3 + $0x48] sm:$0xff] %v1501_v62  ;;  %v1506_v9 = vadd.f32 %v2360_v42, %v1435_v6  ;;  %v1507_v10 = vadd.f32 %v2360_v42, %v1436_v7  ;;  %v1438_v12 = vld [vmem:[#allocation2 + $0x188] sm:$0xff] }
 0x194   : > { %1566 = vst [vmem:[%s2636_s3 + $0x50] sm:$0xff] %v1502_v63  ;;  %v1508_v11 = vadd.f32 %v2360_v42, %v1437_v8  ;;  %v1439_v13 = vld [vmem:[#allocation2 + $0x138] sm:$0xff]  ;;  %v1440_v14 = vld [vmem:[#allocation2 + $0x140] sm:$0xff]  ;;  %1567 = vst [vmem:[%s2636_s3 + $0x58] sm:$0xff] %v1503_v3  ;;  %v1509_v15 = vadd.f32 %v2360_v42, %v1438_v12 }
 0x195   : > { %1568 = vst [vmem:[%s2636_s3 + $0x60] sm:$0xff] %v1504_v4  ;;  %1569 = vst [vmem:[%s2636_s3 + $0x68] sm:$0xff] %v1505_v5  ;;  %v1510_v16 = vadd.f32 %v2360_v42, %v1439_v13  ;;  %v1511_v17 = vadd.f32 %v2360_v42, %v1440_v14  ;;  %v1441_v18 = vld [vmem:[#allocation2 + $0x80] sm:$0xff]  ;;  %v1442_v19 = vld [vmem:[#allocation2 + $0x1a8] sm:$0xff] }
 0x196   : > { %v1443_v20 = vld [vmem:[#allocation2 + $0x1b8] sm:$0xff]  ;;  %1570 = vst [vmem:[%s2636_s3 + $0x70] sm:$0xff] %v1506_v9  ;;  %1571 = vst [vmem:[%s2636_s3 + $0x78] sm:$0xff] %v1507_v10  ;;  %v1512_v21 = vadd.f32 %v2360_v42, %v1441_v18  ;;  %v1513_v22 = vadd.f32 %v2360_v42, %v1442_v19  ;;  %v1444_v24 = vld [vmem:[#allocation2 + $0x28] sm:$0xff] }
 0x197   : > { %1572 = vst [vmem:[%s2636_s3 + $0x80] sm:$0xff] %v1508_v11  ;;  %v1514_v23 = vadd.f32 %v2360_v42, %v1443_v20  ;;  %v1445_v25 = vld [vmem:[#allocation2 + $0x1e8] sm:$0xff]  ;;  %v1446_v26 = vld [vmem:[#allocation2 + $0xf8] sm:$0xff]  ;;  %1573 = vst [vmem:[%s2636_s3 + $0x88] sm:$0xff] %v1509_v15  ;;  %v1515_v27 = vadd.f32 %v2360_v42, %v1444_v24 }
 0x198   : > { %1574 = vst [vmem:[%s2636_s3 + $0x90] sm:$0xff] %v1510_v16  ;;  %1575 = vst [vmem:[%s2636_s3 + $0x98] sm:$0xff] %v1511_v17  ;;  %v1516_v28 = vadd.f32 %v2360_v42, %v1445_v25  ;;  %v1517_v29 = vadd.f32 %v2360_v42, %v1446_v26  ;;  %v1447_v30 = vld [vmem:[#allocation2 + $0x160] sm:$0xff]  ;;  %v1448_v31 = vld [vmem:[#allocation2 + $0x30] sm:$0xff] }
 0x199   : > { %v1449_v32 = vld [vmem:[#allocation2 + $0x1e0] sm:$0xff]  ;;  %1576 = vst [vmem:[%s2636_s3 + $0xa0] sm:$0xff] %v1512_v21  ;;  %1577 = vst [vmem:[%s2636_s3 + $0xa8] sm:$0xff] %v1513_v22  ;;  %v1518_v33 = vadd.f32 %v2360_v42, %v1447_v30  ;;  %v1519_v34 = vadd.f32 %v2360_v42, %v1448_v31  ;;  %v1451_v37 = vld [vmem:[#allocation2 + $0xf0] sm:$0xff] }
 0x19a   : > { %1578 = vst [vmem:[%s2636_s3 + $0xb0] sm:$0xff] %v1514_v23  ;;  %v1520_v35 = vadd.f32 %v2360_v42, %v1449_v32  ;;  %v1450_v36 = vld [vmem:[#allocation2] sm:$0xff]  ;;  %v1452_v38 = vld [vmem:[#allocation2 + $0x8] sm:$0xff]  ;;  %1579 = vst [vmem:[%s2636_s3 + $0xb8] sm:$0xff] %v1515_v27  ;;  %v1522_v40 = vadd.f32 %v2360_v42, %v1451_v37 }
 0x19b   : > { %1580 = vst [vmem:[%s2636_s3 + $0xc0] sm:$0xff] %v1516_v28  ;;  %1581 = vst [vmem:[%s2636_s3 + $0xc8] sm:$0xff] %v1517_v29  ;;  %v1521_v39 = vadd.f32 %v2360_v42, %v1450_v36  ;;  %v1523_v41 = vadd.f32 %v2360_v42, %v1452_v38  ;;  %v1453_v43 = vld [vmem:[#allocation2 + $0x148] sm:$0xff]  ;;  %v1454_v44 = vld [vmem:[#allocation2 + $0x1d0] sm:$0xff] }
 0x19c   : > { %v1455_v45 = vld [vmem:[#allocation2 + $0x100] sm:$0xff]  ;;  %1582 = vst [vmem:[%s2636_s3 + $0xd0] sm:$0xff] %v1518_v33  ;;  %1583 = vst [vmem:[%s2636_s3 + $0xd8] sm:$0xff] %v1519_v34  ;;  %v1524_v46 = vadd.f32 %v2360_v42, %v1453_v43  ;;  %v1525_v47 = vadd.f32 %v2360_v42, %v1454_v44  ;;  %v1456_v49 = vld [vmem:[#allocation2 + $0xc8] sm:$0xff] }
 0x19d   : > { %1584 = vst [vmem:[%s2636_s3 + $0xe0] sm:$0xff] %v1520_v35  ;;  %v1526_v48 = vadd.f32 %v2360_v42, %v1455_v45  ;;  %v1457_v50 = vld [vmem:[#allocation2 + $0x40] sm:$0xff]  ;;  %v1458_v51 = vld [vmem:[#allocation2 + $0x1f8] sm:$0xff]  ;;  %1585 = vst [vmem:[%s2636_s3 + $0xe8] sm:$0xff] %v1521_v39  ;;  %v1527_v52 = vadd.f32 %v2360_v42, %v1456_v49 }
 0x19e   : > { %1586 = vst [vmem:[%s2636_s3 + $0xf0] sm:$0xff] %v1522_v40  ;;  %1587 = vst [vmem:[%s2636_s3 + $0xf8] sm:$0xff] %v1523_v41  ;;  %v1528_v53 = vadd.f32 %v2360_v42, %v1457_v50  ;;  %v1529_v54 = vadd.f32 %v2360_v42, %v1458_v51  ;;  %v1459_v55 = vld [vmem:[#allocation2 + $0x20] sm:$0xff]  ;;  %v1460_v56 = vld [vmem:[#allocation2 + $0x128] sm:$0xff] }
 0x19f   : > { %v1461_v57 = vld [vmem:[#allocation2 + $0x1a0] sm:$0xff]  ;;  %1588 = vst [vmem:[%s2636_s3 + $0x100] sm:$0xff] %v1524_v46  ;;  %1589 = vst [vmem:[%s2636_s3 + $0x108] sm:$0xff] %v1525_v47  ;;  %v1530_v58 = vadd.f32 %v2360_v42, %v1459_v55  ;;  %v1531_v59 = vadd.f32 %v2360_v42, %v1460_v56  ;;  %v1462_v61 = vld [vmem:[#allocation2 + $0x1f0] sm:$0xff] }
 0x1a0   : > { %1590 = vst [vmem:[%s2636_s3 + $0x110] sm:$0xff] %v1526_v48  ;;  %v1532_v60 = vadd.f32 %v2360_v42, %v1461_v57  ;;  %v1463_v62 = vld [vmem:[#allocation2 + $0xe8] sm:$0xff]  ;;  %v1464_v63 = vld [vmem:[#allocation2 + $0x78] sm:$0xff]  ;;  %1591 = vst [vmem:[%s2636_s3 + $0x118] sm:$0xff] %v1527_v52  ;;  %v1533_v0 = vadd.f32 %v2360_v42, %v1462_v61 }
 0x1a1   : > { %1592 = vst [vmem:[%s2636_s3 + $0x120] sm:$0xff] %v1528_v53  ;;  %1593 = vst [vmem:[%s2636_s3 + $0x128] sm:$0xff] %v1529_v54  ;;  %v1534_v1 = vadd.f32 %v2360_v42, %v1463_v62  ;;  %v1535_v2 = vadd.f32 %v2360_v42, %v1464_v63  ;;  %v1465_v3 = vld [vmem:[#allocation2 + $0x70] sm:$0xff]  ;;  %v1467_v5 = vld [vmem:[#allocation2 + $0x1d8] sm:$0xff] }
 0x1a2   : > { %v1466_v4 = vld [vmem:[#allocation2 + $0x90] sm:$0xff]  ;;  %1594 = vst [vmem:[%s2636_s3 + $0x130] sm:$0xff] %v1530_v58  ;;  %1595 = vst [vmem:[%s2636_s3 + $0x138] sm:$0xff] %v1531_v59  ;;  %v1536_v6 = vadd.f32 %v2360_v42, %v1465_v3  ;;  %v1538_v8 = vadd.f32 %v2360_v42, %v1467_v5  ;;  %v1469_v10 = vld [vmem:[#allocation2 + $0xb8] sm:$0xff] }
 0x1a3   : > { %1596 = vst [vmem:[%s2636_s3 + $0x140] sm:$0xff] %v1532_v60  ;;  %v1537_v7 = vadd.f32 %v2360_v42, %v1466_v4  ;;  %v1468_v9 = vld [vmem:[#allocation2 + $0xd0] sm:$0xff]  ;;  %v1470_v11 = vld [vmem:[#allocation2 + $0x88] sm:$0xff]  ;;  %1597 = vst [vmem:[%s2636_s3 + $0x148] sm:$0xff] %v1533_v0  ;;  %v1540_v13 = vadd.f32 %v2360_v42, %v1469_v10 }
 0x1a4   : > { %1598 = vst [vmem:[%s2636_s3 + $0x150] sm:$0xff] %v1534_v1  ;;  %1599 = vst [vmem:[%s2636_s3 + $0x158] sm:$0xff] %v1535_v2  ;;  %v1539_v12 = vadd.f32 %v2360_v42, %v1468_v9  ;;  %v1541_v14 = vadd.f32 %v2360_v42, %v1470_v11  ;;  %v1471_v15 = vld [vmem:[#allocation2 + $0xa8] sm:$0xff]  ;;  %v1473_v17 = vld [vmem:[#allocation2 + $0x170] sm:$0xff] }
 0x1a5   : > { %v1472_v16 = vld [vmem:[#allocation2 + $0x1c8] sm:$0xff]  ;;  %1600 = vst [vmem:[%s2636_s3 + $0x160] sm:$0xff] %v1536_v6  ;;  %1601 = vst [vmem:[%s2636_s3 + $0x168] sm:$0xff] %v1537_v7  ;;  %v1542_v18 = vadd.f32 %v2360_v42, %v1471_v15  ;;  %v1544_v20 = vadd.f32 %v2360_v42, %v1473_v17  ;;  %v1474_v21 = vld [vmem:[#allocation2 + $0x178] sm:$0xff] }
 0x1a6   : > { %1602 = vst [vmem:[%s2636_s3 + $0x170] sm:$0xff] %v1538_v8  ;;  %v1543_v19 = vadd.f32 %v2360_v42, %v1472_v16  ;;  %v1475_v22 = vld [vmem:[#allocation2 + $0x68] sm:$0xff]  ;;  %v1476_v23 = vld [vmem:[#allocation2 + $0x190] sm:$0xff]  ;;  %1603 = vst [vmem:[%s2636_s3 + $0x178] sm:$0xff] %v1539_v12  ;;  %v1545_v24 = vadd.f32 %v2360_v42, %v1474_v21 }
 0x1a7   : > { %1604 = vst [vmem:[%s2636_s3 + $0x180] sm:$0xff] %v1540_v13  ;;  %1605 = vst [vmem:[%s2636_s3 + $0x188] sm:$0xff] %v1541_v14  ;;  %v1546_v25 = vadd.f32 %v2360_v42, %v1475_v22  ;;  %v1547_v26 = vadd.f32 %v2360_v42, %v1476_v23  ;;  %v1477_v27 = vld [vmem:[#allocation2 + $0x198] sm:$0xff]  ;;  %v1479_v29 = vld [vmem:[#allocation2 + $0xc0] sm:$0xff] }
 0x1a8   : > { %v1478_v28 = vld [vmem:[#allocation2 + $0x38] sm:$0xff]  ;;  %1606 = vst [vmem:[%s2636_s3 + $0x190] sm:$0xff] %v1542_v18  ;;  %1607 = vst [vmem:[%s2636_s3 + $0x198] sm:$0xff] %v1543_v19  ;;  %v1548_v30 = vadd.f32 %v2360_v42, %v1477_v27  ;;  %v1550_v32 = vadd.f32 %v2360_v42, %v1479_v29  ;;  %v1480_v33 = vld [vmem:[#allocation2 + $0x1c0] sm:$0xff] }
 0x1a9   : > { %1608 = vst [vmem:[%s2636_s3 + $0x1a0] sm:$0xff] %v1544_v20  ;;  %v1549_v31 = vadd.f32 %v2360_v42, %v1478_v28  ;;  %v1481_v34 = vld [vmem:[#allocation2 + $0x158] sm:$0xff]  ;;  %v1482_v35 = vld [vmem:[#allocation2 + $0x10] sm:$0xff]  ;;  %1609 = vst [vmem:[%s2636_s3 + $0x1a8] sm:$0xff] %v1545_v24  ;;  %v1551_v36 = vadd.f32 %v2360_v42, %v1480_v33 }
 0x1aa   : > { %1610 = vst [vmem:[%s2636_s3 + $0x1b0] sm:$0xff] %v1546_v25  ;;  %1611 = vst [vmem:[%s2636_s3 + $0x1b8] sm:$0xff] %v1547_v26  ;;  %v1552_v37 = vadd.f32 %v2360_v42, %v1481_v34  ;;  %v1553_v38 = vadd.f32 %v2360_v42, %v1482_v35  ;;  %v1483_v39 = vld [vmem:[#allocation2 + $0x58] sm:$0xff]  ;;  %v1484_v40 = vld [vmem:[#allocation2 + $0xa0] sm:$0xff] }
 0x1ab   : > { %1612 = vst [vmem:[%s2636_s3 + $0x1c0] sm:$0xff] %v1548_v30  ;;  %1613 = vst [vmem:[%s2636_s3 + $0x1c8] sm:$0xff] %v1549_v31  ;;  %v1554_v41 = vadd.f32 %v2360_v42, %v1483_v39  ;;  %v1555_v43 = vadd.f32 %v2360_v42, %v1484_v40 }
 0x1ac   : > { %1614 = vst [vmem:[%s2636_s3 + $0x1d0] sm:$0xff] %v1550_v32  ;;  %1615 = vst [vmem:[%s2636_s3 + $0x1d8] sm:$0xff] %v1551_v36 }
 0x1ad   : > { %1616 = vst [vmem:[%s2636_s3 + $0x1e0] sm:$0xff] %v1552_v37  ;;  %1617 = vst [vmem:[%s2636_s3 + $0x1e8] sm:$0xff] %v1553_v38 }
 0x1ae   : > { %1618 = vst [vmem:[%s2636_s3 + $0x1f0] sm:$0xff] %v1554_v41  ;;  %1619 = vst [vmem:[%s2636_s3 + $0x1f8] sm:$0xff] %v1555_v43 }
 0x1af PF: > { %s13_s16 = sadd.s32 1, %s2042_s16   ;;  %s2637_s12 = smov %s2030_s13 }
 0x1b0   : > { %p10_p12 = scmp.ge.s32.totalorder %s13_s16, 15   ;;  %s2638_s13 = smov %s2100_s20 }
 0x1b1   : > { %s2639_s14 = smov %s2038_s15  ;;  %s2640_s15 = smov %s2642_s17 }
 0x1b2   :  { %12 = sbr.rel (!%p10_p12) target bundleno = 3 (0x3), region = 122 }

// kernel: _lambda_.48
= control target key start
LH: loop header
LB: loop body
LE: loop exit
PB: predicated region body
PF: predicated region fallthrough
CT: control target
= control target key end

     0   :  { %s1749_s1 = inlined_call_operand.vmem [shape: bf16[640,128], index: 1, kind: input, shape index: {}]   ;;  %s1750_s0 = inlined_call_operand.vmem [shape: bf16[128,640], index: 0, kind: input, shape index: {}]   ;;  %s1751_s2 = inlined_call_operand.vmem [shape: f32[1,128], index: 2, kind: input, shape index: {}]   ;;  %s1752_s3 = inlined_call_operand.vmem [shape: f32[128,128], index: 3, kind: output, shape index: {}]  }
   0x1   :  { %v1285_v0 = vld [vmem:[%s1749_s1 + $0x78] sm:$0xff]   ;;  %v1289_v4 = vld [vmem:[%s1749_s1 + $0x70] sm:$0xff]   ;;  %v1293_v8 = vld [vmem:[%s1749_s1 + $0x68] sm:$0xff]  }
   0x2   :  { %v1286_v1 = vld [vmem:[%s1749_s1 + $0xf8] sm:$0xff]   ;;  %1093 = vmatprep.subr.bf16.mxu0 %v1285_v0  ;;  %v1290_v5 = vld [vmem:[%s1749_s1 + $0xf0] sm:$0xff]   ;;  %v1294_v9 = vld [vmem:[%s1749_s1 + $0xe8] sm:$0xff]  }
   0x3   :  { %v1287_v2 = vld [vmem:[%s1749_s1 + $0x38] sm:$0xff]   ;;  %1157 = vmatprep.subr.bf16.mxu1 %v1286_v1  ;;  %v1291_v6 = vld [vmem:[%s1749_s1 + $0x30] sm:$0xff]   ;;  %v1295_v10 = vld [vmem:[%s1749_s1 + $0x28] sm:$0xff]  }
   0x4   :  { %v1288_v3 = vld [vmem:[%s1749_s1 + $0xb8] sm:$0xff]   ;;  %1094 = vmatpush3.bf16.msra.mxu0 %v1287_v2  ;;  %v1292_v7 = vld [vmem:[%s1749_s1 + $0xb0] sm:$0xff]   ;;  %v1296_v11 = vld [vmem:[%s1749_s1 + $0xa8] sm:$0xff]  }
   0x5   :  { %1158 = vmatpush3.bf16.msra.mxu1 %v1288_v3  ;;  %1095 = vmatprep.subr.bf16.mxu0 %v1289_v4  ;;  %v1297_v12 = vld [vmem:[%s1749_s1 + $0x60] sm:$0xff]   ;;  %v1301_v16 = vld [vmem:[%s1749_s1 + $0x58] sm:$0xff]   ;;  %v1305_v20 = vld [vmem:[%s1749_s1 + $0x50] sm:$0xff]  }
   0x6   :  { %1159 = vmatprep.subr.bf16.mxu1 %v1290_v5  ;;  %v1298_v13 = vld [vmem:[%s1749_s1 + $0xe0] sm:$0xff]   ;;  %v1302_v17 = vld [vmem:[%s1749_s1 + $0xd8] sm:$0xff]   ;;  %v1306_v21 = vld [vmem:[%s1749_s1 + $0xd0] sm:$0xff]  }
   0x7   :  { %v1299_v14 = vld [vmem:[%s1749_s1 + $0x20] sm:$0xff]   ;;  %v1303_v18 = vld [vmem:[%s1749_s1 + $0x18] sm:$0xff]   ;;  %v1307_v22 = vld [vmem:[%s1749_s1 + $0x10] sm:$0xff]  }
   0x8   :  { %1096 = vmatpush3.bf16.msra.mxu0 %v1291_v6  ;;  %v1300_v15 = vld [vmem:[%s1749_s1 + $0xa0] sm:$0xff]   ;;  %v1304_v19 = vld [vmem:[%s1749_s1 + $0x98] sm:$0xff]   ;;  %v1308_v23 = vld [vmem:[%s1749_s1 + $0x90] sm:$0xff]  }
   0x9   :  { %1160 = vmatpush3.bf16.msra.mxu1 %v1292_v7  ;;  %1097 = vmatprep.subr.bf16.mxu0 %v1293_v8  ;;  %v1309_v24 = vld [vmem:[%s1749_s1 + $0x48] sm:$0xff]   ;;  %v1313_v28 = vld [vmem:[%s1749_s1 + $0x40] sm:$0xff]   ;;  %v1323_v36 = vld [vmem:[%s1749_s1 + $0x138] sm:$0xff]  }
   0xa   :  { %1161 = vmatprep.subr.bf16.mxu1 %v1294_v9  ;;  %v1310_v25 = vld [vmem:[%s1749_s1 + $0xc8] sm:$0xff]   ;;  %v1314_v29 = vld [vmem:[%s1749_s1 + $0xc0] sm:$0xff]   ;;  %v1330_v39 = vld [vmem:[%s1749_s1 + $0x130] sm:$0xff]  }
   0xb   :  { %v1311_v26 = vld [vmem:[%s1749_s1 + $0x8] sm:$0xff]   ;;  %v1315_v30 = vld [vmem:[%s1749_s1] sm:$0xff]   ;;  %v1333_v43 = vld [vmem:[%s1750_s0 + $0x5c] ss:$20 sps:$4 sm:$0xff]  }
   0xc   :  { %1098 = vmatpush3.bf16.msra.mxu0 %v1295_v10  ;;  %v1312_v27 = vld [vmem:[%s1749_s1 + $0x88] sm:$0xff]   ;;  %v1316_v31 = vld [vmem:[%s1749_s1 + $0x80] sm:$0xff]   ;;  %v1338_v48 = vld [vmem:[%s1750_s0 + $0x7c] ss:$20 sps:$4 sm:$0xff]  }
   0xd   :  { %1162 = vmatpush3.bf16.msra.mxu1 %v1296_v11  ;;  %1099 = vmatprep.subr.bf16.mxu0 %v1297_v12  ;;  %v1317_v32 = vld [vmem:[%s1750_s0] ss:$20 sps:$4 sm:$0xff]   ;;  %v1319_v33 = vld [vmem:[%s1750_s0 + $0x4] ss:$20 sps:$4 sm:$0xff]   ;;  %v1320_v34 = vld [vmem:[%s1750_s0 + $0x8] ss:$20 sps:$4 sm:$0xff]  }
   0xe   :  { %1163 = vmatprep.subr.bf16.mxu1 %v1298_v13  ;;  %v1322_v35 = vld [vmem:[%s1750_s0 + $0xc] ss:$20 sps:$4 sm:$0xff]   ;;  %659 = vmatprep.mubr.bf16.mxu0 %v1319_v33  ;;  %v1326_v38 = vld [vmem:[%s1750_s0 + $0x34] ss:$20 sps:$4 sm:$0xff]   ;;  %v1329_v41 = vld [vmem:[%s1750_s0 + $0x30] ss:$20 sps:$4 sm:$0xff]  }
   0xf   :  { %756 = vmatprep.mubr.bf16.mxu1 %v1322_v35  ;;  %v1324_v37 = vld [vmem:[%s1750_s0 + $0x2c] ss:$20 sps:$4 sm:$0xff]   ;;  %v1328_v40 = vld [vmem:[%s1750_s0 + $0x28] ss:$20 sps:$4 sm:$0xff]   ;;  %v1335_v46 = vld [vmem:[%s1750_s0 + $0x50] ss:$20 sps:$4 sm:$0xff]  }
  0x10   :  { %1100 = vmatpush3.bf16.msra.mxu0 %v1299_v14  ;;  %v1331_v42 = vld [vmem:[%s1750_s0 + $0x54] ss:$20 sps:$4 sm:$0xff]   ;;  %v1344_v45 = vld [vmem:[%s1749_s1 + $0x120] sm:$0xff]   ;;  %v1336_v47 = vld [vmem:[%s1750_s0 + $0x58] ss:$20 sps:$4 sm:$0xff]  }
  0x11   :  { %1164 = vmatpush3.bf16.msra.mxu1 %v1300_v15  ;;  %1101 = vmatprep.subr.bf16.mxu0 %v1301_v16  ;;  %v1337_v44 = vld [vmem:[%s1749_s1 + $0x128] sm:$0xff]   ;;  %v1340_v49 = vld [vmem:[%s1750_s0 + $0x84] ss:$20 sps:$4 sm:$0xff]   ;;  %v1358_v51 = vld [vmem:[%s1749_s1 + $0x110] sm:$0xff]  }
  0x12   :  { %1165 = vmatprep.subr.bf16.mxu1 %v1302_v17  ;;  %v1351_v50 = vld [vmem:[%s1749_s1 + $0x118] sm:$0xff]   ;;  %v1343_v53 = vld [vmem:[%s1750_s0 + $0x80] ss:$20 sps:$4 sm:$0xff]   ;;  %v1365_v55 = vld [vmem:[%s1749_s1 + $0x108] sm:$0xff]  }
  0x13   :  { %v1342_v52 = vld [vmem:[%s1750_s0 + $0x78] ss:$20 sps:$4 sm:$0xff]   ;;  %v1372_v57 = vld [vmem:[%s1749_s1 + $0x100] sm:$0xff]   ;;  %v1350_v59 = vld [vmem:[%s1750_s0 + $0xa8] ss:$20 sps:$4 sm:$0xff]  }
  0x14   :  { %1102 = vmatpush3.bf16.msra.mxu0 %v1303_v18  ;;  %v1345_v54 = vld [vmem:[%s1750_s0 + $0xa4] ss:$20 sps:$4 sm:$0xff]   ;;  %v1347_v56 = vld [vmem:[%s1750_s0 + $0xac] ss:$20 sps:$4 sm:$0xff]   ;;  %v1354_v61 = vld [vmem:[%s1750_s0 + $0xd4] ss:$20 sps:$4 sm:$0xff]  }
  0x15   :  { %1166 = vmatpush3.bf16.msra.mxu1 %v1304_v19  ;;  %1103 = vmatprep.subr.bf16.mxu0 %v1305_v20  ;;  %v1349_v58 = vld [vmem:[%s1750_s0 + $0xa0] ss:$20 sps:$4 sm:$0xff]   ;;  %v1356_v62 = vld [vmem:[%s1750_s0 + $0xc8] ss:$20 sps:$4 sm:$0xff]   ;;  %v1357_v63 = vld [vmem:[%s1750_s0 + $0xd0] ss:$20 sps:$4 sm:$0xff]  }
  0x16   :  { %1167 = vmatprep.subr.bf16.mxu1 %v1306_v21  ;;  %v1352_v60 = vld [vmem:[%s1750_s0 + $0xcc] ss:$20 sps:$4 sm:$0xff]   ;;  %v1359_v0 = vld [vmem:[%s1750_s0 + $0xf4] ss:$20 sps:$4 sm:$0xff]   ;;  %v1361_v1 = vld [vmem:[%s1750_s0 + $0xfc] ss:$20 sps:$4 sm:$0xff]  }
  0x17   :  { %v1363_v2 = vld [vmem:[%s1750_s0 + $0xf0] ss:$20 sps:$4 sm:$0xff]   ;;  %v1364_v3 = vld [vmem:[%s1750_s0 + $0xf8] ss:$20 sps:$4 sm:$0xff]   ;;  %v1371_v7 = vld [vmem:[%s1750_s0 + $0x120] ss:$20 sps:$4 sm:$0xff]  }
  0x18   :  { %1104 = vmatpush3.bf16.msra.mxu0 %v1307_v22  ;;  %v1366_v4 = vld [vmem:[%s1750_s0 + $0x11c] ss:$20 sps:$4 sm:$0xff]   ;;  %v1368_v5 = vld [vmem:[%s1750_s0 + $0x124] ss:$20 sps:$4 sm:$0xff]   ;;  %v1377_v12 = vld [vmem:[%s1750_s0 + $0x60] ss:$20 sps:$4 sm:$0xff]  }
  0x19   :  { %1168 = vmatpush3.bf16.msra.mxu1 %v1308_v23  ;;  %1105 = vmatprep.subr.bf16.mxu0 %v1309_v24  ;;  %v1370_v6 = vld [vmem:[%s1750_s0 + $0x118] ss:$20 sps:$4 sm:$0xff]   ;;  %v1373_v8 = vld [vmem:[%s1750_s0 + $0x10] ss:$20 sps:$4 sm:$0xff]   ;;  %v1378_v13 = vld [vmem:[%s1750_s0 + $0x100] ss:$20 sps:$4 sm:$0xff]  }
  0x1a   :  { %1169 = vmatprep.subr.bf16.mxu1 %v1310_v25  ;;  %v1374_v9 = vld [vmem:[%s1750_s0 + $0xb0] ss:$20 sps:$4 sm:$0xff]   ;;  %v1375_v10 = vld [vmem:[%s1750_s0 + $0x38] ss:$20 sps:$4 sm:$0xff]   ;;  %v1379_v14 = vld [vmem:[%s1750_s0 + $0x88] ss:$20 sps:$4 sm:$0xff]  }
  0x1b   :  { %v1376_v11 = vld [vmem:[%s1750_s0 + $0xd8] ss:$20 sps:$4 sm:$0xff]   ;;  %v1380_v15 = vld [vmem:[%s1750_s0 + $0x128] ss:$20 sps:$4 sm:$0xff]  }
  0x1c   :  { %1106 = vmatpush3.bf16.msra.mxu0 %v1311_v26 }
  0x1d   :  { %1170 = vmatpush3.bf16.msra.mxu1 %v1312_v27  ;;  %1107 = vmatprep.subr.bf16.mxu0 %v1313_v28 }
  0x1e   :  { %1171 = vmatprep.subr.bf16.mxu1 %v1314_v29 }
  0x20   :  { %1108 = vmatpush3.bf16.msra.mxu0 %v1315_v30 }
  0x21   :  { %1172 = vmatpush3.bf16.msra.mxu1 %v1316_v31  ;;  %1237 = vmatprep.subr.bf16.mxu0 %v1323_v36 }
  0x22   :  { %1269 = vmatprep.subr.bf16.mxu1 %v1323_v36 }
  0x23   :  { %660 = vmatmul.mubr.bf16.vlgmr.msra.gmra.mxu0 %v1317_v32 }
  0x24   :  { %757 = vmatmul.mubr.bf16.vlgmr.msra.gmra.mxu1 %v1320_v34  ;;  %1238 = vmatpush3.bf16.msra.mxu0 %v1323_v36 }
  0x25   :  { %1277 = vmatpush3.bf16.msra.mxu1 %v1323_v36  ;;  %667 = vmatprep.mubr.bf16.mxu0 %v1324_v37 }
  0x26   :  { %764 = vmatprep.mubr.bf16.mxu1 %v1326_v38  ;;  %1239 = vmatprep.subr.bf16.mxu0 %v1330_v39 }
  0x27   :  { %1270 = vmatprep.subr.bf16.mxu1 %v1330_v39 }
  0x28   :  { %1240 = vmatpush3.bf16.msra.mxu0 %v1330_v39 }
  0x29   :  { %1278 = vmatpush3.bf16.msra.mxu1 %v1330_v39  ;;  %1241 = vmatprep.subr.bf16.mxu0 %v1337_v44 }
  0x2a   :  { %1271 = vmatprep.subr.bf16.mxu1 %v1337_v44 }
  0x2b   :  { %668 = vmatmul.mubr.bf16.gmra.mxu0 %v1328_v40 }
  0x2c   :  { %765 = vmatmul.mubr.bf16.gmra.mxu1 %v1329_v41  ;;  %675 = vmatprep.mubr.bf16.mxu0 %v1331_v42 }
  0x2d   :  { %772 = vmatprep.mubr.bf16.mxu1 %v1333_v43  ;;  %1242 = vmatpush3.bf16.msra.mxu0 %v1337_v44 }
  0x2e   :  { %1279 = vmatpush3.bf16.msra.mxu1 %v1337_v44  ;;  %1243 = vmatprep.subr.bf16.mxu0 %v1344_v45 }
  0x2f   :  { %1272 = vmatprep.subr.bf16.mxu1 %v1344_v45 }
  0x31   :  { %1244 = vmatpush3.bf16.msra.mxu0 %v1344_v45 }
  0x32   :  { %1280 = vmatpush3.bf16.msra.mxu1 %v1344_v45  ;;  %1245 = vmatprep.subr.bf16.mxu0 %v1351_v50 }
  0x33   :  { %676 = vmatmul.mubr.bf16.gmra.mxu0 %v1335_v46  ;;  %1273 = vmatprep.subr.bf16.mxu1 %v1351_v50 }
  0x34   :  { %773 = vmatmul.mubr.bf16.gmra.mxu1 %v1336_v47  ;;  %683 = vmatprep.mubr.bf16.mxu0 %v1338_v48 }
  0x35   :  { %780 = vmatprep.mubr.bf16.mxu1 %v1340_v49  ;;  %1246 = vmatpush3.bf16.msra.mxu0 %v1351_v50 }
  0x36   :  { %1281 = vmatpush3.bf16.msra.mxu1 %v1351_v50  ;;  %1247 = vmatprep.subr.bf16.mxu0 %v1358_v51 }
  0x37   :  { %1274 = vmatprep.subr.bf16.mxu1 %v1358_v51 }
  0x39   :  { %1248 = vmatpush3.bf16.msra.mxu0 %v1358_v51 }
  0x3a   :  { %1282 = vmatpush3.bf16.msra.mxu1 %v1358_v51  ;;  %1249 = vmatprep.subr.bf16.mxu0 %v1365_v55 }
  0x3b   :  { %684 = vmatmul.mubr.bf16.gmra.mxu0 %v1342_v52  ;;  %1275 = vmatprep.subr.bf16.mxu1 %v1365_v55 }
  0x3c   :  { %781 = vmatmul.mubr.bf16.gmra.mxu1 %v1343_v53  ;;  %691 = vmatprep.mubr.bf16.mxu0 %v1345_v54 }
  0x3d   :  { %788 = vmatprep.mubr.bf16.mxu1 %v1347_v56  ;;  %1250 = vmatpush3.bf16.msra.mxu0 %v1365_v55 }
  0x3e   :  { %1283 = vmatpush3.bf16.msra.mxu1 %v1365_v55  ;;  %1251 = vmatprep.subr.bf16.mxu0 %v1372_v57 }
  0x3f   :  { %1276 = vmatprep.subr.bf16.mxu1 %v1372_v57 }
  0x41   :  { %1252 = vmatpush3.bf16.msra.mxu0 %v1372_v57 }
  0x42   :  { %1284 = vmatpush3.bf16.msra.mxu1 %v1372_v57 }
  0x43   :  { %692 = vmatmul.mubr.bf16.gmra.mxu0 %v1349_v58 }
  0x44   :  { %789 = vmatmul.mubr.bf16.gmra.mxu1 %v1350_v59  ;;  %699 = vmatprep.mubr.bf16.mxu0 %v1352_v60 }
  0x45   :  { %796 = vmatprep.mubr.bf16.mxu1 %v1354_v61 }
  0x4b   :  { %700 = vmatmul.mubr.bf16.gmra.mxu0 %v1356_v62 }
  0x4c   :  { %797 = vmatmul.mubr.bf16.gmra.mxu1 %v1357_v63  ;;  %707 = vmatprep.mubr.bf16.mxu0 %v1359_v0 }
  0x4d   :  { %804 = vmatprep.mubr.bf16.mxu1 %v1361_v1 }
  0x53   :  { %708 = vmatmul.mubr.bf16.gmra.mxu0 %v1363_v2 }
  0x54   :  { %805 = vmatmul.mubr.bf16.gmra.mxu1 %v1364_v3  ;;  %715 = vmatprep.mubr.bf16.mxu0 %v1366_v4 }
  0x55   :  { %812 = vmatprep.mubr.bf16.mxu1 %v1368_v5 }
  0x5b   :  { %716 = vmatmul.mubr.bf16.gmra.mxu0 %v1370_v6 }
  0x5c   :  { %813 = vmatmul.mubr.bf16.gmra.mxu1 %v1371_v7  ;;  %1253 = vmatprep.mubr.bf16.mxu0 %v1373_v8 }
  0x5d   :  { %1261 = vmatprep.mubr.bf16.mxu1 %v1374_v9 }
  0x63   :  { %1254 = vmatmul.mubr.bf16.vlgmr.msra.gmra.mxu0 %v1375_v10 }
  0x64   :  { %1262 = vmatmul.mubr.bf16.vlgmr.msra.gmra.mxu1 %v1376_v11  ;;  %1257 = vmatprep.mubr.bf16.mxu0 %v1377_v12 }
  0x65   :  { %1265 = vmatprep.mubr.bf16.mxu1 %v1378_v13 }
  0x6b   :  { %1258 = vmatmul.mubr.bf16.gmra.mxu0 %v1379_v14 }
  0x6c   :  { %1266 = vmatmul.mubr.bf16.gmra.mxu1 %v1380_v15 }
  0xe3   :  { %v1109_v16 = vpop.f32.mrf.mxu0 }
  0xe4   :  { %v1173_v17 = vpop.f32.mrf.mxu1 }
  0xe5   :  { %v1110_v18 = vpop.f32.mrf.mxu0 }
  0xe6   :  { %v1174_v19 = vpop.f32.mrf.mxu1  ;;  %v1111_v10 = vadd.f32 %v1110_v18, %v1109_v16 }
  0xe7   :  { %v1112_v20 = vpop.f32.mrf.mxu0  ;;  %v1175_v11 = vadd.f32 %v1174_v19, %v1173_v17 }
  0xe8   :  { %v1176_v21 = vpop.f32.mrf.mxu1 }
  0xe9   :  { %v1113_v22 = vpop.f32.mrf.mxu0 }
  0xea   :  { %v1177_v23 = vpop.f32.mrf.mxu1  ;;  %v1114_v13 = vadd.f32 %v1113_v22, %v1112_v20  ;;  %v759_v20 = vadd.f32 %v1175_v11, %v1111_v10 }
  0xeb   :  { %v1115_v24 = vpop.f32.mrf.mxu0  ;;  %v1178_v14 = vadd.f32 %v1177_v23, %v1176_v21 }
  0xec   :  { %v1179_v25 = vpop.f32.mrf.mxu1 }
  0xed   :  { %v1116_v26 = vpop.f32.mrf.mxu0  ;;  %v762_v22 = vadd.f32 %v1178_v14, %v1114_v13 }
  0xee   :  { %v1180_v27 = vpop.f32.mrf.mxu1  ;;  %v1117_v15 = vadd.f32 %v1116_v26, %v1115_v24  ;;  %v1668_v26 = vld [vmem:[%s1751_s2] ss:$0 sm:$0xff] }
  0xef   :  { %v1118_v28 = vpop.f32.mrf.mxu0 }
  0xf0   :  { %v1182_v29 = vpop.f32.mrf.mxu1 }
  0xf1   :  { %v1119_v30 = vpop.f32.mrf.mxu0 }
  0xf2   :  { %v1183_v31 = vpop.f32.mrf.mxu1 }
  0xf3   :  { %v1121_v32 = vpop.f32.mrf.mxu0 }
  0xf4   :  { %v1185_v33 = vpop.f32.mrf.mxu1 }
  0xf5   :  { %v1122_v34 = vpop.f32.mrf.mxu0 }
  0xf6   :  { %v1186_v35 = vpop.f32.mrf.mxu1 }
  0xf7   :  { %v1641_v36 = vpop.f32.mrf.mxu0 }
  0xf8   :  { %1753 = vst [vmem:[#allocation3_spill] sm:$0xff] %v1641_v36  ;;  %v1643_v37 = vpop.f32.mrf.mxu1 }
  0xf9   :  { %1754 = vst [vmem:[#allocation4_spill] sm:$0xff] %v1643_v37  ;;  %v1645_v38 = vpop.f32.mrf.mxu0 }
  0xfa   :  { %1755 = vst [vmem:[#allocation5_spill] sm:$0xff] %v1645_v38  ;;  %v1647_v39 = vpop.f32.mrf.mxu1  ;;  %v1187_v38 = vadd.f32 %v1186_v35, %v1185_v33 }
  0xfb   :  { %1756 = vst [vmem:[#allocation6_spill] sm:$0xff] %v1647_v39  ;;  %v1127_v40 = vpop.f32.mrf.mxu0  ;;  %v1181_v39 = vadd.f32 %v1180_v27, %v1179_v25 }
  0xfc   :  { %v1191_v41 = vpop.f32.mrf.mxu1 }
  0xfd   :  { %v1128_v42 = vpop.f32.mrf.mxu0  ;;  %v767_v19 = vadd.f32 %v1181_v39, %v1117_v15 }
  0xfe   :  { %v1192_v43 = vpop.f32.mrf.mxu1  ;;  %v1129_v18 = vadd.f32 %v1128_v42, %v1127_v40 }
  0xff   :  { %v1649_v44 = vpop.f32.mrf.mxu0  ;;  %v1193_v21 = vadd.f32 %v1192_v43, %v1191_v41 }
 0x100   :  { %1757 = vst [vmem:[#allocation7_spill] sm:$0xff] %v1649_v44  ;;  %v1651_v45 = vpop.f32.mrf.mxu1  ;;  %v1184_v44 = vadd.f32 %v1183_v31, %v1182_v29 }
 0x101   :  { %1758 = vst [vmem:[#allocation8_spill] sm:$0xff] %v1651_v45  ;;  %v1653_v46 = vpop.f32.mrf.mxu0  ;;  %v1766_v29 = vld [vmem:[#allocation5_spill] sm:$0xff] }
 0x102   :  { %1759 = vst [vmem:[#allocation9_spill] sm:$0xff] %v1653_v46  ;;  %v1655_v47 = vpop.f32.mrf.mxu1  ;;  %v1772_v13 = vld [vmem:[#allocation6_spill] sm:$0xff] }
 0x103   :  { %1760 = vst [vmem:[#allocation10_spill] sm:$0xff] %v1655_v47  ;;  %v1133_v48 = vpop.f32.mrf.mxu0 }
 0x104   :  { %v1197_v49 = vpop.f32.mrf.mxu1 }
 0x105   :  { %v1134_v50 = vpop.f32.mrf.mxu0 }
 0x106   :  { %v1198_v51 = vpop.f32.mrf.mxu1  ;;  %v1135_v36 = vadd.f32 %v1134_v50, %v1133_v48 }
 0x107   :  { %v1136_v52 = vpop.f32.mrf.mxu0 }
 0x108   :  { %v1200_v53 = vpop.f32.mrf.mxu1 }
 0x109   :  { %v1137_v54 = vpop.f32.mrf.mxu0 }
 0x10a   :  { %v1201_v55 = vpop.f32.mrf.mxu1  ;;  %v1138_v35 = vadd.f32 %v1137_v54, %v1136_v52  ;;  %v1767_v52 = vld [vmem:[#allocation7_spill] sm:$0xff] }
 0x10b   :  { %v1139_v56 = vpop.f32.mrf.mxu0  ;;  %v1202_v39 = vadd.f32 %v1201_v55, %v1200_v53  ;;  %v1768_v53 = vld [vmem:[#allocation9_spill] sm:$0xff] }
 0x10c   :  { %v1203_v57 = vpop.f32.mrf.mxu1  ;;  %v1132_v54 = vadd.f32 %v1768_v53, %v1767_v52 }
 0x10d   :  { %v1140_v58 = vpop.f32.mrf.mxu0 }
 0x10e   :  { %v1204_v59 = vpop.f32.mrf.mxu1  ;;  %v1141_v47 = vadd.f32 %v1140_v58, %v1139_v56  ;;  %v783_v58 = vadd.f32 %v1193_v21, %v1129_v18 }
 0x10f   :  { %v1142_v60 = vpop.f32.mrf.mxu0  ;;  %v1205_v45 = vadd.f32 %v1204_v59, %v1203_v57 }
 0x110   :  { %v1206_v61 = vpop.f32.mrf.mxu1 }
 0x111   :  { %v1143_v62 = vpop.f32.mrf.mxu0  ;;  %v799_v27 = vadd.f32 %v1205_v45, %v1141_v47 }
 0x112   :  { %v1207_v63 = vpop.f32.mrf.mxu1  ;;  %v1144_v23 = vadd.f32 %v1143_v62, %v1142_v60  ;;  %v794_v62 = vadd.f32 %v1202_v39, %v1138_v35 }
 0x113   :  { %v1145_v0 = vpop.f32.mrf.mxu0  ;;  %v1208_v24 = vadd.f32 %v1207_v63, %v1206_v61  ;;  %v1769_v63 = vld [vmem:[#allocation8_spill] sm:$0xff] }
 0x114   :  { %v1209_v1 = vpop.f32.mrf.mxu1 }
 0x115   :  { %v1146_v2 = vpop.f32.mrf.mxu0  ;;  %v802_v57 = vadd.f32 %v1208_v24, %v1144_v23 }
 0x116   :  { %v1210_v3 = vpop.f32.mrf.mxu1  ;;  %v1147_v59 = vadd.f32 %v1146_v2, %v1145_v0  ;;  %v1770_v0 = vld [vmem:[#allocation10_spill] sm:$0xff] }
 0x117   :  { %v1657_v4 = vpop.f32.mrf.mxu0 }
 0x118   :  { %1761 = vst [vmem:[#allocation11_spill] sm:$0xff] %v1657_v4  ;;  %v1659_v5 = vpop.f32.mrf.mxu1  ;;  %v1120_v4 = vadd.f32 %v1119_v30, %v1118_v28  ;;  %v1765_v28 = vld [vmem:[#allocation3_spill] sm:$0xff] }
 0x119   :  { %1762 = vst [vmem:[#allocation12_spill] sm:$0xff] %v1659_v5  ;;  %v1661_v6 = vpop.f32.mrf.mxu0  ;;  %v1123_v5 = vadd.f32 %v1122_v34, %v1121_v32  ;;  %v1672_v30 = vadd.f32 %v1766_v29, %v1765_v28 }
 0x11a   :  { %1763 = vst [vmem:[#allocation13_spill] sm:$0xff] %v1661_v6  ;;  %v1663_v7 = vpop.f32.mrf.mxu1  ;;  %v770_v33 = vadd.f32 %v1184_v44, %v1120_v4  ;;  %v1211_v44 = vadd.f32 %v1210_v3, %v1209_v1  ;;  %v1196_v1 = vadd.f32 %v1770_v0, %v1769_v63 }
 0x11b   :  { %1764 = vst [vmem:[#allocation14_spill] sm:$0xff] %v1663_v7  ;;  %v1151_v8 = vpop.f32.mrf.mxu0  ;;  %v1199_v7 = vadd.f32 %v1198_v51, %v1197_v49  ;;  %v775_v34 = vadd.f32 %v1187_v38, %v1123_v5 }
 0x11c   :  { %v1215_v9 = vpop.f32.mrf.mxu1 }
 0x11d   :  { %v1152_v12 = vpop.f32.mrf.mxu0  ;;  %v791_v42 = vadd.f32 %v1199_v7, %v1135_v36 }
 0x11e   :  { %v1216_v37 = vpop.f32.mrf.mxu1  ;;  %v1153_v43 = vadd.f32 %v1152_v12, %v1151_v8  ;;  %v1771_v12 = vld [vmem:[#allocation4_spill] sm:$0xff] }
 0x11f   :  { %v1154_v46 = vpop.f32.mrf.mxu0  ;;  %v1217_v48 = vadd.f32 %v1216_v37, %v1215_v9  ;;  %v1190_v14 = vadd.f32 %v1772_v13, %v1771_v12 }
 0x120   :  { %v1218_v6 = vpop.f32.mrf.mxu1 }
 0x121   :  { %v1155_v16 = vpop.f32.mrf.mxu0  ;;  %v815_v5 = vadd.f32 %v1217_v48, %v1153_v43 }
 0x122   :  { %v1219_v17 = vpop.f32.mrf.mxu1  ;;  %v1156_v7 = vadd.f32 %v1155_v16, %v1154_v46  ;;  %v1773_v16 = vld [vmem:[#allocation11_spill] sm:$0xff] }
 0x123   :  { %v1255_v25 = vpop.f32.mrf.mxu0  ;;  %v1220_v8 = vadd.f32 %v1219_v17, %v1218_v6  ;;  %v807_v6 = vadd.f32 %v1211_v44, %v1147_v59  ;;  %v1774_v17 = vld [vmem:[#allocation13_spill] sm:$0xff] }
 0x124   :  { %v864_v31 = vadd.f32 %v1255_v25, %v767_v19  ;;  %v1263_v32 = vpop.f32.mrf.mxu1  ;;  %v1150_v19 = vadd.f32 %v1774_v17, %v1773_v16 }
 0x125   :  { %v896_v40 = vadd.f32 %v1263_v32, %v799_v27  ;;  %v855_v41 = vpop.f32.mrf.mxu0  ;;  %v818_v39 = vadd.f32 %v1220_v8, %v1156_v7 }
 0x126   :  { %v978_v49 = vadd.f32 %v1668_v26, %v864_v31  ;;  %v856_v50 = vadd.f32 %v855_v41, %v759_v20  ;;  %v887_v51 = vpop.f32.mrf.mxu1  ;;  %v1775_v20 = vld [vmem:[#allocation12_spill] sm:$0xff]  ;;  %v786_v31 = vadd.f32 %v1196_v1, %v1132_v54 }
 0x127   :  { %v986_v45 = vadd.f32 %v1668_v26, %v896_v40  ;;  %v888_v47 = vadd.f32 %v887_v51, %v791_v42  ;;  %v1256_v56 = vpop.f32.mrf.mxu0 }
 0x128   :  { %994 = vst [vmem:[%s1752_s3 + $0x10] sm:$0xff] %v978_v49  ;;  %v976_v36 = vadd.f32 %v1668_v26, %v856_v50  ;;  %v867_v38 = vadd.f32 %v1256_v56, %v770_v33  ;;  %v1264_v37 = vpop.f32.mrf.mxu1 }
 0x129   :  { %1002 = vst [vmem:[%s1752_s3 + $0x50] sm:$0xff] %v986_v45  ;;  %v984_v55 = vadd.f32 %v1668_v26, %v888_v47  ;;  %v899_v60 = vadd.f32 %v1264_v37, %v802_v57  ;;  %v858_v61 = vpop.f32.mrf.mxu0 }
 0x12a   :  { %992 = vst [vmem:[%s1752_s3] sm:$0xff] %v976_v36  ;;  %v979_v2 = vadd.f32 %v1668_v26, %v867_v38  ;;  %v859_v3 = vadd.f32 %v858_v61, %v762_v22  ;;  %v890_v4 = vpop.f32.mrf.mxu1  ;;  %v1776_v22 = vld [vmem:[#allocation14_spill] sm:$0xff] }
 0x12b   :  { %1000 = vst [vmem:[%s1752_s3 + $0x40] sm:$0xff] %v984_v55  ;;  %v987_v9 = vadd.f32 %v1668_v26, %v899_v60  ;;  %v891_v10 = vadd.f32 %v890_v4, %v794_v62  ;;  %v1259_v11 = vpop.f32.mrf.mxu0  ;;  %v1214_v21 = vadd.f32 %v1776_v22, %v1775_v20 }
 0x12c   :  { %995 = vst [vmem:[%s1752_s3 + $0x18] sm:$0xff] %v979_v2  ;;  %v977_v15 = vadd.f32 %v1668_v26, %v859_v3  ;;  %v880_v18 = vadd.f32 %v1259_v11, %v783_v58  ;;  %v1267_v46 = vpop.f32.mrf.mxu1 }
 0x12d   :  { %1003 = vst [vmem:[%s1752_s3 + $0x58] sm:$0xff] %v987_v9  ;;  %v985_v23 = vadd.f32 %v1668_v26, %v891_v10  ;;  %v912_v24 = vadd.f32 %v1267_v46, %v815_v5  ;;  %v871_v25 = vpop.f32.mrf.mxu0  ;;  %v810_v50 = vadd.f32 %v1214_v21, %v1150_v19 }
 0x12e   :  { %993 = vst [vmem:[%s1752_s3 + $0x8] sm:$0xff] %v977_v15  ;;  %v982_v27 = vadd.f32 %v1668_v26, %v880_v18  ;;  %v872_v28 = vadd.f32 %v871_v25, %v775_v34  ;;  %v903_v29 = vpop.f32.mrf.mxu1  ;;  %v778_v34 = vadd.f32 %v1190_v14, %v1672_v30 }
 0x12f   :  { %1001 = vst [vmem:[%s1752_s3 + $0x48] sm:$0xff] %v985_v23  ;;  %v990_v32 = vadd.f32 %v1668_v26, %v912_v24  ;;  %v904_v33 = vadd.f32 %v903_v29, %v807_v6  ;;  %v1260_v35 = vpop.f32.mrf.mxu0 }
 0x130   :  { %998 = vst [vmem:[%s1752_s3 + $0x30] sm:$0xff] %v982_v27  ;;  %v980_v40 = vadd.f32 %v1668_v26, %v872_v28  ;;  %v883_v41 = vadd.f32 %v1260_v35, %v786_v31  ;;  %v1268_v42 = vpop.f32.mrf.mxu1 }
 0x131   :  { %1006 = vst [vmem:[%s1752_s3 + $0x70] sm:$0xff] %v990_v32  ;;  %v988_v43 = vadd.f32 %v1668_v26, %v904_v33  ;;  %v915_v48 = vadd.f32 %v1268_v42, %v818_v39  ;;  %v874_v49 = vpop.f32.mrf.mxu0 }
 0x132   :  { %996 = vst [vmem:[%s1752_s3 + $0x20] sm:$0xff] %v980_v40  ;;  %v983_v51 = vadd.f32 %v1668_v26, %v883_v41  ;;  %v875_v45 = vadd.f32 %v874_v49, %v778_v34  ;;  %v906_v47 = vpop.f32.mrf.mxu1 }
 0x133   :  { %1004 = vst [vmem:[%s1752_s3 + $0x60] sm:$0xff] %v988_v43  ;;  %v991_v30 = vadd.f32 %v1668_v26, %v915_v48  ;;  %v907_v56 = vadd.f32 %v906_v47, %v810_v50 }
 0x134   :  { %999 = vst [vmem:[%s1752_s3 + $0x38] sm:$0xff] %v983_v51  ;;  %v981_v57 = vadd.f32 %v1668_v26, %v875_v45 }
 0x135   :  { %1007 = vst [vmem:[%s1752_s3 + $0x78] sm:$0xff] %v991_v30  ;;  %v989_v58 = vadd.f32 %v1668_v26, %v907_v56 }
 0x136   :  { %997 = vst [vmem:[%s1752_s3 + $0x28] sm:$0xff] %v981_v57 }
 0x137   :  { %1005 = vst [vmem:[%s1752_s3 + $0x68] sm:$0xff] %v989_v58 }

// kernel: _lambda_.50
= control target key start
LH: loop header
LB: loop body
LE: loop exit
PB: predicated region body
PF: predicated region fallthrough
CT: control target
= control target key end

     0   :  { %s294_s6 = smov 0   ;;  %s318_s0 = inlined_call_operand.vmem [shape: f32[2,64,128], index: 0, kind: input, shape index: {}]   ;;  %s319_s1 = inlined_call_operand.vmem [shape: f32[2,64,128], index: 1, kind: output, shape index: {}]  }
   0x1 LB: > { %s253_s7 = sadd.s32 4294967295, %s282_s6   ;;  %p257_p0 = scmp.ge.s32.totalorder %s282_s6, 1  ;;  %s282_s6 = sphi %s294_s6, %s11_s6  }
   0x2   : > { %p87_p1 = scmp.lt.s32.totalorder %s282_s6, 3 }
   0x4   : > { %p88_p2 = pnand %p257_p0, %p87_p1 }
   0x5   : > { %p107_p3 = scmp.lt.s32.totalorder (!%p88_p2), %s253_s7, 1 }
   0x6   : > { %91 = sbr.rel (%p88_p2) target bundleno = 73 (0x49), region = 24 }
   0xb   : > { %s321_s7 = smov (!%p107_p3, %s253_s7), 1 }
   0xc   : > { %s264_s8 = sshll.u32 %s321_s7, 6 }
   0xd   : > { %s111_s11 = scalar_lea.vmem %s318_s0, %s264_s8  ;;  %s116_s14 = scalar_lea.vmem %s319_s1, %s264_s8 }
   0xe   : > { %v117_v0 = vld [vmem:[%s111_s11] sm:$0xff]  ;;  %v118_v1 = vld [vmem:[%s111_s11 + $0x8] sm:$0xff]  ;;  %v119_v2 = vld [vmem:[%s111_s11 + $0x10] sm:$0xff] }
   0xf   : > { %v120_v3 = vld [vmem:[%s111_s11 + $0x18] sm:$0xff]  ;;  %v125_v4 = vadd.f32 %v118_v1, %v117_v0  ;;  %v138_v5 = vmul.f32 %v117_v0, %v117_v0  ;;  %v139_v6 = vmul.f32 %v118_v1, %v118_v1  ;;  %v140_v7 = vmul.f32 %v119_v2, %v119_v2  ;;  %v121_v8 = vld [vmem:[%s111_s11 + $0x20] sm:$0xff]  ;;  %v122_v12 = vld [vmem:[%s111_s11 + $0x28] sm:$0xff] }
  0x10   : > { %v141_v10 = vmul.f32 %v120_v3, %v120_v3  ;;  %v142_v14 = vmul.f32 %v121_v8, %v121_v8  ;;  %v123_v16 = vld [vmem:[%s111_s11 + $0x30] sm:$0xff]  ;;  %v143_v18 = vmul.f32 %v122_v12, %v122_v12  ;;  %v124_v20 = vld [vmem:[%s111_s11 + $0x38] sm:$0xff] }
  0x11   : > { %v126_v9 = vadd.f32 %v125_v4, %v119_v2  ;;  %v146_v11 = vadd.f32 %v139_v6, %v138_v5  ;;  %v144_v22 = vmul.f32 %v123_v16, %v123_v16  ;;  %v145_v25 = vmul.f32 %v124_v20, %v124_v20 }
  0x13   : > { %v127_v13 = vadd.f32 %v126_v9, %v120_v3  ;;  %v147_v15 = vadd.f32 %v146_v11, %v140_v7 }
  0x15   : > { %v128_v17 = vadd.f32 %v127_v13, %v121_v8  ;;  %v148_v19 = vadd.f32 %v147_v15, %v141_v10 }
  0x17   : > { %v129_v21 = vadd.f32 %v128_v17, %v122_v12  ;;  %v149_v23 = vadd.f32 %v148_v19, %v142_v14 }
  0x19   : > { %v130_v24 = vadd.f32 %v129_v21, %v123_v16  ;;  %v150_v26 = vadd.f32 %v149_v23, %v143_v18 }
  0x1b   : > { %v131_v27 = vadd.f32 %v130_v24, %v124_v20  ;;  %v151_v28 = vadd.f32 %v150_v26, %v144_v22 }
  0x1d   : > { %v132_v29 = vrot.slane %v131_v27, 4  ;;  %v152_v30 = vadd.f32 %v151_v28, %v145_v25 }
  0x1f   : > { %v133_v31 = vadd.f32 %v132_v29, %v131_v27  ;;  %v153_v32 = vrot.slane %v152_v30, 4 }
  0x21   : > { %v134_v33 = vrot.slane %v133_v31, 2  ;;  %v154_v34 = vadd.f32 %v153_v32, %v152_v30 }
  0x23   : > { %v135_v35 = vadd.f32 %v134_v33, %v133_v31  ;;  %v155_v36 = vrot.slane %v154_v34, 2 }
  0x25   : > { %v136_v37 = vrot.slane %v135_v35, 1  ;;  %v156_v38 = vadd.f32 %v155_v36, %v154_v34 }
  0x27   : > { %v137_v39 = vadd.f32 %v136_v37, %v135_v35  ;;  %v157_v40 = vrot.slane %v156_v38, 1 }
  0x29   : > { %v158_v41 = vadd.f32 %v157_v40, %v156_v38  ;;  %v159_v42 = vmul.f32 0.015625, %v137_v39 }
  0x2b   : > { %v160_v43 = vmul.f32 0.015625, %v158_v41  ;;  %v161_v44 = vmul.f32 %v159_v42, %v159_v42  ;;  %v164_v48 = vsub.f32 %v117_v0, %v159_v42  ;;  %v165_v49 = vsub.f32 %v118_v1, %v159_v42 }
  0x2c   : > { %v166_v50 = vsub.f32 %v119_v2, %v159_v42  ;;  %v167_v51 = vsub.f32 %v120_v3, %v159_v42  ;;  %v168_v52 = vsub.f32 %v121_v8, %v159_v42  ;;  %v169_v53 = vsub.f32 %v122_v12, %v159_v42 }
  0x2d   : > { %v162_v45 = vsub.f32 %v160_v43, %v161_v44  ;;  %v170_v54 = vsub.f32 %v123_v16, %v159_v42  ;;  %v171_v55 = vsub.f32 %v124_v20, %v159_v42 }
  0x2f   : > { %v163_v46 = vmax.f32 %v162_v45, 0.0 }
  0x31   : > { %v172_v47 = vadd.f32 1e-05, %v163_v46 }
  0x33   : > { %274 = vrsqrt.f32 %v172_v47 }
  0x40   : > { %v275_v56 = vpop.eup %274 }
  0x41   : > { %v174_v57 = vmul.f32 %v275_v56, %v164_v48  ;;  %v175_v58 = vmul.f32 %v275_v56, %v165_v49  ;;  %v176_v59 = vmul.f32 %v275_v56, %v166_v50  ;;  %v177_v60 = vmul.f32 %v275_v56, %v167_v51 }
  0x42   : > { %v178_v61 = vmul.f32 %v275_v56, %v168_v52  ;;  %v179_v62 = vmul.f32 %v275_v56, %v169_v53  ;;  %v180_v63 = vmul.f32 %v275_v56, %v170_v54  ;;  %v181_v0 = vmul.f32 %v275_v56, %v171_v55 }
  0x43   : > { %v182_v1 = vmax.f32 %v174_v57, 0.0  ;;  %v183_v2 = vmax.f32 %v175_v58, 0.0  ;;  %v184_v3 = vmax.f32 %v176_v59, 0.0  ;;  %v185_v4 = vmax.f32 %v177_v60, 0.0 }
  0x44   : > { %v186_v5 = vmax.f32 %v178_v61, 0.0  ;;  %v187_v6 = vmax.f32 %v179_v62, 0.0  ;;  %v188_v7 = vmax.f32 %v180_v63, 0.0  ;;  %v189_v8 = vmax.f32 %v181_v0, 0.0 }
  0x45   : > { %190 = vst [vmem:[%s116_s14] sm:$0xff] %v182_v1  ;;  %191 = vst [vmem:[%s116_s14 + $0x8] sm:$0xff] %v183_v2 }
  0x46   : > { %192 = vst [vmem:[%s116_s14 + $0x10] sm:$0xff] %v184_v3  ;;  %193 = vst [vmem:[%s116_s14 + $0x18] sm:$0xff] %v185_v4 }
  0x47   : > { %194 = vst [vmem:[%s116_s14 + $0x20] sm:$0xff] %v186_v5  ;;  %195 = vst [vmem:[%s116_s14 + $0x28] sm:$0xff] %v187_v6 }
  0x48   : > { %196 = vst [vmem:[%s116_s14 + $0x30] sm:$0xff] %v188_v7  ;;  %197 = vst [vmem:[%s116_s14 + $0x38] sm:$0xff] %v189_v8 }
  0x49 PF: > { %s11_s6 = sadd.s32 1, %s282_s6  }
  0x4a   : > { %p8_p4 = scmp.ge.s32.totalorder %s11_s6, 4  }
  0x4c   :  { %10 = sbr.rel (!%p8_p4) target bundleno = 1 (0x1), region = 54 }

// kernel: _lambda_.49
= control target key start
LH: loop header
LB: loop body
LE: loop exit
PB: predicated region body
PF: predicated region fallthrough
CT: control target
= control target key end

     0   :  { %s1501_s12 = smov 0   ;;  %s1503_s13 = smov 0   ;;  %s1739_s0 = inlined_call_operand.vmem [shape: bf16[128,1152], index: 0, kind: input, shape index: {}]   ;;  %s1740_s1 = inlined_call_operand.vmem [shape: bf16[1152,128], index: 1, kind: input, shape index: {}]   ;;  %s1741_s2 = inlined_call_operand.vmem [shape: f32[1,128], index: 2, kind: input, shape index: {}]   ;;  %s1742_s3 = inlined_call_operand.vmem [shape: f32[128,128], index: 3, kind: output, shape index: {}]  }
   0x1   :  { %s1505_s14 = smov 0   ;;  %s1507_s15 = smov 0  }
   0x2   :  { %s1509_s16 = smov 0  }
   0x3 LB: > { %s25_s17 = sadd.s32 1, %s1474_s15  ;;  %p48_p1 = scmp.ne.s32.totalorder %s1466_s13, %s1462_s12  ;;  %s1478_s16 = sphi %s1509_s16, %s13_s16   ;;  %s1474_s15 = sphi %s1507_s15, %s1746_s15   ;;  %s1470_s14 = sphi %s1505_s14, %s1745_s14   ;;  %s1466_s13 = sphi %s1503_s13, %s1744_s13   ;;  %s1462_s12 = sphi %s1501_s12, %s1743_s12  }
   0x4   : > { %p26_p0 = scmp.ge.s32.totalorder %s25_s17, 3  ;;  %p49_p2 = scmp.eq.s32.totalorder %s1478_s16, 0 }
   0x5   : > { %s41_s19 = sadd.s32 1, %s1466_s13  ;;  %p1137_p5 = scmp.ge.s32.totalorder %s1478_s16, 3 }
   0x6   : > { %s1748_s17 = smov (%p26_p0, %s25_s17), 0  ;;  %p50_p3 = por %p49_p2, %p48_p1 }
   0x7   : > { %s37_s18 = ssub.s32 %s1474_s15, %s1748_s17  ;;  %162 = sbr.rel (%p1137_p5) target bundleno = 35 (0x23), region = 20 }
   0x8   : > { %p39_p4 = scmp.eq.s32.totalorder %s37_s18, 0 }
   0xa   : > { %s1536_s20 = scalar_select %p39_p4, %s1466_s13, %s41_s19  }
   0xc   : > { %165 = sbr.rel (!%p50_p3) target bundleno = 35 (0x23), region = 24  ;;  %s167_s21 = sand.u32 (%p50_p3), 1, %s1466_s13  }
   0xd   : > { %s1228_s22 = smul.u32 (%p50_p3), 12, %s1474_s15 }
   0xe   : > { %s1341_s23 = smul.u32 (%p50_p3), 192, %s167_s21 }
   0xf   : > { %s1544_s26 = scalar_lea.vmem (%p50_p3), %s1739_s0, %s1228_s22 }
  0x10   : > { %v190_v0 = vld [vmem:[%s1544_s26] sm:$0xff] (%p50_p3)  ;;  %v194_v2 = vld [vmem:[%s1544_s26 + $0x48] sm:$0xff] (%p50_p3)  ;;  %s1549_s27 = scalar_lea.vmem (%p50_p3), [#allocation3], %s1341_s23  ;;  %v198_v4 = vld [vmem:[%s1544_s26 + $0x90] sm:$0xff] (%p50_p3) }
  0x11   : > { %v192_v1 = vld [vmem:[%s1544_s26 + $0x24] sm:$0xff]  ;;  %191 = vst [vmem:[%s1549_s27] sm:$0xff] %v190_v0  ;;  %195 = vst [vmem:[%s1549_s27 + $0x18] sm:$0xff] %v194_v2  ;;  %v196_v3 = vld [vmem:[%s1544_s26 + $0x6c] sm:$0xff] }
  0x12   : > { %193 = vst [vmem:[%s1549_s27 + $0xc] sm:$0xff] %v192_v1  ;;  %v200_v5 = vld [vmem:[%s1544_s26 + $0xb4] sm:$0xff]  ;;  %197 = vst [vmem:[%s1549_s27 + $0x24] sm:$0xff] %v196_v3  ;;  %v204_v7 = vld [vmem:[%s1544_s26 + $0xfc] sm:$0xff] }
  0x13   : > { %199 = vst [vmem:[%s1549_s27 + $0x30] sm:$0xff] %v198_v4  ;;  %201 = vst [vmem:[%s1549_s27 + $0x3c] sm:$0xff] %v200_v5  ;;  %v202_v6 = vld [vmem:[%s1544_s26 + $0xd8] sm:$0xff]  ;;  %v206_v8 = vld [vmem:[%s1544_s26 + $0x120] sm:$0xff] }
  0x14   : > { %203 = vst [vmem:[%s1549_s27 + $0x48] sm:$0xff] %v202_v6  ;;  %205 = vst [vmem:[%s1549_s27 + $0x54] sm:$0xff] %v204_v7  ;;  %v208_v9 = vld [vmem:[%s1544_s26 + $0x144] sm:$0xff]  ;;  %v212_v11 = vld [vmem:[%s1544_s26 + $0x18c] sm:$0xff] }
  0x15   : > { %207 = vst [vmem:[%s1549_s27 + $0x60] sm:$0xff] %v206_v8  ;;  %v210_v10 = vld [vmem:[%s1544_s26 + $0x168] sm:$0xff]  ;;  %209 = vst [vmem:[%s1549_s27 + $0x6c] sm:$0xff] %v208_v9  ;;  %v214_v12 = vld [vmem:[%s1544_s26 + $0x1b0] sm:$0xff] }
  0x16   : > { %211 = vst [vmem:[%s1549_s27 + $0x78] sm:$0xff] %v210_v10  ;;  %213 = vst [vmem:[%s1549_s27 + $0x84] sm:$0xff] %v212_v11  ;;  %v216_v13 = vld [vmem:[%s1544_s26 + $0x1d4] sm:$0xff]  ;;  %v220_v15 = vld [vmem:[%s1544_s26 + $0x21c] sm:$0xff] }
  0x17   : > { %v218_v14 = vld [vmem:[%s1544_s26 + $0x1f8] sm:$0xff]  ;;  %215 = vst [vmem:[%s1549_s27 + $0x90] sm:$0xff] %v214_v12  ;;  %217 = vst [vmem:[%s1549_s27 + $0x9c] sm:$0xff] %v216_v13  ;;  %v1139_v16 = vld [vmem:[%s1544_s26 + $0x8] sm:$0xf] }
  0x18   : > { %219 = vst [vmem:[%s1549_s27 + $0xa8] sm:$0xff] %v218_v14  ;;  %v1141_v17 = vld [vmem:[%s1544_s26 + $0x2c] sm:$0xf]  ;;  %221 = vst [vmem:[%s1549_s27 + $0xb4] sm:$0xff] %v220_v15  ;;  %v1143_v18 = vld [vmem:[%s1544_s26 + $0x50] sm:$0xf] }
  0x19   : > { %1140 = vst [vmem:[%s1549_s27 + $0x8] sm:$0xf] %v1139_v16  ;;  %1142 = vst [vmem:[%s1549_s27 + $0x14] sm:$0xf] %v1141_v17  ;;  %v1145_v19 = vld [vmem:[%s1544_s26 + $0x74] sm:$0xf] }
  0x1a   : > { %v1147_v20 = vld [vmem:[%s1544_s26 + $0x98] sm:$0xf]  ;;  %1144 = vst [vmem:[%s1549_s27 + $0x20] sm:$0xf] %v1143_v18  ;;  %1146 = vst [vmem:[%s1549_s27 + $0x2c] sm:$0xf] %v1145_v19 }
  0x1b   : > { %1148 = vst [vmem:[%s1549_s27 + $0x38] sm:$0xf] %v1147_v20  ;;  %v1149_v21 = vld [vmem:[%s1544_s26 + $0xbc] sm:$0xf]  ;;  %v1151_v22 = vld [vmem:[%s1544_s26 + $0xe0] sm:$0xf] }
  0x1c   : > { %v1153_v23 = vld [vmem:[%s1544_s26 + $0x104] sm:$0xf]  ;;  %1150 = vst [vmem:[%s1549_s27 + $0x44] sm:$0xf] %v1149_v21  ;;  %1152 = vst [vmem:[%s1549_s27 + $0x50] sm:$0xf] %v1151_v22 }
  0x1d   : > { %1154 = vst [vmem:[%s1549_s27 + $0x5c] sm:$0xf] %v1153_v23  ;;  %v1155_v24 = vld [vmem:[%s1544_s26 + $0x128] sm:$0xf]  ;;  %v1157_v25 = vld [vmem:[%s1544_s26 + $0x14c] sm:$0xf] }
  0x1e   : > { %v1159_v26 = vld [vmem:[%s1544_s26 + $0x170] sm:$0xf]  ;;  %1156 = vst [vmem:[%s1549_s27 + $0x68] sm:$0xf] %v1155_v24  ;;  %1158 = vst [vmem:[%s1549_s27 + $0x74] sm:$0xf] %v1157_v25 }
  0x1f   : > { %1160 = vst [vmem:[%s1549_s27 + $0x80] sm:$0xf] %v1159_v26  ;;  %v1161_v27 = vld [vmem:[%s1544_s26 + $0x194] sm:$0xf]  ;;  %v1163_v28 = vld [vmem:[%s1544_s26 + $0x1b8] sm:$0xf] }
  0x20   : > { %v1165_v29 = vld [vmem:[%s1544_s26 + $0x1dc] sm:$0xf]  ;;  %1162 = vst [vmem:[%s1549_s27 + $0x8c] sm:$0xf] %v1161_v27  ;;  %1164 = vst [vmem:[%s1549_s27 + $0x98] sm:$0xf] %v1163_v28 }
  0x21   : > { %1166 = vst [vmem:[%s1549_s27 + $0xa4] sm:$0xf] %v1165_v29  ;;  %v1167_v30 = vld [vmem:[%s1544_s26 + $0x200] sm:$0xf]  ;;  %v1169_v31 = vld [vmem:[%s1544_s26 + $0x224] sm:$0xf] }
  0x22   : > { %1168 = vst [vmem:[%s1549_s27 + $0xb0] sm:$0xf] %v1167_v30  ;;  %1170 = vst [vmem:[%s1549_s27 + $0xbc] sm:$0xf] %v1169_v31 }
  0x23 PF: > { %p1171_p6 = scmp.ge.s32.totalorder %s1478_s16, 1  ;;  %p278_p7 = scmp.lt.s32.totalorder %s1478_s16, 4 }
  0x25   : > { %p279_p8 = pnand %p1171_p6, %p278_p7 }
  0x26   : > { %s285_s28 = sand.u32 (!%p279_p8), 1, %s1462_s12   ;;  %s324_s29 = smul.u32 (!%p279_p8), 48, %s1470_s14 }
  0x27   : > { %282 = sbr.rel (%p279_p8) target bundleno = 364 (0x16c), region = 54  ;;  %p1173_p10 = scmp.ne.s32.totalorder (!%p279_p8), %s1470_s14, 0 }
  0x28   : > { %s1342_s30 = smul.u32 (!%p279_p8), 192, %s285_s28  ;;  %p325_p9 = scmp.lt.s32.totalorder (!%p279_p8), %s324_s29, 143 }
  0x2a   : > { %s1621_s8 = scalar_lea.vmem (!%p279_p8), [#allocation3], %s1342_s30 }
  0x2c   : > { %s1750_s29 = smov (!%p325_p9, %s324_s29), 143  ;;  %349 = sbr.rel (%p1173_p10) target bundleno = 58 (0x3a), region = 62 }
  0x2d   : > { %s1172_s4 = sshll.u32 %s1750_s29, 2 }
  0x2e   : > { %s1619_s7 = scalar_lea.vmem %s1740_s1, %s1172_s4 }
  0x31   : > { %v1480_v32 = vmov 0.0  }
  0x32   : > { %350 = vst [vmem:[#allocation2 + $0x30] sm:$0xff] %v1480_v32  ;;  %351 = vst [vmem:[#allocation2] sm:$0xff] %v1480_v32 }
  0x33   : > { %352 = vst [vmem:[#allocation2 + $0x58] sm:$0xff] %v1480_v32  ;;  %353 = vst [vmem:[#allocation2 + $0x18] sm:$0xff] %v1480_v32 }
  0x34   : > { %354 = vst [vmem:[#allocation2 + $0x50] sm:$0xff] %v1480_v32  ;;  %355 = vst [vmem:[#allocation2 + $0x68] sm:$0xff] %v1480_v32 }
  0x35   : > { %356 = vst [vmem:[#allocation2 + $0x8] sm:$0xff] %v1480_v32  ;;  %357 = vst [vmem:[#allocation2 + $0x48] sm:$0xff] %v1480_v32 }
  0x36   : > { %358 = vst [vmem:[#allocation2 + $0x40] sm:$0xff] %v1480_v32  ;;  %359 = vst [vmem:[#allocation2 + $0x20] sm:$0xff] %v1480_v32 }
  0x37   : > { %360 = vst [vmem:[#allocation2 + $0x10] sm:$0xff] %v1480_v32  ;;  %361 = vst [vmem:[#allocation2 + $0x38] sm:$0xff] %v1480_v32 }
  0x38   : > { %362 = vst [vmem:[#allocation2 + $0x60] sm:$0xff] %v1480_v32  ;;  %363 = vst [vmem:[#allocation2 + $0x70] sm:$0xff] %v1480_v32 }
  0x39   : > { %364 = vst [vmem:[#allocation2 + $0x78] sm:$0xff] %v1480_v32  ;;  %365 = vst [vmem:[#allocation2 + $0x28] sm:$0xff] %v1480_v32 }
  0x3a PF: > { %v1384_v33 = vld [vmem:[%s1619_s7 + $0x78] sm:$0xff]   ;;  %v1387_v36 = vld [vmem:[%s1619_s7 + $0x70] sm:$0xff]   ;;  %v1390_v39 = vld [vmem:[%s1619_s7 + $0x68] sm:$0xff]   ;;  %p1222_p11 = scmp.ne.s32.totalorder %s1470_s14, 2 }
  0x3b   : > { %v1385_v34 = vld [vmem:[%s1619_s7 + $0x38] sm:$0xff]   ;;  %1229 = vmatprep.subr.bf16.mxu0 %v1384_v33  ;;  %v1388_v37 = vld [vmem:[%s1619_s7 + $0x30] sm:$0xff]   ;;  %v1391_v40 = vld [vmem:[%s1619_s7 + $0x28] sm:$0xff]  }
  0x3c   : > { %v1386_v35 = vld [vmem:[%s1619_s7 + $0xb8] sm:$0xff]   ;;  %1230 = vmatpush3.bf16.msra.mxu0 %v1385_v34  ;;  %v1389_v38 = vld [vmem:[%s1619_s7 + $0xb0] sm:$0xff]   ;;  %v1392_v41 = vld [vmem:[%s1619_s7 + $0xa8] sm:$0xff]  }
  0x3d   : > { %1309 = vmatprep.subr.bf16.mxu1 %v1386_v35  ;;  %1231 = vmatprep.subr.bf16.mxu0 %v1387_v36  ;;  %v1393_v42 = vld [vmem:[%s1619_s7 + $0x60] sm:$0xff]   ;;  %v1396_v45 = vld [vmem:[%s1619_s7 + $0x58] sm:$0xff]   ;;  %v1399_v48 = vld [vmem:[%s1619_s7 + $0x50] sm:$0xff]  }
  0x3e   : > { %1310 = vmatpush3.bf16.msra.mxu1 %v1386_v35  ;;  %v1394_v43 = vld [vmem:[%s1619_s7 + $0x20] sm:$0xff]   ;;  %v1398_v46 = vld [vmem:[%s1619_s7 + $0x98] sm:$0xff]   ;;  %v1401_v49 = vld [vmem:[%s1619_s7 + $0x90] sm:$0xff]  }
  0x3f   : > { %1311 = vmatprep.subr.bf16.mxu1 %v1389_v38  ;;  %v1395_v44 = vld [vmem:[%s1619_s7 + $0xa0] sm:$0xff]   ;;  %v1397_v47 = vld [vmem:[%s1619_s7 + $0x18] sm:$0xff]   ;;  %v1400_v50 = vld [vmem:[%s1619_s7 + $0x10] sm:$0xff]  }
  0x40   : > { %1232 = vmatpush3.bf16.msra.mxu0 %v1388_v37  ;;  %v1402_v51 = vld [vmem:[%s1619_s7 + $0x48] sm:$0xff]   ;;  %v1405_v54 = vld [vmem:[%s1619_s7 + $0x40] sm:$0xff]   ;;  %v1420_v1 = vld [vmem:[%s1621_s8 + $0x50] ss:$12 sps:$4 sm:$0xff]  }
  0x41   : > { %1233 = vmatprep.subr.bf16.mxu0 %v1390_v39  ;;  %v1403_v52 = vld [vmem:[%s1619_s7 + $0x8] sm:$0xff]   ;;  %v1407_v55 = vld [vmem:[%s1619_s7 + $0x80] sm:$0xff]   ;;  %v1418_v3 = vld [vmem:[%s1621_s8 + $0x30] ss:$12 sps:$4 sm:$0xff]  }
  0x42   : > { %1312 = vmatpush3.bf16.msra.mxu1 %v1389_v38  ;;  %v1404_v53 = vld [vmem:[%s1619_s7 + $0x88] sm:$0xff]   ;;  %v1410_v56 = vld [vmem:[%s1621_s8 + $0x4] ss:$12 sps:$4 sm:$0xff]   ;;  %v1416_v0 = vld [vmem:[%s1621_s8 + $0x34] ss:$12 sps:$4 sm:$0xff]  }
  0x43   : > { %1313 = vmatprep.subr.bf16.mxu1 %v1392_v41  ;;  %v1411_v57 = vld [vmem:[%s1621_s8 + $0x8] ss:$12 sps:$4 sm:$0xff]   ;;  %v1406_v58 = vld [vmem:[%s1619_s7] sm:$0xff]   ;;  %766 = vmatprep.mubr.bf16.mxu0 %v1410_v56  ;;  %v1421_v4 = vld [vmem:[%s1621_s8 + $0x4c] ss:$12 sps:$4 sm:$0xff]  }
  0x44   : > { %1234 = vmatpush3.bf16.msra.mxu0 %v1391_v40  ;;  %1325 = vmatprep.mubr.bf16.mxu1 %v1411_v57  ;;  %v1408_v59 = vld [vmem:[%s1621_s8] ss:$12 sps:$4 sm:$0xff]   ;;  %v1413_v60 = vld [vmem:[%s1621_s8 + $0x1c] ss:$12 sps:$4 sm:$0xff]   ;;  %v1419_v62 = vld [vmem:[%s1621_s8 + $0x38] ss:$12 sps:$4 sm:$0xff]  }
  0x45   : > { %1235 = vmatprep.subr.bf16.mxu0 %v1393_v42  ;;  %v1412_v61 = vld [vmem:[%s1621_s8 + $0x20] ss:$12 sps:$4 sm:$0xff]   ;;  %v1415_v63 = vld [vmem:[%s1621_s8 + $0x18] ss:$12 sps:$4 sm:$0xff]   ;;  %v1427_v2 = vld [vmem:[%s1621_s8 + $0x68] ss:$12 sps:$4 sm:$0xff]  }
  0x46   : > { %1314 = vmatpush3.bf16.msra.mxu1 %v1392_v41  ;;  %v1428_v5 = vld [vmem:[%s1621_s8 + $0x80] ss:$12 sps:$4 sm:$0xff]   ;;  %v1435_v6 = vld [vmem:[%s1621_s8 + $0x98] ss:$12 sps:$4 sm:$0xff]   ;;  %v1423_v7 = vld [vmem:[%s1621_s8 + $0x48] ss:$12 sps:$4 sm:$0xff]  }
  0x47   : > { %1315 = vmatprep.subr.bf16.mxu1 %v1395_v44  ;;  %v1424_v8 = vld [vmem:[%s1621_s8 + $0x64] ss:$12 sps:$4 sm:$0xff]   ;;  %v1426_v10 = vld [vmem:[%s1621_s8 + $0x60] ss:$12 sps:$4 sm:$0xff]   ;;  %v1429_v11 = vld [vmem:[%s1621_s8 + $0x7c] ss:$12 sps:$4 sm:$0xff]  }
  0x48   : > { %1236 = vmatpush3.bf16.msra.mxu0 %v1394_v43  ;;  %v1436_v9 = vld [vmem:[%s1621_s8 + $0xb0] ss:$12 sps:$4 sm:$0xff]   ;;  %v1431_v12 = vld [vmem:[%s1621_s8 + $0x78] ss:$12 sps:$4 sm:$0xff]   ;;  %v1432_v13 = vld [vmem:[%s1621_s8 + $0x94] ss:$12 sps:$4 sm:$0xff]  }
  0x49   : > { %1237 = vmatprep.subr.bf16.mxu0 %v1396_v45  ;;  %v1434_v14 = vld [vmem:[%s1621_s8 + $0x90] ss:$12 sps:$4 sm:$0xff]   ;;  %v1437_v15 = vld [vmem:[%s1621_s8 + $0xac] ss:$12 sps:$4 sm:$0xff]   ;;  %v1439_v16 = vld [vmem:[%s1621_s8 + $0xa8] ss:$12 sps:$4 sm:$0xff]  }
  0x4a   : > { %1316 = vmatpush3.bf16.msra.mxu1 %v1395_v44  ;;  %v366_v22 = vld [vmem:[#allocation2 + $0x30] sm:$0xff]  ;;  %v367_v30 = vld [vmem:[#allocation2] sm:$0xff]  ;;  %v368_v37 = vld [vmem:[#allocation2 + $0x58] sm:$0xff] }
  0x4b   : > { %1317 = vmatprep.subr.bf16.mxu1 %v1398_v46  ;;  %v369_v44 = vld [vmem:[#allocation2 + $0x18] sm:$0xff] }
  0x4c   : > { %1238 = vmatpush3.bf16.msra.mxu0 %v1397_v47 }
  0x4d   : > { %1239 = vmatprep.subr.bf16.mxu0 %v1399_v48 }
  0x4e   : > { %1318 = vmatpush3.bf16.msra.mxu1 %v1398_v46 }
  0x4f   : > { %1319 = vmatprep.subr.bf16.mxu1 %v1401_v49 }
  0x50   : > { %1240 = vmatpush3.bf16.msra.mxu0 %v1400_v50 }
  0x51   : > { %1241 = vmatprep.subr.bf16.mxu0 %v1402_v51 }
  0x52   : > { %1320 = vmatpush3.bf16.msra.mxu1 %v1401_v49 }
  0x53   : > { %1321 = vmatprep.subr.bf16.mxu1 %v1404_v53 }
  0x54   : > { %1242 = vmatpush3.bf16.msra.mxu0 %v1403_v52  ;;  %v370_v52 = vld [vmem:[#allocation2 + $0x50] sm:$0xff] }
  0x55   : > { %1243 = vmatprep.subr.bf16.mxu0 %v1405_v54 }
  0x56   : > { %1322 = vmatpush3.bf16.msra.mxu1 %v1404_v53 }
  0x57   : > { %1323 = vmatprep.subr.bf16.mxu1 %v1407_v55 }
  0x58   : > { %1244 = vmatpush3.bf16.msra.mxu0 %v1406_v58 }
  0x5a   : > { %1324 = vmatpush3.bf16.msra.mxu1 %v1407_v55 }
  0x5b   : > { %767 = vmatmul.mubr.bf16.vlgmr.msra.gmra.mxu0 %v1408_v59  ;;  %v371_v59 = vld [vmem:[#allocation2 + $0x68] sm:$0xff] }
  0x5c   : > { %774 = vmatprep.mubr.bf16.mxu0 %v1413_v60 }
  0x5d   : > { %1326 = vmatmul.mubr.bf16.vlgmr.msra.gmra.mxu1 %v1412_v61 }
  0x5e   : > { %1329 = vmatprep.mubr.bf16.mxu1 %v1419_v62 }
  0x63   : > { %775 = vmatmul.mubr.bf16.gmra.mxu0 %v1415_v63 }
  0x64   : > { %782 = vmatprep.mubr.bf16.mxu0 %v1416_v0 }
  0x65   : > { %1330 = vmatmul.mubr.bf16.gmra.mxu1 %v1420_v1  ;;  %v372_v1 = vld [vmem:[#allocation2 + $0x8] sm:$0xff] }
  0x66   : > { %1333 = vmatprep.mubr.bf16.mxu1 %v1427_v2 }
  0x6b   : > { %783 = vmatmul.mubr.bf16.gmra.mxu0 %v1418_v3 }
  0x6c   : > { %790 = vmatprep.mubr.bf16.mxu0 %v1421_v4 }
  0x6d   : > { %1334 = vmatmul.mubr.bf16.gmra.mxu1 %v1428_v5 }
  0x6e   : > { %1337 = vmatprep.mubr.bf16.mxu1 %v1435_v6 }
  0x73   : > { %791 = vmatmul.mubr.bf16.gmra.mxu0 %v1423_v7 }
  0x74   : > { %798 = vmatprep.mubr.bf16.mxu0 %v1424_v8  ;;  %v373_v8 = vld [vmem:[#allocation2 + $0x48] sm:$0xff] }
  0x75   : > { %1338 = vmatmul.mubr.bf16.gmra.mxu1 %v1436_v9 }
  0x7b   : > { %799 = vmatmul.mubr.bf16.gmra.mxu0 %v1426_v10 }
  0x7c   : > { %806 = vmatprep.mubr.bf16.mxu0 %v1429_v11 }
  0x83   : > { %807 = vmatmul.mubr.bf16.gmra.mxu0 %v1431_v12 }
  0x84   : > { %814 = vmatprep.mubr.bf16.mxu0 %v1432_v13 }
  0x8b   : > { %815 = vmatmul.mubr.bf16.gmra.mxu0 %v1434_v14 }
  0x8c   : > { %822 = vmatprep.mubr.bf16.mxu0 %v1437_v15 }
  0x93   : > { %823 = vmatmul.mubr.bf16.gmra.mxu0 %v1439_v16  ;;  %v374_v16 = vld [vmem:[#allocation2 + $0x40] sm:$0xff] }
 0x11b   : > { %v1245_v17 = vpop.f32.mrf.mxu0 }
 0x11d   : > { %v1246_v18 = vpop.f32.mrf.mxu0  ;;  %v1327_v19 = vpop.f32.mrf.mxu1 }
 0x11e   : > { %v1247_v20 = vadd.f32 %v1246_v18, %v1245_v17 }
 0x11f   : > { %v1248_v21 = vpop.f32.mrf.mxu0  ;;  %v865_v23 = vpop.f32.mrf.mxu1 }
 0x120   : > { %v866_v24 = vadd.f32 %v1247_v20, %v865_v23  ;;  %v375_v23 = vld [vmem:[#allocation2 + $0x20] sm:$0xff] }
 0x121   : > { %v1249_v25 = vpop.f32.mrf.mxu0  ;;  %v1328_v26 = vpop.f32.mrf.mxu1 }
 0x122   : > { %v928_v27 = vadd.f32 %v866_v24, %v366_v22  ;;  %v1250_v28 = vadd.f32 %v1249_v25, %v1248_v21 }
 0x123   : > { %v1251_v29 = vpop.f32.mrf.mxu0  ;;  %v868_v31 = vpop.f32.mrf.mxu1 }
 0x124   : > { %944 = vst [vmem:[#allocation2 + $0x30] sm:$0xff] %v928_v27  ;;  %v869_v32 = vadd.f32 %v1250_v28, %v868_v31 }
 0x125   : > { %v1252_v33 = vpop.f32.mrf.mxu0  ;;  %v1331_v34 = vpop.f32.mrf.mxu1 }
 0x126   : > { %v929_v35 = vadd.f32 %v869_v32, %v367_v30  ;;  %v1253_v36 = vadd.f32 %v1252_v33, %v1251_v29  ;;  %v376_v29 = vld [vmem:[#allocation2 + $0x10] sm:$0xff] }
 0x127   : > { %v1254_v38 = vpop.f32.mrf.mxu0  ;;  %v881_v41 = vpop.f32.mrf.mxu1 }
 0x128   : > { %945 = vst [vmem:[#allocation2] sm:$0xff] %v929_v35  ;;  %v874_v39 = vadd.f32 %v1327_v19, %v1253_v36  ;;  %v377_v36 = vld [vmem:[#allocation2 + $0x38] sm:$0xff] }
 0x129   : > { %v1255_v40 = vpop.f32.mrf.mxu0  ;;  %v1332_v48 = vpop.f32.mrf.mxu1 }
 0x12a   : > { %v930_v42 = vadd.f32 %v874_v39, %v368_v37  ;;  %v1256_v43 = vadd.f32 %v1255_v40, %v1254_v38 }
 0x12b   : > { %v1257_v45 = vpop.f32.mrf.mxu0  ;;  %v884_v55 = vpop.f32.mrf.mxu1 }
 0x12c   : > { %946 = vst [vmem:[#allocation2 + $0x58] sm:$0xff] %v930_v42  ;;  %v877_v46 = vadd.f32 %v1328_v26, %v1256_v43 }
 0x12d   : > { %v1258_v47 = vpop.f32.mrf.mxu0  ;;  %v1335_v62 = vpop.f32.mrf.mxu1 }
 0x12e   : > { %v931_v49 = vadd.f32 %v877_v46, %v369_v44  ;;  %v1259_v50 = vadd.f32 %v1258_v47, %v1257_v45  ;;  %v378_v44 = vld [vmem:[#allocation2 + $0x60] sm:$0xff] }
 0x12f   : > { %v1260_v51 = vpop.f32.mrf.mxu0  ;;  %v897_v5 = vpop.f32.mrf.mxu1 }
 0x130   : > { %947 = vst [vmem:[#allocation2 + $0x18] sm:$0xff] %v931_v49  ;;  %v882_v53 = vadd.f32 %v1259_v50, %v881_v41 }
 0x131   : > { %v1261_v54 = vpop.f32.mrf.mxu0  ;;  %v1336_v12 = vpop.f32.mrf.mxu1 }
 0x132   : > { %v932_v56 = vadd.f32 %v882_v53, %v370_v52  ;;  %v1262_v57 = vadd.f32 %v1261_v54, %v1260_v51  ;;  %v379_v51 = vld [vmem:[#allocation2 + $0x70] sm:$0xff] }
 0x133   : > { %v1263_v58 = vpop.f32.mrf.mxu0  ;;  %v900_v19 = vpop.f32.mrf.mxu1 }
 0x134   : > { %948 = vst [vmem:[#allocation2 + $0x50] sm:$0xff] %v932_v56  ;;  %v885_v60 = vadd.f32 %v1262_v57, %v884_v55  ;;  %v380_v56 = vld [vmem:[#allocation2 + $0x78] sm:$0xff] }
 0x135   : > { %v1264_v61 = vpop.f32.mrf.mxu0  ;;  %v1339_v26 = vpop.f32.mrf.mxu1 }
 0x136   : > { %v933_v63 = vadd.f32 %v885_v60, %v371_v59  ;;  %v1265_v0 = vadd.f32 %v1264_v61, %v1263_v58 }
 0x137   : > { %v1266_v2 = vpop.f32.mrf.mxu0  ;;  %v913_v33 = vpop.f32.mrf.mxu1 }
 0x138   : > { %949 = vst [vmem:[#allocation2 + $0x68] sm:$0xff] %v933_v63  ;;  %v890_v3 = vadd.f32 %v1331_v34, %v1265_v0 }
 0x139   : > { %v1267_v4 = vpop.f32.mrf.mxu0  ;;  %v1340_v40 = vpop.f32.mrf.mxu1 }
 0x13a   : > { %v934_v6 = vadd.f32 %v890_v3, %v372_v1  ;;  %v1268_v7 = vadd.f32 %v1267_v4, %v1266_v2 }
 0x13b   : > { %v1269_v9 = vpop.f32.mrf.mxu0  ;;  %v916_v47 = vpop.f32.mrf.mxu1 }
 0x13c   : > { %950 = vst [vmem:[#allocation2 + $0x8] sm:$0xff] %v934_v6  ;;  %v893_v10 = vadd.f32 %v1332_v48, %v1268_v7 }
 0x13d   : > { %v1270_v11 = vpop.f32.mrf.mxu0 }
 0x13e   : > { %v935_v13 = vadd.f32 %v893_v10, %v373_v8  ;;  %v1271_v14 = vadd.f32 %v1270_v11, %v1269_v9 }
 0x13f   : > { %v1272_v15 = vpop.f32.mrf.mxu0 }
 0x140   : > { %951 = vst [vmem:[#allocation2 + $0x48] sm:$0xff] %v935_v13  ;;  %v898_v17 = vadd.f32 %v1271_v14, %v897_v5 }
 0x141   : > { %v1273_v18 = vpop.f32.mrf.mxu0 }
 0x142   : > { %v936_v20 = vadd.f32 %v898_v17, %v374_v16  ;;  %v1274_v21 = vadd.f32 %v1273_v18, %v1272_v15 }
 0x143   : > { %v1275_v22 = vpop.f32.mrf.mxu0 }
 0x144   : > { %952 = vst [vmem:[#allocation2 + $0x40] sm:$0xff] %v936_v20  ;;  %v901_v24 = vadd.f32 %v1274_v21, %v900_v19 }
 0x145   : > { %v1276_v25 = vpop.f32.mrf.mxu0 }
 0x146   : > { %v937_v27 = vadd.f32 %v901_v24, %v375_v23  ;;  %v1277_v28 = vadd.f32 %v1276_v25, %v1275_v22 }
 0x147   : > { %v1278_v30 = vpop.f32.mrf.mxu0 }
 0x148   : > { %953 = vst [vmem:[#allocation2 + $0x20] sm:$0xff] %v937_v27  ;;  %v906_v31 = vadd.f32 %v1335_v62, %v1277_v28  ;;  %v381_v62 = vld [vmem:[#allocation2 + $0x28] sm:$0xff] }
 0x149   : > { %v1279_v32 = vpop.f32.mrf.mxu0 }
 0x14a   : > { %v938_v34 = vadd.f32 %v906_v31, %v376_v29  ;;  %v1280_v35 = vadd.f32 %v1279_v32, %v1278_v30 }
 0x14b   : > { %v1281_v37 = vpop.f32.mrf.mxu0 }
 0x14c   : > { %954 = vst [vmem:[#allocation2 + $0x10] sm:$0xff] %v938_v34  ;;  %v909_v38 = vadd.f32 %v1336_v12, %v1280_v35 }
 0x14d   : > { %v1282_v39 = vpop.f32.mrf.mxu0 }
 0x14e   : > { %v939_v41 = vadd.f32 %v909_v38, %v377_v36  ;;  %v1283_v42 = vadd.f32 %v1282_v39, %v1281_v37 }
 0x14f   : > { %v1284_v43 = vpop.f32.mrf.mxu0 }
 0x150   : > { %955 = vst [vmem:[#allocation2 + $0x38] sm:$0xff] %v939_v41  ;;  %v914_v45 = vadd.f32 %v1283_v42, %v913_v33 }
 0x151   : > { %v1285_v46 = vpop.f32.mrf.mxu0 }
 0x152   : > { %v940_v48 = vadd.f32 %v914_v45, %v378_v44  ;;  %v1286_v49 = vadd.f32 %v1285_v46, %v1284_v43 }
 0x153   : > { %v1287_v50 = vpop.f32.mrf.mxu0 }
 0x154   : > { %956 = vst [vmem:[#allocation2 + $0x60] sm:$0xff] %v940_v48  ;;  %v917_v52 = vadd.f32 %v1286_v49, %v916_v47 }
 0x155   : > { %v1288_v53 = vpop.f32.mrf.mxu0 }
 0x156   : > { %v941_v54 = vadd.f32 %v917_v52, %v379_v51  ;;  %v1289_v55 = vadd.f32 %v1288_v53, %v1287_v50 }
 0x157   : > { %v1290_v57 = vpop.f32.mrf.mxu0 }
 0x158   : > { %957 = vst [vmem:[#allocation2 + $0x70] sm:$0xff] %v941_v54  ;;  %v922_v58 = vadd.f32 %v1339_v26, %v1289_v55 }
 0x159   : > { %v1291_v59 = vpop.f32.mrf.mxu0 }
 0x15a   : > { %v942_v60 = vadd.f32 %v922_v58, %v380_v56  ;;  %v1292_v61 = vadd.f32 %v1291_v59, %v1290_v57 }
 0x15c   : > { %958 = vst [vmem:[#allocation2 + $0x78] sm:$0xff] %v942_v60  ;;  %v925_v63 = vadd.f32 %v1340_v40, %v1292_v61  ;;  %963 = sbr.rel (%p1222_p11) target bundleno = 364 (0x16c), region = 66 }
 0x15e   : > { %v943_v0 = vadd.f32 %v925_v63, %v381_v62 }
 0x160   : > { %959 = vst [vmem:[#allocation2 + $0x28] sm:$0xff] %v943_v0 }
 0x161   : > { %v964_v1 = vld [vmem:[#allocation2 + $0x30] sm:$0xff]  ;;  %v1223_v2 = vld [vmem:[%s1741_s2] ss:$0 sm:$0xff]  ;;  %v966_v6 = vld [vmem:[#allocation2 + $0x58] sm:$0xff] }
 0x162   : > { %v965_v3 = vld [vmem:[#allocation2] sm:$0xff]  ;;  %v987_v4 = vadd.f32 %v1223_v2, %v964_v1  ;;  %v967_v7 = vld [vmem:[#allocation2 + $0x18] sm:$0xff]  ;;  %v968_v8 = vld [vmem:[#allocation2 + $0x50] sm:$0xff]  ;;  %v989_v9 = vadd.f32 %v1223_v2, %v966_v6 }
 0x163   : > { %v988_v5 = vadd.f32 %v1223_v2, %v965_v3  ;;  %v990_v10 = vadd.f32 %v1223_v2, %v967_v7  ;;  %v991_v11 = vadd.f32 %v1223_v2, %v968_v8  ;;  %v969_v12 = vld [vmem:[#allocation2 + $0x68] sm:$0xff]  ;;  %v972_v18 = vld [vmem:[#allocation2 + $0x40] sm:$0xff]  ;;  %v974_v20 = vld [vmem:[#allocation2 + $0x10] sm:$0xff] }
 0x164   : > { %v970_v13 = vld [vmem:[#allocation2 + $0x8] sm:$0xff]  ;;  %1003 = vst [vmem:[%s1742_s3] sm:$0xff] %v987_v4  ;;  %v992_v15 = vadd.f32 %v1223_v2, %v969_v12  ;;  %v973_v19 = vld [vmem:[#allocation2 + $0x20] sm:$0xff]  ;;  %1005 = vst [vmem:[%s1742_s3 + $0x10] sm:$0xff] %v989_v9  ;;  %v995_v21 = vadd.f32 %v1223_v2, %v972_v18  ;;  %v997_v23 = vadd.f32 %v1223_v2, %v974_v20 }
 0x165   : > { %v971_v14 = vld [vmem:[#allocation2 + $0x48] sm:$0xff]  ;;  %1004 = vst [vmem:[%s1742_s3 + $0x8] sm:$0xff] %v988_v5  ;;  %v993_v16 = vadd.f32 %v1223_v2, %v970_v13  ;;  %1006 = vst [vmem:[%s1742_s3 + $0x18] sm:$0xff] %v990_v10  ;;  %v996_v22 = vadd.f32 %v1223_v2, %v973_v19  ;;  %v975_v24 = vld [vmem:[#allocation2 + $0x38] sm:$0xff] }
 0x166   : > { %v994_v17 = vadd.f32 %v1223_v2, %v971_v14  ;;  %1007 = vst [vmem:[%s1742_s3 + $0x20] sm:$0xff] %v991_v11  ;;  %v976_v25 = vld [vmem:[#allocation2 + $0x60] sm:$0xff]  ;;  %v977_v26 = vld [vmem:[#allocation2 + $0x70] sm:$0xff]  ;;  %1008 = vst [vmem:[%s1742_s3 + $0x28] sm:$0xff] %v992_v15  ;;  %v998_v27 = vadd.f32 %v1223_v2, %v975_v24 }
 0x167   : > { %1009 = vst [vmem:[%s1742_s3 + $0x30] sm:$0xff] %v993_v16  ;;  %v999_v28 = vadd.f32 %v1223_v2, %v976_v25  ;;  %v1000_v29 = vadd.f32 %v1223_v2, %v977_v26  ;;  %v978_v30 = vld [vmem:[#allocation2 + $0x78] sm:$0xff]  ;;  %v979_v31 = vld [vmem:[#allocation2 + $0x28] sm:$0xff]  ;;  %1011 = vst [vmem:[%s1742_s3 + $0x40] sm:$0xff] %v995_v21 }
 0x168   : > { %1010 = vst [vmem:[%s1742_s3 + $0x38] sm:$0xff] %v994_v17  ;;  %1012 = vst [vmem:[%s1742_s3 + $0x48] sm:$0xff] %v996_v22  ;;  %v1001_v32 = vadd.f32 %v1223_v2, %v978_v30  ;;  %v1002_v33 = vadd.f32 %v1223_v2, %v979_v31 }
 0x169   : > { %1013 = vst [vmem:[%s1742_s3 + $0x50] sm:$0xff] %v997_v23  ;;  %1014 = vst [vmem:[%s1742_s3 + $0x58] sm:$0xff] %v998_v27 }
 0x16a   : > { %1015 = vst [vmem:[%s1742_s3 + $0x60] sm:$0xff] %v999_v28  ;;  %1016 = vst [vmem:[%s1742_s3 + $0x68] sm:$0xff] %v1000_v29 }
 0x16b   : > { %1017 = vst [vmem:[%s1742_s3 + $0x70] sm:$0xff] %v1001_v32  ;;  %1018 = vst [vmem:[%s1742_s3 + $0x78] sm:$0xff] %v1002_v33 }
 0x16c PF: > { %s13_s16 = sadd.s32 1, %s1478_s16   ;;  %s1743_s12 = smov %s1466_s13 }
 0x16d   : > { %p10_p12 = scmp.ge.s32.totalorder %s13_s16, 5   ;;  %s1744_s13 = smov %s1536_s20 }
 0x16e   : > { %s1745_s14 = smov %s1474_s15  ;;  %s1746_s15 = smov %s1748_s17 }
 0x16f   :  { %12 = sbr.rel (!%p10_p12) target bundleno = 3 (0x3), region = 113 }

// kernel: _lambda_.51
= control target key start
LH: loop header
LB: loop body
LE: loop exit
PB: predicated region body
PF: predicated region fallthrough
CT: control target
= control target key end

     0   :  { %s1217_s12 = smov 0   ;;  %s1219_s13 = smov 0   ;;  %s1371_s0 = inlined_call_operand.vmem [shape: bf16[32,1152], index: 0, kind: input, shape index: {}]   ;;  %s1372_s1 = inlined_call_operand.vmem [shape: bf16[1152,256], index: 1, kind: input, shape index: {}]   ;;  %s1373_s2 = inlined_call_operand.vmem [shape: f32[1,256], index: 2, kind: input, shape index: {}]   ;;  %s1374_s3 = inlined_call_operand.vmem [shape: f32[32,256], index: 3, kind: output, shape index: {}]  }
   0x1   :  { %s1221_s14 = smov 0   ;;  %s1223_s15 = smov 0  }
   0x2   :  { %s1225_s16 = smov 0  }
   0x3 LB: > { %s25_s17 = sadd.s32 1, %s1189_s15  ;;  %p48_p1 = scmp.ne.s32.totalorder %s1181_s13, %s1177_s12  ;;  %s1193_s16 = sphi %s1225_s16, %s13_s16   ;;  %s1189_s15 = sphi %s1223_s15, %s1378_s15   ;;  %s1185_s14 = sphi %s1221_s14, %s1377_s14   ;;  %s1181_s13 = sphi %s1219_s13, %s1376_s13   ;;  %s1177_s12 = sphi %s1217_s12, %s1375_s12  }
   0x4   : > { %p26_p0 = scmp.ge.s32.totalorder %s25_s17, 3  ;;  %p49_p2 = scmp.eq.s32.totalorder %s1193_s16, 0 }
   0x5   : > { %s41_s19 = sadd.s32 1, %s1181_s13  ;;  %p956_p5 = scmp.ge.s32.totalorder %s1193_s16, 3 }
   0x6   : > { %s1380_s17 = smov (%p26_p0, %s25_s17), 0  ;;  %p50_p3 = por %p49_p2, %p48_p1 }
   0x7   : > { %s37_s18 = ssub.s32 %s1189_s15, %s1380_s17  ;;  %164 = sbr.rel (%p956_p5) target bundleno = 21 (0x15), region = 20 }
   0x8   : > { %p39_p4 = scmp.eq.s32.totalorder %s37_s18, 0 }
   0xa   : > { %s1252_s20 = scalar_select %p39_p4, %s1181_s13, %s41_s19  }
   0xc   : > { %167 = sbr.rel (!%p50_p3) target bundleno = 21 (0x15), region = 24  ;;  %s169_s21 = sand.u32 (%p50_p3), 1, %s1181_s13  }
   0xd   : > { %s1029_s22 = smul.u32 (%p50_p3), 12, %s1189_s15 }
   0xe   : > { %s1031_s23 = smul.u32 (%p50_p3), 48, %s169_s21 }
   0xf   : > { %s177_s26 = scalar_lea.vmem (%p50_p3), %s1371_s0, %s1029_s22 }
  0x10   : > { %v192_v0 = vld [vmem:[%s177_s26] sm:$0xff] (%p50_p3)  ;;  %v196_v2 = vld [vmem:[%s177_s26 + $0x48] sm:$0xff] (%p50_p3)  ;;  %s171_s27 = scalar_lea.vmem (%p50_p3), [#allocation3], %s1031_s23  ;;  %v962_v6 = vld [vmem:[%s177_s26 + $0x50] sm:$0xf] (%p50_p3) }
  0x11   : > { %v194_v1 = vld [vmem:[%s177_s26 + $0x24] sm:$0xff]  ;;  %193 = vst [vmem:[%s171_s27] sm:$0xff] %v192_v0  ;;  %197 = vst [vmem:[%s171_s27 + $0x18] sm:$0xff] %v196_v2  ;;  %v198_v3 = vld [vmem:[%s177_s26 + $0x6c] sm:$0xff] }
  0x12   : > { %195 = vst [vmem:[%s171_s27 + $0xc] sm:$0xff] %v194_v1  ;;  %v958_v4 = vld [vmem:[%s177_s26 + $0x8] sm:$0xf]  ;;  %v960_v5 = vld [vmem:[%s177_s26 + $0x2c] sm:$0xf]  ;;  %199 = vst [vmem:[%s171_s27 + $0x24] sm:$0xff] %v198_v3 }
  0x13   : > { %959 = vst [vmem:[%s171_s27 + $0x8] sm:$0xf] %v958_v4  ;;  %961 = vst [vmem:[%s171_s27 + $0x14] sm:$0xf] %v960_v5  ;;  %v964_v7 = vld [vmem:[%s177_s26 + $0x74] sm:$0xf] }
  0x14   : > { %963 = vst [vmem:[%s171_s27 + $0x20] sm:$0xf] %v962_v6  ;;  %965 = vst [vmem:[%s171_s27 + $0x2c] sm:$0xf] %v964_v7 }
  0x15 PF: > { %p966_p6 = scmp.ge.s32.totalorder %s1193_s16, 1  ;;  %p235_p7 = scmp.lt.s32.totalorder %s1193_s16, 4 }
  0x17   : > { %p236_p8 = pnand %p966_p6, %p235_p7 }
  0x18   : > { %s242_s28 = sand.u32 (!%p236_p8), 1, %s1177_s12   ;;  %s286_s29 = smul.u32 (!%p236_p8), 48, %s1185_s14 }
  0x19   : > { %239 = sbr.rel (%p236_p8) target bundleno = 331 (0x14b), region = 54  ;;  %p969_p10 = scmp.ne.s32.totalorder (!%p236_p8), %s1185_s14, 0 }
  0x1a   : > { %s1032_s30 = smul.u32 (!%p236_p8), 48, %s242_s28  ;;  %p288_p9 = scmp.lt.s32.totalorder (!%p236_p8), %s286_s29, 143 }
  0x1c   : > { %s1269_s8 = scalar_lea.vmem (!%p236_p8), [#allocation3], %s1032_s30 }
  0x1e   : > { %s1382_s29 = smov (!%p288_p9, %s286_s29), 143  ;;  %319 = sbr.rel (%p969_p10) target bundleno = 40 (0x28), region = 62 }
  0x1f   : > { %s1030_s4 = sshll.u32 %s1382_s29, 3 }
  0x20   : > { %s1267_s7 = scalar_lea.vmem %s1372_s1, %s1030_s4 }
  0x23   : > { %v1195_v8 = vmov 0.0  }
  0x24   : > { %320 = vst [vmem:[#allocation2 + $0x30] sm:$0xff] %v1195_v8  ;;  %321 = vst [vmem:[#allocation2] sm:$0xff] %v1195_v8 }
  0x25   : > { %322 = vst [vmem:[#allocation2 + $0x18] sm:$0xff] %v1195_v8  ;;  %323 = vst [vmem:[#allocation2 + $0x10] sm:$0xff] %v1195_v8 }
  0x26   : > { %324 = vst [vmem:[#allocation2 + $0x8] sm:$0xff] %v1195_v8  ;;  %325 = vst [vmem:[#allocation2 + $0x20] sm:$0xff] %v1195_v8 }
  0x27   : > { %326 = vst [vmem:[#allocation2 + $0x28] sm:$0xff] %v1195_v8  ;;  %327 = vst [vmem:[#allocation2 + $0x38] sm:$0xff] %v1195_v8 }
  0x28 PF: > { %v1075_v9 = vld [vmem:[%s1267_s7 + $0x74] ss:$8 sps:$4 sm:$0xff]   ;;  %v1077_v10 = vld [vmem:[%s1267_s7 + $0x70] ss:$8 sps:$4 sm:$0xff]   ;;  %v1196_v11 = vmov 0   ;;  %p1024_p11 = scmp.ne.s32.totalorder %s1185_s14, 2 }
  0x29   : > { %749 = vmatprep.mubr.bf16.mxu1 %v1196_v11  ;;  %664 = vmatprep.subr.bf16.mxu0 %v1075_v9  ;;  %v1078_v12 = vld [vmem:[%s1267_s7 + $0x64] ss:$8 sps:$4 sm:$0xff]   ;;  %v1080_v13 = vld [vmem:[%s1267_s7 + $0x60] ss:$8 sps:$4 sm:$0xff]   ;;  %v1081_v14 = vld [vmem:[%s1267_s7 + $0x54] ss:$8 sps:$4 sm:$0xff]  }
  0x2a   : > { %665 = vmatpush1.bf16.msra.mxu0 %v1077_v10  ;;  %v1083_v15 = vld [vmem:[%s1267_s7 + $0x50] ss:$8 sps:$4 sm:$0xff]   ;;  %v1084_v16 = vld [vmem:[%s1267_s7 + $0x44] ss:$8 sps:$4 sm:$0xff]   ;;  %v1096_v17 = vld [vmem:[%s1267_s7 + $0x174] ss:$8 sps:$4 sm:$0xff]  }
  0x2b   : > { %666 = vmatprep.subr.bf16.mxu0 %v1078_v12  ;;  %v1098_v18 = vld [vmem:[%s1267_s7 + $0x170] ss:$8 sps:$4 sm:$0xff]   ;;  %v1086_v19 = vld [vmem:[%s1267_s7 + $0x40] ss:$8 sps:$4 sm:$0xff]   ;;  %v1087_v20 = vld [vmem:[%s1267_s7 + $0x34] ss:$8 sps:$4 sm:$0xff]   ;;  %717 = vmatprep.subr.bf16.mxu1 %v1096_v17 }
  0x2c   : > { %v1102_v21 = vld [vmem:[%s1267_s7 + $0x164] ss:$8 sps:$4 sm:$0xff]   ;;  %718 = vmatpush1.bf16.msra.mxu1 %v1098_v18  ;;  %v1104_v22 = vld [vmem:[%s1267_s7 + $0x160] ss:$8 sps:$4 sm:$0xff]   ;;  %v1089_v23 = vld [vmem:[%s1267_s7 + $0x30] ss:$8 sps:$4 sm:$0xff]  }
  0x2d   : > { %719 = vmatprep.subr.bf16.mxu1 %v1102_v21  ;;  %v1108_v24 = vld [vmem:[%s1267_s7 + $0x154] ss:$8 sps:$4 sm:$0xff]   ;;  %v1090_v25 = vld [vmem:[%s1267_s7 + $0x24] ss:$8 sps:$4 sm:$0xff]   ;;  %v1110_v26 = vld [vmem:[%s1267_s7 + $0x150] ss:$8 sps:$4 sm:$0xff]  }
  0x2e   : > { %667 = vmatpush1.bf16.msra.mxu0 %v1080_v13  ;;  %v1114_v27 = vld [vmem:[%s1267_s7 + $0x144] ss:$8 sps:$4 sm:$0xff]   ;;  %v1092_v28 = vld [vmem:[%s1267_s7 + $0x20] ss:$8 sps:$4 sm:$0xff]   ;;  %v1093_v29 = vld [vmem:[%s1267_s7 + $0x14] ss:$8 sps:$4 sm:$0xff]  }
  0x2f   : > { %668 = vmatprep.subr.bf16.mxu0 %v1081_v14  ;;  %v1116_v30 = vld [vmem:[%s1267_s7 + $0x140] ss:$8 sps:$4 sm:$0xff]   ;;  %v1120_v31 = vld [vmem:[%s1267_s7 + $0x134] ss:$8 sps:$4 sm:$0xff]   ;;  %v1095_v32 = vld [vmem:[%s1267_s7 + $0x10] ss:$8 sps:$4 sm:$0xff]  }
  0x30   : > { %720 = vmatpush1.bf16.msra.mxu1 %v1104_v22  ;;  %v1099_v33 = vld [vmem:[%s1267_s7 + $0x4] ss:$8 sps:$4 sm:$0xff]   ;;  %v1122_v34 = vld [vmem:[%s1267_s7 + $0x130] ss:$8 sps:$4 sm:$0xff]   ;;  %v1101_v36 = vld [vmem:[%s1267_s7] ss:$8 sps:$4 sm:$0xff]  }
  0x31   : > { %721 = vmatprep.subr.bf16.mxu1 %v1108_v24  ;;  %v1126_v35 = vld [vmem:[%s1267_s7 + $0x124] ss:$8 sps:$4 sm:$0xff]   ;;  %v1105_v37 = vld [vmem:[%s1267_s7 + $0xf4] ss:$8 sps:$4 sm:$0xff]   ;;  %v1128_v38 = vld [vmem:[%s1267_s7 + $0x120] ss:$8 sps:$4 sm:$0xff]  }
  0x32   : > { %669 = vmatpush1.bf16.msra.mxu0 %v1083_v15  ;;  %v1132_v39 = vld [vmem:[%s1267_s7 + $0x114] ss:$8 sps:$4 sm:$0xff]   ;;  %v1107_v40 = vld [vmem:[%s1267_s7 + $0xf0] ss:$8 sps:$4 sm:$0xff]   ;;  %v1111_v41 = vld [vmem:[%s1267_s7 + $0xe4] ss:$8 sps:$4 sm:$0xff]  }
  0x33   : > { %670 = vmatprep.subr.bf16.mxu0 %v1084_v16  ;;  %v1134_v42 = vld [vmem:[%s1267_s7 + $0x110] ss:$8 sps:$4 sm:$0xff]   ;;  %v1138_v43 = vld [vmem:[%s1267_s7 + $0x104] ss:$8 sps:$4 sm:$0xff]   ;;  %v1113_v45 = vld [vmem:[%s1267_s7 + $0xe0] ss:$8 sps:$4 sm:$0xff]  }
  0x34   : > { %722 = vmatpush1.bf16.msra.mxu1 %v1110_v26  ;;  %v1150_v44 = vld [vmem:[%s1269_s8 + $0x4] ss:$12 sps:$4 sm:$0xff]   ;;  %v1144_v50 = vld [vmem:[%s1269_s8 + $0x8] ss:$12 sps:$4 sm:$0xff]   ;;  %v1151_v55 = vld [vmem:[%s1269_s8 + $0x20] ss:$12 sps:$4 sm:$0xff]  }
  0x35   : > { %723 = vmatprep.subr.bf16.mxu1 %v1114_v27  ;;  %v1117_v46 = vld [vmem:[%s1267_s7 + $0xd4] ss:$8 sps:$4 sm:$0xff]   ;;  %696 = vmatprep.mubr.bf16.mxu0 %v1150_v44  ;;  %v1140_v47 = vld [vmem:[%s1267_s7 + $0x100] ss:$8 sps:$4 sm:$0xff]   ;;  %v1119_v48 = vld [vmem:[%s1267_s7 + $0xd0] ss:$8 sps:$4 sm:$0xff]  }
  0x36   : > { %671 = vmatpush1.bf16.msra.mxu0 %v1086_v19  ;;  %v1123_v49 = vld [vmem:[%s1267_s7 + $0xc4] ss:$8 sps:$4 sm:$0xff]   ;;  %v1125_v51 = vld [vmem:[%s1267_s7 + $0xc0] ss:$8 sps:$4 sm:$0xff]   ;;  %v1129_v52 = vld [vmem:[%s1267_s7 + $0xb4] ss:$8 sps:$4 sm:$0xff]  }
  0x37   : > { %672 = vmatprep.subr.bf16.mxu0 %v1087_v20  ;;  %v1131_v53 = vld [vmem:[%s1267_s7 + $0xb0] ss:$8 sps:$4 sm:$0xff]   ;;  %v1135_v54 = vld [vmem:[%s1267_s7 + $0xa4] ss:$8 sps:$4 sm:$0xff]   ;;  %v1137_v56 = vld [vmem:[%s1267_s7 + $0xa0] ss:$8 sps:$4 sm:$0xff]  }
  0x38   : > { %724 = vmatpush1.bf16.msra.mxu1 %v1116_v30  ;;  %v1141_v57 = vld [vmem:[%s1267_s7 + $0x94] ss:$8 sps:$4 sm:$0xff]   ;;  %v1143_v58 = vld [vmem:[%s1267_s7 + $0x90] ss:$8 sps:$4 sm:$0xff]   ;;  %v1145_v59 = vld [vmem:[%s1267_s7 + $0x84] ss:$8 sps:$4 sm:$0xff]  }
  0x39   : > { %725 = vmatprep.subr.bf16.mxu1 %v1120_v31  ;;  %v1147_v60 = vld [vmem:[%s1267_s7 + $0x80] ss:$8 sps:$4 sm:$0xff]   ;;  %v328_v4 = vld [vmem:[#allocation2 + $0x30] sm:$0xff]  ;;  %v330_v12 = vld [vmem:[#allocation2 + $0x18] sm:$0xff] }
  0x3a   : > { %673 = vmatpush1.bf16.msra.mxu0 %v1089_v23  ;;  %v1148_v61 = vld [vmem:[%s1269_s8] ss:$12 sps:$4 sm:$0xff]   ;;  %v1152_v62 = vld [vmem:[%s1269_s8 + $0x1c] ss:$12 sps:$4 sm:$0xff]   ;;  %v1154_v63 = vld [vmem:[%s1269_s8 + $0x18] ss:$12 sps:$4 sm:$0xff]  }
  0x3b   : > { %674 = vmatprep.subr.bf16.mxu0 %v1090_v25  ;;  %v329_v7 = vld [vmem:[#allocation2] sm:$0xff]  ;;  %v331_v17 = vld [vmem:[#allocation2 + $0x10] sm:$0xff]  ;;  %v332_v21 = vld [vmem:[#allocation2 + $0x8] sm:$0xff] }
  0x3c   : > { %726 = vmatpush1.bf16.msra.mxu1 %v1122_v34  ;;  %v333_v26 = vld [vmem:[#allocation2 + $0x20] sm:$0xff]  ;;  %v334_v30 = vld [vmem:[#allocation2 + $0x28] sm:$0xff] }
  0x3d   : > { %727 = vmatprep.subr.bf16.mxu1 %v1126_v35  ;;  %v335_v35 = vld [vmem:[#allocation2 + $0x38] sm:$0xff] }
  0x3e   : > { %675 = vmatpush1.bf16.msra.mxu0 %v1092_v28 }
  0x3f   : > { %676 = vmatprep.subr.bf16.mxu0 %v1093_v29 }
  0x40   : > { %728 = vmatpush1.bf16.msra.mxu1 %v1128_v38 }
  0x41   : > { %729 = vmatprep.subr.bf16.mxu1 %v1132_v39 }
  0x42   : > { %677 = vmatpush1.bf16.msra.mxu0 %v1095_v32 }
  0x43   : > { %678 = vmatprep.subr.bf16.mxu0 %v1099_v33 }
  0x44   : > { %730 = vmatpush1.bf16.msra.mxu1 %v1134_v42 }
  0x45   : > { %731 = vmatprep.subr.bf16.mxu1 %v1138_v43 }
  0x46   : > { %679 = vmatpush1.bf16.msra.mxu0 %v1101_v36 }
  0x47   : > { %680 = vmatprep.subr.bf16.mxu0 %v1105_v37 }
  0x48   : > { %732 = vmatpush1.bf16.msra.mxu1 %v1140_v47 }
  0x4a   : > { %681 = vmatpush2.bf16.msra.mxu0 %v1107_v40 }
  0x4b   : > { %682 = vmatprep.subr.bf16.mxu0 %v1111_v41  ;;  %750 = vmatmul.mubr.bf16.vlgmr.msra.gmra.mxu1 %v1144_v50 }
  0x4c   : > { %759 = vmatprep.mubr.bf16.mxu1 %v1196_v11 }
  0x4e   : > { %683 = vmatpush2.bf16.msra.mxu0 %v1113_v45 }
  0x4f   : > { %684 = vmatprep.subr.bf16.mxu0 %v1117_v46 }
  0x52   : > { %685 = vmatpush2.bf16.msra.mxu0 %v1119_v48 }
  0x53   : > { %686 = vmatprep.subr.bf16.mxu0 %v1123_v49  ;;  %760 = vmatmul.mubr.bf16.gmra.mxu1 %v1151_v55 }
  0x56   : > { %687 = vmatpush2.bf16.msra.mxu0 %v1125_v51 }
  0x57   : > { %688 = vmatprep.subr.bf16.mxu0 %v1129_v52 }
  0x5a   : > { %689 = vmatpush2.bf16.msra.mxu0 %v1131_v53 }
  0x5b   : > { %690 = vmatprep.subr.bf16.mxu0 %v1135_v54 }
  0x5e   : > { %691 = vmatpush2.bf16.msra.mxu0 %v1137_v56 }
  0x5f   : > { %692 = vmatprep.subr.bf16.mxu0 %v1141_v57 }
  0x62   : > { %693 = vmatpush2.bf16.msra.mxu0 %v1143_v58 }
  0x63   : > { %694 = vmatprep.subr.bf16.mxu0 %v1145_v59 }
  0x66   : > { %695 = vmatpush2.bf16.msra.mxu0 %v1147_v60 }
  0x69   : > { %697 = vmatmul.mubr.bf16.vlgmr.msra.gmra.mxu0 %v1148_v61 }
  0x6a   : > { %706 = vmatprep.mubr.bf16.mxu0 %v1152_v62 }
  0x71   : > { %707 = vmatmul.mubr.bf16.gmra.mxu0 %v1154_v63 }
 0x10b   : > { %v751_v0 = vpop.f32.mrf.mxu1 }
 0x10d   : > { %v753_v1 = vpop.f32.mrf.mxu1 }
 0x10f   : > { %v755_v2 = vpop.f32.mrf.mxu1 }
 0x111   : > { %v757_v3 = vpop.f32.mrf.mxu1 }
 0x113   : > { %v761_v9 = vpop.f32.mrf.mxu1 }
 0x115   : > { %v763_v16 = vpop.f32.mrf.mxu1 }
 0x117   : > { %v765_v25 = vpop.f32.mrf.mxu1 }
 0x119   : > { %v767_v34 = vpop.f32.mrf.mxu1 }
 0x129   : > { %v698_v5 = vpop.f32.mrf.mxu0 }
 0x12a   : > { %v752_v6 = vadd.f32 %v751_v0, %v698_v5 }
 0x12b   : > { %v700_v8 = vpop.f32.mrf.mxu0 }
 0x12c   : > { %v770_v10 = vadd.f32 %v752_v6, %v328_v4  ;;  %v754_v11 = vadd.f32 %v753_v1, %v700_v8 }
 0x12d   : > { %v702_v13 = vpop.f32.mrf.mxu0 }
 0x12e   : > { %778 = vst [vmem:[#allocation2 + $0x30] sm:$0xff] %v770_v10  ;;  %v771_v14 = vadd.f32 %v754_v11, %v329_v7  ;;  %v756_v15 = vadd.f32 %v755_v2, %v702_v13 }
 0x12f   : > { %v704_v18 = vpop.f32.mrf.mxu0 }
 0x130   : > { %779 = vst [vmem:[#allocation2] sm:$0xff] %v771_v14  ;;  %v772_v19 = vadd.f32 %v756_v15, %v330_v12  ;;  %v758_v20 = vadd.f32 %v757_v3, %v704_v18 }
 0x131   : > { %v708_v22 = vpop.f32.mrf.mxu0 }
 0x132   : > { %780 = vst [vmem:[#allocation2 + $0x18] sm:$0xff] %v772_v19  ;;  %v773_v23 = vadd.f32 %v758_v20, %v331_v17  ;;  %v762_v24 = vadd.f32 %v761_v9, %v708_v22 }
 0x133   : > { %v710_v27 = vpop.f32.mrf.mxu0 }
 0x134   : > { %781 = vst [vmem:[#allocation2 + $0x10] sm:$0xff] %v773_v23  ;;  %v774_v28 = vadd.f32 %v762_v24, %v332_v21  ;;  %v764_v29 = vadd.f32 %v763_v16, %v710_v27 }
 0x135   : > { %v712_v31 = vpop.f32.mrf.mxu0 }
 0x136   : > { %782 = vst [vmem:[#allocation2 + $0x8] sm:$0xff] %v774_v28  ;;  %v775_v32 = vadd.f32 %v764_v29, %v333_v26  ;;  %v766_v33 = vadd.f32 %v765_v25, %v712_v31 }
 0x137   : > { %v714_v36 = vpop.f32.mrf.mxu0 }
 0x138   : > { %783 = vst [vmem:[#allocation2 + $0x20] sm:$0xff] %v775_v32  ;;  %v776_v37 = vadd.f32 %v766_v33, %v334_v30  ;;  %v768_v38 = vadd.f32 %v767_v34, %v714_v36  ;;  %789 = sbr.rel (%p1024_p11) target bundleno = 331 (0x14b), region = 66 }
 0x13a   : > { %784 = vst [vmem:[#allocation2 + $0x28] sm:$0xff] %v776_v37  ;;  %v777_v39 = vadd.f32 %v768_v38, %v335_v35 }
 0x13c   : > { %785 = vst [vmem:[#allocation2 + $0x38] sm:$0xff] %v777_v39 }
 0x13d   : > { %v800_v40 = vlaneseq  ;;  %v798_v42 = vld [vmem:[%s1373_s2] sm:$0x3]  ;;  %v790_v43 = vld [vmem:[#allocation2 + $0x30] sm:$0xff]  ;;  %v792_v47 = vld [vmem:[#allocation2 + $0x18] sm:$0xff] }
 0x13e   : > { %v791_v45 = vld [vmem:[#allocation2] sm:$0xff]  ;;  %v793_v48 = vld [vmem:[#allocation2 + $0x10] sm:$0xff]  ;;  %v794_v49 = vld [vmem:[#allocation2 + $0x8] sm:$0xff] }
 0x13f   : > { %v801_v41 = vshrl.u32 %v800_v40, 7  ;;  %v795_v52 = vld [vmem:[#allocation2 + $0x20] sm:$0xff] }
 0x141   : > { %v802_v44 = vsub.s32 0, %v801_v41  ;;  %v806_v46 = vsub.s32 1, %v801_v41  ;;  %v796_v53 = vld [vmem:[#allocation2 + $0x28] sm:$0xff] }
 0x143   : > { %v803_v50 = vrot.slane %v798_v42, %v802_v44  ;;  %v807_v51 = vrot.slane %v798_v42, %v806_v46  ;;  %v797_v54 = vld [vmem:[#allocation2 + $0x38] sm:$0xff] }
 0x145   : > { %v810_v55 = vadd.f32 %v803_v50, %v790_v43  ;;  %v811_v56 = vadd.f32 %v807_v51, %v791_v45  ;;  %v812_v57 = vadd.f32 %v803_v50, %v792_v47  ;;  %v813_v58 = vadd.f32 %v807_v51, %v793_v48 }
 0x146   : > { %v814_v59 = vadd.f32 %v803_v50, %v794_v49  ;;  %v815_v60 = vadd.f32 %v807_v51, %v795_v52  ;;  %v816_v61 = vadd.f32 %v803_v50, %v796_v53  ;;  %v817_v62 = vadd.f32 %v807_v51, %v797_v54 }
 0x147   : > { %818 = vst [vmem:[%s1374_s3] sm:$0xff] %v810_v55  ;;  %819 = vst [vmem:[%s1374_s3 + $0x8] sm:$0xff] %v811_v56 }
 0x148   : > { %820 = vst [vmem:[%s1374_s3 + $0x10] sm:$0xff] %v812_v57  ;;  %821 = vst [vmem:[%s1374_s3 + $0x18] sm:$0xff] %v813_v58 }
 0x149   : > { %822 = vst [vmem:[%s1374_s3 + $0x20] sm:$0xff] %v814_v59  ;;  %823 = vst [vmem:[%s1374_s3 + $0x28] sm:$0xff] %v815_v60 }
 0x14a   : > { %824 = vst [vmem:[%s1374_s3 + $0x30] sm:$0xff] %v816_v61  ;;  %825 = vst [vmem:[%s1374_s3 + $0x38] sm:$0xff] %v817_v62 }
 0x14b PF: > { %s13_s16 = sadd.s32 1, %s1193_s16   ;;  %s1375_s12 = smov %s1181_s13 }
 0x14c   : > { %p10_p12 = scmp.ge.s32.totalorder %s13_s16, 5   ;;  %s1376_s13 = smov %s1252_s20 }
 0x14d   : > { %s1377_s14 = smov %s1189_s15  ;;  %s1378_s15 = smov %s1380_s17 }
 0x14e   :  { %12 = sbr.rel (!%p10_p12) target bundleno = 3 (0x3), region = 113 }

// kernel: _lambda_.53
= control target key start
LH: loop header
LB: loop body
LE: loop exit
PB: predicated region body
PF: predicated region fallthrough
CT: control target
= control target key end

     0   :  { %s281_s6 = smov 0   ;;  %s305_s0 = inlined_call_operand.vmem [shape: f32[2,16,256], index: 0, kind: input, shape index: {}]   ;;  %s306_s1 = inlined_call_operand.vmem [shape: f32[2,16,256], index: 1, kind: output, shape index: {}]  }
   0x1 LB: > { %s238_s7 = sadd.s32 4294967295, %s269_s6   ;;  %p242_p0 = scmp.ge.s32.totalorder %s269_s6, 1  ;;  %s269_s6 = sphi %s281_s6, %s11_s6  }
   0x2   : > { %p87_p1 = scmp.lt.s32.totalorder %s269_s6, 3 }
   0x4   : > { %p88_p2 = pnand %p242_p0, %p87_p1 }
   0x5   : > { %p107_p3 = scmp.lt.s32.totalorder (!%p88_p2), %s238_s7, 1 }
   0x6   : > { %91 = sbr.rel (%p88_p2) target bundleno = 59 (0x3b), region = 24 }
   0xb   : > { %s308_s7 = smov (!%p107_p3, %s238_s7), 1 }
   0xc   : > { %s249_s8 = sshll.u32 %s308_s7, 5 }
   0xd   : > { %s111_s11 = scalar_lea.vmem %s305_s0, %s249_s8  ;;  %s116_s14 = scalar_lea.vmem %s306_s1, %s249_s8 }
   0xe   : > { %v117_v0 = vld [vmem:[%s111_s11] sm:$0xff]  ;;  %v119_v1 = vld [vmem:[%s111_s11 + $0x10] sm:$0xff]  ;;  %v120_v2 = vld [vmem:[%s111_s11 + $0x18] sm:$0xff] }
   0xf   : > { %v121_v3 = vadd.f32 %v119_v1, %v117_v0  ;;  %v135_v4 = vmul.f32 %v117_v0, %v117_v0  ;;  %v137_v5 = vmul.f32 %v119_v1, %v119_v1  ;;  %v138_v6 = vmul.f32 %v120_v2, %v120_v2  ;;  %v118_v7 = vld [vmem:[%s111_s11 + $0x8] sm:$0xff] }
  0x10   : > { %v128_v8 = vadd.f32 %v120_v2, %v118_v7  ;;  %v136_v9 = vmul.f32 %v118_v7, %v118_v7 }
  0x11   : > { %v122_v10 = vrot.slane %v121_v3, 4  ;;  %v139_v11 = vadd.f32 %v137_v5, %v135_v4 }
  0x12   : > { %v129_v12 = vrot.slane %v128_v8, 4  ;;  %v146_v13 = vadd.f32 %v138_v6, %v136_v9 }
  0x13   : > { %v123_v14 = vadd.f32 %v122_v10, %v121_v3  ;;  %v140_v15 = vrot.slane %v139_v11, 4 }
  0x14   : > { %v130_v16 = vadd.f32 %v129_v12, %v128_v8  ;;  %v147_v17 = vrot.slane %v146_v13, 4 }
  0x15   : > { %v124_v18 = vrot.slane %v123_v14, 2  ;;  %v141_v19 = vadd.f32 %v140_v15, %v139_v11 }
  0x16   : > { %v131_v20 = vrot.slane %v130_v16, 2  ;;  %v148_v21 = vadd.f32 %v147_v17, %v146_v13 }
  0x17   : > { %v125_v22 = vadd.f32 %v124_v18, %v123_v14  ;;  %v142_v23 = vrot.slane %v141_v19, 2 }
  0x18   : > { %v132_v24 = vadd.f32 %v131_v20, %v130_v16  ;;  %v149_v25 = vrot.slane %v148_v21, 2 }
  0x19   : > { %v126_v26 = vrot.slane %v125_v22, 1  ;;  %v143_v27 = vadd.f32 %v142_v23, %v141_v19 }
  0x1a   : > { %v133_v28 = vrot.slane %v132_v24, 1  ;;  %v150_v29 = vadd.f32 %v149_v25, %v148_v21 }
  0x1b   : > { %v127_v30 = vadd.f32 %v126_v26, %v125_v22  ;;  %v144_v31 = vrot.slane %v143_v27, 1 }
  0x1c   : > { %v134_v32 = vadd.f32 %v133_v28, %v132_v24  ;;  %v151_v33 = vrot.slane %v150_v29, 1 }
  0x1d   : > { %v145_v34 = vadd.f32 %v144_v31, %v143_v27  ;;  %v153_v35 = vmul.f32 0.0625, %v127_v30 }
  0x1e   : > { %v152_v36 = vadd.f32 %v151_v33, %v150_v29  ;;  %v154_v37 = vmul.f32 0.0625, %v134_v32 }
  0x1f   : > { %v155_v38 = vmul.f32 0.0625, %v145_v34  ;;  %v157_v39 = vmul.f32 %v153_v35, %v153_v35  ;;  %v163_v48 = vsub.f32 %v117_v0, %v153_v35  ;;  %v165_v49 = vsub.f32 %v119_v1, %v153_v35 }
  0x20   : > { %v156_v40 = vmul.f32 0.0625, %v152_v36  ;;  %v158_v41 = vmul.f32 %v154_v37, %v154_v37  ;;  %v164_v50 = vsub.f32 %v118_v7, %v154_v37  ;;  %v166_v51 = vsub.f32 %v120_v2, %v154_v37 }
  0x21   : > { %v159_v42 = vsub.f32 %v155_v38, %v157_v39 }
  0x22   : > { %v160_v43 = vsub.f32 %v156_v40, %v158_v41 }
  0x23   : > { %v161_v44 = vmax.f32 %v159_v42, 0.0 }
  0x24   : > { %v162_v45 = vmax.f32 %v160_v43, 0.0 }
  0x25   : > { %v167_v46 = vadd.f32 1e-05, %v161_v44 }
  0x26   : > { %v168_v47 = vadd.f32 1e-05, %v162_v45 }
  0x27   : > { %259 = vrsqrt.f32 %v167_v46 }
  0x28   : > { %261 = vrsqrt.f32 %v168_v47 }
  0x34   : > { %v260_v52 = vpop.eup %259 }
  0x35   : > { %v262_v53 = vpop.eup %261  ;;  %v171_v54 = vmul.f32 %v260_v52, %v163_v48  ;;  %v173_v55 = vmul.f32 %v260_v52, %v165_v49 }
  0x36   : > { %v172_v56 = vmul.f32 %v262_v53, %v164_v50  ;;  %v174_v57 = vmul.f32 %v262_v53, %v166_v51 }
  0x37   : > { %v175_v58 = vmax.f32 %v171_v54, 0.0  ;;  %v177_v59 = vmax.f32 %v173_v55, 0.0 }
  0x38   : > { %v176_v60 = vmax.f32 %v172_v56, 0.0  ;;  %v178_v61 = vmax.f32 %v174_v57, 0.0 }
  0x39   : > { %179 = vst [vmem:[%s116_s14] sm:$0xff] %v175_v58  ;;  %181 = vst [vmem:[%s116_s14 + $0x10] sm:$0xff] %v177_v59 }
  0x3a   : > { %180 = vst [vmem:[%s116_s14 + $0x8] sm:$0xff] %v176_v60  ;;  %182 = vst [vmem:[%s116_s14 + $0x18] sm:$0xff] %v178_v61 }
  0x3b PF: > { %s11_s6 = sadd.s32 1, %s269_s6  }
  0x3c   : > { %p8_p4 = scmp.ge.s32.totalorder %s11_s6, 4  }
  0x3e   :  { %10 = sbr.rel (!%p8_p4) target bundleno = 1 (0x1), region = 54 }

// kernel: _lambda_.52
= control target key start
LH: loop header
LB: loop body
LE: loop exit
PB: predicated region body
PF: predicated region fallthrough
CT: control target
= control target key end

     0   :  { %s1741_s12 = smov 0   ;;  %s1743_s13 = smov 0   ;;  %s1947_s0 = inlined_call_operand.vmem [shape: bf16[32,2304], index: 0, kind: input, shape index: {}]   ;;  %s1948_s1 = inlined_call_operand.vmem [shape: bf16[2304,256], index: 1, kind: input, shape index: {}]   ;;  %s1949_s2 = inlined_call_operand.vmem [shape: f32[1,256], index: 2, kind: input, shape index: {}]   ;;  %s1950_s3 = inlined_call_operand.vmem [shape: f32[32,256], index: 3, kind: output, shape index: {}]  }
   0x1   :  { %s1745_s14 = smov 0   ;;  %s1747_s15 = smov 0  }
   0x2   :  { %s1749_s16 = smov 0  }
   0x3 LB: > { %s25_s17 = sadd.s32 1, %s1714_s15  ;;  %p48_p1 = scmp.ne.s32.totalorder %s1706_s13, %s1702_s12  ;;  %s1718_s16 = sphi %s1749_s16, %s13_s16   ;;  %s1714_s15 = sphi %s1747_s15, %s1954_s15   ;;  %s1710_s14 = sphi %s1745_s14, %s1953_s14   ;;  %s1706_s13 = sphi %s1743_s13, %s1952_s13   ;;  %s1702_s12 = sphi %s1741_s12, %s1951_s12  }
   0x4   : > { %p26_p0 = scmp.ge.s32.totalorder %s25_s17, 3  ;;  %p49_p2 = scmp.eq.s32.totalorder %s1718_s16, 0 }
   0x5   : > { %s41_s19 = sadd.s32 1, %s1706_s13  ;;  %p1322_p5 = scmp.ge.s32.totalorder %s1718_s16, 3 }
   0x6   : > { %s1956_s17 = smov (%p26_p0, %s25_s17), 0  ;;  %p50_p3 = por %p49_p2, %p48_p1 }
   0x7   : > { %s37_s18 = ssub.s32 %s1714_s15, %s1956_s17  ;;  %164 = sbr.rel (%p1322_p5) target bundleno = 23 (0x17), region = 20 }
   0x8   : > { %p39_p4 = scmp.eq.s32.totalorder %s37_s18, 0 }
   0xa   : > { %s1776_s20 = scalar_select %p39_p4, %s1706_s13, %s41_s19  }
   0xc   : > { %167 = sbr.rel (!%p50_p3) target bundleno = 23 (0x17), region = 24  ;;  %s169_s21 = sand.u32 (%p50_p3), 1, %s1706_s13  }
   0xd   : > { %s1441_s22 = smul.u32 (%p50_p3), 24, %s1714_s15 }
   0xe   : > { %s1475_s23 = smul.u32 (%p50_p3), 96, %s169_s21 }
   0xf   : > { %s177_s26 = scalar_lea.vmem (%p50_p3), %s1947_s0, %s1441_s22 }
  0x10   : > { %v190_v0 = vld [vmem:[%s177_s26] sm:$0xff] (%p50_p3)  ;;  %v192_v1 = vld [vmem:[%s177_s26 + $0x8] sm:$0xff] (%p50_p3)  ;;  %v194_v2 = vld [vmem:[%s177_s26 + $0x10] sm:$0xff] (%p50_p3)  ;;  %s171_s27 = scalar_lea.vmem (%p50_p3), [#allocation3], %s1475_s23 }
  0x11   : > { %191 = vst [vmem:[%s171_s27] sm:$0xff] %v190_v0  ;;  %193 = vst [vmem:[%s171_s27 + $0x8] sm:$0xff] %v192_v1  ;;  %v196_v3 = vld [vmem:[%s177_s26 + $0x48] sm:$0xff]  ;;  %v198_v4 = vld [vmem:[%s177_s26 + $0x50] sm:$0xff] }
  0x12   : > { %195 = vst [vmem:[%s171_s27 + $0x10] sm:$0xff] %v194_v2  ;;  %v200_v5 = vld [vmem:[%s177_s26 + $0x58] sm:$0xff]  ;;  %197 = vst [vmem:[%s171_s27 + $0x18] sm:$0xff] %v196_v3  ;;  %v202_v6 = vld [vmem:[%s177_s26 + $0x90] sm:$0xff] }
  0x13   : > { %199 = vst [vmem:[%s171_s27 + $0x20] sm:$0xff] %v198_v4  ;;  %201 = vst [vmem:[%s171_s27 + $0x28] sm:$0xff] %v200_v5  ;;  %v204_v7 = vld [vmem:[%s177_s26 + $0x98] sm:$0xff]  ;;  %v206_v8 = vld [vmem:[%s177_s26 + $0xa0] sm:$0xff] }
  0x14   : > { %203 = vst [vmem:[%s171_s27 + $0x30] sm:$0xff] %v202_v6  ;;  %205 = vst [vmem:[%s171_s27 + $0x38] sm:$0xff] %v204_v7  ;;  %v208_v9 = vld [vmem:[%s177_s26 + $0xd8] sm:$0xff]  ;;  %v210_v10 = vld [vmem:[%s177_s26 + $0xe0] sm:$0xff] }
  0x15   : > { %207 = vst [vmem:[%s171_s27 + $0x40] sm:$0xff] %v206_v8  ;;  %v212_v11 = vld [vmem:[%s177_s26 + $0xe8] sm:$0xff]  ;;  %209 = vst [vmem:[%s171_s27 + $0x48] sm:$0xff] %v208_v9 }
  0x16   : > { %211 = vst [vmem:[%s171_s27 + $0x50] sm:$0xff] %v210_v10  ;;  %213 = vst [vmem:[%s171_s27 + $0x58] sm:$0xff] %v212_v11 }
  0x17 PF: > { %p1324_p6 = scmp.ge.s32.totalorder %s1718_s16, 1  ;;  %p233_p7 = scmp.lt.s32.totalorder %s1718_s16, 4 }
  0x19   : > { %p234_p8 = pnand %p1324_p6, %p233_p7 }
  0x1a   : > { %s240_s28 = sand.u32 (!%p234_p8), 1, %s1702_s12   ;;  %s284_s29 = smul.u32 (!%p234_p8), 96, %s1710_s14 }
  0x1b   : > { %237 = sbr.rel (%p234_p8) target bundleno = 390 (0x186), region = 51  ;;  %p1327_p10 = scmp.ne.s32.totalorder (!%p234_p8), %s1710_s14, 0 }
  0x1c   : > { %s1476_s30 = smul.u32 (!%p234_p8), 96, %s240_s28  ;;  %p286_p9 = scmp.lt.s32.totalorder (!%p234_p8), %s284_s29, 287 }
  0x1e   : > { %s1793_s8 = scalar_lea.vmem (!%p234_p8), [#allocation3], %s1476_s30 }
  0x20   : > { %s1958_s29 = smov (!%p286_p9, %s284_s29), 287  ;;  %316 = sbr.rel (%p1327_p10) target bundleno = 42 (0x2a), region = 59 }
  0x21   : > { %s1442_s4 = sshll.u32 %s1958_s29, 3 }
  0x22   : > { %s1791_s7 = scalar_lea.vmem %s1948_s1, %s1442_s4 }
  0x25   : > { %v1720_v12 = vmov 0.0  }
  0x26   : > { %317 = vst [vmem:[#allocation2 + $0x30] sm:$0xff] %v1720_v12  ;;  %318 = vst [vmem:[#allocation2] sm:$0xff] %v1720_v12 }
  0x27   : > { %319 = vst [vmem:[#allocation2 + $0x18] sm:$0xff] %v1720_v12  ;;  %320 = vst [vmem:[#allocation2 + $0x10] sm:$0xff] %v1720_v12 }
  0x28   : > { %321 = vst [vmem:[#allocation2 + $0x8] sm:$0xff] %v1720_v12  ;;  %322 = vst [vmem:[#allocation2 + $0x20] sm:$0xff] %v1720_v12 }
  0x29   : > { %323 = vst [vmem:[#allocation2 + $0x28] sm:$0xff] %v1720_v12  ;;  %324 = vst [vmem:[#allocation2 + $0x38] sm:$0xff] %v1720_v12 }
  0x2a PF: > { %v1518_v13 = vld [vmem:[%s1791_s7 + $0x74] ss:$8 sps:$4 sm:$0xff]   ;;  %v1522_v15 = vld [vmem:[%s1791_s7 + $0x70] ss:$8 sps:$4 sm:$0xff]   ;;  %v1524_v17 = vld [vmem:[%s1791_s7 + $0x64] ss:$8 sps:$4 sm:$0xff]  }
  0x2b   : > { %v1520_v14 = vld [vmem:[%s1791_s7 + $0x174] ss:$8 sps:$4 sm:$0xff]   ;;  %981 = vmatprep.subr.bf16.mxu0 %v1518_v13  ;;  %v1523_v16 = vld [vmem:[%s1791_s7 + $0x170] ss:$8 sps:$4 sm:$0xff]   ;;  %v1526_v18 = vld [vmem:[%s1791_s7 + $0x164] ss:$8 sps:$4 sm:$0xff]  }
  0x2c   : > { %1034 = vmatprep.subr.bf16.mxu1 %v1520_v14  ;;  %982 = vmatpush1.bf16.msra.mxu0 %v1522_v15  ;;  %v1528_v19 = vld [vmem:[%s1791_s7 + $0x60] ss:$8 sps:$4 sm:$0xff]   ;;  %v1530_v21 = vld [vmem:[%s1791_s7 + $0x54] ss:$8 sps:$4 sm:$0xff]   ;;  %v1534_v23 = vld [vmem:[%s1791_s7 + $0x50] ss:$8 sps:$4 sm:$0xff]  }
  0x2d   : > { %1035 = vmatpush1.bf16.msra.mxu1 %v1523_v16  ;;  %983 = vmatprep.subr.bf16.mxu0 %v1524_v17  ;;  %v1529_v20 = vld [vmem:[%s1791_s7 + $0x160] ss:$8 sps:$4 sm:$0xff]   ;;  %v1532_v22 = vld [vmem:[%s1791_s7 + $0x154] ss:$8 sps:$4 sm:$0xff]   ;;  %v1535_v24 = vld [vmem:[%s1791_s7 + $0x150] ss:$8 sps:$4 sm:$0xff]  }
  0x2e   : > { %1036 = vmatprep.subr.bf16.mxu1 %v1526_v18  ;;  %v1536_v25 = vld [vmem:[%s1791_s7 + $0x44] ss:$8 sps:$4 sm:$0xff]   ;;  %v1540_v27 = vld [vmem:[%s1791_s7 + $0x40] ss:$8 sps:$4 sm:$0xff]   ;;  %v1542_v29 = vld [vmem:[%s1791_s7 + $0x34] ss:$8 sps:$4 sm:$0xff]  }
  0x2f   : > { %v1538_v26 = vld [vmem:[%s1791_s7 + $0x144] ss:$8 sps:$4 sm:$0xff]   ;;  %v1541_v28 = vld [vmem:[%s1791_s7 + $0x140] ss:$8 sps:$4 sm:$0xff]   ;;  %v1544_v30 = vld [vmem:[%s1791_s7 + $0x134] ss:$8 sps:$4 sm:$0xff]  }
  0x30   : > { %984 = vmatpush1.bf16.msra.mxu0 %v1528_v19  ;;  %v1546_v31 = vld [vmem:[%s1791_s7 + $0x30] ss:$8 sps:$4 sm:$0xff]   ;;  %v1548_v33 = vld [vmem:[%s1791_s7 + $0x24] ss:$8 sps:$4 sm:$0xff]   ;;  %v1552_v35 = vld [vmem:[%s1791_s7 + $0x20] ss:$8 sps:$4 sm:$0xff]  }
  0x31   : > { %1037 = vmatpush1.bf16.msra.mxu1 %v1529_v20  ;;  %985 = vmatprep.subr.bf16.mxu0 %v1530_v21  ;;  %v1547_v32 = vld [vmem:[%s1791_s7 + $0x130] ss:$8 sps:$4 sm:$0xff]   ;;  %v1550_v34 = vld [vmem:[%s1791_s7 + $0x124] ss:$8 sps:$4 sm:$0xff]   ;;  %v1553_v36 = vld [vmem:[%s1791_s7 + $0x120] ss:$8 sps:$4 sm:$0xff]  }
  0x32   : > { %1038 = vmatprep.subr.bf16.mxu1 %v1532_v22  ;;  %v1554_v37 = vld [vmem:[%s1791_s7 + $0x14] ss:$8 sps:$4 sm:$0xff]   ;;  %v1558_v39 = vld [vmem:[%s1791_s7 + $0x10] ss:$8 sps:$4 sm:$0xff]   ;;  %v1560_v41 = vld [vmem:[%s1791_s7 + $0x4] ss:$8 sps:$4 sm:$0xff]  }
  0x33   : > { %v1556_v38 = vld [vmem:[%s1791_s7 + $0x114] ss:$8 sps:$4 sm:$0xff]   ;;  %v1559_v40 = vld [vmem:[%s1791_s7 + $0x110] ss:$8 sps:$4 sm:$0xff]   ;;  %v1562_v42 = vld [vmem:[%s1791_s7 + $0x104] ss:$8 sps:$4 sm:$0xff]  }
  0x34   : > { %986 = vmatpush1.bf16.msra.mxu0 %v1534_v23  ;;  %v1564_v43 = vld [vmem:[%s1791_s7] ss:$8 sps:$4 sm:$0xff]   ;;  %v1566_v45 = vld [vmem:[%s1791_s7 + $0xf4] ss:$8 sps:$4 sm:$0xff]   ;;  %v1570_v47 = vld [vmem:[%s1791_s7 + $0xf0] ss:$8 sps:$4 sm:$0xff]  }
  0x35   : > { %1039 = vmatpush1.bf16.msra.mxu1 %v1535_v24  ;;  %987 = vmatprep.subr.bf16.mxu0 %v1536_v25  ;;  %v1565_v44 = vld [vmem:[%s1791_s7 + $0x100] ss:$8 sps:$4 sm:$0xff]   ;;  %v1568_v46 = vld [vmem:[%s1791_s7 + $0x1f4] ss:$8 sps:$4 sm:$0xff]   ;;  %v1571_v48 = vld [vmem:[%s1791_s7 + $0x1f0] ss:$8 sps:$4 sm:$0xff]  }
  0x36   : > { %1040 = vmatprep.subr.bf16.mxu1 %v1538_v26  ;;  %v1572_v49 = vld [vmem:[%s1791_s7 + $0xe4] ss:$8 sps:$4 sm:$0xff]   ;;  %v1576_v51 = vld [vmem:[%s1791_s7 + $0xe0] ss:$8 sps:$4 sm:$0xff]   ;;  %v1578_v53 = vld [vmem:[%s1791_s7 + $0xd4] ss:$8 sps:$4 sm:$0xff]  }
  0x37   : > { %v1574_v50 = vld [vmem:[%s1791_s7 + $0x1e4] ss:$8 sps:$4 sm:$0xff]   ;;  %v1577_v52 = vld [vmem:[%s1791_s7 + $0x1e0] ss:$8 sps:$4 sm:$0xff]   ;;  %v1580_v54 = vld [vmem:[%s1791_s7 + $0x1d4] ss:$8 sps:$4 sm:$0xff]  }
  0x38   : > { %988 = vmatpush1.bf16.msra.mxu0 %v1540_v27  ;;  %v1582_v55 = vld [vmem:[%s1791_s7 + $0xd0] ss:$8 sps:$4 sm:$0xff]   ;;  %v1584_v57 = vld [vmem:[%s1791_s7 + $0xc4] ss:$8 sps:$4 sm:$0xff]   ;;  %v1588_v59 = vld [vmem:[%s1791_s7 + $0xc0] ss:$8 sps:$4 sm:$0xff]  }
  0x39   : > { %1041 = vmatpush1.bf16.msra.mxu1 %v1541_v28  ;;  %989 = vmatprep.subr.bf16.mxu0 %v1542_v29  ;;  %v1583_v56 = vld [vmem:[%s1791_s7 + $0x1d0] ss:$8 sps:$4 sm:$0xff]   ;;  %v1586_v58 = vld [vmem:[%s1791_s7 + $0x1c4] ss:$8 sps:$4 sm:$0xff]   ;;  %v1589_v60 = vld [vmem:[%s1791_s7 + $0x1c0] ss:$8 sps:$4 sm:$0xff]  }
  0x3a   : > { %1042 = vmatprep.subr.bf16.mxu1 %v1544_v30  ;;  %v1590_v61 = vld [vmem:[%s1791_s7 + $0xb4] ss:$8 sps:$4 sm:$0xff]   ;;  %v1619_v0 = vld [vmem:[%s1793_s8 + $0xc] ss:$24 sps:$4 sm:$0xff]   ;;  %v1594_v1 = vld [vmem:[%s1791_s7 + $0xb0] ss:$8 sps:$4 sm:$0xff]  }
  0x3b   : > { %v1616_v62 = vld [vmem:[%s1793_s8 + $0x4] ss:$24 sps:$4 sm:$0xff]   ;;  %v1595_v2 = vld [vmem:[%s1791_s7 + $0x1b0] ss:$8 sps:$4 sm:$0xff]   ;;  %1066 = vmatprep.mubr.bf16.mxu1 %v1619_v0  ;;  %v1600_v5 = vld [vmem:[%s1791_s7 + $0xa0] ss:$8 sps:$4 sm:$0xff]  }
  0x3c   : > { %990 = vmatpush1.bf16.msra.mxu0 %v1546_v31  ;;  %v1592_v63 = vld [vmem:[%s1791_s7 + $0x1b4] ss:$8 sps:$4 sm:$0xff]   ;;  %1013 = vmatprep.mubr.bf16.mxu0 %v1616_v62  ;;  %v1596_v3 = vld [vmem:[%s1791_s7 + $0xa4] ss:$8 sps:$4 sm:$0xff]   ;;  %v1601_v6 = vld [vmem:[%s1791_s7 + $0x1a0] ss:$8 sps:$4 sm:$0xff]  }
  0x3d   : > { %1043 = vmatpush1.bf16.msra.mxu1 %v1547_v32  ;;  %991 = vmatprep.subr.bf16.mxu0 %v1548_v33  ;;  %v1598_v4 = vld [vmem:[%s1791_s7 + $0x1a4] ss:$8 sps:$4 sm:$0xff]   ;;  %v1602_v7 = vld [vmem:[%s1791_s7 + $0x94] ss:$8 sps:$4 sm:$0xff]   ;;  %v1606_v9 = vld [vmem:[%s1791_s7 + $0x90] ss:$8 sps:$4 sm:$0xff]  }
  0x3e   : > { %1044 = vmatprep.subr.bf16.mxu1 %v1550_v34  ;;  %v1604_v8 = vld [vmem:[%s1791_s7 + $0x194] ss:$8 sps:$4 sm:$0xff]   ;;  %v1607_v10 = vld [vmem:[%s1791_s7 + $0x190] ss:$8 sps:$4 sm:$0xff]   ;;  %v1608_v11 = vld [vmem:[%s1791_s7 + $0x84] ss:$8 sps:$4 sm:$0xff]  }
  0x3f   : > { %v1610_v12 = vld [vmem:[%s1791_s7 + $0x184] ss:$8 sps:$4 sm:$0xff]   ;;  %v1612_v13 = vld [vmem:[%s1791_s7 + $0x80] ss:$8 sps:$4 sm:$0xff]   ;;  %v1622_v15 = vld [vmem:[%s1791_s7 + $0x274] ss:$8 sps:$4 sm:$0xff]  }
  0x40   : > { %992 = vmatpush1.bf16.msra.mxu0 %v1552_v35  ;;  %v1613_v14 = vld [vmem:[%s1791_s7 + $0x180] ss:$8 sps:$4 sm:$0xff]   ;;  %v1620_v18 = vld [vmem:[%s1791_s7 + $0x270] ss:$8 sps:$4 sm:$0xff]   ;;  %v1625_v19 = vld [vmem:[%s1791_s7 + $0x264] ss:$8 sps:$4 sm:$0xff]  }
  0x41   : > { %1045 = vmatpush1.bf16.msra.mxu1 %v1553_v36  ;;  %993 = vmatprep.subr.bf16.mxu0 %v1554_v37  ;;  %v1614_v16 = vld [vmem:[%s1793_s8] ss:$24 sps:$4 sm:$0xff]   ;;  %v1659_v20 = vld [vmem:[%s1793_s8 + $0x34] ss:$24 sps:$4 sm:$0xff]   ;;  %v1663_v24 = vld [vmem:[%s1793_s8 + $0x30] ss:$24 sps:$4 sm:$0xff]  }
  0x42   : > { %1046 = vmatprep.subr.bf16.mxu1 %v1556_v38  ;;  %v1617_v17 = vld [vmem:[%s1793_s8 + $0x8] ss:$24 sps:$4 sm:$0xff]   ;;  %v1661_v21 = vld [vmem:[%s1793_s8 + $0x3c] ss:$24 sps:$4 sm:$0xff]   ;;  %v1664_v25 = vld [vmem:[%s1793_s8 + $0x38] ss:$24 sps:$4 sm:$0xff]  }
  0x43   : > { %v1623_v22 = vld [vmem:[%s1791_s7 + $0x260] ss:$8 sps:$4 sm:$0xff]   ;;  %v1628_v23 = vld [vmem:[%s1791_s7 + $0x254] ss:$8 sps:$4 sm:$0xff]   ;;  %v1626_v26 = vld [vmem:[%s1791_s7 + $0x250] ss:$8 sps:$4 sm:$0xff]  }
  0x44   : > { %994 = vmatpush1.bf16.msra.mxu0 %v1558_v39  ;;  %v1631_v27 = vld [vmem:[%s1791_s7 + $0x244] ss:$8 sps:$4 sm:$0xff]   ;;  %v1629_v30 = vld [vmem:[%s1791_s7 + $0x240] ss:$8 sps:$4 sm:$0xff]   ;;  %v1634_v31 = vld [vmem:[%s1791_s7 + $0x234] ss:$8 sps:$4 sm:$0xff]  }
  0x45   : > { %1047 = vmatpush1.bf16.msra.mxu1 %v1559_v40  ;;  %995 = vmatprep.subr.bf16.mxu0 %v1560_v41  ;;  %v1676_v28 = vld [vmem:[%s1793_s8 + $0x14] ss:$24 sps:$4 sm:$0xff]   ;;  %v1679_v29 = vld [vmem:[%s1793_s8 + $0x44] ss:$24 sps:$4 sm:$0xff]   ;;  %v1632_v32 = vld [vmem:[%s1791_s7 + $0x230] ss:$8 sps:$4 sm:$0xff]  }
  0x46   : > { %1048 = vmatprep.subr.bf16.mxu1 %v1562_v42  ;;  %v1637_v33 = vld [vmem:[%s1791_s7 + $0x224] ss:$8 sps:$4 sm:$0xff]   ;;  %v1635_v34 = vld [vmem:[%s1791_s7 + $0x220] ss:$8 sps:$4 sm:$0xff]   ;;  %v1640_v35 = vld [vmem:[%s1791_s7 + $0x214] ss:$8 sps:$4 sm:$0xff]  }
  0x47   : > { %v1638_v36 = vld [vmem:[%s1791_s7 + $0x210] ss:$8 sps:$4 sm:$0xff]   ;;  %v1643_v37 = vld [vmem:[%s1791_s7 + $0x204] ss:$8 sps:$4 sm:$0xff]   ;;  %v1641_v38 = vld [vmem:[%s1791_s7 + $0x200] ss:$8 sps:$4 sm:$0xff]  }
  0x48   : > { %996 = vmatpush1.bf16.msra.mxu0 %v1564_v43  ;;  %v1646_v39 = vld [vmem:[%s1791_s7 + $0x2f4] ss:$8 sps:$4 sm:$0xff]   ;;  %v1644_v40 = vld [vmem:[%s1791_s7 + $0x2f0] ss:$8 sps:$4 sm:$0xff]   ;;  %v1649_v41 = vld [vmem:[%s1791_s7 + $0x2e4] ss:$8 sps:$4 sm:$0xff]  }
  0x49   : > { %1049 = vmatpush1.bf16.msra.mxu1 %v1565_v44  ;;  %997 = vmatprep.subr.bf16.mxu0 %v1566_v45  ;;  %v1647_v42 = vld [vmem:[%s1791_s7 + $0x2e0] ss:$8 sps:$4 sm:$0xff]   ;;  %v1652_v43 = vld [vmem:[%s1791_s7 + $0x2d4] ss:$8 sps:$4 sm:$0xff]   ;;  %v1650_v44 = vld [vmem:[%s1791_s7 + $0x2d0] ss:$8 sps:$4 sm:$0xff]  }
  0x4a   : > { %1050 = vmatprep.subr.bf16.mxu1 %v1568_v46  ;;  %v1655_v45 = vld [vmem:[%s1791_s7 + $0x2c4] ss:$8 sps:$4 sm:$0xff]   ;;  %v1653_v46 = vld [vmem:[%s1791_s7 + $0x2c0] ss:$8 sps:$4 sm:$0xff]   ;;  %p1436_p11 = scmp.ne.s32.totalorder %s1710_s14, 2 }
  0x4c   : > { %998 = vmatpush2.bf16.msra.mxu0 %v1570_v47  ;;  %v1658_v47 = vld [vmem:[%s1791_s7 + $0x2b4] ss:$8 sps:$4 sm:$0xff]  }
  0x4d   : > { %1051 = vmatpush2.bf16.msra.mxu1 %v1571_v48  ;;  %999 = vmatprep.subr.bf16.mxu0 %v1572_v49  ;;  %v1656_v48 = vld [vmem:[%s1791_s7 + $0x2b0] ss:$8 sps:$4 sm:$0xff]   ;;  %v1667_v49 = vld [vmem:[%s1791_s7 + $0x2a4] ss:$8 sps:$4 sm:$0xff]  }
  0x4e   : > { %1052 = vmatprep.subr.bf16.mxu1 %v1574_v50  ;;  %v1665_v50 = vld [vmem:[%s1791_s7 + $0x2a0] ss:$8 sps:$4 sm:$0xff]  }
  0x50   : > { %1000 = vmatpush2.bf16.msra.mxu0 %v1576_v51  ;;  %v1670_v51 = vld [vmem:[%s1791_s7 + $0x294] ss:$8 sps:$4 sm:$0xff]  }
  0x51   : > { %1053 = vmatpush2.bf16.msra.mxu1 %v1577_v52  ;;  %1001 = vmatprep.subr.bf16.mxu0 %v1578_v53  ;;  %v1668_v52 = vld [vmem:[%s1791_s7 + $0x290] ss:$8 sps:$4 sm:$0xff]   ;;  %v1673_v53 = vld [vmem:[%s1791_s7 + $0x284] ss:$8 sps:$4 sm:$0xff]  }
  0x52   : > { %1054 = vmatprep.subr.bf16.mxu1 %v1580_v54  ;;  %v1671_v54 = vld [vmem:[%s1791_s7 + $0x280] ss:$8 sps:$4 sm:$0xff]  }
  0x54   : > { %1002 = vmatpush2.bf16.msra.mxu0 %v1582_v55  ;;  %v1674_v55 = vld [vmem:[%s1793_s8 + $0x10] ss:$24 sps:$4 sm:$0xff]  }
  0x55   : > { %1055 = vmatpush2.bf16.msra.mxu1 %v1583_v56  ;;  %1003 = vmatprep.subr.bf16.mxu0 %v1584_v57  ;;  %v1677_v56 = vld [vmem:[%s1793_s8 + $0x40] ss:$24 sps:$4 sm:$0xff]  }
  0x56   : > { %1056 = vmatprep.subr.bf16.mxu1 %v1586_v58 }
  0x58   : > { %1004 = vmatpush2.bf16.msra.mxu0 %v1588_v59 }
  0x59   : > { %1057 = vmatpush2.bf16.msra.mxu1 %v1589_v60  ;;  %1005 = vmatprep.subr.bf16.mxu0 %v1590_v61 }
  0x5a   : > { %1058 = vmatprep.subr.bf16.mxu1 %v1592_v63 }
  0x5c   : > { %1006 = vmatpush2.bf16.msra.mxu0 %v1594_v1 }
  0x5d   : > { %1059 = vmatpush2.bf16.msra.mxu1 %v1595_v2  ;;  %1007 = vmatprep.subr.bf16.mxu0 %v1596_v3 }
  0x5e   : > { %1060 = vmatprep.subr.bf16.mxu1 %v1598_v4 }
  0x60   : > { %1008 = vmatpush2.bf16.msra.mxu0 %v1600_v5 }
  0x61   : > { %1061 = vmatpush2.bf16.msra.mxu1 %v1601_v6  ;;  %1009 = vmatprep.subr.bf16.mxu0 %v1602_v7 }
  0x62   : > { %1062 = vmatprep.subr.bf16.mxu1 %v1604_v8 }
  0x64   : > { %1010 = vmatpush2.bf16.msra.mxu0 %v1606_v9 }
  0x65   : > { %1063 = vmatpush2.bf16.msra.mxu1 %v1607_v10  ;;  %1011 = vmatprep.subr.bf16.mxu0 %v1608_v11  ;;  %v325_v11 = vld [vmem:[#allocation2 + $0x30] sm:$0xff] }
  0x66   : > { %1064 = vmatprep.subr.bf16.mxu1 %v1610_v12 }
  0x68   : > { %1012 = vmatpush2.bf16.msra.mxu0 %v1612_v13  ;;  %v329_v13 = vld [vmem:[#allocation2 + $0x8] sm:$0xff] }
  0x69   : > { %1065 = vmatpush2.bf16.msra.mxu1 %v1613_v14  ;;  %1087 = vmatprep.subr.bf16.mxu0 %v1622_v15 }
  0x6a   : > { %1443 = vmatprep.subr.bf16.mxu1 %v1622_v15 }
  0x6b   : > { %1014 = vmatmul.mubr.bf16.vlgmr.msra.gmra.mxu0 %v1614_v16 }
  0x6c   : > { %1067 = vmatmul.mubr.bf16.vlgmr.msra.gmra.mxu1 %v1617_v17  ;;  %1088 = vmatpush1.bf16.msra.mxu0 %v1620_v18 }
  0x6d   : > { %1459 = vmatpush1.bf16.msra.mxu1 %v1620_v18  ;;  %1089 = vmatprep.subr.bf16.mxu0 %v1625_v19 }
  0x6e   : > { %1444 = vmatprep.subr.bf16.mxu1 %v1625_v19  ;;  %1023 = vmatprep.mubr.bf16.mxu0 %v1659_v20 }
  0x6f   : > { %1076 = vmatprep.mubr.bf16.mxu1 %v1661_v21  ;;  %v326_v21 = vld [vmem:[#allocation2] sm:$0xff] }
  0x70   : > { %1090 = vmatpush1.bf16.msra.mxu0 %v1623_v22 }
  0x71   : > { %1460 = vmatpush1.bf16.msra.mxu1 %v1623_v22  ;;  %1091 = vmatprep.subr.bf16.mxu0 %v1628_v23 }
  0x72   : > { %1445 = vmatprep.subr.bf16.mxu1 %v1628_v23  ;;  %v330_v23 = vld [vmem:[#allocation2 + $0x20] sm:$0xff] }
  0x73   : > { %1024 = vmatmul.mubr.bf16.gmra.mxu0 %v1663_v24 }
  0x74   : > { %1077 = vmatmul.mubr.bf16.gmra.mxu1 %v1664_v25  ;;  %1092 = vmatpush1.bf16.msra.mxu0 %v1626_v26 }
  0x75   : > { %1461 = vmatpush1.bf16.msra.mxu1 %v1626_v26  ;;  %1093 = vmatprep.subr.bf16.mxu0 %v1631_v27 }
  0x76   : > { %1446 = vmatprep.subr.bf16.mxu1 %v1631_v27  ;;  %1119 = vmatprep.mubr.bf16.mxu0 %v1676_v28 }
  0x77   : > { %1129 = vmatprep.mubr.bf16.mxu1 %v1679_v29 }
  0x78   : > { %1094 = vmatpush1.bf16.msra.mxu0 %v1629_v30 }
  0x79   : > { %1462 = vmatpush1.bf16.msra.mxu1 %v1629_v30  ;;  %1095 = vmatprep.subr.bf16.mxu0 %v1634_v31 }
  0x7a   : > { %1447 = vmatprep.subr.bf16.mxu1 %v1634_v31  ;;  %v327_v31 = vld [vmem:[#allocation2 + $0x18] sm:$0xff] }
  0x7c   : > { %1096 = vmatpush1.bf16.msra.mxu0 %v1632_v32 }
  0x7d   : > { %1463 = vmatpush1.bf16.msra.mxu1 %v1632_v32  ;;  %1097 = vmatprep.subr.bf16.mxu0 %v1637_v33 }
  0x7e   : > { %1448 = vmatprep.subr.bf16.mxu1 %v1637_v33  ;;  %v331_v33 = vld [vmem:[#allocation2 + $0x28] sm:$0xff] }
  0x80   : > { %1098 = vmatpush1.bf16.msra.mxu0 %v1635_v34 }
  0x81   : > { %1464 = vmatpush1.bf16.msra.mxu1 %v1635_v34  ;;  %1099 = vmatprep.subr.bf16.mxu0 %v1640_v35 }
  0x82   : > { %1449 = vmatprep.subr.bf16.mxu1 %v1640_v35 }
  0x84   : > { %1100 = vmatpush1.bf16.msra.mxu0 %v1638_v36 }
  0x85   : > { %1465 = vmatpush1.bf16.msra.mxu1 %v1638_v36  ;;  %1101 = vmatprep.subr.bf16.mxu0 %v1643_v37 }
  0x86   : > { %1450 = vmatprep.subr.bf16.mxu1 %v1643_v37 }
  0x88   : > { %1102 = vmatpush1.bf16.msra.mxu0 %v1641_v38 }
  0x89   : > { %1466 = vmatpush1.bf16.msra.mxu1 %v1641_v38  ;;  %1103 = vmatprep.subr.bf16.mxu0 %v1646_v39 }
  0x8a   : > { %1451 = vmatprep.subr.bf16.mxu1 %v1646_v39  ;;  %v328_v39 = vld [vmem:[#allocation2 + $0x10] sm:$0xff] }
  0x8c   : > { %1104 = vmatpush2.bf16.msra.mxu0 %v1644_v40 }
  0x8d   : > { %1467 = vmatpush2.bf16.msra.mxu1 %v1644_v40  ;;  %1105 = vmatprep.subr.bf16.mxu0 %v1649_v41 }
  0x8e   : > { %1452 = vmatprep.subr.bf16.mxu1 %v1649_v41  ;;  %v332_v41 = vld [vmem:[#allocation2 + $0x38] sm:$0xff] }
  0x90   : > { %1106 = vmatpush2.bf16.msra.mxu0 %v1647_v42 }
  0x91   : > { %1468 = vmatpush2.bf16.msra.mxu1 %v1647_v42  ;;  %1107 = vmatprep.subr.bf16.mxu0 %v1652_v43 }
  0x92   : > { %1453 = vmatprep.subr.bf16.mxu1 %v1652_v43 }
  0x94   : > { %1108 = vmatpush2.bf16.msra.mxu0 %v1650_v44 }
  0x95   : > { %1469 = vmatpush2.bf16.msra.mxu1 %v1650_v44  ;;  %1109 = vmatprep.subr.bf16.mxu0 %v1655_v45 }
  0x96   : > { %1454 = vmatprep.subr.bf16.mxu1 %v1655_v45 }
  0x98   : > { %1110 = vmatpush2.bf16.msra.mxu0 %v1653_v46 }
  0x99   : > { %1470 = vmatpush2.bf16.msra.mxu1 %v1653_v46  ;;  %1111 = vmatprep.subr.bf16.mxu0 %v1658_v47 }
  0x9a   : > { %1455 = vmatprep.subr.bf16.mxu1 %v1658_v47 }
  0x9c   : > { %1112 = vmatpush2.bf16.msra.mxu0 %v1656_v48 }
  0x9d   : > { %1471 = vmatpush2.bf16.msra.mxu1 %v1656_v48  ;;  %1113 = vmatprep.subr.bf16.mxu0 %v1667_v49 }
  0x9e   : > { %1456 = vmatprep.subr.bf16.mxu1 %v1667_v49 }
  0xa0   : > { %1114 = vmatpush2.bf16.msra.mxu0 %v1665_v50 }
  0xa1   : > { %1472 = vmatpush2.bf16.msra.mxu1 %v1665_v50  ;;  %1115 = vmatprep.subr.bf16.mxu0 %v1670_v51 }
  0xa2   : > { %1457 = vmatprep.subr.bf16.mxu1 %v1670_v51 }
  0xa4   : > { %1116 = vmatpush2.bf16.msra.mxu0 %v1668_v52 }
  0xa5   : > { %1473 = vmatpush2.bf16.msra.mxu1 %v1668_v52  ;;  %1117 = vmatprep.subr.bf16.mxu0 %v1673_v53 }
  0xa6   : > { %1458 = vmatprep.subr.bf16.mxu1 %v1673_v53 }
  0xa8   : > { %1118 = vmatpush2.bf16.msra.mxu0 %v1671_v54 }
  0xa9   : > { %1474 = vmatpush2.bf16.msra.mxu1 %v1671_v54 }
  0xab   : > { %1120 = vmatmul.mubr.bf16.vlgmr.msra.gmra.mxu0 %v1674_v55 }
  0xac   : > { %1130 = vmatmul.mubr.bf16.vlgmr.msra.gmra.mxu1 %v1677_v56 }
 0x12b   : > { %v1015_v57 = vpop.f32.mrf.mxu0 }
 0x12c   : > { %v1068_v58 = vpop.f32.mrf.mxu1 }
 0x12d   : > { %v1017_v59 = vpop.f32.mrf.mxu0  ;;  %v1069_v9 = vadd.f32 %v1068_v58, %v1015_v57 }
 0x12e   : > { %v1070_v60 = vpop.f32.mrf.mxu1 }
 0x12f   : > { %v1019_v61 = vpop.f32.mrf.mxu0  ;;  %v1071_v15 = vadd.f32 %v1070_v60, %v1017_v59 }
 0x130   : > { %v1072_v62 = vpop.f32.mrf.mxu1 }
 0x131   : > { %v1021_v63 = vpop.f32.mrf.mxu0  ;;  %v1073_v19 = vadd.f32 %v1072_v62, %v1019_v61 }
 0x132   : > { %v1074_v0 = vpop.f32.mrf.mxu1 }
 0x133   : > { %v1025_v1 = vpop.f32.mrf.mxu0  ;;  %v1075_v29 = vadd.f32 %v1074_v0, %v1021_v63 }
 0x134   : > { %v1078_v2 = vpop.f32.mrf.mxu1 }
 0x135   : > { %v1027_v3 = vpop.f32.mrf.mxu0  ;;  %v1079_v10 = vadd.f32 %v1078_v2, %v1025_v1 }
 0x136   : > { %v1080_v4 = vpop.f32.mrf.mxu1 }
 0x137   : > { %v1029_v5 = vpop.f32.mrf.mxu0  ;;  %v1081_v16 = vadd.f32 %v1080_v4, %v1027_v3 }
 0x138   : > { %v1082_v6 = vpop.f32.mrf.mxu1 }
 0x139   : > { %v1031_v7 = vpop.f32.mrf.mxu0  ;;  %v1083_v20 = vadd.f32 %v1082_v6, %v1029_v5 }
 0x13a   : > { %v1084_v8 = vpop.f32.mrf.mxu1 }
 0x13b   : > { %v1085_v30 = vadd.f32 %v1084_v8, %v1031_v7 }
 0x16b   : > { %v1121_v12 = vpop.f32.mrf.mxu0 }
 0x16c   : > { %v1131_v14 = vpop.f32.mrf.mxu1  ;;  %v1122_v17 = vadd.f32 %v1121_v12, %v1069_v9 }
 0x16d   : > { %v1132_v18 = vadd.f32 %v1131_v14, %v1079_v10  ;;  %v1123_v22 = vpop.f32.mrf.mxu0 }
 0x16e   : > { %v1133_v24 = vpop.f32.mrf.mxu1  ;;  %v1140_v25 = vadd.f32 %v1122_v17, %v325_v11  ;;  %v1124_v27 = vadd.f32 %v1123_v22, %v1071_v15 }
 0x16f   : > { %v1144_v26 = vadd.f32 %v1132_v18, %v329_v13  ;;  %v1134_v28 = vadd.f32 %v1133_v24, %v1081_v16  ;;  %v1125_v32 = vpop.f32.mrf.mxu0 }
 0x170   : > { %v1135_v34 = vpop.f32.mrf.mxu1  ;;  %1148 = vst [vmem:[#allocation2 + $0x30] sm:$0xff] %v1140_v25  ;;  %v1141_v35 = vadd.f32 %v1124_v27, %v326_v21  ;;  %v1126_v37 = vadd.f32 %v1125_v32, %v1073_v19 }
 0x171   : > { %1152 = vst [vmem:[#allocation2 + $0x8] sm:$0xff] %v1144_v26  ;;  %v1145_v36 = vadd.f32 %v1134_v28, %v330_v23  ;;  %v1136_v38 = vadd.f32 %v1135_v34, %v1083_v20  ;;  %v1127_v40 = vpop.f32.mrf.mxu0 }
 0x172   : > { %v1137_v42 = vpop.f32.mrf.mxu1  ;;  %1149 = vst [vmem:[#allocation2] sm:$0xff] %v1141_v35  ;;  %v1142_v43 = vadd.f32 %v1126_v37, %v327_v31  ;;  %v1128_v45 = vadd.f32 %v1127_v40, %v1075_v29 }
 0x173   : > { %1153 = vst [vmem:[#allocation2 + $0x20] sm:$0xff] %v1145_v36  ;;  %v1146_v44 = vadd.f32 %v1136_v38, %v331_v33  ;;  %v1138_v46 = vadd.f32 %v1137_v42, %v1085_v30  ;;  %1159 = sbr.rel (%p1436_p11) target bundleno = 390 (0x186), region = 63 }
 0x174   : > { %1150 = vst [vmem:[#allocation2 + $0x18] sm:$0xff] %v1142_v43  ;;  %v1143_v47 = vadd.f32 %v1128_v45, %v328_v39 }
 0x175   : > { %1154 = vst [vmem:[#allocation2 + $0x28] sm:$0xff] %v1146_v44  ;;  %v1147_v48 = vadd.f32 %v1138_v46, %v332_v41 }
 0x176   : > { %1151 = vst [vmem:[#allocation2 + $0x10] sm:$0xff] %v1143_v47 }
 0x177   : > { %1155 = vst [vmem:[#allocation2 + $0x38] sm:$0xff] %v1147_v48 }
 0x178   : > { %v1170_v49 = vlaneseq  ;;  %v1168_v51 = vld [vmem:[%s1949_s2] sm:$0x3]  ;;  %v1160_v52 = vld [vmem:[#allocation2 + $0x30] sm:$0xff]  ;;  %v1164_v58 = vld [vmem:[#allocation2 + $0x8] sm:$0xff] }
 0x179   : > { %v1161_v54 = vld [vmem:[#allocation2] sm:$0xff] }
 0x17a   : > { %v1171_v50 = vshrl.u32 %v1170_v49, 7  ;;  %v1165_v61 = vld [vmem:[#allocation2 + $0x20] sm:$0xff] }
 0x17b   : > { %v1162_v56 = vld [vmem:[#allocation2 + $0x18] sm:$0xff] }
 0x17c   : > { %v1172_v53 = vsub.s32 0, %v1171_v50  ;;  %v1176_v55 = vsub.s32 1, %v1171_v50  ;;  %v1166_v62 = vld [vmem:[#allocation2 + $0x28] sm:$0xff] }
 0x17d   : > { %v1163_v57 = vld [vmem:[#allocation2 + $0x10] sm:$0xff] }
 0x17e   : > { %v1173_v59 = vrot.slane %v1168_v51, %v1172_v53  ;;  %v1177_v60 = vrot.slane %v1168_v51, %v1176_v55  ;;  %v1167_v63 = vld [vmem:[#allocation2 + $0x38] sm:$0xff] }
 0x180   : > { %v1180_v0 = vadd.f32 %v1173_v59, %v1160_v52  ;;  %v1181_v1 = vadd.f32 %v1177_v60, %v1161_v54  ;;  %v1182_v2 = vadd.f32 %v1173_v59, %v1162_v56  ;;  %v1183_v3 = vadd.f32 %v1177_v60, %v1163_v57 }
 0x181   : > { %v1184_v4 = vadd.f32 %v1173_v59, %v1164_v58  ;;  %v1185_v5 = vadd.f32 %v1177_v60, %v1165_v61  ;;  %v1186_v6 = vadd.f32 %v1173_v59, %v1166_v62  ;;  %v1187_v7 = vadd.f32 %v1177_v60, %v1167_v63 }
 0x182   : > { %1188 = vst [vmem:[%s1950_s3] sm:$0xff] %v1180_v0  ;;  %1189 = vst [vmem:[%s1950_s3 + $0x8] sm:$0xff] %v1181_v1 }
 0x183   : > { %1190 = vst [vmem:[%s1950_s3 + $0x10] sm:$0xff] %v1182_v2  ;;  %1191 = vst [vmem:[%s1950_s3 + $0x18] sm:$0xff] %v1183_v3 }
 0x184   : > { %1192 = vst [vmem:[%s1950_s3 + $0x20] sm:$0xff] %v1184_v4  ;;  %1193 = vst [vmem:[%s1950_s3 + $0x28] sm:$0xff] %v1185_v5 }
 0x185   : > { %1194 = vst [vmem:[%s1950_s3 + $0x30] sm:$0xff] %v1186_v6  ;;  %1195 = vst [vmem:[%s1950_s3 + $0x38] sm:$0xff] %v1187_v7 }
 0x186 PF: > { %s13_s16 = sadd.s32 1, %s1718_s16   ;;  %s1951_s12 = smov %s1706_s13 }
 0x187   : > { %p10_p12 = scmp.ge.s32.totalorder %s13_s16, 5   ;;  %s1952_s13 = smov %s1776_s20 }
 0x188   : > { %s1953_s14 = smov %s1714_s15  ;;  %s1954_s15 = smov %s1956_s17 }
 0x189   :  { %12 = sbr.rel (!%p10_p12) target bundleno = 3 (0x3), region = 104 }

// kernel: _lambda_.58
= control target key start
LH: loop header
LB: loop body
LE: loop exit
PB: predicated region body
PF: predicated region fallthrough
CT: control target
= control target key end

     0   :  { %s1852_s15 = smov 0   ;;  %s1854_s16 = smov 0   ;;  %s2082_s0 = inlined_call_operand.vmem [shape: bf16[32,2304], index: 0, kind: input, shape index: {}]   ;;  %s2083_s1 = inlined_call_operand.vmem [shape: bf16[2304,256], index: 1, kind: input, shape index: {}]   ;;  %s2084_s2 = inlined_call_operand.vmem [shape: f32[1,256], index: 2, kind: input, shape index: {}]   ;;  %s2085_s3 = inlined_call_operand.vmem [shape: f32[32,256], index: 3, kind: input, shape index: {}]   ;;  %s2086_s4 = inlined_call_operand.vmem [shape: f32[32,256], index: 4, kind: output, shape index: {}]  }
   0x1   :  { %s1856_s17 = smov 0   ;;  %s1858_s18 = smov 0  }
   0x2   :  { %s1860_s19 = smov 0  }
   0x3 LB: > { %s26_s20 = sadd.s32 1, %s1820_s18  ;;  %p49_p1 = scmp.ne.s32.totalorder %s1812_s16, %s1808_s15  ;;  %s1824_s19 = sphi %s1860_s19, %s14_s19   ;;  %s1820_s18 = sphi %s1858_s18, %s2090_s18   ;;  %s1816_s17 = sphi %s1856_s17, %s2089_s17   ;;  %s1812_s16 = sphi %s1854_s16, %s2088_s16   ;;  %s1808_s15 = sphi %s1852_s15, %s2087_s15  }
   0x4   : > { %p27_p0 = scmp.ge.s32.totalorder %s26_s20, 3  ;;  %p50_p2 = scmp.eq.s32.totalorder %s1824_s19, 0 }
   0x5   : > { %s42_s22 = sadd.s32 1, %s1812_s16  ;;  %p1428_p5 = scmp.ge.s32.totalorder %s1824_s19, 3 }
   0x6   : > { %s2092_s20 = smov (%p27_p0, %s26_s20), 0  ;;  %p51_p3 = por %p50_p2, %p49_p1 }
   0x7   : > { %s38_s21 = ssub.s32 %s1820_s18, %s2092_s20  ;;  %208 = sbr.rel (%p1428_p5) target bundleno = 23 (0x17), region = 24 }
   0x8   : > { %p40_p4 = scmp.eq.s32.totalorder %s38_s21, 0 }
   0xa   : > { %s1887_s23 = scalar_select %p40_p4, %s1812_s16, %s42_s22  }
   0xc   : > { %211 = sbr.rel (!%p51_p3) target bundleno = 23 (0x17), region = 28  ;;  %s213_s24 = sand.u32 (%p51_p3), 1, %s1812_s16  }
   0xd   : > { %s1547_s25 = smul.u32 (%p51_p3), 24, %s1820_s18 }
   0xe   : > { %s1581_s26 = smul.u32 (%p51_p3), 96, %s213_s24 }
   0xf   : > { %s221_s29 = scalar_lea.vmem (%p51_p3), %s2082_s0, %s1547_s25 }
  0x10   : > { %v234_v0 = vld [vmem:[%s221_s29] sm:$0xff] (%p51_p3)  ;;  %v236_v1 = vld [vmem:[%s221_s29 + $0x8] sm:$0xff] (%p51_p3)  ;;  %v238_v2 = vld [vmem:[%s221_s29 + $0x10] sm:$0xff] (%p51_p3)  ;;  %s215_s30 = scalar_lea.vmem (%p51_p3), [#allocation3], %s1581_s26 }
  0x11   : > { %235 = vst [vmem:[%s215_s30] sm:$0xff] %v234_v0  ;;  %237 = vst [vmem:[%s215_s30 + $0x8] sm:$0xff] %v236_v1  ;;  %v240_v3 = vld [vmem:[%s221_s29 + $0x48] sm:$0xff]  ;;  %v242_v4 = vld [vmem:[%s221_s29 + $0x50] sm:$0xff] }
  0x12   : > { %239 = vst [vmem:[%s215_s30 + $0x10] sm:$0xff] %v238_v2  ;;  %v244_v5 = vld [vmem:[%s221_s29 + $0x58] sm:$0xff]  ;;  %241 = vst [vmem:[%s215_s30 + $0x18] sm:$0xff] %v240_v3  ;;  %v246_v6 = vld [vmem:[%s221_s29 + $0x90] sm:$0xff] }
  0x13   : > { %243 = vst [vmem:[%s215_s30 + $0x20] sm:$0xff] %v242_v4  ;;  %245 = vst [vmem:[%s215_s30 + $0x28] sm:$0xff] %v244_v5  ;;  %v248_v7 = vld [vmem:[%s221_s29 + $0x98] sm:$0xff]  ;;  %v250_v8 = vld [vmem:[%s221_s29 + $0xa0] sm:$0xff] }
  0x14   : > { %247 = vst [vmem:[%s215_s30 + $0x30] sm:$0xff] %v246_v6  ;;  %249 = vst [vmem:[%s215_s30 + $0x38] sm:$0xff] %v248_v7  ;;  %v252_v9 = vld [vmem:[%s221_s29 + $0xd8] sm:$0xff]  ;;  %v254_v10 = vld [vmem:[%s221_s29 + $0xe0] sm:$0xff] }
  0x15   : > { %251 = vst [vmem:[%s215_s30 + $0x40] sm:$0xff] %v250_v8  ;;  %v256_v11 = vld [vmem:[%s221_s29 + $0xe8] sm:$0xff]  ;;  %253 = vst [vmem:[%s215_s30 + $0x48] sm:$0xff] %v252_v9 }
  0x16   : > { %255 = vst [vmem:[%s215_s30 + $0x50] sm:$0xff] %v254_v10  ;;  %257 = vst [vmem:[%s215_s30 + $0x58] sm:$0xff] %v256_v11 }
  0x17 PF: > { %p1430_p6 = scmp.ge.s32.totalorder %s1824_s19, 1  ;;  %p277_p7 = scmp.lt.s32.totalorder %s1824_s19, 4 }
  0x19   : > { %p278_p8 = pnand %p1430_p6, %p277_p7 }
  0x1a   : > { %s284_s5 = sand.u32 (!%p278_p8), 1, %s1808_s15   ;;  %s340_s6 = smul.u32 (!%p278_p8), 96, %s1816_s17 }
  0x1b   : > { %281 = sbr.rel (%p278_p8) target bundleno = 392 (0x188), region = 55  ;;  %p1433_p10 = scmp.ne.s32.totalorder (!%p278_p8), %s1816_s17, 0 }
  0x1c   : > { %s1582_s7 = smul.u32 (!%p278_p8), 96, %s284_s5  ;;  %p342_p9 = scmp.lt.s32.totalorder (!%p278_p8), %s340_s6, 287 }
  0x1e   : > { %s1904_s12 = scalar_lea.vmem (!%p278_p8), [#allocation3], %s1582_s7 }
  0x20   : > { %s2094_s6 = smov (!%p342_p9, %s340_s6), 287  ;;  %384 = sbr.rel (%p1433_p10) target bundleno = 42 (0x2a), region = 63 }
  0x21   : > { %s1548_s8 = sshll.u32 %s2094_s6, 3 }
  0x22   : > { %s1902_s11 = scalar_lea.vmem %s2083_s1, %s1548_s8 }
  0x25   : > { %v1826_v12 = vmov 0.0  }
  0x26   : > { %385 = vst [vmem:[#allocation2 + $0x30] sm:$0xff] %v1826_v12  ;;  %386 = vst [vmem:[#allocation2] sm:$0xff] %v1826_v12 }
  0x27   : > { %387 = vst [vmem:[#allocation2 + $0x18] sm:$0xff] %v1826_v12  ;;  %388 = vst [vmem:[#allocation2 + $0x10] sm:$0xff] %v1826_v12 }
  0x28   : > { %389 = vst [vmem:[#allocation2 + $0x8] sm:$0xff] %v1826_v12  ;;  %390 = vst [vmem:[#allocation2 + $0x20] sm:$0xff] %v1826_v12 }
  0x29   : > { %391 = vst [vmem:[#allocation2 + $0x28] sm:$0xff] %v1826_v12  ;;  %392 = vst [vmem:[#allocation2 + $0x38] sm:$0xff] %v1826_v12 }
  0x2a PF: > { %v1624_v13 = vld [vmem:[%s1902_s11 + $0x74] ss:$8 sps:$4 sm:$0xff]   ;;  %v1628_v15 = vld [vmem:[%s1902_s11 + $0x70] ss:$8 sps:$4 sm:$0xff]   ;;  %v1630_v17 = vld [vmem:[%s1902_s11 + $0x64] ss:$8 sps:$4 sm:$0xff]  }
  0x2b   : > { %v1626_v14 = vld [vmem:[%s1902_s11 + $0x174] ss:$8 sps:$4 sm:$0xff]   ;;  %1049 = vmatprep.subr.bf16.mxu0 %v1624_v13  ;;  %v1629_v16 = vld [vmem:[%s1902_s11 + $0x170] ss:$8 sps:$4 sm:$0xff]   ;;  %v1632_v18 = vld [vmem:[%s1902_s11 + $0x164] ss:$8 sps:$4 sm:$0xff]  }
  0x2c   : > { %1102 = vmatprep.subr.bf16.mxu1 %v1626_v14  ;;  %1050 = vmatpush1.bf16.msra.mxu0 %v1628_v15  ;;  %v1634_v19 = vld [vmem:[%s1902_s11 + $0x60] ss:$8 sps:$4 sm:$0xff]   ;;  %v1636_v21 = vld [vmem:[%s1902_s11 + $0x54] ss:$8 sps:$4 sm:$0xff]   ;;  %v1640_v23 = vld [vmem:[%s1902_s11 + $0x50] ss:$8 sps:$4 sm:$0xff]  }
  0x2d   : > { %1103 = vmatpush1.bf16.msra.mxu1 %v1629_v16  ;;  %1051 = vmatprep.subr.bf16.mxu0 %v1630_v17  ;;  %v1635_v20 = vld [vmem:[%s1902_s11 + $0x160] ss:$8 sps:$4 sm:$0xff]   ;;  %v1638_v22 = vld [vmem:[%s1902_s11 + $0x154] ss:$8 sps:$4 sm:$0xff]   ;;  %v1641_v24 = vld [vmem:[%s1902_s11 + $0x150] ss:$8 sps:$4 sm:$0xff]  }
  0x2e   : > { %1104 = vmatprep.subr.bf16.mxu1 %v1632_v18  ;;  %v1642_v25 = vld [vmem:[%s1902_s11 + $0x44] ss:$8 sps:$4 sm:$0xff]   ;;  %v1646_v27 = vld [vmem:[%s1902_s11 + $0x40] ss:$8 sps:$4 sm:$0xff]   ;;  %v1648_v29 = vld [vmem:[%s1902_s11 + $0x34] ss:$8 sps:$4 sm:$0xff]  }
  0x2f   : > { %v1644_v26 = vld [vmem:[%s1902_s11 + $0x144] ss:$8 sps:$4 sm:$0xff]   ;;  %v1647_v28 = vld [vmem:[%s1902_s11 + $0x140] ss:$8 sps:$4 sm:$0xff]   ;;  %v1650_v30 = vld [vmem:[%s1902_s11 + $0x134] ss:$8 sps:$4 sm:$0xff]  }
  0x30   : > { %1052 = vmatpush1.bf16.msra.mxu0 %v1634_v19  ;;  %v1652_v31 = vld [vmem:[%s1902_s11 + $0x30] ss:$8 sps:$4 sm:$0xff]   ;;  %v1654_v33 = vld [vmem:[%s1902_s11 + $0x24] ss:$8 sps:$4 sm:$0xff]   ;;  %v1658_v35 = vld [vmem:[%s1902_s11 + $0x20] ss:$8 sps:$4 sm:$0xff]  }
  0x31   : > { %1105 = vmatpush1.bf16.msra.mxu1 %v1635_v20  ;;  %1053 = vmatprep.subr.bf16.mxu0 %v1636_v21  ;;  %v1653_v32 = vld [vmem:[%s1902_s11 + $0x130] ss:$8 sps:$4 sm:$0xff]   ;;  %v1656_v34 = vld [vmem:[%s1902_s11 + $0x124] ss:$8 sps:$4 sm:$0xff]   ;;  %v1659_v36 = vld [vmem:[%s1902_s11 + $0x120] ss:$8 sps:$4 sm:$0xff]  }
  0x32   : > { %1106 = vmatprep.subr.bf16.mxu1 %v1638_v22  ;;  %v1660_v37 = vld [vmem:[%s1902_s11 + $0x14] ss:$8 sps:$4 sm:$0xff]   ;;  %v1664_v39 = vld [vmem:[%s1902_s11 + $0x10] ss:$8 sps:$4 sm:$0xff]   ;;  %v1666_v41 = vld [vmem:[%s1902_s11 + $0x4] ss:$8 sps:$4 sm:$0xff]  }
  0x33   : > { %v1662_v38 = vld [vmem:[%s1902_s11 + $0x114] ss:$8 sps:$4 sm:$0xff]   ;;  %v1665_v40 = vld [vmem:[%s1902_s11 + $0x110] ss:$8 sps:$4 sm:$0xff]   ;;  %v1668_v42 = vld [vmem:[%s1902_s11 + $0x104] ss:$8 sps:$4 sm:$0xff]  }
  0x34   : > { %1054 = vmatpush1.bf16.msra.mxu0 %v1640_v23  ;;  %v1670_v43 = vld [vmem:[%s1902_s11] ss:$8 sps:$4 sm:$0xff]   ;;  %v1672_v45 = vld [vmem:[%s1902_s11 + $0xf4] ss:$8 sps:$4 sm:$0xff]   ;;  %v1676_v47 = vld [vmem:[%s1902_s11 + $0xf0] ss:$8 sps:$4 sm:$0xff]  }
  0x35   : > { %1107 = vmatpush1.bf16.msra.mxu1 %v1641_v24  ;;  %1055 = vmatprep.subr.bf16.mxu0 %v1642_v25  ;;  %v1671_v44 = vld [vmem:[%s1902_s11 + $0x100] ss:$8 sps:$4 sm:$0xff]   ;;  %v1674_v46 = vld [vmem:[%s1902_s11 + $0x1f4] ss:$8 sps:$4 sm:$0xff]   ;;  %v1677_v48 = vld [vmem:[%s1902_s11 + $0x1f0] ss:$8 sps:$4 sm:$0xff]  }
  0x36   : > { %1108 = vmatprep.subr.bf16.mxu1 %v1644_v26  ;;  %v1678_v49 = vld [vmem:[%s1902_s11 + $0xe4] ss:$8 sps:$4 sm:$0xff]   ;;  %v1682_v51 = vld [vmem:[%s1902_s11 + $0xe0] ss:$8 sps:$4 sm:$0xff]   ;;  %v1684_v53 = vld [vmem:[%s1902_s11 + $0xd4] ss:$8 sps:$4 sm:$0xff]  }
  0x37   : > { %v1680_v50 = vld [vmem:[%s1902_s11 + $0x1e4] ss:$8 sps:$4 sm:$0xff]   ;;  %v1683_v52 = vld [vmem:[%s1902_s11 + $0x1e0] ss:$8 sps:$4 sm:$0xff]   ;;  %v1686_v54 = vld [vmem:[%s1902_s11 + $0x1d4] ss:$8 sps:$4 sm:$0xff]  }
  0x38   : > { %1056 = vmatpush1.bf16.msra.mxu0 %v1646_v27  ;;  %v1688_v55 = vld [vmem:[%s1902_s11 + $0xd0] ss:$8 sps:$4 sm:$0xff]   ;;  %v1690_v57 = vld [vmem:[%s1902_s11 + $0xc4] ss:$8 sps:$4 sm:$0xff]   ;;  %v1694_v59 = vld [vmem:[%s1902_s11 + $0xc0] ss:$8 sps:$4 sm:$0xff]  }
  0x39   : > { %1109 = vmatpush1.bf16.msra.mxu1 %v1647_v28  ;;  %1057 = vmatprep.subr.bf16.mxu0 %v1648_v29  ;;  %v1689_v56 = vld [vmem:[%s1902_s11 + $0x1d0] ss:$8 sps:$4 sm:$0xff]   ;;  %v1692_v58 = vld [vmem:[%s1902_s11 + $0x1c4] ss:$8 sps:$4 sm:$0xff]   ;;  %v1695_v60 = vld [vmem:[%s1902_s11 + $0x1c0] ss:$8 sps:$4 sm:$0xff]  }
  0x3a   : > { %1110 = vmatprep.subr.bf16.mxu1 %v1650_v30  ;;  %v1696_v61 = vld [vmem:[%s1902_s11 + $0xb4] ss:$8 sps:$4 sm:$0xff]   ;;  %v1725_v0 = vld [vmem:[%s1904_s12 + $0xc] ss:$24 sps:$4 sm:$0xff]   ;;  %v1700_v1 = vld [vmem:[%s1902_s11 + $0xb0] ss:$8 sps:$4 sm:$0xff]  }
  0x3b   : > { %v1722_v62 = vld [vmem:[%s1904_s12 + $0x4] ss:$24 sps:$4 sm:$0xff]   ;;  %v1701_v2 = vld [vmem:[%s1902_s11 + $0x1b0] ss:$8 sps:$4 sm:$0xff]   ;;  %1134 = vmatprep.mubr.bf16.mxu1 %v1725_v0  ;;  %v1706_v5 = vld [vmem:[%s1902_s11 + $0xa0] ss:$8 sps:$4 sm:$0xff]  }
  0x3c   : > { %1058 = vmatpush1.bf16.msra.mxu0 %v1652_v31  ;;  %v1698_v63 = vld [vmem:[%s1902_s11 + $0x1b4] ss:$8 sps:$4 sm:$0xff]   ;;  %1081 = vmatprep.mubr.bf16.mxu0 %v1722_v62  ;;  %v1702_v3 = vld [vmem:[%s1902_s11 + $0xa4] ss:$8 sps:$4 sm:$0xff]   ;;  %v1707_v6 = vld [vmem:[%s1902_s11 + $0x1a0] ss:$8 sps:$4 sm:$0xff]  }
  0x3d   : > { %1111 = vmatpush1.bf16.msra.mxu1 %v1653_v32  ;;  %1059 = vmatprep.subr.bf16.mxu0 %v1654_v33  ;;  %v1704_v4 = vld [vmem:[%s1902_s11 + $0x1a4] ss:$8 sps:$4 sm:$0xff]   ;;  %v1708_v7 = vld [vmem:[%s1902_s11 + $0x94] ss:$8 sps:$4 sm:$0xff]   ;;  %v1712_v9 = vld [vmem:[%s1902_s11 + $0x90] ss:$8 sps:$4 sm:$0xff]  }
  0x3e   : > { %1112 = vmatprep.subr.bf16.mxu1 %v1656_v34  ;;  %v1710_v8 = vld [vmem:[%s1902_s11 + $0x194] ss:$8 sps:$4 sm:$0xff]   ;;  %v1713_v10 = vld [vmem:[%s1902_s11 + $0x190] ss:$8 sps:$4 sm:$0xff]   ;;  %v1714_v11 = vld [vmem:[%s1902_s11 + $0x84] ss:$8 sps:$4 sm:$0xff]  }
  0x3f   : > { %v1716_v12 = vld [vmem:[%s1902_s11 + $0x184] ss:$8 sps:$4 sm:$0xff]   ;;  %v1718_v13 = vld [vmem:[%s1902_s11 + $0x80] ss:$8 sps:$4 sm:$0xff]   ;;  %v1728_v15 = vld [vmem:[%s1902_s11 + $0x274] ss:$8 sps:$4 sm:$0xff]  }
  0x40   : > { %1060 = vmatpush1.bf16.msra.mxu0 %v1658_v35  ;;  %v1719_v14 = vld [vmem:[%s1902_s11 + $0x180] ss:$8 sps:$4 sm:$0xff]   ;;  %v1726_v18 = vld [vmem:[%s1902_s11 + $0x270] ss:$8 sps:$4 sm:$0xff]   ;;  %v1731_v19 = vld [vmem:[%s1902_s11 + $0x264] ss:$8 sps:$4 sm:$0xff]  }
  0x41   : > { %1113 = vmatpush1.bf16.msra.mxu1 %v1659_v36  ;;  %1061 = vmatprep.subr.bf16.mxu0 %v1660_v37  ;;  %v1720_v16 = vld [vmem:[%s1904_s12] ss:$24 sps:$4 sm:$0xff]   ;;  %v1765_v20 = vld [vmem:[%s1904_s12 + $0x34] ss:$24 sps:$4 sm:$0xff]   ;;  %v1769_v24 = vld [vmem:[%s1904_s12 + $0x30] ss:$24 sps:$4 sm:$0xff]  }
  0x42   : > { %1114 = vmatprep.subr.bf16.mxu1 %v1662_v38  ;;  %v1723_v17 = vld [vmem:[%s1904_s12 + $0x8] ss:$24 sps:$4 sm:$0xff]   ;;  %v1767_v21 = vld [vmem:[%s1904_s12 + $0x3c] ss:$24 sps:$4 sm:$0xff]   ;;  %v1770_v25 = vld [vmem:[%s1904_s12 + $0x38] ss:$24 sps:$4 sm:$0xff]  }
  0x43   : > { %v1729_v22 = vld [vmem:[%s1902_s11 + $0x260] ss:$8 sps:$4 sm:$0xff]   ;;  %v1734_v23 = vld [vmem:[%s1902_s11 + $0x254] ss:$8 sps:$4 sm:$0xff]   ;;  %v1732_v26 = vld [vmem:[%s1902_s11 + $0x250] ss:$8 sps:$4 sm:$0xff]  }
  0x44   : > { %1062 = vmatpush1.bf16.msra.mxu0 %v1664_v39  ;;  %v1737_v27 = vld [vmem:[%s1902_s11 + $0x244] ss:$8 sps:$4 sm:$0xff]   ;;  %v1735_v30 = vld [vmem:[%s1902_s11 + $0x240] ss:$8 sps:$4 sm:$0xff]   ;;  %v1740_v31 = vld [vmem:[%s1902_s11 + $0x234] ss:$8 sps:$4 sm:$0xff]  }
  0x45   : > { %1115 = vmatpush1.bf16.msra.mxu1 %v1665_v40  ;;  %1063 = vmatprep.subr.bf16.mxu0 %v1666_v41  ;;  %v1782_v28 = vld [vmem:[%s1904_s12 + $0x14] ss:$24 sps:$4 sm:$0xff]   ;;  %v1785_v29 = vld [vmem:[%s1904_s12 + $0x44] ss:$24 sps:$4 sm:$0xff]   ;;  %v1738_v32 = vld [vmem:[%s1902_s11 + $0x230] ss:$8 sps:$4 sm:$0xff]  }
  0x46   : > { %1116 = vmatprep.subr.bf16.mxu1 %v1668_v42  ;;  %v1743_v33 = vld [vmem:[%s1902_s11 + $0x224] ss:$8 sps:$4 sm:$0xff]   ;;  %v1741_v34 = vld [vmem:[%s1902_s11 + $0x220] ss:$8 sps:$4 sm:$0xff]   ;;  %v1746_v35 = vld [vmem:[%s1902_s11 + $0x214] ss:$8 sps:$4 sm:$0xff]  }
  0x47   : > { %v1744_v36 = vld [vmem:[%s1902_s11 + $0x210] ss:$8 sps:$4 sm:$0xff]   ;;  %v1749_v37 = vld [vmem:[%s1902_s11 + $0x204] ss:$8 sps:$4 sm:$0xff]   ;;  %v1747_v38 = vld [vmem:[%s1902_s11 + $0x200] ss:$8 sps:$4 sm:$0xff]  }
  0x48   : > { %1064 = vmatpush1.bf16.msra.mxu0 %v1670_v43  ;;  %v1752_v39 = vld [vmem:[%s1902_s11 + $0x2f4] ss:$8 sps:$4 sm:$0xff]   ;;  %v1750_v40 = vld [vmem:[%s1902_s11 + $0x2f0] ss:$8 sps:$4 sm:$0xff]   ;;  %v1755_v41 = vld [vmem:[%s1902_s11 + $0x2e4] ss:$8 sps:$4 sm:$0xff]  }
  0x49   : > { %1117 = vmatpush1.bf16.msra.mxu1 %v1671_v44  ;;  %1065 = vmatprep.subr.bf16.mxu0 %v1672_v45  ;;  %v1753_v42 = vld [vmem:[%s1902_s11 + $0x2e0] ss:$8 sps:$4 sm:$0xff]   ;;  %v1758_v43 = vld [vmem:[%s1902_s11 + $0x2d4] ss:$8 sps:$4 sm:$0xff]   ;;  %v1756_v44 = vld [vmem:[%s1902_s11 + $0x2d0] ss:$8 sps:$4 sm:$0xff]  }
  0x4a   : > { %1118 = vmatprep.subr.bf16.mxu1 %v1674_v46  ;;  %v1761_v45 = vld [vmem:[%s1902_s11 + $0x2c4] ss:$8 sps:$4 sm:$0xff]   ;;  %v1759_v46 = vld [vmem:[%s1902_s11 + $0x2c0] ss:$8 sps:$4 sm:$0xff]   ;;  %p1542_p11 = scmp.ne.s32.totalorder %s1816_s17, 2 }
  0x4c   : > { %1066 = vmatpush2.bf16.msra.mxu0 %v1676_v47  ;;  %v1764_v47 = vld [vmem:[%s1902_s11 + $0x2b4] ss:$8 sps:$4 sm:$0xff]  }
  0x4d   : > { %1119 = vmatpush2.bf16.msra.mxu1 %v1677_v48  ;;  %1067 = vmatprep.subr.bf16.mxu0 %v1678_v49  ;;  %v1762_v48 = vld [vmem:[%s1902_s11 + $0x2b0] ss:$8 sps:$4 sm:$0xff]   ;;  %v1773_v49 = vld [vmem:[%s1902_s11 + $0x2a4] ss:$8 sps:$4 sm:$0xff]  }
  0x4e   : > { %1120 = vmatprep.subr.bf16.mxu1 %v1680_v50  ;;  %v1771_v50 = vld [vmem:[%s1902_s11 + $0x2a0] ss:$8 sps:$4 sm:$0xff]  }
  0x50   : > { %1068 = vmatpush2.bf16.msra.mxu0 %v1682_v51  ;;  %v1776_v51 = vld [vmem:[%s1902_s11 + $0x294] ss:$8 sps:$4 sm:$0xff]  }
  0x51   : > { %1121 = vmatpush2.bf16.msra.mxu1 %v1683_v52  ;;  %1069 = vmatprep.subr.bf16.mxu0 %v1684_v53  ;;  %v1774_v52 = vld [vmem:[%s1902_s11 + $0x290] ss:$8 sps:$4 sm:$0xff]   ;;  %v1779_v53 = vld [vmem:[%s1902_s11 + $0x284] ss:$8 sps:$4 sm:$0xff]  }
  0x52   : > { %1122 = vmatprep.subr.bf16.mxu1 %v1686_v54  ;;  %v1777_v54 = vld [vmem:[%s1902_s11 + $0x280] ss:$8 sps:$4 sm:$0xff]  }
  0x54   : > { %1070 = vmatpush2.bf16.msra.mxu0 %v1688_v55  ;;  %v1780_v55 = vld [vmem:[%s1904_s12 + $0x10] ss:$24 sps:$4 sm:$0xff]  }
  0x55   : > { %1123 = vmatpush2.bf16.msra.mxu1 %v1689_v56  ;;  %1071 = vmatprep.subr.bf16.mxu0 %v1690_v57  ;;  %v1783_v56 = vld [vmem:[%s1904_s12 + $0x40] ss:$24 sps:$4 sm:$0xff]  }
  0x56   : > { %1124 = vmatprep.subr.bf16.mxu1 %v1692_v58 }
  0x58   : > { %1072 = vmatpush2.bf16.msra.mxu0 %v1694_v59 }
  0x59   : > { %1125 = vmatpush2.bf16.msra.mxu1 %v1695_v60  ;;  %1073 = vmatprep.subr.bf16.mxu0 %v1696_v61 }
  0x5a   : > { %1126 = vmatprep.subr.bf16.mxu1 %v1698_v63 }
  0x5c   : > { %1074 = vmatpush2.bf16.msra.mxu0 %v1700_v1 }
  0x5d   : > { %1127 = vmatpush2.bf16.msra.mxu1 %v1701_v2  ;;  %1075 = vmatprep.subr.bf16.mxu0 %v1702_v3 }
  0x5e   : > { %1128 = vmatprep.subr.bf16.mxu1 %v1704_v4 }
  0x60   : > { %1076 = vmatpush2.bf16.msra.mxu0 %v1706_v5 }
  0x61   : > { %1129 = vmatpush2.bf16.msra.mxu1 %v1707_v6  ;;  %1077 = vmatprep.subr.bf16.mxu0 %v1708_v7 }
  0x62   : > { %1130 = vmatprep.subr.bf16.mxu1 %v1710_v8 }
  0x64   : > { %1078 = vmatpush2.bf16.msra.mxu0 %v1712_v9 }
  0x65   : > { %1131 = vmatpush2.bf16.msra.mxu1 %v1713_v10  ;;  %1079 = vmatprep.subr.bf16.mxu0 %v1714_v11  ;;  %v393_v11 = vld [vmem:[#allocation2 + $0x30] sm:$0xff] }
  0x66   : > { %1132 = vmatprep.subr.bf16.mxu1 %v1716_v12 }
  0x68   : > { %1080 = vmatpush2.bf16.msra.mxu0 %v1718_v13  ;;  %v397_v13 = vld [vmem:[#allocation2 + $0x8] sm:$0xff] }
  0x69   : > { %1133 = vmatpush2.bf16.msra.mxu1 %v1719_v14  ;;  %1155 = vmatprep.subr.bf16.mxu0 %v1728_v15 }
  0x6a   : > { %1549 = vmatprep.subr.bf16.mxu1 %v1728_v15 }
  0x6b   : > { %1082 = vmatmul.mubr.bf16.vlgmr.msra.gmra.mxu0 %v1720_v16 }
  0x6c   : > { %1135 = vmatmul.mubr.bf16.vlgmr.msra.gmra.mxu1 %v1723_v17  ;;  %1156 = vmatpush1.bf16.msra.mxu0 %v1726_v18 }
  0x6d   : > { %1565 = vmatpush1.bf16.msra.mxu1 %v1726_v18  ;;  %1157 = vmatprep.subr.bf16.mxu0 %v1731_v19 }
  0x6e   : > { %1550 = vmatprep.subr.bf16.mxu1 %v1731_v19  ;;  %1091 = vmatprep.mubr.bf16.mxu0 %v1765_v20 }
  0x6f   : > { %1144 = vmatprep.mubr.bf16.mxu1 %v1767_v21  ;;  %v394_v21 = vld [vmem:[#allocation2] sm:$0xff] }
  0x70   : > { %1158 = vmatpush1.bf16.msra.mxu0 %v1729_v22 }
  0x71   : > { %1566 = vmatpush1.bf16.msra.mxu1 %v1729_v22  ;;  %1159 = vmatprep.subr.bf16.mxu0 %v1734_v23 }
  0x72   : > { %1551 = vmatprep.subr.bf16.mxu1 %v1734_v23  ;;  %v398_v23 = vld [vmem:[#allocation2 + $0x20] sm:$0xff] }
  0x73   : > { %1092 = vmatmul.mubr.bf16.gmra.mxu0 %v1769_v24 }
  0x74   : > { %1145 = vmatmul.mubr.bf16.gmra.mxu1 %v1770_v25  ;;  %1160 = vmatpush1.bf16.msra.mxu0 %v1732_v26 }
  0x75   : > { %1567 = vmatpush1.bf16.msra.mxu1 %v1732_v26  ;;  %1161 = vmatprep.subr.bf16.mxu0 %v1737_v27 }
  0x76   : > { %1552 = vmatprep.subr.bf16.mxu1 %v1737_v27  ;;  %1187 = vmatprep.mubr.bf16.mxu0 %v1782_v28 }
  0x77   : > { %1197 = vmatprep.mubr.bf16.mxu1 %v1785_v29 }
  0x78   : > { %1162 = vmatpush1.bf16.msra.mxu0 %v1735_v30 }
  0x79   : > { %1568 = vmatpush1.bf16.msra.mxu1 %v1735_v30  ;;  %1163 = vmatprep.subr.bf16.mxu0 %v1740_v31 }
  0x7a   : > { %1553 = vmatprep.subr.bf16.mxu1 %v1740_v31  ;;  %v395_v31 = vld [vmem:[#allocation2 + $0x18] sm:$0xff] }
  0x7c   : > { %1164 = vmatpush1.bf16.msra.mxu0 %v1738_v32 }
  0x7d   : > { %1569 = vmatpush1.bf16.msra.mxu1 %v1738_v32  ;;  %1165 = vmatprep.subr.bf16.mxu0 %v1743_v33 }
  0x7e   : > { %1554 = vmatprep.subr.bf16.mxu1 %v1743_v33  ;;  %v399_v33 = vld [vmem:[#allocation2 + $0x28] sm:$0xff] }
  0x80   : > { %1166 = vmatpush1.bf16.msra.mxu0 %v1741_v34 }
  0x81   : > { %1570 = vmatpush1.bf16.msra.mxu1 %v1741_v34  ;;  %1167 = vmatprep.subr.bf16.mxu0 %v1746_v35 }
  0x82   : > { %1555 = vmatprep.subr.bf16.mxu1 %v1746_v35 }
  0x84   : > { %1168 = vmatpush1.bf16.msra.mxu0 %v1744_v36 }
  0x85   : > { %1571 = vmatpush1.bf16.msra.mxu1 %v1744_v36  ;;  %1169 = vmatprep.subr.bf16.mxu0 %v1749_v37 }
  0x86   : > { %1556 = vmatprep.subr.bf16.mxu1 %v1749_v37 }
  0x88   : > { %1170 = vmatpush1.bf16.msra.mxu0 %v1747_v38 }
  0x89   : > { %1572 = vmatpush1.bf16.msra.mxu1 %v1747_v38  ;;  %1171 = vmatprep.subr.bf16.mxu0 %v1752_v39 }
  0x8a   : > { %1557 = vmatprep.subr.bf16.mxu1 %v1752_v39  ;;  %v396_v39 = vld [vmem:[#allocation2 + $0x10] sm:$0xff] }
  0x8c   : > { %1172 = vmatpush2.bf16.msra.mxu0 %v1750_v40 }
  0x8d   : > { %1573 = vmatpush2.bf16.msra.mxu1 %v1750_v40  ;;  %1173 = vmatprep.subr.bf16.mxu0 %v1755_v41 }
  0x8e   : > { %1558 = vmatprep.subr.bf16.mxu1 %v1755_v41  ;;  %v400_v41 = vld [vmem:[#allocation2 + $0x38] sm:$0xff] }
  0x90   : > { %1174 = vmatpush2.bf16.msra.mxu0 %v1753_v42 }
  0x91   : > { %1574 = vmatpush2.bf16.msra.mxu1 %v1753_v42  ;;  %1175 = vmatprep.subr.bf16.mxu0 %v1758_v43 }
  0x92   : > { %1559 = vmatprep.subr.bf16.mxu1 %v1758_v43 }
  0x94   : > { %1176 = vmatpush2.bf16.msra.mxu0 %v1756_v44 }
  0x95   : > { %1575 = vmatpush2.bf16.msra.mxu1 %v1756_v44  ;;  %1177 = vmatprep.subr.bf16.mxu0 %v1761_v45 }
  0x96   : > { %1560 = vmatprep.subr.bf16.mxu1 %v1761_v45 }
  0x98   : > { %1178 = vmatpush2.bf16.msra.mxu0 %v1759_v46 }
  0x99   : > { %1576 = vmatpush2.bf16.msra.mxu1 %v1759_v46  ;;  %1179 = vmatprep.subr.bf16.mxu0 %v1764_v47 }
  0x9a   : > { %1561 = vmatprep.subr.bf16.mxu1 %v1764_v47 }
  0x9c   : > { %1180 = vmatpush2.bf16.msra.mxu0 %v1762_v48 }
  0x9d   : > { %1577 = vmatpush2.bf16.msra.mxu1 %v1762_v48  ;;  %1181 = vmatprep.subr.bf16.mxu0 %v1773_v49 }
  0x9e   : > { %1562 = vmatprep.subr.bf16.mxu1 %v1773_v49 }
  0xa0   : > { %1182 = vmatpush2.bf16.msra.mxu0 %v1771_v50 }
  0xa1   : > { %1578 = vmatpush2.bf16.msra.mxu1 %v1771_v50  ;;  %1183 = vmatprep.subr.bf16.mxu0 %v1776_v51 }
  0xa2   : > { %1563 = vmatprep.subr.bf16.mxu1 %v1776_v51 }
  0xa4   : > { %1184 = vmatpush2.bf16.msra.mxu0 %v1774_v52 }
  0xa5   : > { %1579 = vmatpush2.bf16.msra.mxu1 %v1774_v52  ;;  %1185 = vmatprep.subr.bf16.mxu0 %v1779_v53 }
  0xa6   : > { %1564 = vmatprep.subr.bf16.mxu1 %v1779_v53 }
  0xa8   : > { %1186 = vmatpush2.bf16.msra.mxu0 %v1777_v54 }
  0xa9   : > { %1580 = vmatpush2.bf16.msra.mxu1 %v1777_v54 }
  0xab   : > { %1188 = vmatmul.mubr.bf16.vlgmr.msra.gmra.mxu0 %v1780_v55 }
  0xac   : > { %1198 = vmatmul.mubr.bf16.vlgmr.msra.gmra.mxu1 %v1783_v56 }
 0x12b   : > { %v1083_v57 = vpop.f32.mrf.mxu0 }
 0x12c   : > { %v1136_v58 = vpop.f32.mrf.mxu1 }
 0x12d   : > { %v1085_v59 = vpop.f32.mrf.mxu0  ;;  %v1137_v9 = vadd.f32 %v1136_v58, %v1083_v57 }
 0x12e   : > { %v1138_v60 = vpop.f32.mrf.mxu1 }
 0x12f   : > { %v1087_v61 = vpop.f32.mrf.mxu0  ;;  %v1139_v15 = vadd.f32 %v1138_v60, %v1085_v59 }
 0x130   : > { %v1140_v62 = vpop.f32.mrf.mxu1 }
 0x131   : > { %v1089_v63 = vpop.f32.mrf.mxu0  ;;  %v1141_v19 = vadd.f32 %v1140_v62, %v1087_v61 }
 0x132   : > { %v1142_v0 = vpop.f32.mrf.mxu1 }
 0x133   : > { %v1093_v1 = vpop.f32.mrf.mxu0  ;;  %v1143_v29 = vadd.f32 %v1142_v0, %v1089_v63 }
 0x134   : > { %v1146_v2 = vpop.f32.mrf.mxu1 }
 0x135   : > { %v1095_v3 = vpop.f32.mrf.mxu0  ;;  %v1147_v10 = vadd.f32 %v1146_v2, %v1093_v1 }
 0x136   : > { %v1148_v4 = vpop.f32.mrf.mxu1 }
 0x137   : > { %v1097_v5 = vpop.f32.mrf.mxu0  ;;  %v1149_v16 = vadd.f32 %v1148_v4, %v1095_v3 }
 0x138   : > { %v1150_v6 = vpop.f32.mrf.mxu1 }
 0x139   : > { %v1099_v7 = vpop.f32.mrf.mxu0  ;;  %v1151_v20 = vadd.f32 %v1150_v6, %v1097_v5 }
 0x13a   : > { %v1152_v8 = vpop.f32.mrf.mxu1 }
 0x13b   : > { %v1153_v30 = vadd.f32 %v1152_v8, %v1099_v7 }
 0x16b   : > { %v1189_v12 = vpop.f32.mrf.mxu0 }
 0x16c   : > { %v1199_v14 = vpop.f32.mrf.mxu1  ;;  %v1190_v17 = vadd.f32 %v1189_v12, %v1137_v9 }
 0x16d   : > { %v1200_v18 = vadd.f32 %v1199_v14, %v1147_v10  ;;  %v1191_v22 = vpop.f32.mrf.mxu0 }
 0x16e   : > { %v1201_v24 = vpop.f32.mrf.mxu1  ;;  %v1208_v25 = vadd.f32 %v1190_v17, %v393_v11  ;;  %v1192_v27 = vadd.f32 %v1191_v22, %v1139_v15 }
 0x16f   : > { %v1212_v26 = vadd.f32 %v1200_v18, %v397_v13  ;;  %v1202_v28 = vadd.f32 %v1201_v24, %v1149_v16  ;;  %v1193_v32 = vpop.f32.mrf.mxu0 }
 0x170   : > { %v1203_v34 = vpop.f32.mrf.mxu1  ;;  %1216 = vst [vmem:[#allocation2 + $0x30] sm:$0xff] %v1208_v25  ;;  %v1209_v35 = vadd.f32 %v1192_v27, %v394_v21  ;;  %v1194_v37 = vadd.f32 %v1193_v32, %v1141_v19 }
 0x171   : > { %1220 = vst [vmem:[#allocation2 + $0x8] sm:$0xff] %v1212_v26  ;;  %v1213_v36 = vadd.f32 %v1202_v28, %v398_v23  ;;  %v1204_v38 = vadd.f32 %v1203_v34, %v1151_v20  ;;  %v1195_v40 = vpop.f32.mrf.mxu0 }
 0x172   : > { %v1205_v42 = vpop.f32.mrf.mxu1  ;;  %1217 = vst [vmem:[#allocation2] sm:$0xff] %v1209_v35  ;;  %v1210_v43 = vadd.f32 %v1194_v37, %v395_v31  ;;  %v1196_v45 = vadd.f32 %v1195_v40, %v1143_v29 }
 0x173   : > { %1221 = vst [vmem:[#allocation2 + $0x20] sm:$0xff] %v1213_v36  ;;  %v1214_v44 = vadd.f32 %v1204_v38, %v399_v33  ;;  %v1206_v46 = vadd.f32 %v1205_v42, %v1153_v30  ;;  %1227 = sbr.rel (%p1542_p11) target bundleno = 392 (0x188), region = 67 }
 0x174   : > { %1218 = vst [vmem:[#allocation2 + $0x18] sm:$0xff] %v1210_v43  ;;  %v1211_v47 = vadd.f32 %v1196_v45, %v396_v39 }
 0x175   : > { %1222 = vst [vmem:[#allocation2 + $0x28] sm:$0xff] %v1214_v44  ;;  %v1215_v48 = vadd.f32 %v1206_v46, %v400_v41 }
 0x176   : > { %1219 = vst [vmem:[#allocation2 + $0x10] sm:$0xff] %v1211_v47 }
 0x177   : > { %1223 = vst [vmem:[#allocation2 + $0x38] sm:$0xff] %v1215_v48 }
 0x178   : > { %v1238_v49 = vlaneseq  ;;  %v1236_v51 = vld [vmem:[%s2084_s2] sm:$0x3]  ;;  %v1228_v52 = vld [vmem:[#allocation2 + $0x30] sm:$0xff]  ;;  %v1257_v57 = vld [vmem:[%s2085_s3 + $0x8] sm:$0xff] }
 0x179   : > { %v1229_v54 = vld [vmem:[#allocation2] sm:$0xff]  ;;  %v1232_v60 = vld [vmem:[#allocation2 + $0x8] sm:$0xff]  ;;  %v1258_v2 = vld [vmem:[%s2085_s3 + $0x10] sm:$0xff] }
 0x17a   : > { %v1239_v50 = vshrl.u32 %v1238_v49, 7  ;;  %v1256_v56 = vld [vmem:[%s2085_s3] sm:$0xff]  ;;  %v1259_v3 = vld [vmem:[%s2085_s3 + $0x18] sm:$0xff]  ;;  %v1261_v9 = vld [vmem:[%s2085_s3 + $0x28] sm:$0xff] }
 0x17b   : > { %v1230_v58 = vld [vmem:[#allocation2 + $0x18] sm:$0xff]  ;;  %v1233_v63 = vld [vmem:[#allocation2 + $0x20] sm:$0xff]  ;;  %v1262_v10 = vld [vmem:[%s2085_s3 + $0x30] sm:$0xff] }
 0x17c   : > { %v1240_v53 = vsub.s32 0, %v1239_v50  ;;  %v1244_v55 = vsub.s32 1, %v1239_v50  ;;  %v1234_v0 = vld [vmem:[#allocation2 + $0x28] sm:$0xff]  ;;  %v1260_v4 = vld [vmem:[%s2085_s3 + $0x20] sm:$0xff]  ;;  %v1263_v11 = vld [vmem:[%s2085_s3 + $0x38] sm:$0xff] }
 0x17d   : > { %v1231_v59 = vld [vmem:[#allocation2 + $0x10] sm:$0xff] }
 0x17e   : > { %v1241_v61 = vrot.slane %v1236_v51, %v1240_v53  ;;  %v1245_v62 = vrot.slane %v1236_v51, %v1244_v55  ;;  %v1235_v1 = vld [vmem:[#allocation2 + $0x38] sm:$0xff] }
 0x180   : > { %v1248_v5 = vadd.f32 %v1241_v61, %v1228_v52  ;;  %v1249_v6 = vadd.f32 %v1245_v62, %v1229_v54  ;;  %v1250_v7 = vadd.f32 %v1241_v61, %v1230_v58  ;;  %v1251_v8 = vadd.f32 %v1245_v62, %v1231_v59 }
 0x181   : > { %v1252_v12 = vadd.f32 %v1241_v61, %v1232_v60  ;;  %v1253_v13 = vadd.f32 %v1245_v62, %v1233_v63  ;;  %v1254_v14 = vadd.f32 %v1241_v61, %v1234_v0  ;;  %v1255_v15 = vadd.f32 %v1245_v62, %v1235_v1 }
 0x182   : > { %v1264_v16 = vadd.f32 %v1256_v56, %v1248_v5  ;;  %v1265_v17 = vadd.f32 %v1257_v57, %v1249_v6  ;;  %v1266_v18 = vadd.f32 %v1258_v2, %v1250_v7  ;;  %v1267_v19 = vadd.f32 %v1259_v3, %v1251_v8 }
 0x183   : > { %v1268_v20 = vadd.f32 %v1260_v4, %v1252_v12  ;;  %v1269_v21 = vadd.f32 %v1261_v9, %v1253_v13  ;;  %v1270_v22 = vadd.f32 %v1262_v10, %v1254_v14  ;;  %v1271_v23 = vadd.f32 %v1263_v11, %v1255_v15 }
 0x184   : > { %1272 = vst [vmem:[%s2086_s4] sm:$0xff] %v1264_v16  ;;  %1273 = vst [vmem:[%s2086_s4 + $0x8] sm:$0xff] %v1265_v17 }
 0x185   : > { %1274 = vst [vmem:[%s2086_s4 + $0x10] sm:$0xff] %v1266_v18  ;;  %1275 = vst [vmem:[%s2086_s4 + $0x18] sm:$0xff] %v1267_v19 }
 0x186   : > { %1276 = vst [vmem:[%s2086_s4 + $0x20] sm:$0xff] %v1268_v20  ;;  %1277 = vst [vmem:[%s2086_s4 + $0x28] sm:$0xff] %v1269_v21 }
 0x187   : > { %1278 = vst [vmem:[%s2086_s4 + $0x30] sm:$0xff] %v1270_v22  ;;  %1279 = vst [vmem:[%s2086_s4 + $0x38] sm:$0xff] %v1271_v23 }
 0x188 PF: > { %s14_s19 = sadd.s32 1, %s1824_s19   ;;  %s2087_s15 = smov %s1812_s16 }
 0x189   : > { %p11_p12 = scmp.ge.s32.totalorder %s14_s19, 5   ;;  %s2088_s16 = smov %s1887_s23 }
 0x18a   : > { %s2089_s17 = smov %s1820_s18  ;;  %s2090_s18 = smov %s2092_s20 }
 0x18b   :  { %13 = sbr.rel (!%p11_p12) target bundleno = 3 (0x3), region = 111 }

</bundles_post_ra>
